<compile_context>
chip_gen: v5e
topology: v5e:2x2
jax: 0.10.0
libtpu: 0.0.40
codegen_flags: <defaults>
</compile_context>

<pallas_src>
import math
from functools import partial

import numpy as np
import jax
import jax.numpy as jnp
from jax.experimental import pallas as pl
from jax.experimental.pallas import tpu as pltpu

# ---------------------------------------------------------------------------
# small config (original: img=224, patch=16 -> 196 patches, dModel=384,
# depth=12, heads=12, ff=1024, numClasses=1000).  Scaled down but structurally
# identical; dModel == pre_model embed_dim (required by the hard-coded reshape
# `x.reshape(B, -1, P, dModel)` in the original forward).
# ---------------------------------------------------------------------------
IMG = 32
PATCH = 16
FRAMES = 4
TUBELET = 2
IN_CHANS = 3
D_MODEL = 128          # stands in for 384
NUM_HEADS = 4
HEAD_DIM = D_MODEL // NUM_HEADS
NUM_CLASSES = 40
DEPTH_ENC = 2          # pre_model blocks
DEPTH_DEC = 2          # TransformerDecoder layers
DIM_FF = 256           # stands in for 1024
MLP_RATIO = 4
PE_MAX_LEN = 3000
P_SPATIAL = (IMG // PATCH) * (IMG // PATCH)   # stands in for 196
EPS = 1e-5
C_PAD = max(128, ((NUM_CLASSES + 127) // 128) * 128)   # lane-dense class padding


def _vmem_limit_bytes():
    # ~3/4 of physical VMEM: ~48 MiB on v7x (64 MiB), 96 MiB on v5e/v6e (128 MiB).
    try:
        cap = int(pltpu.get_tpu_info().vmem_capacity_bytes)
        return int(min((cap * 3) // 4, 96 * 1024 * 1024))
    except Exception:
        return 32 * 1024 * 1024


VMEM_LIMIT = _vmem_limit_bytes()


def _cp(*dims):
    return pltpu.CompilerParams(dimension_semantics=tuple(dims),
                                vmem_limit_bytes=VMEM_LIMIT)


# ---------------------------------------------------------------------------
# in-kernel helpers (traced inside Pallas kernels; f32 VPU math, bf16 MXU in)
# ---------------------------------------------------------------------------
def _ln(v, g, b):
    v = v.astype(jnp.float32)
    mu = jnp.mean(v, axis=-1, keepdims=True)
    var = jnp.mean(jnp.square(v - mu), axis=-1, keepdims=True)
    return (v - mu) * jax.lax.rsqrt(var + EPS) * g + b


def _mm(a, w, b=None):
    """bf16-in / f32-accumulate matmul; `w` is a bf16 value, `b` an f32 row value."""
    acc = jnp.dot(a.astype(jnp.bfloat16), w.astype(jnp.bfloat16),
                  preferred_element_type=jnp.float32)
    if b is not None:
        acc = acc + b
    return acc


def _mha(q, k, v, mask, num_heads, scale):
    """Batched multi-head attention on (Lq, D)/(Lk, D) values.

    Heads are gathered with static lane slices into one (H, L, dh) batch so the
    MXU runs a single batched QK^T / PV pair (live intermediates bounded to one
    (H, Lq, Lk) slab instead of H loop-carried score matrices); the additive
    mask (None, (Lq,Lk) or (1,Lk) f32) is broadcast once over heads.  All model
    masks leave >=1 unmasked key per used query row, so no all -inf rows (same
    NaN behaviour as PyTorch for fully padded rows otherwise).
    """
    D = q.shape[-1]
    dh = D // num_heads
    qb, kb, vb = (t.astype(jnp.bfloat16) for t in (q, k, v))
    qh = jnp.stack([qb[:, h * dh:(h + 1) * dh] for h in range(num_heads)], 0)
    kh = jnp.stack([kb[:, h * dh:(h + 1) * dh] for h in range(num_heads)], 0)
    vh = jnp.stack([vb[:, h * dh:(h + 1) * dh] for h in range(num_heads)], 0)
    s = jnp.einsum("hqd,hkd->hqk", qh, kh,
                   preferred_element_type=jnp.float32) * scale
    if mask is not None:
        s = s + mask                              # broadcast once over heads
    s = s - jnp.max(s, axis=-1, keepdims=True)
    p = jnp.exp(s)
    p = p * pl.reciprocal(jnp.sum(p, axis=-1, keepdims=True), approx=True)
    o = jnp.einsum("hqk,hkd->hqd", p.astype(jnp.bfloat16), vh,
                   preferred_element_type=jnp.float32)          # (H, Lq, dh)
    # TODO(synk): fold the head merge into the output projection (per-head
    # batched matmul + sum over heads) to avoid the lane concat entirely.
    return jnp.concatenate([o[h] for h in range(num_heads)], axis=-1)


# ---------------------------------------------------------------------------
# Pallas kernels
# ---------------------------------------------------------------------------
def _patch_embed_kernel(x_ref, w_ref, b_ref, pos_ref, o_ref):
    # Conv3d(k=s=(tt,ps,ps)) as a matmul over flattened tubelets + pos-embed add.
    h = _mm(x_ref[0], w_ref[...], b_ref[...]) + pos_ref[...]
    o_ref[0] = h.astype(o_ref.dtype)


def _enc_stack_kernel(x_ref, ln1_g, ln1_b, qkv_w, qkv_b, proj_w, proj_b,
                      ln2_g, ln2_b, fc1_w, fc1_b, fc2_w, fc2_b,
                      o_ref, acc_ref, *, num_heads, scale):
    # TODO(synk): VideoMAE VisionTransformer block source is not in the provided
    # module; standard pre-norm ViT block (MHSA + MLP, init_values=0, no drop-path).
    l = pl.program_id(1)

    @pl.when(l == 0)
    def _():
        acc_ref[...] = x_ref[0].astype(jnp.float32)

    x = acc_ref[...]                                  # (N, D) f32, VMEM-resident
    D = x.shape[-1]
    h = _ln(x, ln1_g[0], ln1_b[0])
    qkv = _mm(h, qkv_w[0], qkv_b[0])                  # fused (D, 3D) projection
    attn = _mha(qkv[:, :D], qkv[:, D:2 * D], qkv[:, 2 * D:],
                None, num_heads, scale)               # no mask in the encoder
    x = x + _mm(attn, proj_w[0], proj_b[0])
    h = _ln(x, ln2_g[0], ln2_b[0])
    # TODO(synk): torch nn.GELU is erf-exact; tanh-approx used here.
    h = jax.nn.gelu(_mm(h, fc1_w[0], fc1_b[0]))
    x = x + _mm(h, fc2_w[0], fc2_b[0])
    acc_ref[...] = x

    @pl.when(l == pl.num_programs(1) - 1)
    def _():
        o_ref[0] = x.astype(o_ref.dtype)


def _dec_stack_kernel(x_ref, mem_ref, tmask_ref, mmask_ref,
                      sa_w, sa_b, sa_ow, sa_ob, ln1_g, ln1_b,
                      ca_qw, ca_qb, ca_kvw, ca_kvb, ca_ow, ca_ob,
                      ln2_g, ln2_b, ff1_w, ff1_b, ff2_w, ff2_b,
                      ln3_g, ln3_b, o_ref, acc_ref, *, num_heads, scale):
    # nn.TransformerDecoderLayer, norm_first=False, relu FFN, dropout=identity.
    l = pl.program_id(1)

    @pl.when(l == 0)
    def _():
        acc_ref[...] = x_ref[0].astype(jnp.float32)

    x = acc_ref[...]                                  # (L, D) f32
    mem = mem_ref[0]                                  # (T', D) bf16
    tmask = tmask_ref[0]                              # (L, L) f32, read once
    mmask = mmask_ref[0]                              # (1, T') f32, read once
    D = x.shape[-1]
    # --- self-attention (fused in_proj) ---
    qkv = _mm(x, sa_w[0], sa_b[0])
    sa = _mha(qkv[:, :D], qkv[:, D:2 * D], qkv[:, 2 * D:], tmask, num_heads, scale)
    x = _ln(x + _mm(sa, sa_ow[0], sa_ob[0]), ln1_g[0], ln1_b[0])
    # --- cross-attention (fused K/V proj); mmask is PyTorch's float {0,1}
    #     memory_key_padding_mask added to the logits as-is ---
    q = _mm(x, ca_qw[0], ca_qb[0])
    kv = _mm(mem, ca_kvw[0], ca_kvb[0])
    ca = _mha(q, kv[:, :D], kv[:, D:], mmask, num_heads, scale)
    x = _ln(x + _mm(ca, ca_ow[0], ca_ob[0]), ln2_g[0], ln2_b[0])
    # --- FFN (relu) ---
    h = jnp.maximum(_mm(x, ff1_w[0], ff1_b[0]), 0.0)
    x = _ln(x + _mm(h, ff2_w[0], ff2_b[0]), ln3_g[0], ln3_b[0])
    acc_ref[...] = x

    @pl.when(l == pl.num_programs(1) - 1)
    def _():
        o_ref[0] = x.astype(o_ref.dtype)


def _mean_patch_kernel(x_ref, o_ref):
    o_ref[...] = jnp.mean(x_ref[...].astype(jnp.float32), axis=1,
                          keepdims=True).astype(o_ref.dtype)


def _outputconv_kernel(*refs, logsm, pre_ln):
    """Fused outputConv: [tx LayerNorm] + 4x(1x1 conv) + 3x LN + 3x ReLU [+ log_softmax].

    Final weight/bias are padded to C_PAD lanes (padded bias = -1e30 when the
    log_softmax is fused, so padded classes contribute nothing to the sum)."""
    o_ref = refs[-1]
    x = refs[0][...].astype(jnp.float32)
    i = 1
    if pre_ln:
        x = _ln(x, refs[1][...], refs[2][...])
        i = 3
    (w1, b1, g1, be1, w2, b2, g2, be2,
     w3, b3, g3, be3, w4, b4) = refs[i:i + 14]
    h = _mm(x, w1[...], b1[...])
    h = jnp.maximum(_ln(h, g1[...], be1[...]), 0.0)
    h = _mm(h, w2[...], b2[...])
    h = jnp.maximum(_ln(h, g2[...], be2[...]), 0.0)
    h = _mm(h, w3[...], b3[...])
    h = jnp.maximum(_ln(h, g3[...], be3[...]), 0.0)
    h = _mm(h, w4[...], b4[...])
    if logsm:
        h = h - jnp.max(h, axis=-1, keepdims=True)
        h = h - jnp.log(jnp.sum(jnp.exp(h), axis=-1, keepdims=True))
    o_ref[...] = h.astype(o_ref.dtype)


# ---------------------------------------------------------------------------
# pallas_call wrappers
# ---------------------------------------------------------------------------
def patch_embed(src, params, pos_table):
    B, C, T, H, W = src.shape
    tt, ps = TUBELET, PATCH
    x = src.astype(jnp.bfloat16)                        # halve im2col HBM traffic
    x = x.reshape(B, C, T // tt, tt, H // ps, ps, W // ps, ps)
    x = x.transpose(0, 2, 4, 6, 1, 3, 5, 7)             # (B, T', Hp, Wp, C, tt, ps, ps)
    N = (T // tt) * (H // ps) * (W // ps)
    K = C * tt * ps * ps
    x = x.reshape(B, N, K)
    return pl.pallas_call(
        _patch_embed_kernel,
        grid=(B,),
        in_specs=[pl.BlockSpec((1, N, K), lambda b: (b, 0, 0)),
                  pl.BlockSpec((K, D_MODEL), lambda b: (0, 0)),
                  pl.BlockSpec((1, D_MODEL), lambda b: (0, 0)),
                  pl.BlockSpec((N, D_MODEL), lambda b: (0, 0))],
        out_specs=pl.BlockSpec((1, N, D_MODEL), lambda b: (b, 0, 0)),
        out_shape=jax.ShapeDtypeStruct((B, N, D_MODEL), jnp.bfloat16),
        compiler_params=_cp("parallel"),
    )(x, params["patch_w"], params["patch_b"].reshape(1, -1), pos_table)


ENC_WEIGHT_KEYS = ["ln1_g", "ln1_b", "qkv_w", "qkv_b", "proj_w", "proj_b",
                   "ln2_g", "ln2_b", "fc1_w", "fc1_b", "fc2_w", "fc2_b"]


def encoder_stack(x, enc):
    B, N, D = x.shape
    n_layers = enc["qkv_w"].shape[0]
    ws = [enc[k] for k in ENC_WEIGHT_KEYS]
    in_specs = [pl.BlockSpec((1, N, D), lambda b, l: (b, 0, 0))]
    in_specs += [pl.BlockSpec((1,) + w.shape[1:], lambda b, l: (l, 0, 0)) for w in ws]
    return pl.pallas_call(
        partial(_enc_stack_kernel, num_heads=NUM_HEADS, scale=HEAD_DIM ** -0.5),
        grid=(B, n_layers),
        in_specs=in_specs,
        out_specs=pl.BlockSpec((1, N, D), lambda b, l: (b, 0, 0)),
        out_shape=jax.ShapeDtypeStruct((B, N, D), jnp.bfloat16),
        scratch_shapes=[pltpu.VMEM((N, D), jnp.float32)],
        compiler_params=_cp("parallel", "arbitrary"),
    )(x, *ws)


DEC_WEIGHT_KEYS = ["sa_w", "sa_b", "sa_ow", "sa_ob", "ln1_g", "ln1_b",
                   "ca_qw", "ca_qb", "ca_kvw", "ca_kvb", "ca_ow", "ca_ob",
                   "ln2_g", "ln2_b", "ff1_w", "ff1_b", "ff2_w", "ff2_b",
                   "ln3_g", "ln3_b"]


def decoder_stack(x, mem, tgt_mask, mem_mask, dec):
    B, L, D = x.shape
    T_ = mem.shape[1]
    n_layers = dec["sa_w"].shape[0]
    ws = [dec[k] for k in DEC_WEIGHT_KEYS]
    in_specs = [pl.BlockSpec((1, L, D), lambda b, l: (b, 0, 0)),
                pl.BlockSpec((1, T_, D), lambda b, l: (b, 0, 0)),
                pl.BlockSpec((1, L, L), lambda b, l: (b, 0, 0)),
                pl.BlockSpec((1, 1, T_), lambda b, l: (b, 0, 0))]
    in_specs += [pl.BlockSpec((1,) + w.shape[1:], lambda b, l: (l, 0, 0)) for w in ws]
    return pl.pallas_call(
        partial(_dec_stack_kernel, num_heads=NUM_HEADS, scale=HEAD_DIM ** -0.5),
        grid=(B, n_layers),
        in_specs=in_specs,
        out_specs=pl.BlockSpec((1, L, D), lambda b, l: (b, 0, 0)),
        out_shape=jax.ShapeDtypeStruct((B, L, D), jnp.bfloat16),
        scratch_shapes=[pltpu.VMEM((L, D), jnp.float32)],
        compiler_params=_cp("parallel", "arbitrary"),
    )(x, mem, tgt_mask, mem_mask, *ws)


def mean_over_patches(x3d):
    M, Pn, Dn = x3d.shape
    R = min(M, 8)                        # 8 tubelet-rows per block at scale
    out = pl.pallas_call(
        _mean_patch_kernel,
        grid=(pl.cdiv(M, R),),
        in_specs=[pl.BlockSpec((R, Pn, Dn), lambda m: (m, 0, 0))],
        out_specs=pl.BlockSpec((R, 1, Dn), lambda m: (m, 0, 0)),
        out_shape=jax.ShapeDtypeStruct((M, 1, Dn), jnp.bfloat16),
        compiler_params=_cp("parallel"),
    )(x3d)
    return out.reshape(M, Dn)


def output_conv(x2d, p, logsoftmax, pre_ln=None):
    M, D = x2d.shape
    R = M if M <= 256 else 256           # full rows at toy shapes, 256-row tiles at scale
    args = [x2d]
    if pre_ln is not None:
        args += [pre_ln[0].reshape(1, -1), pre_ln[1].reshape(1, -1)]
    args += [p["w1"], p["b1"].reshape(1, -1), p["g1"].reshape(1, -1), p["be1"].reshape(1, -1),
             p["w2"], p["b2"].reshape(1, -1), p["g2"].reshape(1, -1), p["be2"].reshape(1, -1),
             p["w3"], p["b3"].reshape(1, -1), p["g3"].reshape(1, -1), p["be3"].reshape(1, -1),
             p["w4"], p["b4"].reshape(1, -1)]
    in_specs = [pl.BlockSpec((R, D), lambda m: (m, 0))]
    in_specs += [pl.BlockSpec(a.shape, lambda m: (0, 0)) for a in args[1:]]
    out = pl.pallas_call(
        partial(_outputconv_kernel, logsm=logsoftmax, pre_ln=pre_ln is not None),
        grid=(pl.cdiv(M, R),),
        in_specs=in_specs,
        out_specs=pl.BlockSpec((R, C_PAD), lambda m: (m, 0)),
        out_shape=jax.ShapeDtypeStruct((M, C_PAD), jnp.float32),
        compiler_params=_cp("parallel"),
    )(*args)
    return out[:, :NUM_CLASSES]


# ---------------------------------------------------------------------------
# positional encodings (buffers, plain numpy glue)
# ---------------------------------------------------------------------------
def get_sinusoid_encoding_table(n_position, d_hid):
    pos = np.arange(n_position)[:, None].astype(np.float64)
    j = np.arange(d_hid)[None, :]
    angle = pos / np.power(10000.0, 2 * (j // 2) / d_hid)
    table = np.zeros((n_position, d_hid), np.float64)
    table[:, 0::2] = np.sin(angle[:, 0::2])
    table[:, 1::2] = np.cos(angle[:, 1::2])
    return jnp.asarray(table, jnp.float32)


def decoder_pe_table(max_len, d):
    pos = np.arange(max_len, dtype=np.float32)[:, None]
    denom = np.exp(np.arange(0, d, 2, dtype=np.float32) * (math.log(10000.0) / d))
    pe = np.zeros((max_len, d), np.float32)
    pe[:, 0::2] = np.sin(pos / denom)
    pe[:, 1::2] = np.cos(pos / denom)
    return jnp.asarray(pe)


PE_TABLE = decoder_pe_table(PE_MAX_LEN, D_MODEL)


# ---------------------------------------------------------------------------
# forward (jitted; all kernel launches + XLA glue in a single program)
# ---------------------------------------------------------------------------
@partial(jax.jit, static_argnums=(5,))
def _forward(params, src, tgt, src_len, tgt_len, L):
    B = src.shape[0]
    T = src.shape[2]
    Tp = T // TUBELET
    N = Tp * (src.shape[3] // PATCH) * (src.shape[4] // PATCH)

    # ----- pre_model encoder (torch.no_grad context: forward only) -----
    pos_table = get_sinusoid_encoding_table(N, D_MODEL)          # pos_embed is not None
    x = patch_embed(src, params, pos_table)                      # (B, N, D) bf16, +pos fused
    # pos_drop: drop_rate=0 -> identity
    x = encoder_stack(x, params["enc"])                          # fused block stack

    # ----- x.reshape(B, -1, P, D).mean(dim=2) -----
    T_ = N // P_SPATIAL
    xm = mean_over_patches(x.reshape(B * T_, P_SPATIAL, D_MODEL)).reshape(B, T_, D_MODEL)

    # ----- CTC branch: jointOutputConv (1x1 convs are pointwise over channels,
    #       so the (T',D,B) conv layout == per-token math) + fused log_softmax -----
    ctc_in = jnp.transpose(xm, (1, 0, 2)).reshape(T_ * B, D_MODEL)
    jointCTCOutputBatch = output_conv(ctc_in, params["joint_out"], logsoftmax=True
                                      ).reshape(T_, B, NUM_CLASSES)

    # ----- target embedding (pad_sequence of tgt[i][:tgt_len[i]-1]) -----
    pos = jnp.arange(L)
    valid = pos[None, :] < (tgt_len - 1)[:, None]
    targetin = jnp.where(valid, tgt[:, :L], 0)                   # pad with 0
    emb = jnp.take(params["embed_table"], targetin, axis=0)      # Embedding (glue gather)
    emb = (emb + PE_TABLE[:L][None, :, :]).astype(jnp.bfloat16)  # PositionalEncoding

    # ----- masks -----
    inputLenBatch = (src_len - 2) // 2 + 1
    causal = jnp.where(pos[None, :] <= pos[:, None], 0.0, -jnp.inf).astype(jnp.float32)
    tgt_pad = pos[None, :] >= (tgt_len - 1)[:, None]             # makeMaskfromLength
    tgt_mask = causal[None] + jnp.where(tgt_pad, -jnp.inf, 0.0)[:, None, :]    # (B,L,L)
    # NOTE: original passes a *float* {0,1} memory_key_padding_mask; PyTorch>=2.x adds
    # a float key-padding mask to the attention logits as-is (+1.0), reproduced literally.
    mem_mask = (jnp.arange(T_)[None, :] >= inputLenBatch[:, None]
                ).astype(jnp.float32).reshape(B, 1, T_)          # (B,1,T'), shared by heads

    # ----- jointAttentionDecoder (+ final LayerNorm fused into the outputConv) -----
    dec = decoder_stack(emb, xm, tgt_mask, mem_mask, params["dec"])   # fused layer stack

    jointAttentionOutputBatch = output_conv(
        dec.reshape(B * L, D_MODEL), params["att_out"], logsoftmax=False,
        pre_ln=(params["tx_norm_g"], params["tx_norm_b"])).reshape(B, L, NUM_CLASSES)

    return inputLenBatch, (jointCTCOutputBatch, jointAttentionOutputBatch)


def vit_vsr_forward(params, src, tgt, src_len_np, tgt_len_np):
    L = int(np.max(np.asarray(tgt_len_np))) - 1
    return _forward(params, src, tgt,
                    jnp.asarray(src_len_np, jnp.int32),
                    jnp.asarray(tgt_len_np, jnp.int32), L)


# ---------------------------------------------------------------------------
# deterministic parameter init (matmul weights stored bf16 for the MXU;
# per-layer weights pre-stacked along a leading layer dim for the fused stacks)
# ---------------------------------------------------------------------------
def init_params(key):
    keys = iter(jax.random.split(key, 256))

    def dense(shape, scale=0.02):
        return scale * jax.random.normal(next(keys), shape, jnp.float32)

    def bdense(shape, scale=0.02):
        return dense(shape, scale).astype(jnp.bfloat16)

    def zeros(shape):
        return jnp.zeros(shape, jnp.float32)

    def ones(shape):
        return jnp.ones(shape, jnp.float32)

    def outconv_params(logsm):
        w4 = dense((D_MODEL // 2, NUM_CLASSES))
        w4p = jnp.zeros((D_MODEL // 2, C_PAD), jnp.float32
                        ).at[:, :NUM_CLASSES].set(w4).astype(jnp.bfloat16)
        b4p = jnp.full((C_PAD,), -1e30 if logsm else 0.0, jnp.float32
                       ).at[:NUM_CLASSES].set(0.0)
        return {"w1": bdense((D_MODEL, D_MODEL)), "b1": zeros((D_MODEL,)),
                "g1": ones((D_MODEL,)), "be1": zeros((D_MODEL,)),
                "w2": bdense((D_MODEL, D_MODEL // 2)), "b2": zeros((D_MODEL // 2,)),
                "g2": ones((D_MODEL // 2,)), "be2": zeros((D_MODEL // 2,)),
                "w3": bdense((D_MODEL // 2, D_MODEL // 2)), "b3": zeros((D_MODEL // 2,)),
                "g3": ones((D_MODEL // 2,)), "be3": zeros((D_MODEL // 2,)),
                "w4": w4p, "b4": b4p}

    De, Dd = DEPTH_ENC, DEPTH_DEC
    enc = {"ln1_g": ones((De, 1, D_MODEL)), "ln1_b": zeros((De, 1, D_MODEL)),
           "qkv_w": bdense((De, D_MODEL, 3 * D_MODEL)),
           "qkv_b": zeros((De, 1, 3 * D_MODEL)),                 # qkv_bias=False
           "proj_w": bdense((De, D_MODEL, D_MODEL)), "proj_b": zeros((De, 1, D_MODEL)),
           "ln2_g": ones((De, 1, D_MODEL)), "ln2_b": zeros((De, 1, D_MODEL)),
           "fc1_w": bdense((De, D_MODEL, MLP_RATIO * D_MODEL)),
           "fc1_b": zeros((De, 1, MLP_RATIO * D_MODEL)),
           "fc2_w": bdense((De, MLP_RATIO * D_MODEL, D_MODEL)),
           "fc2_b": zeros((De, 1, D_MODEL))}

    dec = {"sa_w": bdense((Dd, D_MODEL, 3 * D_MODEL)), "sa_b": zeros((Dd, 1, 3 * D_MODEL)),
           "sa_ow": bdense((Dd, D_MODEL, D_MODEL)), "sa_ob": zeros((Dd, 1, D_MODEL)),
           "ca_qw": bdense((Dd, D_MODEL, D_MODEL)), "ca_qb": zeros((Dd, 1, D_MODEL)),
           "ca_kvw": bdense((Dd, D_MODEL, 2 * D_MODEL)), "ca_kvb": zeros((Dd, 1, 2 * D_MODEL)),
           "ca_ow": bdense((Dd, D_MODEL, D_MODEL)), "ca_ob": zeros((Dd, 1, D_MODEL)),
           "ln1_g": ones((Dd, 1, D_MODEL)), "ln1_b": zeros((Dd, 1, D_MODEL)),
           "ln2_g": ones((Dd, 1, D_MODEL)), "ln2_b": zeros((Dd, 1, D_MODEL)),
           "ln3_g": ones((Dd, 1, D_MODEL)), "ln3_b": zeros((Dd, 1, D_MODEL)),
           "ff1_w": bdense((Dd, D_MODEL, DIM_FF)), "ff1_b": zeros((Dd, 1, DIM_FF)),
           "ff2_w": bdense((Dd, DIM_FF, D_MODEL)), "ff2_b": zeros((Dd, 1, D_MODEL))}

    return {"patch_w": bdense((IN_CHANS * TUBELET * PATCH * PATCH, D_MODEL)),
            "patch_b": zeros((D_MODEL,)),
            "enc": enc,
            "embed_table": dense((NUM_CLASSES, D_MODEL)),
            "dec": dec,
            "tx_norm_g": ones((D_MODEL,)), "tx_norm_b": zeros((D_MODEL,)),
            "joint_out": outconv_params(True),
            "att_out": outconv_params(False)}


# ---------------------------------------------------------------------------
if __name__ == "__main__":
    key = jax.random.PRNGKey(0)
    k_par, k_src, k_tgt = jax.random.split(key, 3)

    params = init_params(k_par)

    B = 2
    src = jax.random.normal(k_src, (B, IN_CHANS, FRAMES, IMG, IMG), jnp.float32)
    tgt = jax.random.randint(k_tgt, (B, 6), 1, NUM_CLASSES).astype(jnp.int32)
    src_len = np.array([4, 3], np.int32)
    tgt_len = np.array([5, 4], np.int32)

    inputLenBatch, (ctc_out, att_out) = vit_vsr_forward(params, src, tgt, src_len, tgt_len)
    jax.block_until_ready((inputLenBatch, ctc_out, att_out))

    # shape sanity: (T', B, C) and (B, L, C)
    assert ctc_out.shape == (FRAMES // TUBELET, B, NUM_CLASSES)
    assert att_out.shape == (B, int(tgt_len.max()) - 1, NUM_CLASSES)
    assert inputLenBatch.shape == (B,)
    assert bool(jnp.all(jnp.isfinite(ctc_out))) and bool(jnp.all(jnp.isfinite(att_out)))
    print("KERNEL_OK")
</pallas_src>

<mosaic_0001>
module attributes {stable_mosaic.version = 11 : i64} {
  func.func @_patch_embed_kernel(%arg0: i32, %arg1: memref<1x8x1536xbf16, #tpu.memory_space<vmem>>, %arg2: memref<1536x128xbf16, #tpu.memory_space<vmem>>, %arg3: memref<1x128xf32, #tpu.memory_space<vmem>>, %arg4: memref<8x128xf32, #tpu.memory_space<vmem>>, %arg5: memref<1x8x128xbf16, #tpu.memory_space<vmem>>) attributes {dimension_semantics = [#tpu.dimension_semantics<parallel>], iteration_bounds = array<i64: 2>, scalar_prefetch = 0 : i64, scratch_operands = 0 : i64, tpu.core_type = #tpu.core_type<tc>, window_params = [{transform_indices = @transform_0, window_bounds = array<i64: 1, 8, 1536>}, {pipeline_mode = #tpu.pipeline_mode<synchronous>, transform_indices = @transform_1, window_bounds = array<i64: 1536, 128>}, {pipeline_mode = #tpu.pipeline_mode<synchronous>, transform_indices = @transform_2, window_bounds = array<i64: 1, 128>}, {pipeline_mode = #tpu.pipeline_mode<synchronous>, transform_indices = @transform_3, window_bounds = array<i64: 8, 128>}, {transform_indices = @transform_4, window_bounds = array<i64: 1, 8, 128>}]} {
    %c0 = arith.constant 0 : index
    %c0_0 = arith.constant 0 : index
    %c0_1 = arith.constant 0 : index
    %0 = vector.load %arg1[%c0, %c0_0, %c0_1] : memref<1x8x1536xbf16, #tpu.memory_space<vmem>>, vector<1x8x1536xbf16>
    %1 = vector.shape_cast %0 : vector<1x8x1536xbf16> to vector<8x1536xbf16>
    %c0_2 = arith.constant 0 : index
    %c0_3 = arith.constant 0 : index
    %2 = vector.load %arg2[%c0_2, %c0_3] : memref<1536x128xbf16, #tpu.memory_space<vmem>>, vector<1536x128xbf16>
    %c0_4 = arith.constant 0 : index
    %c0_5 = arith.constant 0 : index
    %3 = vector.load %arg3[%c0_4, %c0_5] : memref<1x128xf32, #tpu.memory_space<vmem>>, vector<1x128xf32>
    %cst = arith.constant dense<0.000000e+00> : vector<8x128xf32>
    %4 = tpu.matmul %1, %2, %cst {dimension_numbers = #tpu.dot_dimension_numbers<[1], [0], [0], [1], [0, 0, 1, 1], [], []>} : vector<8x1536xbf16>, vector<1536x128xbf16>, vector<8x128xf32> -> vector<8x128xf32>
    %5 = vector.broadcast %3 : vector<1x128xf32> to vector<8x128xf32>
    %6 = arith.addf %4, %5 : vector<8x128xf32>
    %c0_6 = arith.constant 0 : index
    %c0_7 = arith.constant 0 : index
    %7 = vector.load %arg4[%c0_6, %c0_7] : memref<8x128xf32, #tpu.memory_space<vmem>>, vector<8x128xf32>
    %8 = arith.addf %6, %7 : vector<8x128xf32>
    %9 = arith.truncf %8 : vector<8x128xf32> to vector<8x128xbf16>
    %c0_8 = arith.constant 0 : index
    %c0_9 = arith.constant 0 : index
    %c0_10 = arith.constant 0 : index
    %10 = vector.load %arg5[%c0_8, %c0_9, %c0_10] : memref<1x8x128xbf16, #tpu.memory_space<vmem>>, vector<1x8x128xbf16>
    %11 = vector.shape_cast %10 : vector<1x8x128xbf16> to vector<8x128xbf16>
    %12 = vector.shape_cast %9 : vector<8x128xbf16> to vector<1x8x128xbf16>
    tpu.vector_store %arg5[%c0_8, %c0_9, %c0_10], %12 {strides = array<i32>} : memref<1x8x128xbf16, #tpu.memory_space<vmem>>, vector<1x8x128xbf16>,
    return
  }
  func.func @transform_0(%arg0: i32) -> (i32, i32, i32) {
    %c0_i32 = arith.constant 0 : i32
    %c0_i32_0 = arith.constant 0 : i32
    %c0_i32_1 = arith.constant 0 : i32
    return %arg0, %c0_i32, %c0_i32_0 : i32, i32, i32
  }
  func.func @transform_1(%arg0: i32) -> (i32, i32) {
    %c0_i32 = arith.constant 0 : i32
    %c0_i32_0 = arith.constant 0 : i32
    %c0_i32_1 = arith.constant 0 : i32
    return %c0_i32, %c0_i32_0 : i32, i32
  }
  func.func @transform_2(%arg0: i32) -> (i32, i32) {
    %c0_i32 = arith.constant 0 : i32
    %c0_i32_0 = arith.constant 0 : i32
    %c0_i32_1 = arith.constant 0 : i32
    return %c0_i32, %c0_i32_0 : i32, i32
  }
  func.func @transform_3(%arg0: i32) -> (i32, i32) {
    %c0_i32 = arith.constant 0 : i32
    %c0_i32_0 = arith.constant 0 : i32
    %c0_i32_1 = arith.constant 0 : i32
    return %c0_i32, %c0_i32_0 : i32, i32
  }
  func.func @transform_4(%arg0: i32) -> (i32, i32, i32) {
    %c0_i32 = arith.constant 0 : i32
    %c0_i32_0 = arith.constant 0 : i32
    %c0_i32_1 = arith.constant 0 : i32
    return %arg0, %c0_i32, %c0_i32_0 : i32, i32, i32
  }
}

module attributes {stable_mosaic.version = 11 : i64} {
  func.func @_enc_stack_kernel(%arg0: i32, %arg1: i32, %arg2: memref<1x8x128xbf16, #tpu.memory_space<vmem>>, %arg3: memref<1x1x128xf32, #tpu.memory_space<vmem>>, %arg4: memref<1x1x128xf32, #tpu.memory_space<vmem>>, %arg5: memref<1x128x384xbf16, #tpu.memory_space<vmem>>, %arg6: memref<1x1x384xf32, #tpu.memory_space<vmem>>, %arg7: memref<1x128x128xbf16, #tpu.memory_space<vmem>>, %arg8: memref<1x1x128xf32, #tpu.memory_space<vmem>>, %arg9: memref<1x1x128xf32, #tpu.memory_space<vmem>>, %arg10: memref<1x1x128xf32, #tpu.memory_space<vmem>>, %arg11: memref<1x128x512xbf16, #tpu.memory_space<vmem>>, %arg12: memref<1x1x512xf32, #tpu.memory_space<vmem>>, %arg13: memref<1x512x128xbf16, #tpu.memory_space<vmem>>, %arg14: memref<1x1x128xf32, #tpu.memory_space<vmem>>, %arg15: memref<1x8x128xbf16, #tpu.memory_space<vmem>>, %arg16: memref<8x128xf32, #tpu.memory_space<vmem>>) attributes {dimension_semantics = [#tpu.dimension_semantics<parallel>, #tpu.dimension_semantics<arbitrary>], iteration_bounds = array<i64: 2, 2>, scalar_prefetch = 0 : i64, scratch_operands = 1 : i64, tpu.core_type = #tpu.core_type<tc>, window_params = [{transform_indices = @transform_0, window_bounds = array<i64: 1, 8, 128>}, {transform_indices = @transform_1, window_bounds = array<i64: 1, 1, 128>}, {transform_indices = @transform_2, window_bounds = array<i64: 1, 1, 128>}, {transform_indices = @transform_3, window_bounds = array<i64: 1, 128, 384>}, {transform_indices = @transform_4, window_bounds = array<i64: 1, 1, 384>}, {transform_indices = @transform_5, window_bounds = array<i64: 1, 128, 128>}, {transform_indices = @transform_6, window_bounds = array<i64: 1, 1, 128>}, {transform_indices = @transform_7, window_bounds = array<i64: 1, 1, 128>}, {transform_indices = @transform_8, window_bounds = array<i64: 1, 1, 128>}, {transform_indices = @transform_9, window_bounds = array<i64: 1, 128, 512>}, {transform_indices = @transform_10, window_bounds = array<i64: 1, 1, 512>}, {transform_indices = @transform_11, window_bounds = array<i64: 1, 512, 128>}, {transform_indices = @transform_12, window_bounds = array<i64: 1, 1, 128>}, {transform_indices = @transform_13, window_bounds = array<i64: 1, 8, 128>}]} {
    %c0_i32 = arith.constant 0 : i32
    %0 = arith.cmpi eq, %arg1, %c0_i32 : i32
    %1 = arith.extui %0 : i1 to i32
    %c0_i32_0 = arith.constant 0 : i32
    %2 = arith.cmpi ne, %1, %c0_i32_0 : i32
    scf.if %2 {
      %c0_63 = arith.constant 0 : index
      %c0_64 = arith.constant 0 : index
      %c0_65 = arith.constant 0 : index
      %164 = vector.load %arg2[%c0_63, %c0_64, %c0_65] : memref<1x8x128xbf16, #tpu.memory_space<vmem>>, vector<1x8x128xbf16>
      %165 = vector.shape_cast %164 : vector<1x8x128xbf16> to vector<8x128xbf16>
      %166 = arith.extf %165 : vector<8x128xbf16> to vector<8x128xf32>
      %c0_66 = arith.constant 0 : index
      %c0_67 = arith.constant 0 : index
      %167 = vector.load %arg16[%c0_66, %c0_67] : memref<8x128xf32, #tpu.memory_space<vmem>>, vector<8x128xf32>
      tpu.vector_store %arg16[%c0_66, %c0_67], %166 {strides = array<i32>} : memref<8x128xf32, #tpu.memory_space<vmem>>, vector<8x128xf32>,
    } else {
    }
    %c0 = arith.constant 0 : index
    %c0_1 = arith.constant 0 : index
    %3 = vector.load %arg16[%c0, %c0_1] : memref<8x128xf32, #tpu.memory_space<vmem>>, vector<8x128xf32>
    %c0_2 = arith.constant 0 : index
    %c0_3 = arith.constant 0 : index
    %c0_4 = arith.constant 0 : index
    %4 = vector.load %arg3[%c0_2, %c0_3, %c0_4] : memref<1x1x128xf32, #tpu.memory_space<vmem>>, vector<1x1x128xf32>
    %5 = vector.shape_cast %4 : vector<1x1x128xf32> to vector<1x128xf32>
    %c0_5 = arith.constant 0 : index
    %c0_6 = arith.constant 0 : index
    %c0_7 = arith.constant 0 : index
    %6 = vector.load %arg4[%c0_5, %c0_6, %c0_7] : memref<1x1x128xf32, #tpu.memory_space<vmem>>, vector<1x1x128xf32>
    %7 = vector.shape_cast %6 : vector<1x1x128xf32> to vector<1x128xf32>
    %cst = arith.constant dense<0.000000e+00> : vector<8xf32>
    %8 = vector.multi_reduction <add>, %3, %cst [1] : vector<8x128xf32> to vector<8xf32>
    %9 = vector.shape_cast %8 : vector<8xf32> to vector<8x1xf32>
    %cst_8 = arith.constant 1.280000e+02 : f32
    %10 = vector.broadcast %cst_8 : f32 to vector<8x1xf32>
    %11 = arith.divf %9, %10 : vector<8x1xf32>
    %12 = vector.broadcast %11 : vector<8x1xf32> to vector<8x128xf32>
    %13 = arith.subf %3, %12 : vector<8x128xf32>
    %14 = arith.mulf %13, %13 : vector<8x128xf32>
    %cst_9 = arith.constant dense<0.000000e+00> : vector<8xf32>
    %15 = vector.multi_reduction <add>, %14, %cst_9 [1] : vector<8x128xf32> to vector<8xf32>
    %16 = vector.shape_cast %15 : vector<8xf32> to vector<8x1xf32>
    %cst_10 = arith.constant 1.280000e+02 : f32
    %17 = vector.broadcast %cst_10 : f32 to vector<8x1xf32>
    %18 = arith.divf %16, %17 : vector<8x1xf32>
    %19 = vector.broadcast %11 : vector<8x1xf32> to vector<8x128xf32>
    %20 = arith.subf %3, %19 : vector<8x128xf32>
    %cst_11 = arith.constant 9.99999974E-6 : f32
    %21 = vector.broadcast %cst_11 : f32 to vector<8x1xf32>
    %22 = arith.addf %18, %21 : vector<8x1xf32>
    %23 = math.rsqrt %22 : vector<8x1xf32>
    %24 = vector.broadcast %23 : vector<8x1xf32> to vector<8x128xf32>
    %25 = arith.mulf %20, %24 : vector<8x128xf32>
    %26 = vector.broadcast %5 : vector<1x128xf32> to vector<8x128xf32>
    %27 = arith.mulf %25, %26 : vector<8x128xf32>
    %28 = vector.broadcast %7 : vector<1x128xf32> to vector<8x128xf32>
    %29 = arith.addf %27, %28 : vector<8x128xf32>
    %c0_12 = arith.constant 0 : index
    %c0_13 = arith.constant 0 : index
    %c0_14 = arith.constant 0 : index
    %30 = vector.load %arg5[%c0_12, %c0_13, %c0_14] : memref<1x128x384xbf16, #tpu.memory_space<vmem>>, vector<1x128x384xbf16>
    %31 = vector.shape_cast %30 : vector<1x128x384xbf16> to vector<128x384xbf16>
    %c0_15 = arith.constant 0 : index
    %c0_16 = arith.constant 0 : index
    %c0_17 = arith.constant 0 : index
    %32 = vector.load %arg6[%c0_15, %c0_16, %c0_17] : memref<1x1x384xf32, #tpu.memory_space<vmem>>, vector<1x1x384xf32>
    %33 = vector.shape_cast %32 : vector<1x1x384xf32> to vector<1x384xf32>
    %34 = arith.truncf %29 : vector<8x128xf32> to vector<8x128xbf16>
    %cst_18 = arith.constant dense<0.000000e+00> : vector<8x384xf32>
    %35 = tpu.matmul %34, %31, %cst_18 {dimension_numbers = #tpu.dot_dimension_numbers<[1], [0], [0], [1], [0, 0, 1, 1], [], []>} : vector<8x128xbf16>, vector<128x384xbf16>, vector<8x384xf32> -> vector<8x384xf32>
    %36 = vector.broadcast %33 : vector<1x384xf32> to vector<8x384xf32>
    %37 = arith.addf %35, %36 : vector<8x384xf32>
    %38 = vector.extract_strided_slice %37 {offsets = [0, 0], sizes = [8, 128], strides = [1, 1]} : vector<8x384xf32> to vector<8x128xf32>
    %39 = vector.extract_strided_slice %37 {offsets = [0, 128], sizes = [8, 128], strides = [1, 1]} : vector<8x384xf32> to vector<8x128xf32>
    %40 = vector.extract_strided_slice %37 {offsets = [0, 256], sizes = [8, 128], strides = [1, 1]} : vector<8x384xf32> to vector<8x128xf32>
    %41 = arith.truncf %38 : vector<8x128xf32> to vector<8x128xbf16>
    %42 = arith.truncf %39 : vector<8x128xf32> to vector<8x128xbf16>
    %43 = arith.truncf %40 : vector<8x128xf32> to vector<8x128xbf16>
    %44 = vector.extract_strided_slice %41 {offsets = [0, 0], sizes = [8, 32], strides = [1, 1]} : vector<8x128xbf16> to vector<8x32xbf16>
    %45 = vector.extract_strided_slice %41 {offsets = [0, 32], sizes = [8, 32], strides = [1, 1]} : vector<8x128xbf16> to vector<8x32xbf16>
    %46 = vector.extract_strided_slice %41 {offsets = [0, 64], sizes = [8, 32], strides = [1, 1]} : vector<8x128xbf16> to vector<8x32xbf16>
    %47 = vector.extract_strided_slice %41 {offsets = [0, 96], sizes = [8, 32], strides = [1, 1]} : vector<8x128xbf16> to vector<8x32xbf16>
    %48 = vector.shape_cast %44 : vector<8x32xbf16> to vector<1x8x32xbf16>
    %49 = vector.shape_cast %45 : vector<8x32xbf16> to vector<1x8x32xbf16>
    %50 = vector.shape_cast %46 : vector<8x32xbf16> to vector<1x8x32xbf16>
    %51 = vector.shape_cast %47 : vector<8x32xbf16> to vector<1x8x32xbf16>
    %52 = tpu.concatenate %48, %49, %50, %51 in 0 : vector<1x8x32xbf16>, vector<1x8x32xbf16>, vector<1x8x32xbf16>, vector<1x8x32xbf16> -> vector<4x8x32xbf16>
    %53 = vector.extract_strided_slice %42 {offsets = [0, 0], sizes = [8, 32], strides = [1, 1]} : vector<8x128xbf16> to vector<8x32xbf16>
    %54 = vector.extract_strided_slice %42 {offsets = [0, 32], sizes = [8, 32], strides = [1, 1]} : vector<8x128xbf16> to vector<8x32xbf16>
    %55 = vector.extract_strided_slice %42 {offsets = [0, 64], sizes = [8, 32], strides = [1, 1]} : vector<8x128xbf16> to vector<8x32xbf16>
    %56 = vector.extract_strided_slice %42 {offsets = [0, 96], sizes = [8, 32], strides = [1, 1]} : vector<8x128xbf16> to vector<8x32xbf16>
    %57 = vector.shape_cast %53 : vector<8x32xbf16> to vector<1x8x32xbf16>
    %58 = vector.shape_cast %54 : vector<8x32xbf16> to vector<1x8x32xbf16>
    %59 = vector.shape_cast %55 : vector<8x32xbf16> to vector<1x8x32xbf16>
    %60 = vector.shape_cast %56 : vector<8x32xbf16> to vector<1x8x32xbf16>
    %61 = tpu.concatenate %57, %58, %59, %60 in 0 : vector<1x8x32xbf16>, vector<1x8x32xbf16>, vector<1x8x32xbf16>, vector<1x8x32xbf16> -> vector<4x8x32xbf16>
    %62 = vector.extract_strided_slice %43 {offsets = [0, 0], sizes = [8, 32], strides = [1, 1]} : vector<8x128xbf16> to vector<8x32xbf16>
    %63 = vector.extract_strided_slice %43 {offsets = [0, 32], sizes = [8, 32], strides = [1, 1]} : vector<8x128xbf16> to vector<8x32xbf16>
    %64 = vector.extract_strided_slice %43 {offsets = [0, 64], sizes = [8, 32], strides = [1, 1]} : vector<8x128xbf16> to vector<8x32xbf16>
    %65 = vector.extract_strided_slice %43 {offsets = [0, 96], sizes = [8, 32], strides = [1, 1]} : vector<8x128xbf16> to vector<8x32xbf16>
    %66 = vector.shape_cast %62 : vector<8x32xbf16> to vector<1x8x32xbf16>
    %67 = vector.shape_cast %63 : vector<8x32xbf16> to vector<1x8x32xbf16>
    %68 = vector.shape_cast %64 : vector<8x32xbf16> to vector<1x8x32xbf16>
    %69 = vector.shape_cast %65 : vector<8x32xbf16> to vector<1x8x32xbf16>
    %70 = tpu.concatenate %66, %67, %68, %69 in 0 : vector<1x8x32xbf16>, vector<1x8x32xbf16>, vector<1x8x32xbf16>, vector<1x8x32xbf16> -> vector<4x8x32xbf16>
    "tpu.trace_start"() <{level = 10 : i32, message = "hqd,hkd->hqk"}> : () -> ()
    %cst_19 = arith.constant dense<0.000000e+00> : vector<4x8x8xf32>
    %71 = tpu.matmul %52, %61, %cst_19 {dimension_numbers = #tpu.dot_dimension_numbers<[2], [2], [1], [1], [0, 0, 0, 1, 1, 1], [0], [0]>} : vector<4x8x32xbf16>, vector<4x8x32xbf16>, vector<4x8x8xf32> -> vector<4x8x8xf32>
    "tpu.trace_stop"() : () -> ()
    %cst_20 = arith.constant 0.176776692 : f32
    %72 = vector.broadcast %cst_20 : f32 to vector<4x8x8xf32>
    %73 = arith.mulf %71, %72 : vector<4x8x8xf32>
    %cst_21 = arith.constant dense<0xFF800000> : vector<4x8xf32>
    %74 = vector.multi_reduction <maximumf>, %73, %cst_21 [2] : vector<4x8x8xf32> to vector<4x8xf32>
    %75 = vector.shape_cast %74 : vector<4x8xf32> to vector<4x8x1xf32>
    %76 = vector.broadcast %75 : vector<4x8x1xf32> to vector<4x8x8xf32>
    %77 = arith.subf %73, %76 : vector<4x8x8xf32>
    %78 = math.exp %77 : vector<4x8x8xf32>
    %cst_22 = arith.constant dense<0.000000e+00> : vector<4x8xf32>
    %79 = vector.multi_reduction <add>, %78, %cst_22 [2] : vector<4x8x8xf32> to vector<4x8xf32>
    %80 = vector.shape_cast %79 : vector<4x8xf32> to vector<4x8x1xf32>
    %81 = tpu.reciprocal %80 {approx = true} : vector<4x8x1xf32> -> vector<4x8x1xf32>
    %82 = vector.broadcast %81 : vector<4x8x1xf32> to vector<4x8x8xf32>
    %83 = arith.mulf %78, %82 : vector<4x8x8xf32>
    %84 = arith.truncf %83 : vector<4x8x8xf32> to vector<4x8x8xbf16>
    "tpu.trace_start"() <{level = 10 : i32, message = "hqk,hkd->hqd"}> : () -> ()
    %cst_23 = arith.constant dense<0.000000e+00> : vector<4x8x32xf32>
    %85 = tpu.matmul %84, %70, %cst_23 {dimension_numbers = #tpu.dot_dimension_numbers<[2], [1], [1], [2], [0, 0, 0, 1, 1, 2], [0], [0]>} : vector<4x8x8xbf16>, vector<4x8x32xbf16>, vector<4x8x32xf32> -> vector<4x8x32xf32>
    "tpu.trace_stop"() : () -> ()
    %86 = vector.extract_strided_slice %85 {offsets = [0, 0, 0], sizes = [1, 8, 32], strides = [1, 1, 1]} : vector<4x8x32xf32> to vector<1x8x32xf32>
    %87 = vector.shape_cast %86 : vector<1x8x32xf32> to vector<8x32xf32>
    %88 = vector.extract_strided_slice %85 {offsets = [1, 0, 0], sizes = [1, 8, 32], strides = [1, 1, 1]} : vector<4x8x32xf32> to vector<1x8x32xf32>
    %89 = vector.shape_cast %88 : vector<1x8x32xf32> to vector<8x32xf32>
    %90 = vector.extract_strided_slice %85 {offsets = [2, 0, 0], sizes = [1, 8, 32], strides = [1, 1, 1]} : vector<4x8x32xf32> to vector<1x8x32xf32>
    %91 = vector.shape_cast %90 : vector<1x8x32xf32> to vector<8x32xf32>
    %92 = vector.extract_strided_slice %85 {offsets = [3, 0, 0], sizes = [1, 8, 32], strides = [1, 1, 1]} : vector<4x8x32xf32> to vector<1x8x32xf32>
    %93 = vector.shape_cast %92 : vector<1x8x32xf32> to vector<8x32xf32>
    %94 = tpu.concatenate %87, %89, %91, %93 in 1 : vector<8x32xf32>, vector<8x32xf32>, vector<8x32xf32>, vector<8x32xf32> -> vector<8x128xf32>
    %c0_24 = arith.constant 0 : index
    %c0_25 = arith.constant 0 : index
    %c0_26 = arith.constant 0 : index
    %95 = vector.load %arg7[%c0_24, %c0_25, %c0_26] : memref<1x128x128xbf16, #tpu.memory_space<vmem>>, vector<1x128x128xbf16>
    %96 = vector.shape_cast %95 : vector<1x128x128xbf16> to vector<128x128xbf16>
    %c0_27 = arith.constant 0 : index
    %c0_28 = arith.constant 0 : index
    %c0_29 = arith.constant 0 : index
    %97 = vector.load %arg8[%c0_27, %c0_28, %c0_29] : memref<1x1x128xf32, #tpu.memory_space<vmem>>, vector<1x1x128xf32>
    %98 = vector.shape_cast %97 : vector<1x1x128xf32> to vector<1x128xf32>
    %99 = arith.truncf %94 : vector<8x128xf32> to vector<8x128xbf16>
    %cst_30 = arith.constant dense<0.000000e+00> : vector<8x128xf32>
    %100 = tpu.matmul %99, %96, %cst_30 {dimension_numbers = #tpu.dot_dimension_numbers<[1], [0], [0], [1], [0, 0, 1, 1], [], []>} : vector<8x128xbf16>, vector<128x128xbf16>, vector<8x128xf32> -> vector<8x128xf32>
    %101 = vector.broadcast %98 : vector<1x128xf32> to vector<8x128xf32>
    %102 = arith.addf %100, %101 : vector<8x128xf32>
    %103 = arith.addf %3, %102 : vector<8x128xf32>
    %c0_31 = arith.constant 0 : index
    %c0_32 = arith.constant 0 : index
    %c0_33 = arith.constant 0 : index
    %104 = vector.load %arg9[%c0_31, %c0_32, %c0_33] : memref<1x1x128xf32, #tpu.memory_space<vmem>>, vector<1x1x128xf32>
    %105 = vector.shape_cast %104 : vector<1x1x128xf32> to vector<1x128xf32>
    %c0_34 = arith.constant 0 : index
    %c0_35 = arith.constant 0 : index
    %c0_36 = arith.constant 0 : index
    %106 = vector.load %arg10[%c0_34, %c0_35, %c0_36] : memref<1x1x128xf32, #tpu.memory_space<vmem>>, vector<1x1x128xf32>
    %107 = vector.shape_cast %106 : vector<1x1x128xf32> to vector<1x128xf32>
    %cst_37 = arith.constant dense<0.000000e+00> : vector<8xf32>
    %108 = vector.multi_reduction <add>, %103, %cst_37 [1] : vector<8x128xf32> to vector<8xf32>
    %109 = vector.shape_cast %108 : vector<8xf32> to vector<8x1xf32>
    %cst_38 = arith.constant 1.280000e+02 : f32
    %110 = vector.broadcast %cst_38 : f32 to vector<8x1xf32>
    %111 = arith.divf %109, %110 : vector<8x1xf32>
    %112 = vector.broadcast %111 : vector<8x1xf32> to vector<8x128xf32>
    %113 = arith.subf %103, %112 : vector<8x128xf32>
    %114 = arith.mulf %113, %113 : vector<8x128xf32>
    %cst_39 = arith.constant dense<0.000000e+00> : vector<8xf32>
    %115 = vector.multi_reduction <add>, %114, %cst_39 [1] : vector<8x128xf32> to vector<8xf32>
    %116 = vector.shape_cast %115 : vector<8xf32> to vector<8x1xf32>
    %cst_40 = arith.constant 1.280000e+02 : f32
    %117 = vector.broadcast %cst_40 : f32 to vector<8x1xf32>
    %118 = arith.divf %116, %117 : vector<8x1xf32>
    %119 = vector.broadcast %111 : vector<8x1xf32> to vector<8x128xf32>
    %120 = arith.subf %103, %119 : vector<8x128xf32>
    %cst_41 = arith.constant 9.99999974E-6 : f32
    %121 = vector.broadcast %cst_41 : f32 to vector<8x1xf32>
    %122 = arith.addf %118, %121 : vector<8x1xf32>
    %123 = math.rsqrt %122 : vector<8x1xf32>
    %124 = vector.broadcast %123 : vector<8x1xf32> to vector<8x128xf32>
    %125 = arith.mulf %120, %124 : vector<8x128xf32>
    %126 = vector.broadcast %105 : vector<1x128xf32> to vector<8x128xf32>
    %127 = arith.mulf %125, %126 : vector<8x128xf32>
    %128 = vector.broadcast %107 : vector<1x128xf32> to vector<8x128xf32>
    %129 = arith.addf %127, %128 : vector<8x128xf32>
    %c0_42 = arith.constant 0 : index
    %c0_43 = arith.constant 0 : index
    %c0_44 = arith.constant 0 : index
    %130 = vector.load %arg11[%c0_42, %c0_43, %c0_44] : memref<1x128x512xbf16, #tpu.memory_space<vmem>>, vector<1x128x512xbf16>
    %131 = vector.shape_cast %130 : vector<1x128x512xbf16> to vector<128x512xbf16>
    %c0_45 = arith.constant 0 : index
    %c0_46 = arith.constant 0 : index
    %c0_47 = arith.constant 0 : index
    %132 = vector.load %arg12[%c0_45, %c0_46, %c0_47] : memref<1x1x512xf32, #tpu.memory_space<vmem>>, vector<1x1x512xf32>
    %133 = vector.shape_cast %132 : vector<1x1x512xf32> to vector<1x512xf32>
    %134 = arith.truncf %129 : vector<8x128xf32> to vector<8x128xbf16>
    %cst_48 = arith.constant dense<0.000000e+00> : vector<8x512xf32>
    %135 = tpu.matmul %134, %131, %cst_48 {dimension_numbers = #tpu.dot_dimension_numbers<[1], [0], [0], [1], [0, 0, 1, 1], [], []>} : vector<8x128xbf16>, vector<128x512xbf16>, vector<8x512xf32> -> vector<8x512xf32>
    %136 = vector.broadcast %133 : vector<1x512xf32> to vector<8x512xf32>
    %137 = arith.addf %135, %136 : vector<8x512xf32>
    %138 = arith.mulf %137, %137 : vector<8x512xf32>
    %139 = arith.mulf %137, %138 : vector<8x512xf32>
    %cst_49 = arith.constant 4.471500e-02 : f32
    %140 = vector.broadcast %cst_49 : f32 to vector<8x512xf32>
    %141 = arith.mulf %140, %139 : vector<8x512xf32>
    %142 = arith.addf %137, %141 : vector<8x512xf32>
    %cst_50 = arith.constant 0.797884583 : f32
    %143 = vector.broadcast %cst_50 : f32 to vector<8x512xf32>
    %144 = arith.mulf %143, %142 : vector<8x512xf32>
    %145 = math.tanh %144 : vector<8x512xf32>
    %cst_51 = arith.constant 1.000000e+00 : f32
    %146 = vector.broadcast %cst_51 : f32 to vector<8x512xf32>
    %147 = arith.addf %146, %145 : vector<8x512xf32>
    %cst_52 = arith.constant 5.000000e-01 : f32
    %148 = vector.broadcast %cst_52 : f32 to vector<8x512xf32>
    %149 = arith.mulf %148, %147 : vector<8x512xf32>
    %150 = arith.mulf %137, %149 : vector<8x512xf32>
    %c0_53 = arith.constant 0 : index
    %c0_54 = arith.constant 0 : index
    %c0_55 = arith.constant 0 : index
    %151 = vector.load %arg13[%c0_53, %c0_54, %c0_55] : memref<1x512x128xbf16, #tpu.memory_space<vmem>>, vector<1x512x128xbf16>
    %152 = vector.shape_cast %151 : vector<1x512x128xbf16> to vector<512x128xbf16>
    %c0_56 = arith.constant 0 : index
    %c0_57 = arith.constant 0 : index
    %c0_58 = arith.constant 0 : index
    %153 = vector.load %arg14[%c0_56, %c0_57, %c0_58] : memref<1x1x128xf32, #tpu.memory_space<vmem>>, vector<1x1x128xf32>
    %154 = vector.shape_cast %153 : vector<1x1x128xf32> to vector<1x128xf32>
    %155 = arith.truncf %150 : vector<8x512xf32> to vector<8x512xbf16>
    %cst_59 = arith.constant dense<0.000000e+00> : vector<8x128xf32>
    %156 = tpu.matmul %155, %152, %cst_59 {dimension_numbers = #tpu.dot_dimension_numbers<[1], [0], [0], [1], [0, 0, 1, 1], [], []>} : vector<8x512xbf16>, vector<512x128xbf16>, vector<8x128xf32> -> vector<8x128xf32>
    %157 = vector.broadcast %154 : vector<1x128xf32> to vector<8x128xf32>
    %158 = arith.addf %156, %157 : vector<8x128xf32>
    %159 = arith.addf %103, %158 : vector<8x128xf32>
    %c0_60 = arith.constant 0 : index
    %c0_61 = arith.constant 0 : index
    %160 = vector.load %arg16[%c0_60, %c0_61] : memref<8x128xf32, #tpu.memory_space<vmem>>, vector<8x128xf32>
    tpu.vector_store %arg16[%c0_60, %c0_61], %159 {strides = array<i32>} : memref<8x128xf32, #tpu.memory_space<vmem>>, vector<8x128xf32>,
    %c1_i32 = arith.constant 1 : i32
    %161 = arith.cmpi eq, %arg1, %c1_i32 : i32
    %162 = arith.extui %161 : i1 to i32
    %c0_i32_62 = arith.constant 0 : i32
    %163 = arith.cmpi ne, %162, %c0_i32_62 : i32
    scf.if %163 {
      %164 = arith.truncf %159 : vector<8x128xf32> to vector<8x128xbf16>
      %c0_63 = arith.constant 0 : index
      %c0_64 = arith.constant 0 : index
      %c0_65 = arith.constant 0 : index
      %165 = vector.load %arg15[%c0_63, %c0_64, %c0_65] : memref<1x8x128xbf16, #tpu.memory_space<vmem>>, vector<1x8x128xbf16>
      %166 = vector.shape_cast %165 : vector<1x8x128xbf16> to vector<8x128xbf16>
      %167 = vector.shape_cast %164 : vector<8x128xbf16> to vector<1x8x128xbf16>
      tpu.vector_store %arg15[%c0_63, %c0_64, %c0_65], %167 {strides = array<i32>} : memref<1x8x128xbf16, #tpu.memory_space<vmem>>, vector<1x8x128xbf16>,
    } else {
    }
    return
  }
  func.func @transform_0(%arg0: i32, %arg1: i32) -> (i32, i32, i32) {
    %c0_i32 = arith.constant 0 : i32
    %c0_i32_0 = arith.constant 0 : i32
    %c0_i32_1 = arith.constant 0 : i32
    return %arg0, %c0_i32, %c0_i32_0 : i32, i32, i32
  }
  func.func @transform_1(%arg0: i32, %arg1: i32) -> (i32, i32, i32) {
    %c0_i32 = arith.constant 0 : i32
    %c0_i32_0 = arith.constant 0 : i32
    %c0_i32_1 = arith.constant 0 : i32
    return %arg1, %c0_i32, %c0_i32_0 : i32, i32, i32
  }
  func.func @transform_2(%arg0: i32, %arg1: i32) -> (i32, i32, i32) {
    %c0_i32 = arith.constant 0 : i32
    %c0_i32_0 = arith.constant 0 : i32
    %c0_i32_1 = arith.constant 0 : i32
    return %arg1, %c0_i32, %c0_i32_0 : i32, i32, i32
  }
  func.func @transform_3(%arg0: i32, %arg1: i32) -> (i32, i32, i32) {
    %c0_i32 = arith.constant 0 : i32
    %c0_i32_0 = arith.constant 0 : i32
    %c0_i32_1 = arith.constant 0 : i32
    return %arg1, %c0_i32, %c0_i32_0 : i32, i32, i32
  }
  func.func @transform_4(%arg0: i32, %arg1: i32) -> (i32, i32, i32) {
    %c0_i32 = arith.constant 0 : i32
    %c0_i32_0 = arith.constant 0 : i32
    %c0_i32_1 = arith.constant 0 : i32
    return %arg1, %c0_i32, %c0_i32_0 : i32, i32, i32
  }
  func.func @transform_5(%arg0: i32, %arg1: i32) -> (i32, i32, i32) {
    %c0_i32 = arith.constant 0 : i32
    %c0_i32_0 = arith.constant 0 : i32
    %c0_i32_1 = arith.constant 0 : i32
    return %arg1, %c0_i32, %c0_i32_0 : i32, i32, i32
  }
  func.func @transform_6(%arg0: i32, %arg1: i32) -> (i32, i32, i32) {
    %c0_i32 = arith.constant 0 : i32
    %c0_i32_0 = arith.constant 0 : i32
    %c0_i32_1 = arith.constant 0 : i32
    return %arg1, %c0_i32, %c0_i32_0 : i32, i32, i32
  }
  func.func @transform_7(%arg0: i32, %arg1: i32) -> (i32, i32, i32) {
    %c0_i32 = arith.constant 0 : i32
    %c0_i32_0 = arith.constant 0 : i32
    %c0_i32_1 = arith.constant 0 : i32
    return %arg1, %c0_i32, %c0_i32_0 : i32, i32, i32
  }
  func.func @transform_8(%arg0: i32, %arg1: i32) -> (i32, i32, i32) {
    %c0_i32 = arith.constant 0 : i32
    %c0_i32_0 = arith.constant 0 : i32
    %c0_i32_1 = arith.constant 0 : i32
    return %arg1, %c0_i32, %c0_i32_0 : i32, i32, i32
  }
  func.func @transform_9(%arg0: i32, %arg1: i32) -> (i32, i32, i32) {
    %c0_i32 = arith.constant 0 : i32
    %c0_i32_0 = arith.constant 0 : i32
    %c0_i32_1 = arith.constant 0 : i32
    return %arg1, %c0_i32, %c0_i32_0 : i32, i32, i32
  }
  func.func @transform_10(%arg0: i32, %arg1: i32) -> (i32, i32, i32) {
    %c0_i32 = arith.constant 0 : i32
    %c0_i32_0 = arith.constant 0 : i32
    %c0_i32_1 = arith.constant 0 : i32
    return %arg1, %c0_i32, %c0_i32_0 : i32, i32, i32
  }
  func.func @transform_11(%arg0: i32, %arg1: i32) -> (i32, i32, i32) {
    %c0_i32 = arith.constant 0 : i32
    %c0_i32_0 = arith.constant 0 : i32
    %c0_i32_1 = arith.constant 0 : i32
    return %arg1, %c0_i32, %c0_i32_0 : i32, i32, i32
  }
  func.func @transform_12(%arg0: i32, %arg1: i32) -> (i32, i32, i32) {
    %c0_i32 = arith.constant 0 : i32
    %c0_i32_0 = arith.constant 0 : i32
    %c0_i32_1 = arith.constant 0 : i32
    return %arg1, %c0_i32, %c0_i32_0 : i32, i32, i32
  }
  func.func @transform_13(%arg0: i32, %arg1: i32) -> (i32, i32, i32) {
    %c0_i32 = arith.constant 0 : i32
    %c0_i32_0 = arith.constant 0 : i32
    %c0_i32_1 = arith.constant 0 : i32
    return %arg0, %c0_i32, %c0_i32_0 : i32, i32, i32
  }
}

module attributes {stable_mosaic.version = 11 : i64} {
  func.func @_mean_patch_kernel(%arg0: i32, %arg1: memref<4x4x128xbf16, #tpu.memory_space<vmem>>, %arg2: memref<4x1x128xbf16, #tpu.memory_space<vmem>>) attributes {dimension_semantics = [#tpu.dimension_semantics<parallel>], iteration_bounds = array<i64: 1>, scalar_prefetch = 0 : i64, scratch_operands = 0 : i64, tpu.core_type = #tpu.core_type<tc>, window_params = [{transform_indices = @transform_0, window_bounds = array<i64: 4, 4, 128>}, {transform_indices = @transform_1, window_bounds = array<i64: 4, 1, 128>}]} {
    %c0 = arith.constant 0 : index
    %c0_0 = arith.constant 0 : index
    %c0_1 = arith.constant 0 : index
    %0 = vector.load %arg1[%c0, %c0_0, %c0_1] : memref<4x4x128xbf16, #tpu.memory_space<vmem>>, vector<4x4x128xbf16>
    %1 = arith.extf %0 : vector<4x4x128xbf16> to vector<4x4x128xf32>
    %cst = arith.constant dense<0.000000e+00> : vector<4x128xf32>
    %2 = vector.multi_reduction <add>, %1, %cst [1] : vector<4x4x128xf32> to vector<4x128xf32>
    %3 = vector.shape_cast %2 : vector<4x128xf32> to vector<4x1x128xf32>
    %cst_2 = arith.constant 4.000000e+00 : f32
    %4 = vector.broadcast %cst_2 : f32 to vector<4x1x128xf32>
    %5 = arith.divf %3, %4 : vector<4x1x128xf32>
    %6 = arith.truncf %5 : vector<4x1x128xf32> to vector<4x1x128xbf16>
    %c0_3 = arith.constant 0 : index
    %c0_4 = arith.constant 0 : index
    %c0_5 = arith.constant 0 : index
    %7 = vector.load %arg2[%c0_3, %c0_4, %c0_5] : memref<4x1x128xbf16, #tpu.memory_space<vmem>>, vector<4x1x128xbf16>
    tpu.vector_store %arg2[%c0_3, %c0_4, %c0_5], %6 {strides = array<i32>} : memref<4x1x128xbf16, #tpu.memory_space<vmem>>, vector<4x1x128xbf16>,
    return
  }
  func.func @transform_0(%arg0: i32) -> (i32, i32, i32) {
    %c0_i32 = arith.constant 0 : i32
    %c0_i32_0 = arith.constant 0 : i32
    %c0_i32_1 = arith.constant 0 : i32
    return %arg0, %c0_i32, %c0_i32_0 : i32, i32, i32
  }
  func.func @transform_1(%arg0: i32) -> (i32, i32, i32) {
    %c0_i32 = arith.constant 0 : i32
    %c0_i32_0 = arith.constant 0 : i32
    %c0_i32_1 = arith.constant 0 : i32
    return %arg0, %c0_i32, %c0_i32_0 : i32, i32, i32
  }
}

module attributes {stable_mosaic.version = 11 : i64} {
  func.func @_outputconv_kernel(%arg0: i32, %arg1: memref<4x128xbf16, #tpu.memory_space<vmem>>, %arg2: memref<128x128xbf16, #tpu.memory_space<vmem>>, %arg3: memref<1x128xf32, #tpu.memory_space<vmem>>, %arg4: memref<1x128xf32, #tpu.memory_space<vmem>>, %arg5: memref<1x128xf32, #tpu.memory_space<vmem>>, %arg6: memref<128x64xbf16, #tpu.memory_space<vmem>>, %arg7: memref<1x64xf32, #tpu.memory_space<vmem>>, %arg8: memref<1x64xf32, #tpu.memory_space<vmem>>, %arg9: memref<1x64xf32, #tpu.memory_space<vmem>>, %arg10: memref<64x64xbf16, #tpu.memory_space<vmem>>, %arg11: memref<1x64xf32, #tpu.memory_space<vmem>>, %arg12: memref<1x64xf32, #tpu.memory_space<vmem>>, %arg13: memref<1x64xf32, #tpu.memory_space<vmem>>, %arg14: memref<64x128xbf16, #tpu.memory_space<vmem>>, %arg15: memref<1x128xf32, #tpu.memory_space<vmem>>, %arg16: memref<4x128xf32, #tpu.memory_space<vmem>>) attributes {dimension_semantics = [#tpu.dimension_semantics<parallel>], iteration_bounds = array<i64: 1>, scalar_prefetch = 0 : i64, scratch_operands = 0 : i64, tpu.core_type = #tpu.core_type<tc>, window_params = [{transform_indices = @transform_0, window_bounds = array<i64: 4, 128>}, {pipeline_mode = #tpu.pipeline_mode<synchronous>, transform_indices = @transform_1, window_bounds = array<i64: 128, 128>}, {pipeline_mode = #tpu.pipeline_mode<synchronous>, transform_indices = @transform_2, window_bounds = array<i64: 1, 128>}, {pipeline_mode = #tpu.pipeline_mode<synchronous>, transform_indices = @transform_3, window_bounds = array<i64: 1, 128>}, {pipeline_mode = #tpu.pipeline_mode<synchronous>, transform_indices = @transform_4, window_bounds = array<i64: 1, 128>}, {pipeline_mode = #tpu.pipeline_mode<synchronous>, transform_indices = @transform_5, window_bounds = array<i64: 128, 64>}, {pipeline_mode = #tpu.pipeline_mode<synchronous>, transform_indices = @transform_6, window_bounds = array<i64: 1, 64>}, {pipeline_mode = #tpu.pipeline_mode<synchronous>, transform_indices = @transform_7, window_bounds = array<i64: 1, 64>}, {pipeline_mode = #tpu.pipeline_mode<synchronous>, transform_indices = @transform_8, window_bounds = array<i64: 1, 64>}, {pipeline_mode = #tpu.pipeline_mode<synchronous>, transform_indices = @transform_9, window_bounds = array<i64: 64, 64>}, {pipeline_mode = #tpu.pipeline_mode<synchronous>, transform_indices = @transform_10, window_bounds = array<i64: 1, 64>}, {pipeline_mode = #tpu.pipeline_mode<synchronous>, transform_indices = @transform_11, window_bounds = array<i64: 1, 64>}, {pipeline_mode = #tpu.pipeline_mode<synchronous>, transform_indices = @transform_12, window_bounds = array<i64: 1, 64>}, {pipeline_mode = #tpu.pipeline_mode<synchronous>, transform_indices = @transform_13, window_bounds = array<i64: 64, 128>}, {pipeline_mode = #tpu.pipeline_mode<synchronous>, transform_indices = @transform_14, window_bounds = array<i64: 1, 128>}, {transform_indices = @transform_15, window_bounds = array<i64: 4, 128>}]} {
    %c0 = arith.constant 0 : index
    %c0_0 = arith.constant 0 : index
    %0 = vector.load %arg1[%c0, %c0_0] : memref<4x128xbf16, #tpu.memory_space<vmem>>, vector<4x128xbf16>
    %1 = arith.extf %0 : vector<4x128xbf16> to vector<4x128xf32>
    %c0_1 = arith.constant 0 : index
    %c0_2 = arith.constant 0 : index
    %2 = vector.load %arg2[%c0_1, %c0_2] : memref<128x128xbf16, #tpu.memory_space<vmem>>, vector<128x128xbf16>
    %c0_3 = arith.constant 0 : index
    %c0_4 = arith.constant 0 : index
    %3 = vector.load %arg3[%c0_3, %c0_4] : memref<1x128xf32, #tpu.memory_space<vmem>>, vector<1x128xf32>
    %4 = arith.truncf %1 : vector<4x128xf32> to vector<4x128xbf16>
    %cst = arith.constant dense<0.000000e+00> : vector<4x128xf32>
    %5 = tpu.matmul %4, %2, %cst {dimension_numbers = #tpu.dot_dimension_numbers<[1], [0], [0], [1], [0, 0, 1, 1], [], []>} : vector<4x128xbf16>, vector<128x128xbf16>, vector<4x128xf32> -> vector<4x128xf32>
    %6 = vector.broadcast %3 : vector<1x128xf32> to vector<4x128xf32>
    %7 = arith.addf %5, %6 : vector<4x128xf32>
    %c0_5 = arith.constant 0 : index
    %c0_6 = arith.constant 0 : index
    %8 = vector.load %arg4[%c0_5, %c0_6] : memref<1x128xf32, #tpu.memory_space<vmem>>, vector<1x128xf32>
    %c0_7 = arith.constant 0 : index
    %c0_8 = arith.constant 0 : index
    %9 = vector.load %arg5[%c0_7, %c0_8] : memref<1x128xf32, #tpu.memory_space<vmem>>, vector<1x128xf32>
    %cst_9 = arith.constant dense<0.000000e+00> : vector<4xf32>
    %10 = vector.multi_reduction <add>, %7, %cst_9 [1] : vector<4x128xf32> to vector<4xf32>
    %11 = vector.shape_cast %10 : vector<4xf32> to vector<4x1xf32>
    %cst_10 = arith.constant 1.280000e+02 : f32
    %12 = vector.broadcast %cst_10 : f32 to vector<4x1xf32>
    %13 = arith.divf %11, %12 : vector<4x1xf32>
    %14 = vector.broadcast %13 : vector<4x1xf32> to vector<4x128xf32>
    %15 = arith.subf %7, %14 : vector<4x128xf32>
    %16 = arith.mulf %15, %15 : vector<4x128xf32>
    %cst_11 = arith.constant dense<0.000000e+00> : vector<4xf32>
    %17 = vector.multi_reduction <add>, %16, %cst_11 [1] : vector<4x128xf32> to vector<4xf32>
    %18 = vector.shape_cast %17 : vector<4xf32> to vector<4x1xf32>
    %cst_12 = arith.constant 1.280000e+02 : f32
    %19 = vector.broadcast %cst_12 : f32 to vector<4x1xf32>
    %20 = arith.divf %18, %19 : vector<4x1xf32>
    %21 = vector.broadcast %13 : vector<4x1xf32> to vector<4x128xf32>
    %22 = arith.subf %7, %21 : vector<4x128xf32>
    %cst_13 = arith.constant 9.99999974E-6 : f32
    %23 = vector.broadcast %cst_13 : f32 to vector<4x1xf32>
    %24 = arith.addf %20, %23 : vector<4x1xf32>
    %25 = math.rsqrt %24 : vector<4x1xf32>
    %26 = vector.broadcast %25 : vector<4x1xf32> to vector<4x128xf32>
    %27 = arith.mulf %22, %26 : vector<4x128xf32>
    %28 = vector.broadcast %8 : vector<1x128xf32> to vector<4x128xf32>
    %29 = arith.mulf %27, %28 : vector<4x128xf32>
    %30 = vector.broadcast %9 : vector<1x128xf32> to vector<4x128xf32>
    %31 = arith.addf %29, %30 : vector<4x128xf32>
    %cst_14 = arith.constant 0.000000e+00 : f32
    %32 = vector.broadcast %cst_14 : f32 to vector<4x128xf32>
    %33 = arith.maximumf %31, %32 : vector<4x128xf32>
    %c0_15 = arith.constant 0 : index
    %c0_16 = arith.constant 0 : index
    %34 = vector.load %arg6[%c0_15, %c0_16] : memref<128x64xbf16, #tpu.memory_space<vmem>>, vector<128x64xbf16>
    %c0_17 = arith.constant 0 : index
    %c0_18 = arith.constant 0 : index
    %35 = vector.load %arg7[%c0_17, %c0_18] : memref<1x64xf32, #tpu.memory_space<vmem>>, vector<1x64xf32>
    %36 = arith.truncf %33 : vector<4x128xf32> to vector<4x128xbf16>
    %cst_19 = arith.constant dense<0.000000e+00> : vector<4x64xf32>
    %37 = tpu.matmul %36, %34, %cst_19 {dimension_numbers = #tpu.dot_dimension_numbers<[1], [0], [0], [1], [0, 0, 1, 1], [], []>} : vector<4x128xbf16>, vector<128x64xbf16>, vector<4x64xf32> -> vector<4x64xf32>
    %38 = vector.broadcast %35 : vector<1x64xf32> to vector<4x64xf32>
    %39 = arith.addf %37, %38 : vector<4x64xf32>
    %c0_20 = arith.constant 0 : index
    %c0_21 = arith.constant 0 : index
    %40 = vector.load %arg8[%c0_20, %c0_21] : memref<1x64xf32, #tpu.memory_space<vmem>>, vector<1x64xf32>
    %c0_22 = arith.constant 0 : index
    %c0_23 = arith.constant 0 : index
    %41 = vector.load %arg9[%c0_22, %c0_23] : memref<1x64xf32, #tpu.memory_space<vmem>>, vector<1x64xf32>
    %cst_24 = arith.constant dense<0.000000e+00> : vector<4xf32>
    %42 = vector.multi_reduction <add>, %39, %cst_24 [1] : vector<4x64xf32> to vector<4xf32>
    %43 = vector.shape_cast %42 : vector<4xf32> to vector<4x1xf32>
    %cst_25 = arith.constant 6.400000e+01 : f32
    %44 = vector.broadcast %cst_25 : f32 to vector<4x1xf32>
    %45 = arith.divf %43, %44 : vector<4x1xf32>
    %46 = vector.broadcast %45 : vector<4x1xf32> to vector<4x64xf32>
    %47 = arith.subf %39, %46 : vector<4x64xf32>
    %48 = arith.mulf %47, %47 : vector<4x64xf32>
    %cst_26 = arith.constant dense<0.000000e+00> : vector<4xf32>
    %49 = vector.multi_reduction <add>, %48, %cst_26 [1] : vector<4x64xf32> to vector<4xf32>
    %50 = vector.shape_cast %49 : vector<4xf32> to vector<4x1xf32>
    %cst_27 = arith.constant 6.400000e+01 : f32
    %51 = vector.broadcast %cst_27 : f32 to vector<4x1xf32>
    %52 = arith.divf %50, %51 : vector<4x1xf32>
    %53 = vector.broadcast %45 : vector<4x1xf32> to vector<4x64xf32>
    %54 = arith.subf %39, %53 : vector<4x64xf32>
    %cst_28 = arith.constant 9.99999974E-6 : f32
    %55 = vector.broadcast %cst_28 : f32 to vector<4x1xf32>
    %56 = arith.addf %52, %55 : vector<4x1xf32>
    %57 = math.rsqrt %56 : vector<4x1xf32>
    %58 = vector.broadcast %57 : vector<4x1xf32> to vector<4x64xf32>
    %59 = arith.mulf %54, %58 : vector<4x64xf32>
    %60 = vector.broadcast %40 : vector<1x64xf32> to vector<4x64xf32>
    %61 = arith.mulf %59, %60 : vector<4x64xf32>
    %62 = vector.broadcast %41 : vector<1x64xf32> to vector<4x64xf32>
    %63 = arith.addf %61, %62 : vector<4x64xf32>
    %cst_29 = arith.constant 0.000000e+00 : f32
    %64 = vector.broadcast %cst_29 : f32 to vector<4x64xf32>
    %65 = arith.maximumf %63, %64 : vector<4x64xf32>
    %c0_30 = arith.constant 0 : index
    %c0_31 = arith.constant 0 : index
    %66 = vector.load %arg10[%c0_30, %c0_31] : memref<64x64xbf16, #tpu.memory_space<vmem>>, vector<64x64xbf16>
    %c0_32 = arith.constant 0 : index
    %c0_33 = arith.constant 0 : index
    %67 = vector.load %arg11[%c0_32, %c0_33] : memref<1x64xf32, #tpu.memory_space<vmem>>, vector<1x64xf32>
    %68 = arith.truncf %65 : vector<4x64xf32> to vector<4x64xbf16>
    %cst_34 = arith.constant dense<0.000000e+00> : vector<4x64xf32>
    %69 = tpu.matmul %68, %66, %cst_34 {dimension_numbers = #tpu.dot_dimension_numbers<[1], [0], [0], [1], [0, 0, 1, 1], [], []>} : vector<4x64xbf16>, vector<64x64xbf16>, vector<4x64xf32> -> vector<4x64xf32>
    %70 = vector.broadcast %67 : vector<1x64xf32> to vector<4x64xf32>
    %71 = arith.addf %69, %70 : vector<4x64xf32>
    %c0_35 = arith.constant 0 : index
    %c0_36 = arith.constant 0 : index
    %72 = vector.load %arg12[%c0_35, %c0_36] : memref<1x64xf32, #tpu.memory_space<vmem>>, vector<1x64xf32>
    %c0_37 = arith.constant 0 : index
    %c0_38 = arith.constant 0 : index
    %73 = vector.load %arg13[%c0_37, %c0_38] : memref<1x64xf32, #tpu.memory_space<vmem>>, vector<1x64xf32>
    %cst_39 = arith.constant dense<0.000000e+00> : vector<4xf32>
    %74 = vector.multi_reduction <add>, %71, %cst_39 [1] : vector<4x64xf32> to vector<4xf32>
    %75 = vector.shape_cast %74 : vector<4xf32> to vector<4x1xf32>
    %cst_40 = arith.constant 6.400000e+01 : f32
    %76 = vector.broadcast %cst_40 : f32 to vector<4x1xf32>
    %77 = arith.divf %75, %76 : vector<4x1xf32>
    %78 = vector.broadcast %77 : vector<4x1xf32> to vector<4x64xf32>
    %79 = arith.subf %71, %78 : vector<4x64xf32>
    %80 = arith.mulf %79, %79 : vector<4x64xf32>
    %cst_41 = arith.constant dense<0.000000e+00> : vector<4xf32>
    %81 = vector.multi_reduction <add>, %80, %cst_41 [1] : vector<4x64xf32> to vector<4xf32>
    %82 = vector.shape_cast %81 : vector<4xf32> to vector<4x1xf32>
    %cst_42 = arith.constant 6.400000e+01 : f32
    %83 = vector.broadcast %cst_42 : f32 to vector<4x1xf32>
    %84 = arith.divf %82, %83 : vector<4x1xf32>
    %85 = vector.broadcast %77 : vector<4x1xf32> to vector<4x64xf32>
    %86 = arith.subf %71, %85 : vector<4x64xf32>
    %cst_43 = arith.constant 9.99999974E-6 : f32
    %87 = vector.broadcast %cst_43 : f32 to vector<4x1xf32>
    %88 = arith.addf %84, %87 : vector<4x1xf32>
    %89 = math.rsqrt %88 : vector<4x1xf32>
    %90 = vector.broadcast %89 : vector<4x1xf32> to vector<4x64xf32>
    %91 = arith.mulf %86, %90 : vector<4x64xf32>
    %92 = vector.broadcast %72 : vector<1x64xf32> to vector<4x64xf32>
    %93 = arith.mulf %91, %92 : vector<4x64xf32>
    %94 = vector.broadcast %73 : vector<1x64xf32> to vector<4x64xf32>
    %95 = arith.addf %93, %94 : vector<4x64xf32>
    %cst_44 = arith.constant 0.000000e+00 : f32
    %96 = vector.broadcast %cst_44 : f32 to vector<4x64xf32>
    %97 = arith.maximumf %95, %96 : vector<4x64xf32>
    %c0_45 = arith.constant 0 : index
    %c0_46 = arith.constant 0 : index
    %98 = vector.load %arg14[%c0_45, %c0_46] : memref<64x128xbf16, #tpu.memory_space<vmem>>, vector<64x128xbf16>
    %c0_47 = arith.constant 0 : index
    %c0_48 = arith.constant 0 : index
    %99 = vector.load %arg15[%c0_47, %c0_48] : memref<1x128xf32, #tpu.memory_space<vmem>>, vector<1x128xf32>
    %100 = arith.truncf %97 : vector<4x64xf32> to vector<4x64xbf16>
    %cst_49 = arith.constant dense<0.000000e+00> : vector<4x128xf32>
    %101 = tpu.matmul %100, %98, %cst_49 {dimension_numbers = #tpu.dot_dimension_numbers<[1], [0], [0], [1], [0, 0, 1, 1], [], []>} : vector<4x64xbf16>, vector<64x128xbf16>, vector<4x128xf32> -> vector<4x128xf32>
    %102 = vector.broadcast %99 : vector<1x128xf32> to vector<4x128xf32>
    %103 = arith.addf %101, %102 : vector<4x128xf32>
    %cst_50 = arith.constant dense<0xFF800000> : vector<4xf32>
    %104 = vector.multi_reduction <maximumf>, %103, %cst_50 [1] : vector<4x128xf32> to vector<4xf32>
    %105 = vector.shape_cast %104 : vector<4xf32> to vector<4x1xf32>
    %106 = vector.broadcast %105 : vector<4x1xf32> to vector<4x128xf32>
    %107 = arith.subf %103, %106 : vector<4x128xf32>
    %108 = math.exp %107 : vector<4x128xf32>
    %cst_51 = arith.constant dense<0.000000e+00> : vector<4xf32>
    %109 = vector.multi_reduction <add>, %108, %cst_51 [1] : vector<4x128xf32> to vector<4xf32>
    %110 = vector.shape_cast %109 : vector<4xf32> to vector<4x1xf32>
    %111 = math.log %110 : vector<4x1xf32>
    %112 = vector.broadcast %111 : vector<4x1xf32> to vector<4x128xf32>
    %113 = arith.subf %107, %112 : vector<4x128xf32>
    %c0_52 = arith.constant 0 : index
    %c0_53 = arith.constant 0 : index
    %114 = vector.load %arg16[%c0_52, %c0_53] : memref<4x128xf32, #tpu.memory_space<vmem>>, vector<4x128xf32>
    tpu.vector_store %arg16[%c0_52, %c0_53], %113 {strides = array<i32>} : memref<4x128xf32, #tpu.memory_space<vmem>>, vector<4x128xf32>,
    return
  }
  func.func @transform_0(%arg0: i32) -> (i32, i32) {
    %c0_i32 = arith.constant 0 : i32
    %c0_i32_0 = arith.constant 0 : i32
    return %arg0, %c0_i32 : i32, i32
  }
  func.func @transform_1(%arg0: i32) -> (i32, i32) {
    %c0_i32 = arith.constant 0 : i32
    %c0_i32_0 = arith.constant 0 : i32
    %c0_i32_1 = arith.constant 0 : i32
    return %c0_i32, %c0_i32_0 : i32, i32
  }
  func.func @transform_2(%arg0: i32) -> (i32, i32) {
    %c0_i32 = arith.constant 0 : i32
    %c0_i32_0 = arith.constant 0 : i32
    %c0_i32_1 = arith.constant 0 : i32
    return %c0_i32, %c0_i32_0 : i32, i32
  }
  func.func @transform_3(%arg0: i32) -> (i32, i32) {
    %c0_i32 = arith.constant 0 : i32
    %c0_i32_0 = arith.constant 0 : i32
    %c0_i32_1 = arith.constant 0 : i32
    return %c0_i32, %c0_i32_0 : i32, i32
  }
  func.func @transform_4(%arg0: i32) -> (i32, i32) {
    %c0_i32 = arith.constant 0 : i32
    %c0_i32_0 = arith.constant 0 : i32
    %c0_i32_1 = arith.constant 0 : i32
    return %c0_i32, %c0_i32_0 : i32, i32
  }
  func.func @transform_5(%arg0: i32) -> (i32, i32) {
    %c0_i32 = arith.constant 0 : i32
    %c0_i32_0 = arith.constant 0 : i32
    %c0_i32_1 = arith.constant 0 : i32
    return %c0_i32, %c0_i32_0 : i32, i32
  }
  func.func @transform_6(%arg0: i32) -> (i32, i32) {
    %c0_i32 = arith.constant 0 : i32
    %c0_i32_0 = arith.constant 0 : i32
    %c0_i32_1 = arith.constant 0 : i32
    return %c0_i32, %c0_i32_0 : i32, i32
  }
  func.func @transform_7(%arg0: i32) -> (i32, i32) {
    %c0_i32 = arith.constant 0 : i32
    %c0_i32_0 = arith.constant 0 : i32
    %c0_i32_1 = arith.constant 0 : i32
    return %c0_i32, %c0_i32_0 : i32, i32
  }
  func.func @transform_8(%arg0: i32) -> (i32, i32) {
    %c0_i32 = arith.constant 0 : i32
    %c0_i32_0 = arith.constant 0 : i32
    %c0_i32_1 = arith.constant 0 : i32
    return %c0_i32, %c0_i32_0 : i32, i32
  }
  func.func @transform_9(%arg0: i32) -> (i32, i32) {
    %c0_i32 = arith.constant 0 : i32
    %c0_i32_0 = arith.constant 0 : i32
    %c0_i32_1 = arith.constant 0 : i32
    return %c0_i32, %c0_i32_0 : i32, i32
  }
  func.func @transform_10(%arg0: i32) -> (i32, i32) {
    %c0_i32 = arith.constant 0 : i32
    %c0_i32_0 = arith.constant 0 : i32
    %c0_i32_1 = arith.constant 0 : i32
    return %c0_i32, %c0_i32_0 : i32, i32
  }
  func.func @transform_11(%arg0: i32) -> (i32, i32) {
    %c0_i32 = arith.constant 0 : i32
    %c0_i32_0 = arith.constant 0 : i32
    %c0_i32_1 = arith.constant 0 : i32
    return %c0_i32, %c0_i32_0 : i32, i32
  }
  func.func @transform_12(%arg0: i32) -> (i32, i32) {
    %c0_i32 = arith.constant 0 : i32
    %c0_i32_0 = arith.constant 0 : i32
    %c0_i32_1 = arith.constant 0 : i32
    return %c0_i32, %c0_i32_0 : i32, i32
  }
  func.func @transform_13(%arg0: i32) -> (i32, i32) {
    %c0_i32 = arith.constant 0 : i32
    %c0_i32_0 = arith.constant 0 : i32
    %c0_i32_1 = arith.constant 0 : i32
    return %c0_i32, %c0_i32_0 : i32, i32
  }
  func.func @transform_14(%arg0: i32) -> (i32, i32) {
    %c0_i32 = arith.constant 0 : i32
    %c0_i32_0 = arith.constant 0 : i32
    %c0_i32_1 = arith.constant 0 : i32
    return %c0_i32, %c0_i32_0 : i32, i32
  }
  func.func @transform_15(%arg0: i32) -> (i32, i32) {
    %c0_i32 = arith.constant 0 : i32
    %c0_i32_0 = arith.constant 0 : i32
    return %arg0, %c0_i32 : i32, i32
  }
}

module attributes {stable_mosaic.version = 11 : i64} {
  func.func @_dec_stack_kernel(%arg0: i32, %arg1: i32, %arg2: memref<1x4x128xbf16, #tpu.memory_space<vmem>>, %arg3: memref<1x2x128xbf16, #tpu.memory_space<vmem>>, %arg4: memref<1x4x4xf32, #tpu.memory_space<vmem>>, %arg5: memref<1x1x2xf32, #tpu.memory_space<vmem>>, %arg6: memref<1x128x384xbf16, #tpu.memory_space<vmem>>, %arg7: memref<1x1x384xf32, #tpu.memory_space<vmem>>, %arg8: memref<1x128x128xbf16, #tpu.memory_space<vmem>>, %arg9: memref<1x1x128xf32, #tpu.memory_space<vmem>>, %arg10: memref<1x1x128xf32, #tpu.memory_space<vmem>>, %arg11: memref<1x1x128xf32, #tpu.memory_space<vmem>>, %arg12: memref<1x128x128xbf16, #tpu.memory_space<vmem>>, %arg13: memref<1x1x128xf32, #tpu.memory_space<vmem>>, %arg14: memref<1x128x256xbf16, #tpu.memory_space<vmem>>, %arg15: memref<1x1x256xf32, #tpu.memory_space<vmem>>, %arg16: memref<1x128x128xbf16, #tpu.memory_space<vmem>>, %arg17: memref<1x1x128xf32, #tpu.memory_space<vmem>>, %arg18: memref<1x1x128xf32, #tpu.memory_space<vmem>>, %arg19: memref<1x1x128xf32, #tpu.memory_space<vmem>>, %arg20: memref<1x128x256xbf16, #tpu.memory_space<vmem>>, %arg21: memref<1x1x256xf32, #tpu.memory_space<vmem>>, %arg22: memref<1x256x128xbf16, #tpu.memory_space<vmem>>, %arg23: memref<1x1x128xf32, #tpu.memory_space<vmem>>, %arg24: memref<1x1x128xf32, #tpu.memory_space<vmem>>, %arg25: memref<1x1x128xf32, #tpu.memory_space<vmem>>, %arg26: memref<1x4x128xbf16, #tpu.memory_space<vmem>>, %arg27: memref<4x128xf32, #tpu.memory_space<vmem>>) attributes {dimension_semantics = [#tpu.dimension_semantics<parallel>, #tpu.dimension_semantics<arbitrary>], iteration_bounds = array<i64: 2, 2>, scalar_prefetch = 0 : i64, scratch_operands = 1 : i64, tpu.core_type = #tpu.core_type<tc>, window_params = [{transform_indices = @transform_0, window_bounds = array<i64: 1, 4, 128>}, {transform_indices = @transform_1, window_bounds = array<i64: 1, 2, 128>}, {transform_indices = @transform_2, window_bounds = array<i64: 1, 4, 4>}, {transform_indices = @transform_3, window_bounds = array<i64: 1, 1, 2>}, {transform_indices = @transform_4, window_bounds = array<i64: 1, 128, 384>}, {transform_indices = @transform_5, window_bounds = array<i64: 1, 1, 384>}, {transform_indices = @transform_6, window_bounds = array<i64: 1, 128, 128>}, {transform_indices = @transform_7, window_bounds = array<i64: 1, 1, 128>}, {transform_indices = @transform_8, window_bounds = array<i64: 1, 1, 128>}, {transform_indices = @transform_9, window_bounds = array<i64: 1, 1, 128>}, {transform_indices = @transform_10, window_bounds = array<i64: 1, 128, 128>}, {transform_indices = @transform_11, window_bounds = array<i64: 1, 1, 128>}, {transform_indices = @transform_12, window_bounds = array<i64: 1, 128, 256>}, {transform_indices = @transform_13, window_bounds = array<i64: 1, 1, 256>}, {transform_indices = @transform_14, window_bounds = array<i64: 1, 128, 128>}, {transform_indices = @transform_15, window_bounds = array<i64: 1, 1, 128>}, {transform_indices = @transform_16, window_bounds = array<i64: 1, 1, 128>}, {transform_indices = @transform_17, window_bounds = array<i64: 1, 1, 128>}, {transform_indices = @transform_18, window_bounds = array<i64: 1, 128, 256>}, {transform_indices = @transform_19, window_bounds = array<i64: 1, 1, 256>}, {transform_indices = @transform_20, window_bounds = array<i64: 1, 256, 128>}, {transform_indices = @transform_21, window_bounds = array<i64: 1, 1, 128>}, {transform_indices = @transform_22, window_bounds = array<i64: 1, 1, 128>}, {transform_indices = @transform_23, window_bounds = array<i64: 1, 1, 128>}, {transform_indices = @transform_24, window_bounds = array<i64: 1, 4, 128>}]} {
    %c0_i32 = arith.constant 0 : i32
    %0 = arith.cmpi eq, %arg1, %c0_i32 : i32
    %1 = arith.extui %0 : i1 to i32
    %c0_i32_0 = arith.constant 0 : i32
    %2 = arith.cmpi ne, %1, %c0_i32_0 : i32
    scf.if %2 {
      %c0_106 = arith.constant 0 : index
      %c0_107 = arith.constant 0 : index
      %c0_108 = arith.constant 0 : index
      %271 = vector.load %arg2[%c0_106, %c0_107, %c0_108] : memref<1x4x128xbf16, #tpu.memory_space<vmem>>, vector<1x4x128xbf16>
      %272 = vector.shape_cast %271 : vector<1x4x128xbf16> to vector<4x128xbf16>
      %273 = arith.extf %272 : vector<4x128xbf16> to vector<4x128xf32>
      %c0_109 = arith.constant 0 : index
      %c0_110 = arith.constant 0 : index
      %274 = vector.load %arg27[%c0_109, %c0_110] : memref<4x128xf32, #tpu.memory_space<vmem>>, vector<4x128xf32>
      tpu.vector_store %arg27[%c0_109, %c0_110], %273 {strides = array<i32>} : memref<4x128xf32, #tpu.memory_space<vmem>>, vector<4x128xf32>,
    } else {
    }
    %c0 = arith.constant 0 : index
    %c0_1 = arith.constant 0 : index
    %3 = vector.load %arg27[%c0, %c0_1] : memref<4x128xf32, #tpu.memory_space<vmem>>, vector<4x128xf32>
    %c0_2 = arith.constant 0 : index
    %c0_3 = arith.constant 0 : index
    %c0_4 = arith.constant 0 : index
    %4 = vector.load %arg3[%c0_2, %c0_3, %c0_4] : memref<1x2x128xbf16, #tpu.memory_space<vmem>>, vector<1x2x128xbf16>
    %5 = vector.shape_cast %4 : vector<1x2x128xbf16> to vector<2x128xbf16>
    %c0_5 = arith.constant 0 : index
    %c0_6 = arith.constant 0 : index
    %c0_7 = arith.constant 0 : index
    %6 = vector.load %arg4[%c0_5, %c0_6, %c0_7] : memref<1x4x4xf32, #tpu.memory_space<vmem>>, vector<1x4x4xf32>
    %7 = vector.shape_cast %6 : vector<1x4x4xf32> to vector<4x4xf32>
    %c0_8 = arith.constant 0 : index
    %c0_9 = arith.constant 0 : index
    %c0_10 = arith.constant 0 : index
    %8 = vector.load %arg5[%c0_8, %c0_9, %c0_10] : memref<1x1x2xf32, #tpu.memory_space<vmem>>, vector<1x1x2xf32>
    %9 = vector.shape_cast %8 : vector<1x1x2xf32> to vector<1x2xf32>
    %c0_11 = arith.constant 0 : index
    %c0_12 = arith.constant 0 : index
    %c0_13 = arith.constant 0 : index
    %10 = vector.load %arg6[%c0_11, %c0_12, %c0_13] : memref<1x128x384xbf16, #tpu.memory_space<vmem>>, vector<1x128x384xbf16>
    %11 = vector.shape_cast %10 : vector<1x128x384xbf16> to vector<128x384xbf16>
    %c0_14 = arith.constant 0 : index
    %c0_15 = arith.constant 0 : index
    %c0_16 = arith.constant 0 : index
    %12 = vector.load %arg7[%c0_14, %c0_15, %c0_16] : memref<1x1x384xf32, #tpu.memory_space<vmem>>, vector<1x1x384xf32>
    %13 = vector.shape_cast %12 : vector<1x1x384xf32> to vector<1x384xf32>
    %14 = arith.truncf %3 : vector<4x128xf32> to vector<4x128xbf16>
    %cst = arith.constant dense<0.000000e+00> : vector<4x384xf32>
    %15 = tpu.matmul %14, %11, %cst {dimension_numbers = #tpu.dot_dimension_numbers<[1], [0], [0], [1], [0, 0, 1, 1], [], []>} : vector<4x128xbf16>, vector<128x384xbf16>, vector<4x384xf32> -> vector<4x384xf32>
    %16 = vector.broadcast %13 : vector<1x384xf32> to vector<4x384xf32>
    %17 = arith.addf %15, %16 : vector<4x384xf32>
    %18 = vector.extract_strided_slice %17 {offsets = [0, 0], sizes = [4, 128], strides = [1, 1]} : vector<4x384xf32> to vector<4x128xf32>
    %19 = vector.extract_strided_slice %17 {offsets = [0, 128], sizes = [4, 128], strides = [1, 1]} : vector<4x384xf32> to vector<4x128xf32>
    %20 = vector.extract_strided_slice %17 {offsets = [0, 256], sizes = [4, 128], strides = [1, 1]} : vector<4x384xf32> to vector<4x128xf32>
    %21 = arith.truncf %18 : vector<4x128xf32> to vector<4x128xbf16>
    %22 = arith.truncf %19 : vector<4x128xf32> to vector<4x128xbf16>
    %23 = arith.truncf %20 : vector<4x128xf32> to vector<4x128xbf16>
    %24 = vector.extract_strided_slice %21 {offsets = [0, 0], sizes = [4, 32], strides = [1, 1]} : vector<4x128xbf16> to vector<4x32xbf16>
    %25 = vector.extract_strided_slice %21 {offsets = [0, 32], sizes = [4, 32], strides = [1, 1]} : vector<4x128xbf16> to vector<4x32xbf16>
    %26 = vector.extract_strided_slice %21 {offsets = [0, 64], sizes = [4, 32], strides = [1, 1]} : vector<4x128xbf16> to vector<4x32xbf16>
    %27 = vector.extract_strided_slice %21 {offsets = [0, 96], sizes = [4, 32], strides = [1, 1]} : vector<4x128xbf16> to vector<4x32xbf16>
    %28 = vector.shape_cast %24 : vector<4x32xbf16> to vector<1x4x32xbf16>
    %29 = vector.shape_cast %25 : vector<4x32xbf16> to vector<1x4x32xbf16>
    %30 = vector.shape_cast %26 : vector<4x32xbf16> to vector<1x4x32xbf16>
    %31 = vector.shape_cast %27 : vector<4x32xbf16> to vector<1x4x32xbf16>
    %32 = tpu.concatenate %28, %29, %30, %31 in 0 : vector<1x4x32xbf16>, vector<1x4x32xbf16>, vector<1x4x32xbf16>, vector<1x4x32xbf16> -> vector<4x4x32xbf16>
    %33 = vector.extract_strided_slice %22 {offsets = [0, 0], sizes = [4, 32], strides = [1, 1]} : vector<4x128xbf16> to vector<4x32xbf16>
    %34 = vector.extract_strided_slice %22 {offsets = [0, 32], sizes = [4, 32], strides = [1, 1]} : vector<4x128xbf16> to vector<4x32xbf16>
    %35 = vector.extract_strided_slice %22 {offsets = [0, 64], sizes = [4, 32], strides = [1, 1]} : vector<4x128xbf16> to vector<4x32xbf16>
    %36 = vector.extract_strided_slice %22 {offsets = [0, 96], sizes = [4, 32], strides = [1, 1]} : vector<4x128xbf16> to vector<4x32xbf16>
    %37 = vector.shape_cast %33 : vector<4x32xbf16> to vector<1x4x32xbf16>
    %38 = vector.shape_cast %34 : vector<4x32xbf16> to vector<1x4x32xbf16>
    %39 = vector.shape_cast %35 : vector<4x32xbf16> to vector<1x4x32xbf16>
    %40 = vector.shape_cast %36 : vector<4x32xbf16> to vector<1x4x32xbf16>
    %41 = tpu.concatenate %37, %38, %39, %40 in 0 : vector<1x4x32xbf16>, vector<1x4x32xbf16>, vector<1x4x32xbf16>, vector<1x4x32xbf16> -> vector<4x4x32xbf16>
    %42 = vector.extract_strided_slice %23 {offsets = [0, 0], sizes = [4, 32], strides = [1, 1]} : vector<4x128xbf16> to vector<4x32xbf16>
    %43 = vector.extract_strided_slice %23 {offsets = [0, 32], sizes = [4, 32], strides = [1, 1]} : vector<4x128xbf16> to vector<4x32xbf16>
    %44 = vector.extract_strided_slice %23 {offsets = [0, 64], sizes = [4, 32], strides = [1, 1]} : vector<4x128xbf16> to vector<4x32xbf16>
    %45 = vector.extract_strided_slice %23 {offsets = [0, 96], sizes = [4, 32], strides = [1, 1]} : vector<4x128xbf16> to vector<4x32xbf16>
    %46 = vector.shape_cast %42 : vector<4x32xbf16> to vector<1x4x32xbf16>
    %47 = vector.shape_cast %43 : vector<4x32xbf16> to vector<1x4x32xbf16>
    %48 = vector.shape_cast %44 : vector<4x32xbf16> to vector<1x4x32xbf16>
    %49 = vector.shape_cast %45 : vector<4x32xbf16> to vector<1x4x32xbf16>
    %50 = tpu.concatenate %46, %47, %48, %49 in 0 : vector<1x4x32xbf16>, vector<1x4x32xbf16>, vector<1x4x32xbf16>, vector<1x4x32xbf16> -> vector<4x4x32xbf16>
    "tpu.trace_start"() <{level = 10 : i32, message = "hqd,hkd->hqk"}> : () -> ()
    %cst_17 = arith.constant dense<0.000000e+00> : vector<4x4x4xf32>
    %51 = tpu.matmul %32, %41, %cst_17 {dimension_numbers = #tpu.dot_dimension_numbers<[2], [2], [1], [1], [0, 0, 0, 1, 1, 1], [0], [0]>} : vector<4x4x32xbf16>, vector<4x4x32xbf16>, vector<4x4x4xf32> -> vector<4x4x4xf32>
    "tpu.trace_stop"() : () -> ()
    %cst_18 = arith.constant 0.176776692 : f32
    %52 = vector.broadcast %cst_18 : f32 to vector<4x4x4xf32>
    %53 = arith.mulf %51, %52 : vector<4x4x4xf32>
    %54 = vector.shape_cast %7 : vector<4x4xf32> to vector<1x4x4xf32>
    %55 = vector.broadcast %54 : vector<1x4x4xf32> to vector<4x4x4xf32>
    %56 = arith.addf %53, %55 : vector<4x4x4xf32>
    %cst_19 = arith.constant dense<0xFF800000> : vector<4x4xf32>
    %57 = vector.multi_reduction <maximumf>, %56, %cst_19 [2] : vector<4x4x4xf32> to vector<4x4xf32>
    %58 = vector.shape_cast %57 : vector<4x4xf32> to vector<4x4x1xf32>
    %59 = vector.broadcast %58 : vector<4x4x1xf32> to vector<4x4x4xf32>
    %60 = arith.subf %56, %59 : vector<4x4x4xf32>
    %61 = math.exp %60 : vector<4x4x4xf32>
    %cst_20 = arith.constant dense<0.000000e+00> : vector<4x4xf32>
    %62 = vector.multi_reduction <add>, %61, %cst_20 [2] : vector<4x4x4xf32> to vector<4x4xf32>
    %63 = vector.shape_cast %62 : vector<4x4xf32> to vector<4x4x1xf32>
    %64 = tpu.reciprocal %63 {approx = true} : vector<4x4x1xf32> -> vector<4x4x1xf32>
    %65 = vector.broadcast %64 : vector<4x4x1xf32> to vector<4x4x4xf32>
    %66 = arith.mulf %61, %65 : vector<4x4x4xf32>
    %67 = arith.truncf %66 : vector<4x4x4xf32> to vector<4x4x4xbf16>
    "tpu.trace_start"() <{level = 10 : i32, message = "hqk,hkd->hqd"}> : () -> ()
    %cst_21 = arith.constant dense<0.000000e+00> : vector<4x4x32xf32>
    %68 = tpu.matmul %67, %50, %cst_21 {dimension_numbers = #tpu.dot_dimension_numbers<[2], [1], [1], [2], [0, 0, 0, 1, 1, 2], [0], [0]>} : vector<4x4x4xbf16>, vector<4x4x32xbf16>, vector<4x4x32xf32> -> vector<4x4x32xf32>
    "tpu.trace_stop"() : () -> ()
    %69 = vector.extract_strided_slice %68 {offsets = [0, 0, 0], sizes = [1, 4, 32], strides = [1, 1, 1]} : vector<4x4x32xf32> to vector<1x4x32xf32>
    %70 = vector.shape_cast %69 : vector<1x4x32xf32> to vector<4x32xf32>
    %71 = vector.extract_strided_slice %68 {offsets = [1, 0, 0], sizes = [1, 4, 32], strides = [1, 1, 1]} : vector<4x4x32xf32> to vector<1x4x32xf32>
    %72 = vector.shape_cast %71 : vector<1x4x32xf32> to vector<4x32xf32>
    %73 = vector.extract_strided_slice %68 {offsets = [2, 0, 0], sizes = [1, 4, 32], strides = [1, 1, 1]} : vector<4x4x32xf32> to vector<1x4x32xf32>
    %74 = vector.shape_cast %73 : vector<1x4x32xf32> to vector<4x32xf32>
    %75 = vector.extract_strided_slice %68 {offsets = [3, 0, 0], sizes = [1, 4, 32], strides = [1, 1, 1]} : vector<4x4x32xf32> to vector<1x4x32xf32>
    %76 = vector.shape_cast %75 : vector<1x4x32xf32> to vector<4x32xf32>
    %77 = tpu.concatenate %70, %72, %74, %76 in 1 : vector<4x32xf32>, vector<4x32xf32>, vector<4x32xf32>, vector<4x32xf32> -> vector<4x128xf32>
    %c0_22 = arith.constant 0 : index
    %c0_23 = arith.constant 0 : index
    %c0_24 = arith.constant 0 : index
    %78 = vector.load %arg8[%c0_22, %c0_23, %c0_24] : memref<1x128x128xbf16, #tpu.memory_space<vmem>>, vector<1x128x128xbf16>
    %79 = vector.shape_cast %78 : vector<1x128x128xbf16> to vector<128x128xbf16>
    %c0_25 = arith.constant 0 : index
    %c0_26 = arith.constant 0 : index
    %c0_27 = arith.constant 0 : index
    %80 = vector.load %arg9[%c0_25, %c0_26, %c0_27] : memref<1x1x128xf32, #tpu.memory_space<vmem>>, vector<1x1x128xf32>
    %81 = vector.shape_cast %80 : vector<1x1x128xf32> to vector<1x128xf32>
    %82 = arith.truncf %77 : vector<4x128xf32> to vector<4x128xbf16>
    %cst_28 = arith.constant dense<0.000000e+00> : vector<4x128xf32>
    %83 = tpu.matmul %82, %79, %cst_28 {dimension_numbers = #tpu.dot_dimension_numbers<[1], [0], [0], [1], [0, 0, 1, 1], [], []>} : vector<4x128xbf16>, vector<128x128xbf16>, vector<4x128xf32> -> vector<4x128xf32>
    %84 = vector.broadcast %81 : vector<1x128xf32> to vector<4x128xf32>
    %85 = arith.addf %83, %84 : vector<4x128xf32>
    %86 = arith.addf %3, %85 : vector<4x128xf32>
    %c0_29 = arith.constant 0 : index
    %c0_30 = arith.constant 0 : index
    %c0_31 = arith.constant 0 : index
    %87 = vector.load %arg10[%c0_29, %c0_30, %c0_31] : memref<1x1x128xf32, #tpu.memory_space<vmem>>, vector<1x1x128xf32>
    %88 = vector.shape_cast %87 : vector<1x1x128xf32> to vector<1x128xf32>
    %c0_32 = arith.constant 0 : index
    %c0_33 = arith.constant 0 : index
    %c0_34 = arith.constant 0 : index
    %89 = vector.load %arg11[%c0_32, %c0_33, %c0_34] : memref<1x1x128xf32, #tpu.memory_space<vmem>>, vector<1x1x128xf32>
    %90 = vector.shape_cast %89 : vector<1x1x128xf32> to vector<1x128xf32>
    %cst_35 = arith.constant dense<0.000000e+00> : vector<4xf32>
    %91 = vector.multi_reduction <add>, %86, %cst_35 [1] : vector<4x128xf32> to vector<4xf32>
    %92 = vector.shape_cast %91 : vector<4xf32> to vector<4x1xf32>
    %cst_36 = arith.constant 1.280000e+02 : f32
    %93 = vector.broadcast %cst_36 : f32 to vector<4x1xf32>
    %94 = arith.divf %92, %93 : vector<4x1xf32>
    %95 = vector.broadcast %94 : vector<4x1xf32> to vector<4x128xf32>
    %96 = arith.subf %86, %95 : vector<4x128xf32>
    %97 = arith.mulf %96, %96 : vector<4x128xf32>
    %cst_37 = arith.constant dense<0.000000e+00> : vector<4xf32>
    %98 = vector.multi_reduction <add>, %97, %cst_37 [1] : vector<4x128xf32> to vector<4xf32>
    %99 = vector.shape_cast %98 : vector<4xf32> to vector<4x1xf32>
    %cst_38 = arith.constant 1.280000e+02 : f32
    %100 = vector.broadcast %cst_38 : f32 to vector<4x1xf32>
    %101 = arith.divf %99, %100 : vector<4x1xf32>
    %102 = vector.broadcast %94 : vector<4x1xf32> to vector<4x128xf32>
    %103 = arith.subf %86, %102 : vector<4x128xf32>
    %cst_39 = arith.constant 9.99999974E-6 : f32
    %104 = vector.broadcast %cst_39 : f32 to vector<4x1xf32>
    %105 = arith.addf %101, %104 : vector<4x1xf32>
    %106 = math.rsqrt %105 : vector<4x1xf32>
    %107 = vector.broadcast %106 : vector<4x1xf32> to vector<4x128xf32>
    %108 = arith.mulf %103, %107 : vector<4x128xf32>
    %109 = vector.broadcast %88 : vector<1x128xf32> to vector<4x128xf32>
    %110 = arith.mulf %108, %109 : vector<4x128xf32>
    %111 = vector.broadcast %90 : vector<1x128xf32> to vector<4x128xf32>
    %112 = arith.addf %110, %111 : vector<4x128xf32>
    %c0_40 = arith.constant 0 : index
    %c0_41 = arith.constant 0 : index
    %c0_42 = arith.constant 0 : index
    %113 = vector.load %arg12[%c0_40, %c0_41, %c0_42] : memref<1x128x128xbf16, #tpu.memory_space<vmem>>, vector<1x128x128xbf16>
    %114 = vector.shape_cast %113 : vector<1x128x128xbf16> to vector<128x128xbf16>
    %c0_43 = arith.constant 0 : index
    %c0_44 = arith.constant 0 : index
    %c0_45 = arith.constant 0 : index
    %115 = vector.load %arg13[%c0_43, %c0_44, %c0_45] : memref<1x1x128xf32, #tpu.memory_space<vmem>>, vector<1x1x128xf32>
    %116 = vector.shape_cast %115 : vector<1x1x128xf32> to vector<1x128xf32>
    %117 = arith.truncf %112 : vector<4x128xf32> to vector<4x128xbf16>
    %cst_46 = arith.constant dense<0.000000e+00> : vector<4x128xf32>
    %118 = tpu.matmul %117, %114, %cst_46 {dimension_numbers = #tpu.dot_dimension_numbers<[1], [0], [0], [1], [0, 0, 1, 1], [], []>} : vector<4x128xbf16>, vector<128x128xbf16>, vector<4x128xf32> -> vector<4x128xf32>
    %119 = vector.broadcast %116 : vector<1x128xf32> to vector<4x128xf32>
    %120 = arith.addf %118, %119 : vector<4x128xf32>
    %c0_47 = arith.constant 0 : index
    %c0_48 = arith.constant 0 : index
    %c0_49 = arith.constant 0 : index
    %121 = vector.load %arg14[%c0_47, %c0_48, %c0_49] : memref<1x128x256xbf16, #tpu.memory_space<vmem>>, vector<1x128x256xbf16>
    %122 = vector.shape_cast %121 : vector<1x128x256xbf16> to vector<128x256xbf16>
    %c0_50 = arith.constant 0 : index
    %c0_51 = arith.constant 0 : index
    %c0_52 = arith.constant 0 : index
    %123 = vector.load %arg15[%c0_50, %c0_51, %c0_52] : memref<1x1x256xf32, #tpu.memory_space<vmem>>, vector<1x1x256xf32>
    %124 = vector.shape_cast %123 : vector<1x1x256xf32> to vector<1x256xf32>
    %cst_53 = arith.constant dense<0.000000e+00> : vector<2x256xf32>
    %125 = tpu.matmul %5, %122, %cst_53 {dimension_numbers = #tpu.dot_dimension_numbers<[1], [0], [0], [1], [0, 0, 1, 1], [], []>} : vector<2x128xbf16>, vector<128x256xbf16>, vector<2x256xf32> -> vector<2x256xf32>
    %126 = vector.broadcast %124 : vector<1x256xf32> to vector<2x256xf32>
    %127 = arith.addf %125, %126 : vector<2x256xf32>
    %128 = vector.extract_strided_slice %127 {offsets = [0, 0], sizes = [2, 128], strides = [1, 1]} : vector<2x256xf32> to vector<2x128xf32>
    %129 = vector.extract_strided_slice %127 {offsets = [0, 128], sizes = [2, 128], strides = [1, 1]} : vector<2x256xf32> to vector<2x128xf32>
    %130 = arith.truncf %120 : vector<4x128xf32> to vector<4x128xbf16>
    %131 = arith.truncf %128 : vector<2x128xf32> to vector<2x128xbf16>
    %132 = arith.truncf %129 : vector<2x128xf32> to vector<2x128xbf16>
    %133 = vector.extract_strided_slice %130 {offsets = [0, 0], sizes = [4, 32], strides = [1, 1]} : vector<4x128xbf16> to vector<4x32xbf16>
    %134 = vector.extract_strided_slice %130 {offsets = [0, 32], sizes = [4, 32], strides = [1, 1]} : vector<4x128xbf16> to vector<4x32xbf16>
    %135 = vector.extract_strided_slice %130 {offsets = [0, 64], sizes = [4, 32], strides = [1, 1]} : vector<4x128xbf16> to vector<4x32xbf16>
    %136 = vector.extract_strided_slice %130 {offsets = [0, 96], sizes = [4, 32], strides = [1, 1]} : vector<4x128xbf16> to vector<4x32xbf16>
    %137 = vector.shape_cast %133 : vector<4x32xbf16> to vector<1x4x32xbf16>
    %138 = vector.shape_cast %134 : vector<4x32xbf16> to vector<1x4x32xbf16>
    %139 = vector.shape_cast %135 : vector<4x32xbf16> to vector<1x4x32xbf16>
    %140 = vector.shape_cast %136 : vector<4x32xbf16> to vector<1x4x32xbf16>
    %141 = tpu.concatenate %137, %138, %139, %140 in 0 : vector<1x4x32xbf16>, vector<1x4x32xbf16>, vector<1x4x32xbf16>, vector<1x4x32xbf16> -> vector<4x4x32xbf16>
    %142 = vector.extract_strided_slice %131 {offsets = [0, 0], sizes = [2, 32], strides = [1, 1]} : vector<2x128xbf16> to vector<2x32xbf16>
    %143 = vector.extract_strided_slice %131 {offsets = [0, 32], sizes = [2, 32], strides = [1, 1]} : vector<2x128xbf16> to vector<2x32xbf16>
    %144 = vector.extract_strided_slice %131 {offsets = [0, 64], sizes = [2, 32], strides = [1, 1]} : vector<2x128xbf16> to vector<2x32xbf16>
    %145 = vector.extract_strided_slice %131 {offsets = [0, 96], sizes = [2, 32], strides = [1, 1]} : vector<2x128xbf16> to vector<2x32xbf16>
    %146 = vector.shape_cast %142 : vector<2x32xbf16> to vector<1x2x32xbf16>
    %147 = vector.shape_cast %143 : vector<2x32xbf16> to vector<1x2x32xbf16>
    %148 = vector.shape_cast %144 : vector<2x32xbf16> to vector<1x2x32xbf16>
    %149 = vector.shape_cast %145 : vector<2x32xbf16> to vector<1x2x32xbf16>
    %150 = tpu.concatenate %146, %147, %148, %149 in 0 : vector<1x2x32xbf16>, vector<1x2x32xbf16>, vector<1x2x32xbf16>, vector<1x2x32xbf16> -> vector<4x2x32xbf16>
    %151 = vector.extract_strided_slice %132 {offsets = [0, 0], sizes = [2, 32], strides = [1, 1]} : vector<2x128xbf16> to vector<2x32xbf16>
    %152 = vector.extract_strided_slice %132 {offsets = [0, 32], sizes = [2, 32], strides = [1, 1]} : vector<2x128xbf16> to vector<2x32xbf16>
    %153 = vector.extract_strided_slice %132 {offsets = [0, 64], sizes = [2, 32], strides = [1, 1]} : vector<2x128xbf16> to vector<2x32xbf16>
    %154 = vector.extract_strided_slice %132 {offsets = [0, 96], sizes = [2, 32], strides = [1, 1]} : vector<2x128xbf16> to vector<2x32xbf16>
    %155 = vector.shape_cast %151 : vector<2x32xbf16> to vector<1x2x32xbf16>
    %156 = vector.shape_cast %152 : vector<2x32xbf16> to vector<1x2x32xbf16>
    %157 = vector.shape_cast %153 : vector<2x32xbf16> to vector<1x2x32xbf16>
    %158 = vector.shape_cast %154 : vector<2x32xbf16> to vector<1x2x32xbf16>
    %159 = tpu.concatenate %155, %156, %157, %158 in 0 : vector<1x2x32xbf16>, vector<1x2x32xbf16>, vector<1x2x32xbf16>, vector<1x2x32xbf16> -> vector<4x2x32xbf16>
    "tpu.trace_start"() <{level = 10 : i32, message = "hqd,hkd->hqk"}> : () -> ()
    %cst_54 = arith.constant dense<0.000000e+00> : vector<4x4x2xf32>
    %160 = tpu.matmul %141, %150, %cst_54 {dimension_numbers = #tpu.dot_dimension_numbers<[2], [2], [1], [1], [0, 0, 0, 1, 1, 1], [0], [0]>} : vector<4x4x32xbf16>, vector<4x2x32xbf16>, vector<4x4x2xf32> -> vector<4x4x2xf32>
    "tpu.trace_stop"() : () -> ()
    %cst_55 = arith.constant 0.176776692 : f32
    %161 = vector.broadcast %cst_55 : f32 to vector<4x4x2xf32>
    %162 = arith.mulf %160, %161 : vector<4x4x2xf32>
    %163 = vector.shape_cast %9 : vector<1x2xf32> to vector<1x1x2xf32>
    %164 = vector.broadcast %163 : vector<1x1x2xf32> to vector<4x4x2xf32>
    %165 = arith.addf %162, %164 : vector<4x4x2xf32>
    %cst_56 = arith.constant dense<0xFF800000> : vector<4x4xf32>
    %166 = vector.multi_reduction <maximumf>, %165, %cst_56 [2] : vector<4x4x2xf32> to vector<4x4xf32>
    %167 = vector.shape_cast %166 : vector<4x4xf32> to vector<4x4x1xf32>
    %168 = vector.broadcast %167 : vector<4x4x1xf32> to vector<4x4x2xf32>
    %169 = arith.subf %165, %168 : vector<4x4x2xf32>
    %170 = math.exp %169 : vector<4x4x2xf32>
    %cst_57 = arith.constant dense<0.000000e+00> : vector<4x4xf32>
    %171 = vector.multi_reduction <add>, %170, %cst_57 [2] : vector<4x4x2xf32> to vector<4x4xf32>
    %172 = vector.shape_cast %171 : vector<4x4xf32> to vector<4x4x1xf32>
    %173 = tpu.reciprocal %172 {approx = true} : vector<4x4x1xf32> -> vector<4x4x1xf32>
    %174 = vector.broadcast %173 : vector<4x4x1xf32> to vector<4x4x2xf32>
    %175 = arith.mulf %170, %174 : vector<4x4x2xf32>
    %176 = arith.truncf %175 : vector<4x4x2xf32> to vector<4x4x2xbf16>
    "tpu.trace_start"() <{level = 10 : i32, message = "hqk,hkd->hqd"}> : () -> ()
    %cst_58 = arith.constant dense<0.000000e+00> : vector<4x4x32xf32>
    %177 = tpu.matmul %176, %159, %cst_58 {dimension_numbers = #tpu.dot_dimension_numbers<[2], [1], [1], [2], [0, 0, 0, 1, 1, 2], [0], [0]>} : vector<4x4x2xbf16>, vector<4x2x32xbf16>, vector<4x4x32xf32> -> vector<4x4x32xf32>
    "tpu.trace_stop"() : () -> ()
    %178 = vector.extract_strided_slice %177 {offsets = [0, 0, 0], sizes = [1, 4, 32], strides = [1, 1, 1]} : vector<4x4x32xf32> to vector<1x4x32xf32>
    %179 = vector.shape_cast %178 : vector<1x4x32xf32> to vector<4x32xf32>
    %180 = vector.extract_strided_slice %177 {offsets = [1, 0, 0], sizes = [1, 4, 32], strides = [1, 1, 1]} : vector<4x4x32xf32> to vector<1x4x32xf32>
    %181 = vector.shape_cast %180 : vector<1x4x32xf32> to vector<4x32xf32>
    %182 = vector.extract_strided_slice %177 {offsets = [2, 0, 0], sizes = [1, 4, 32], strides = [1, 1, 1]} : vector<4x4x32xf32> to vector<1x4x32xf32>
    %183 = vector.shape_cast %182 : vector<1x4x32xf32> to vector<4x32xf32>
    %184 = vector.extract_strided_slice %177 {offsets = [3, 0, 0], sizes = [1, 4, 32], strides = [1, 1, 1]} : vector<4x4x32xf32> to vector<1x4x32xf32>
    %185 = vector.shape_cast %184 : vector<1x4x32xf32> to vector<4x32xf32>
    %186 = tpu.concatenate %179, %181, %183, %185 in 1 : vector<4x32xf32>, vector<4x32xf32>, vector<4x32xf32>, vector<4x32xf32> -> vector<4x128xf32>
    %c0_59 = arith.constant 0 : index
    %c0_60 = arith.constant 0 : index
    %c0_61 = arith.constant 0 : index
    %187 = vector.load %arg16[%c0_59, %c0_60, %c0_61] : memref<1x128x128xbf16, #tpu.memory_space<vmem>>, vector<1x128x128xbf16>
    %188 = vector.shape_cast %187 : vector<1x128x128xbf16> to vector<128x128xbf16>
    %c0_62 = arith.constant 0 : index
    %c0_63 = arith.constant 0 : index
    %c0_64 = arith.constant 0 : index
    %189 = vector.load %arg17[%c0_62, %c0_63, %c0_64] : memref<1x1x128xf32, #tpu.memory_space<vmem>>, vector<1x1x128xf32>
    %190 = vector.shape_cast %189 : vector<1x1x128xf32> to vector<1x128xf32>
    %191 = arith.truncf %186 : vector<4x128xf32> to vector<4x128xbf16>
    %cst_65 = arith.constant dense<0.000000e+00> : vector<4x128xf32>
    %192 = tpu.matmul %191, %188, %cst_65 {dimension_numbers = #tpu.dot_dimension_numbers<[1], [0], [0], [1], [0, 0, 1, 1], [], []>} : vector<4x128xbf16>, vector<128x128xbf16>, vector<4x128xf32> -> vector<4x128xf32>
    %193 = vector.broadcast %190 : vector<1x128xf32> to vector<4x128xf32>
    %194 = arith.addf %192, %193 : vector<4x128xf32>
    %195 = arith.addf %112, %194 : vector<4x128xf32>
    %c0_66 = arith.constant 0 : index
    %c0_67 = arith.constant 0 : index
    %c0_68 = arith.constant 0 : index
    %196 = vector.load %arg18[%c0_66, %c0_67, %c0_68] : memref<1x1x128xf32, #tpu.memory_space<vmem>>, vector<1x1x128xf32>
    %197 = vector.shape_cast %196 : vector<1x1x128xf32> to vector<1x128xf32>
    %c0_69 = arith.constant 0 : index
    %c0_70 = arith.constant 0 : index
    %c0_71 = arith.constant 0 : index
    %198 = vector.load %arg19[%c0_69, %c0_70, %c0_71] : memref<1x1x128xf32, #tpu.memory_space<vmem>>, vector<1x1x128xf32>
    %199 = vector.shape_cast %198 : vector<1x1x128xf32> to vector<1x128xf32>
    %cst_72 = arith.constant dense<0.000000e+00> : vector<4xf32>
    %200 = vector.multi_reduction <add>, %195, %cst_72 [1] : vector<4x128xf32> to vector<4xf32>
    %201 = vector.shape_cast %200 : vector<4xf32> to vector<4x1xf32>
    %cst_73 = arith.constant 1.280000e+02 : f32
    %202 = vector.broadcast %cst_73 : f32 to vector<4x1xf32>
    %203 = arith.divf %201, %202 : vector<4x1xf32>
    %204 = vector.broadcast %203 : vector<4x1xf32> to vector<4x128xf32>
    %205 = arith.subf %195, %204 : vector<4x128xf32>
    %206 = arith.mulf %205, %205 : vector<4x128xf32>
    %cst_74 = arith.constant dense<0.000000e+00> : vector<4xf32>
    %207 = vector.multi_reduction <add>, %206, %cst_74 [1] : vector<4x128xf32> to vector<4xf32>
    %208 = vector.shape_cast %207 : vector<4xf32> to vector<4x1xf32>
    %cst_75 = arith.constant 1.280000e+02 : f32
    %209 = vector.broadcast %cst_75 : f32 to vector<4x1xf32>
    %210 = arith.divf %208, %209 : vector<4x1xf32>
    %211 = vector.broadcast %203 : vector<4x1xf32> to vector<4x128xf32>
    %212 = arith.subf %195, %211 : vector<4x128xf32>
    %cst_76 = arith.constant 9.99999974E-6 : f32
    %213 = vector.broadcast %cst_76 : f32 to vector<4x1xf32>
    %214 = arith.addf %210, %213 : vector<4x1xf32>
    %215 = math.rsqrt %214 : vector<4x1xf32>
    %216 = vector.broadcast %215 : vector<4x1xf32> to vector<4x128xf32>
    %217 = arith.mulf %212, %216 : vector<4x128xf32>
    %218 = vector.broadcast %197 : vector<1x128xf32> to vector<4x128xf32>
    %219 = arith.mulf %217, %218 : vector<4x128xf32>
    %220 = vector.broadcast %199 : vector<1x128xf32> to vector<4x128xf32>
    %221 = arith.addf %219, %220 : vector<4x128xf32>
    %c0_77 = arith.constant 0 : index
    %c0_78 = arith.constant 0 : index
    %c0_79 = arith.constant 0 : index
    %222 = vector.load %arg20[%c0_77, %c0_78, %c0_79] : memref<1x128x256xbf16, #tpu.memory_space<vmem>>, vector<1x128x256xbf16>
    %223 = vector.shape_cast %222 : vector<1x128x256xbf16> to vector<128x256xbf16>
    %c0_80 = arith.constant 0 : index
    %c0_81 = arith.constant 0 : index
    %c0_82 = arith.constant 0 : index
    %224 = vector.load %arg21[%c0_80, %c0_81, %c0_82] : memref<1x1x256xf32, #tpu.memory_space<vmem>>, vector<1x1x256xf32>
    %225 = vector.shape_cast %224 : vector<1x1x256xf32> to vector<1x256xf32>
    %226 = arith.truncf %221 : vector<4x128xf32> to vector<4x128xbf16>
    %cst_83 = arith.constant dense<0.000000e+00> : vector<4x256xf32>
    %227 = tpu.matmul %226, %223, %cst_83 {dimension_numbers = #tpu.dot_dimension_numbers<[1], [0], [0], [1], [0, 0, 1, 1], [], []>} : vector<4x128xbf16>, vector<128x256xbf16>, vector<4x256xf32> -> vector<4x256xf32>
    %228 = vector.broadcast %225 : vector<1x256xf32> to vector<4x256xf32>
    %229 = arith.addf %227, %228 : vector<4x256xf32>
    %cst_84 = arith.constant 0.000000e+00 : f32
    %230 = vector.broadcast %cst_84 : f32 to vector<4x256xf32>
    %231 = arith.maximumf %229, %230 : vector<4x256xf32>
    %c0_85 = arith.constant 0 : index
    %c0_86 = arith.constant 0 : index
    %c0_87 = arith.constant 0 : index
    %232 = vector.load %arg22[%c0_85, %c0_86, %c0_87] : memref<1x256x128xbf16, #tpu.memory_space<vmem>>, vector<1x256x128xbf16>
    %233 = vector.shape_cast %232 : vector<1x256x128xbf16> to vector<256x128xbf16>
    %c0_88 = arith.constant 0 : index
    %c0_89 = arith.constant 0 : index
    %c0_90 = arith.constant 0 : index
    %234 = vector.load %arg23[%c0_88, %c0_89, %c0_90] : memref<1x1x128xf32, #tpu.memory_space<vmem>>, vector<1x1x128xf32>
    %235 = vector.shape_cast %234 : vector<1x1x128xf32> to vector<1x128xf32>
    %236 = arith.truncf %231 : vector<4x256xf32> to vector<4x256xbf16>
    %cst_91 = arith.constant dense<0.000000e+00> : vector<4x128xf32>
    %237 = tpu.matmul %236, %233, %cst_91 {dimension_numbers = #tpu.dot_dimension_numbers<[1], [0], [0], [1], [0, 0, 1, 1], [], []>} : vector<4x256xbf16>, vector<256x128xbf16>, vector<4x128xf32> -> vector<4x128xf32>
    %238 = vector.broadcast %235 : vector<1x128xf32> to vector<4x128xf32>
    %239 = arith.addf %237, %238 : vector<4x128xf32>
    %240 = arith.addf %221, %239 : vector<4x128xf32>
    %c0_92 = arith.constant 0 : index
    %c0_93 = arith.constant 0 : index
    %c0_94 = arith.constant 0 : index
    %241 = vector.load %arg24[%c0_92, %c0_93, %c0_94] : memref<1x1x128xf32, #tpu.memory_space<vmem>>, vector<1x1x128xf32>
    %242 = vector.shape_cast %241 : vector<1x1x128xf32> to vector<1x128xf32>
    %c0_95 = arith.constant 0 : index
    %c0_96 = arith.constant 0 : index
    %c0_97 = arith.constant 0 : index
    %243 = vector.load %arg25[%c0_95, %c0_96, %c0_97] : memref<1x1x128xf32, #tpu.memory_space<vmem>>, vector<1x1x128xf32>
    %244 = vector.shape_cast %243 : vector<1x1x128xf32> to vector<1x128xf32>
    %cst_98 = arith.constant dense<0.000000e+00> : vector<4xf32>
    %245 = vector.multi_reduction <add>, %240, %cst_98 [1] : vector<4x128xf32> to vector<4xf32>
    %246 = vector.shape_cast %245 : vector<4xf32> to vector<4x1xf32>
    %cst_99 = arith.constant 1.280000e+02 : f32
    %247 = vector.broadcast %cst_99 : f32 to vector<4x1xf32>
    %248 = arith.divf %246, %247 : vector<4x1xf32>
    %249 = vector.broadcast %248 : vector<4x1xf32> to vector<4x128xf32>
    %250 = arith.subf %240, %249 : vector<4x128xf32>
    %251 = arith.mulf %250, %250 : vector<4x128xf32>
    %cst_100 = arith.constant dense<0.000000e+00> : vector<4xf32>
    %252 = vector.multi_reduction <add>, %251, %cst_100 [1] : vector<4x128xf32> to vector<4xf32>
    %253 = vector.shape_cast %252 : vector<4xf32> to vector<4x1xf32>
    %cst_101 = arith.constant 1.280000e+02 : f32
    %254 = vector.broadcast %cst_101 : f32 to vector<4x1xf32>
    %255 = arith.divf %253, %254 : vector<4x1xf32>
    %256 = vector.broadcast %248 : vector<4x1xf32> to vector<4x128xf32>
    %257 = arith.subf %240, %256 : vector<4x128xf32>
    %cst_102 = arith.constant 9.99999974E-6 : f32
    %258 = vector.broadcast %cst_102 : f32 to vector<4x1xf32>
    %259 = arith.addf %255, %258 : vector<4x1xf32>
    %260 = math.rsqrt %259 : vector<4x1xf32>
    %261 = vector.broadcast %260 : vector<4x1xf32> to vector<4x128xf32>
    %262 = arith.mulf %257, %261 : vector<4x128xf32>
    %263 = vector.broadcast %242 : vector<1x128xf32> to vector<4x128xf32>
    %264 = arith.mulf %262, %263 : vector<4x128xf32>
    %265 = vector.broadcast %244 : vector<1x128xf32> to vector<4x128xf32>
    %266 = arith.addf %264, %265 : vector<4x128xf32>
    %c0_103 = arith.constant 0 : index
    %c0_104 = arith.constant 0 : index
    %267 = vector.load %arg27[%c0_103, %c0_104] : memref<4x128xf32, #tpu.memory_space<vmem>>, vector<4x128xf32>
    tpu.vector_store %arg27[%c0_103, %c0_104], %266 {strides = array<i32>} : memref<4x128xf32, #tpu.memory_space<vmem>>, vector<4x128xf32>,
    %c1_i32 = arith.constant 1 : i32
    %268 = arith.cmpi eq, %arg1, %c1_i32 : i32
    %269 = arith.extui %268 : i1 to i32
    %c0_i32_105 = arith.constant 0 : i32
    %270 = arith.cmpi ne, %269, %c0_i32_105 : i32
    scf.if %270 {
      %271 = arith.truncf %266 : vector<4x128xf32> to vector<4x128xbf16>
      %c0_106 = arith.constant 0 : index
      %c0_107 = arith.constant 0 : index
      %c0_108 = arith.constant 0 : index
      %272 = vector.load %arg26[%c0_106, %c0_107, %c0_108] : memref<1x4x128xbf16, #tpu.memory_space<vmem>>, vector<1x4x128xbf16>
      %273 = vector.shape_cast %272 : vector<1x4x128xbf16> to vector<4x128xbf16>
      %274 = vector.shape_cast %271 : vector<4x128xbf16> to vector<1x4x128xbf16>
      tpu.vector_store %arg26[%c0_106, %c0_107, %c0_108], %274 {strides = array<i32>} : memref<1x4x128xbf16, #tpu.memory_space<vmem>>, vector<1x4x128xbf16>,
    } else {
    }
    return
  }
  func.func @transform_0(%arg0: i32, %arg1: i32) -> (i32, i32, i32) {
    %c0_i32 = arith.constant 0 : i32
    %c0_i32_0 = arith.constant 0 : i32
    %c0_i32_1 = arith.constant 0 : i32
    return %arg0, %c0_i32, %c0_i32_0 : i32, i32, i32
  }
  func.func @transform_1(%arg0: i32, %arg1: i32) -> (i32, i32, i32) {
    %c0_i32 = arith.constant 0 : i32
    %c0_i32_0 = arith.constant 0 : i32
    %c0_i32_1 = arith.constant 0 : i32
    return %arg0, %c0_i32, %c0_i32_0 : i32, i32, i32
  }
  func.func @transform_2(%arg0: i32, %arg1: i32) -> (i32, i32, i32) {
    %c0_i32 = arith.constant 0 : i32
    %c0_i32_0 = arith.constant 0 : i32
    %c0_i32_1 = arith.constant 0 : i32
    return %arg0, %c0_i32, %c0_i32_0 : i32, i32, i32
  }
  func.func @transform_3(%arg0: i32, %arg1: i32) -> (i32, i32, i32) {
    %c0_i32 = arith.constant 0 : i32
    %c0_i32_0 = arith.constant 0 : i32
    %c0_i32_1 = arith.constant 0 : i32
    return %arg0, %c0_i32, %c0_i32_0 : i32, i32, i32
  }
  func.func @transform_4(%arg0: i32, %arg1: i32) -> (i32, i32, i32) {
    %c0_i32 = arith.constant 0 : i32
    %c0_i32_0 = arith.constant 0 : i32
    %c0_i32_1 = arith.constant 0 : i32
    return %arg1, %c0_i32, %c0_i32_0 : i32, i32, i32
  }
  func.func @transform_5(%arg0: i32, %arg1: i32) -> (i32, i32, i32) {
    %c0_i32 = arith.constant 0 : i32
    %c0_i32_0 = arith.constant 0 : i32
    %c0_i32_1 = arith.constant 0 : i32
    return %arg1, %c0_i32, %c0_i32_0 : i32, i32, i32
  }
  func.func @transform_6(%arg0: i32, %arg1: i32) -> (i32, i32, i32) {
    %c0_i32 = arith.constant 0 : i32
    %c0_i32_0 = arith.constant 0 : i32
    %c0_i32_1 = arith.constant 0 : i32
    return %arg1, %c0_i32, %c0_i32_0 : i32, i32, i32
  }
  func.func @transform_7(%arg0: i32, %arg1: i32) -> (i32, i32, i32) {
    %c0_i32 = arith.constant 0 : i32
    %c0_i32_0 = arith.constant 0 : i32
    %c0_i32_1 = arith.constant 0 : i32
    return %arg1, %c0_i32, %c0_i32_0 : i32, i32, i32
  }
  func.func @transform_8(%arg0: i32, %arg1: i32) -> (i32, i32, i32) {
    %c0_i32 = arith.constant 0 : i32
    %c0_i32_0 = arith.constant 0 : i32
    %c0_i32_1 = arith.constant 0 : i32
    return %arg1, %c0_i32, %c0_i32_0 : i32, i32, i32
  }
  func.func @transform_9(%arg0: i32, %arg1: i32) -> (i32, i32, i32) {
    %c0_i32 = arith.constant 0 : i32
    %c0_i32_0 = arith.constant 0 : i32
    %c0_i32_1 = arith.constant 0 : i32
    return %arg1, %c0_i32, %c0_i32_0 : i32, i32, i32
  }
  func.func @transform_10(%arg0: i32, %arg1: i32) -> (i32, i32, i32) {
    %c0_i32 = arith.constant 0 : i32
    %c0_i32_0 = arith.constant 0 : i32
    %c0_i32_1 = arith.constant 0 : i32
    return %arg1, %c0_i32, %c0_i32_0 : i32, i32, i32
  }
  func.func @transform_11(%arg0: i32, %arg1: i32) -> (i32, i32, i32) {
    %c0_i32 = arith.constant 0 : i32
    %c0_i32_0 = arith.constant 0 : i32
    %c0_i32_1 = arith.constant 0 : i32
    return %arg1, %c0_i32, %c0_i32_0 : i32, i32, i32
  }
  func.func @transform_12(%arg0: i32, %arg1: i32) -> (i32, i32, i32) {
    %c0_i32 = arith.constant 0 : i32
    %c0_i32_0 = arith.constant 0 : i32
    %c0_i32_1 = arith.constant 0 : i32
    return %arg1, %c0_i32, %c0_i32_0 : i32, i32, i32
  }
  func.func @transform_13(%arg0: i32, %arg1: i32) -> (i32, i32, i32) {
    %c0_i32 = arith.constant 0 : i32
    %c0_i32_0 = arith.constant 0 : i32
    %c0_i32_1 = arith.constant 0 : i32
    return %arg1, %c0_i32, %c0_i32_0 : i32, i32, i32
  }
  func.func @transform_14(%arg0: i32, %arg1: i32) -> (i32, i32, i32) {
    %c0_i32 = arith.constant 0 : i32
    %c0_i32_0 = arith.constant 0 : i32
    %c0_i32_1 = arith.constant 0 : i32
    return %arg1, %c0_i32, %c0_i32_0 : i32, i32, i32
  }
  func.func @transform_15(%arg0: i32, %arg1: i32) -> (i32, i32, i32) {
    %c0_i32 = arith.constant 0 : i32
    %c0_i32_0 = arith.constant 0 : i32
    %c0_i32_1 = arith.constant 0 : i32
    return %arg1, %c0_i32, %c0_i32_0 : i32, i32, i32
  }
  func.func @transform_16(%arg0: i32, %arg1: i32) -> (i32, i32, i32) {
    %c0_i32 = arith.constant 0 : i32
    %c0_i32_0 = arith.constant 0 : i32
    %c0_i32_1 = arith.constant 0 : i32
    return %arg1, %c0_i32, %c0_i32_0 : i32, i32, i32
  }
  func.func @transform_17(%arg0: i32, %arg1: i32) -> (i32, i32, i32) {
    %c0_i32 = arith.constant 0 : i32
    %c0_i32_0 = arith.constant 0 : i32
    %c0_i32_1 = arith.constant 0 : i32
    return %arg1, %c0_i32, %c0_i32_0 : i32, i32, i32
  }
  func.func @transform_18(%arg0: i32, %arg1: i32) -> (i32, i32, i32) {
    %c0_i32 = arith.constant 0 : i32
    %c0_i32_0 = arith.constant 0 : i32
    %c0_i32_1 = arith.constant 0 : i32
    return %arg1, %c0_i32, %c0_i32_0 : i32, i32, i32
  }
  func.func @transform_19(%arg0: i32, %arg1: i32) -> (i32, i32, i32) {
    %c0_i32 = arith.constant 0 : i32
    %c0_i32_0 = arith.constant 0 : i32
    %c0_i32_1 = arith.constant 0 : i32
    return %arg1, %c0_i32, %c0_i32_0 : i32, i32, i32
  }
  func.func @transform_20(%arg0: i32, %arg1: i32) -> (i32, i32, i32) {
    %c0_i32 = arith.constant 0 : i32
    %c0_i32_0 = arith.constant 0 : i32
    %c0_i32_1 = arith.constant 0 : i32
    return %arg1, %c0_i32, %c0_i32_0 : i32, i32, i32
  }
  func.func @transform_21(%arg0: i32, %arg1: i32) -> (i32, i32, i32) {
    %c0_i32 = arith.constant 0 : i32
    %c0_i32_0 = arith.constant 0 : i32
    %c0_i32_1 = arith.constant 0 : i32
    return %arg1, %c0_i32, %c0_i32_0 : i32, i32, i32
  }
  func.func @transform_22(%arg0: i32, %arg1: i32) -> (i32, i32, i32) {
    %c0_i32 = arith.constant 0 : i32
    %c0_i32_0 = arith.constant 0 : i32
    %c0_i32_1 = arith.constant 0 : i32
    return %arg1, %c0_i32, %c0_i32_0 : i32, i32, i32
  }
  func.func @transform_23(%arg0: i32, %arg1: i32) -> (i32, i32, i32) {
    %c0_i32 = arith.constant 0 : i32
    %c0_i32_0 = arith.constant 0 : i32
    %c0_i32_1 = arith.constant 0 : i32
    return %arg1, %c0_i32, %c0_i32_0 : i32, i32, i32
  }
  func.func @transform_24(%arg0: i32, %arg1: i32) -> (i32, i32, i32) {
    %c0_i32 = arith.constant 0 : i32
    %c0_i32_0 = arith.constant 0 : i32
    %c0_i32_1 = arith.constant 0 : i32
    return %arg0, %c0_i32, %c0_i32_0 : i32, i32, i32
  }
}

module attributes {stable_mosaic.version = 11 : i64} {
  func.func @_outputconv_kernel(%arg0: i32, %arg1: memref<8x128xbf16, #tpu.memory_space<vmem>>, %arg2: memref<1x128xf32, #tpu.memory_space<vmem>>, %arg3: memref<1x128xf32, #tpu.memory_space<vmem>>, %arg4: memref<128x128xbf16, #tpu.memory_space<vmem>>, %arg5: memref<1x128xf32, #tpu.memory_space<vmem>>, %arg6: memref<1x128xf32, #tpu.memory_space<vmem>>, %arg7: memref<1x128xf32, #tpu.memory_space<vmem>>, %arg8: memref<128x64xbf16, #tpu.memory_space<vmem>>, %arg9: memref<1x64xf32, #tpu.memory_space<vmem>>, %arg10: memref<1x64xf32, #tpu.memory_space<vmem>>, %arg11: memref<1x64xf32, #tpu.memory_space<vmem>>, %arg12: memref<64x64xbf16, #tpu.memory_space<vmem>>, %arg13: memref<1x64xf32, #tpu.memory_space<vmem>>, %arg14: memref<1x64xf32, #tpu.memory_space<vmem>>, %arg15: memref<1x64xf32, #tpu.memory_space<vmem>>, %arg16: memref<64x128xbf16, #tpu.memory_space<vmem>>, %arg17: memref<1x128xf32, #tpu.memory_space<vmem>>, %arg18: memref<8x128xf32, #tpu.memory_space<vmem>>) attributes {dimension_semantics = [#tpu.dimension_semantics<parallel>], iteration_bounds = array<i64: 1>, scalar_prefetch = 0 : i64, scratch_operands = 0 : i64, tpu.core_type = #tpu.core_type<tc>, window_params = [{transform_indices = @transform_0, window_bounds = array<i64: 8, 128>}, {pipeline_mode = #tpu.pipeline_mode<synchronous>, transform_indices = @transform_1, window_bounds = array<i64: 1, 128>}, {pipeline_mode = #tpu.pipeline_mode<synchronous>, transform_indices = @transform_2, window_bounds = array<i64: 1, 128>}, {pipeline_mode = #tpu.pipeline_mode<synchronous>, transform_indices = @transform_3, window_bounds = array<i64: 128, 128>}, {pipeline_mode = #tpu.pipeline_mode<synchronous>, transform_indices = @transform_4, window_bounds = array<i64: 1, 128>}, {pipeline_mode = #tpu.pipeline_mode<synchronous>, transform_indices = @transform_5, window_bounds = array<i64: 1, 128>}, {pipeline_mode = #tpu.pipeline_mode<synchronous>, transform_indices = @transform_6, window_bounds = array<i64: 1, 128>}, {pipeline_mode = #tpu.pipeline_mode<synchronous>, transform_indices = @transform_7, window_bounds = array<i64: 128, 64>}, {pipeline_mode = #tpu.pipeline_mode<synchronous>, transform_indices = @transform_8, window_bounds = array<i64: 1, 64>}, {pipeline_mode = #tpu.pipeline_mode<synchronous>, transform_indices = @transform_9, window_bounds = array<i64: 1, 64>}, {pipeline_mode = #tpu.pipeline_mode<synchronous>, transform_indices = @transform_10, window_bounds = array<i64: 1, 64>}, {pipeline_mode = #tpu.pipeline_mode<synchronous>, transform_indices = @transform_11, window_bounds = array<i64: 64, 64>}, {pipeline_mode = #tpu.pipeline_mode<synchronous>, transform_indices = @transform_12, window_bounds = array<i64: 1, 64>}, {pipeline_mode = #tpu.pipeline_mode<synchronous>, transform_indices = @transform_13, window_bounds = array<i64: 1, 64>}, {pipeline_mode = #tpu.pipeline_mode<synchronous>, transform_indices = @transform_14, window_bounds = array<i64: 1, 64>}, {pipeline_mode = #tpu.pipeline_mode<synchronous>, transform_indices = @transform_15, window_bounds = array<i64: 64, 128>}, {pipeline_mode = #tpu.pipeline_mode<synchronous>, transform_indices = @transform_16, window_bounds = array<i64: 1, 128>}, {transform_indices = @transform_17, window_bounds = array<i64: 8, 128>}]} {
    %c0 = arith.constant 0 : index
    %c0_0 = arith.constant 0 : index
    %0 = vector.load %arg1[%c0, %c0_0] : memref<8x128xbf16, #tpu.memory_space<vmem>>, vector<8x128xbf16>
    %1 = arith.extf %0 : vector<8x128xbf16> to vector<8x128xf32>
    %c0_1 = arith.constant 0 : index
    %c0_2 = arith.constant 0 : index
    %2 = vector.load %arg2[%c0_1, %c0_2] : memref<1x128xf32, #tpu.memory_space<vmem>>, vector<1x128xf32>
    %c0_3 = arith.constant 0 : index
    %c0_4 = arith.constant 0 : index
    %3 = vector.load %arg3[%c0_3, %c0_4] : memref<1x128xf32, #tpu.memory_space<vmem>>, vector<1x128xf32>
    %cst = arith.constant dense<0.000000e+00> : vector<8xf32>
    %4 = vector.multi_reduction <add>, %1, %cst [1] : vector<8x128xf32> to vector<8xf32>
    %5 = vector.shape_cast %4 : vector<8xf32> to vector<8x1xf32>
    %cst_5 = arith.constant 1.280000e+02 : f32
    %6 = vector.broadcast %cst_5 : f32 to vector<8x1xf32>
    %7 = arith.divf %5, %6 : vector<8x1xf32>
    %8 = vector.broadcast %7 : vector<8x1xf32> to vector<8x128xf32>
    %9 = arith.subf %1, %8 : vector<8x128xf32>
    %10 = arith.mulf %9, %9 : vector<8x128xf32>
    %cst_6 = arith.constant dense<0.000000e+00> : vector<8xf32>
    %11 = vector.multi_reduction <add>, %10, %cst_6 [1] : vector<8x128xf32> to vector<8xf32>
    %12 = vector.shape_cast %11 : vector<8xf32> to vector<8x1xf32>
    %cst_7 = arith.constant 1.280000e+02 : f32
    %13 = vector.broadcast %cst_7 : f32 to vector<8x1xf32>
    %14 = arith.divf %12, %13 : vector<8x1xf32>
    %15 = vector.broadcast %7 : vector<8x1xf32> to vector<8x128xf32>
    %16 = arith.subf %1, %15 : vector<8x128xf32>
    %cst_8 = arith.constant 9.99999974E-6 : f32
    %17 = vector.broadcast %cst_8 : f32 to vector<8x1xf32>
    %18 = arith.addf %14, %17 : vector<8x1xf32>
    %19 = math.rsqrt %18 : vector<8x1xf32>
    %20 = vector.broadcast %19 : vector<8x1xf32> to vector<8x128xf32>
    %21 = arith.mulf %16, %20 : vector<8x128xf32>
    %22 = vector.broadcast %2 : vector<1x128xf32> to vector<8x128xf32>
    %23 = arith.mulf %21, %22 : vector<8x128xf32>
    %24 = vector.broadcast %3 : vector<1x128xf32> to vector<8x128xf32>
    %25 = arith.addf %23, %24 : vector<8x128xf32>
    %c0_9 = arith.constant 0 : index
    %c0_10 = arith.constant 0 : index
    %26 = vector.load %arg4[%c0_9, %c0_10] : memref<128x128xbf16, #tpu.memory_space<vmem>>, vector<128x128xbf16>
    %c0_11 = arith.constant 0 : index
    %c0_12 = arith.constant 0 : index
    %27 = vector.load %arg5[%c0_11, %c0_12] : memref<1x128xf32, #tpu.memory_space<vmem>>, vector<1x128xf32>
    %28 = arith.truncf %25 : vector<8x128xf32> to vector<8x128xbf16>
    %cst_13 = arith.constant dense<0.000000e+00> : vector<8x128xf32>
    %29 = tpu.matmul %28, %26, %cst_13 {dimension_numbers = #tpu.dot_dimension_numbers<[1], [0], [0], [1], [0, 0, 1, 1], [], []>} : vector<8x128xbf16>, vector<128x128xbf16>, vector<8x128xf32> -> vector<8x128xf32>
    %30 = vector.broadcast %27 : vector<1x128xf32> to vector<8x128xf32>
    %31 = arith.addf %29, %30 : vector<8x128xf32>
    %c0_14 = arith.constant 0 : index
    %c0_15 = arith.constant 0 : index
    %32 = vector.load %arg6[%c0_14, %c0_15] : memref<1x128xf32, #tpu.memory_space<vmem>>, vector<1x128xf32>
    %c0_16 = arith.constant 0 : index
    %c0_17 = arith.constant 0 : index
    %33 = vector.load %arg7[%c0_16, %c0_17] : memref<1x128xf32, #tpu.memory_space<vmem>>, vector<1x128xf32>
    %cst_18 = arith.constant dense<0.000000e+00> : vector<8xf32>
    %34 = vector.multi_reduction <add>, %31, %cst_18 [1] : vector<8x128xf32> to vector<8xf32>
    %35 = vector.shape_cast %34 : vector<8xf32> to vector<8x1xf32>
    %cst_19 = arith.constant 1.280000e+02 : f32
    %36 = vector.broadcast %cst_19 : f32 to vector<8x1xf32>
    %37 = arith.divf %35, %36 : vector<8x1xf32>
    %38 = vector.broadcast %37 : vector<8x1xf32> to vector<8x128xf32>
    %39 = arith.subf %31, %38 : vector<8x128xf32>
    %40 = arith.mulf %39, %39 : vector<8x128xf32>
    %cst_20 = arith.constant dense<0.000000e+00> : vector<8xf32>
    %41 = vector.multi_reduction <add>, %40, %cst_20 [1] : vector<8x128xf32> to vector<8xf32>
    %42 = vector.shape_cast %41 : vector<8xf32> to vector<8x1xf32>
    %cst_21 = arith.constant 1.280000e+02 : f32
    %43 = vector.broadcast %cst_21 : f32 to vector<8x1xf32>
    %44 = arith.divf %42, %43 : vector<8x1xf32>
    %45 = vector.broadcast %37 : vector<8x1xf32> to vector<8x128xf32>
    %46 = arith.subf %31, %45 : vector<8x128xf32>
    %cst_22 = arith.constant 9.99999974E-6 : f32
    %47 = vector.broadcast %cst_22 : f32 to vector<8x1xf32>
    %48 = arith.addf %44, %47 : vector<8x1xf32>
    %49 = math.rsqrt %48 : vector<8x1xf32>
    %50 = vector.broadcast %49 : vector<8x1xf32> to vector<8x128xf32>
    %51 = arith.mulf %46, %50 : vector<8x128xf32>
    %52 = vector.broadcast %32 : vector<1x128xf32> to vector<8x128xf32>
    %53 = arith.mulf %51, %52 : vector<8x128xf32>
    %54 = vector.broadcast %33 : vector<1x128xf32> to vector<8x128xf32>
    %55 = arith.addf %53, %54 : vector<8x128xf32>
    %cst_23 = arith.constant 0.000000e+00 : f32
    %56 = vector.broadcast %cst_23 : f32 to vector<8x128xf32>
    %57 = arith.maximumf %55, %56 : vector<8x128xf32>
    %c0_24 = arith.constant 0 : index
    %c0_25 = arith.constant 0 : index
    %58 = vector.load %arg8[%c0_24, %c0_25] : memref<128x64xbf16, #tpu.memory_space<vmem>>, vector<128x64xbf16>
    %c0_26 = arith.constant 0 : index
    %c0_27 = arith.constant 0 : index
    %59 = vector.load %arg9[%c0_26, %c0_27] : memref<1x64xf32, #tpu.memory_space<vmem>>, vector<1x64xf32>
    %60 = arith.truncf %57 : vector<8x128xf32> to vector<8x128xbf16>
    %cst_28 = arith.constant dense<0.000000e+00> : vector<8x64xf32>
    %61 = tpu.matmul %60, %58, %cst_28 {dimension_numbers = #tpu.dot_dimension_numbers<[1], [0], [0], [1], [0, 0, 1, 1], [], []>} : vector<8x128xbf16>, vector<128x64xbf16>, vector<8x64xf32> -> vector<8x64xf32>
    %62 = vector.broadcast %59 : vector<1x64xf32> to vector<8x64xf32>
    %63 = arith.addf %61, %62 : vector<8x64xf32>
    %c0_29 = arith.constant 0 : index
    %c0_30 = arith.constant 0 : index
    %64 = vector.load %arg10[%c0_29, %c0_30] : memref<1x64xf32, #tpu.memory_space<vmem>>, vector<1x64xf32>
    %c0_31 = arith.constant 0 : index
    %c0_32 = arith.constant 0 : index
    %65 = vector.load %arg11[%c0_31, %c0_32] : memref<1x64xf32, #tpu.memory_space<vmem>>, vector<1x64xf32>
    %cst_33 = arith.constant dense<0.000000e+00> : vector<8xf32>
    %66 = vector.multi_reduction <add>, %63, %cst_33 [1] : vector<8x64xf32> to vector<8xf32>
    %67 = vector.shape_cast %66 : vector<8xf32> to vector<8x1xf32>
    %cst_34 = arith.constant 6.400000e+01 : f32
    %68 = vector.broadcast %cst_34 : f32 to vector<8x1xf32>
    %69 = arith.divf %67, %68 : vector<8x1xf32>
    %70 = vector.broadcast %69 : vector<8x1xf32> to vector<8x64xf32>
    %71 = arith.subf %63, %70 : vector<8x64xf32>
    %72 = arith.mulf %71, %71 : vector<8x64xf32>
    %cst_35 = arith.constant dense<0.000000e+00> : vector<8xf32>
    %73 = vector.multi_reduction <add>, %72, %cst_35 [1] : vector<8x64xf32> to vector<8xf32>
    %74 = vector.shape_cast %73 : vector<8xf32> to vector<8x1xf32>
    %cst_36 = arith.constant 6.400000e+01 : f32
    %75 = vector.broadcast %cst_36 : f32 to vector<8x1xf32>
    %76 = arith.divf %74, %75 : vector<8x1xf32>
    %77 = vector.broadcast %69 : vector<8x1xf32> to vector<8x64xf32>
    %78 = arith.subf %63, %77 : vector<8x64xf32>
    %cst_37 = arith.constant 9.99999974E-6 : f32
    %79 = vector.broadcast %cst_37 : f32 to vector<8x1xf32>
    %80 = arith.addf %76, %79 : vector<8x1xf32>
    %81 = math.rsqrt %80 : vector<8x1xf32>
    %82 = vector.broadcast %81 : vector<8x1xf32> to vector<8x64xf32>
    %83 = arith.mulf %78, %82 : vector<8x64xf32>
    %84 = vector.broadcast %64 : vector<1x64xf32> to vector<8x64xf32>
    %85 = arith.mulf %83, %84 : vector<8x64xf32>
    %86 = vector.broadcast %65 : vector<1x64xf32> to vector<8x64xf32>
    %87 = arith.addf %85, %86 : vector<8x64xf32>
    %cst_38 = arith.constant 0.000000e+00 : f32
    %88 = vector.broadcast %cst_38 : f32 to vector<8x64xf32>
    %89 = arith.maximumf %87, %88 : vector<8x64xf32>
    %c0_39 = arith.constant 0 : index
    %c0_40 = arith.constant 0 : index
    %90 = vector.load %arg12[%c0_39, %c0_40] : memref<64x64xbf16, #tpu.memory_space<vmem>>, vector<64x64xbf16>
    %c0_41 = arith.constant 0 : index
    %c0_42 = arith.constant 0 : index
    %91 = vector.load %arg13[%c0_41, %c0_42] : memref<1x64xf32, #tpu.memory_space<vmem>>, vector<1x64xf32>
    %92 = arith.truncf %89 : vector<8x64xf32> to vector<8x64xbf16>
    %cst_43 = arith.constant dense<0.000000e+00> : vector<8x64xf32>
    %93 = tpu.matmul %92, %90, %cst_43 {dimension_numbers = #tpu.dot_dimension_numbers<[1], [0], [0], [1], [0, 0, 1, 1], [], []>} : vector<8x64xbf16>, vector<64x64xbf16>, vector<8x64xf32> -> vector<8x64xf32>
    %94 = vector.broadcast %91 : vector<1x64xf32> to vector<8x64xf32>
    %95 = arith.addf %93, %94 : vector<8x64xf32>
    %c0_44 = arith.constant 0 : index
    %c0_45 = arith.constant 0 : index
    %96 = vector.load %arg14[%c0_44, %c0_45] : memref<1x64xf32, #tpu.memory_space<vmem>>, vector<1x64xf32>
    %c0_46 = arith.constant 0 : index
    %c0_47 = arith.constant 0 : index
    %97 = vector.load %arg15[%c0_46, %c0_47] : memref<1x64xf32, #tpu.memory_space<vmem>>, vector<1x64xf32>
    %cst_48 = arith.constant dense<0.000000e+00> : vector<8xf32>
    %98 = vector.multi_reduction <add>, %95, %cst_48 [1] : vector<8x64xf32> to vector<8xf32>
    %99 = vector.shape_cast %98 : vector<8xf32> to vector<8x1xf32>
    %cst_49 = arith.constant 6.400000e+01 : f32
    %100 = vector.broadcast %cst_49 : f32 to vector<8x1xf32>
    %101 = arith.divf %99, %100 : vector<8x1xf32>
    %102 = vector.broadcast %101 : vector<8x1xf32> to vector<8x64xf32>
    %103 = arith.subf %95, %102 : vector<8x64xf32>
    %104 = arith.mulf %103, %103 : vector<8x64xf32>
    %cst_50 = arith.constant dense<0.000000e+00> : vector<8xf32>
    %105 = vector.multi_reduction <add>, %104, %cst_50 [1] : vector<8x64xf32> to vector<8xf32>
    %106 = vector.shape_cast %105 : vector<8xf32> to vector<8x1xf32>
    %cst_51 = arith.constant 6.400000e+01 : f32
    %107 = vector.broadcast %cst_51 : f32 to vector<8x1xf32>
    %108 = arith.divf %106, %107 : vector<8x1xf32>
    %109 = vector.broadcast %101 : vector<8x1xf32> to vector<8x64xf32>
    %110 = arith.subf %95, %109 : vector<8x64xf32>
    %cst_52 = arith.constant 9.99999974E-6 : f32
    %111 = vector.broadcast %cst_52 : f32 to vector<8x1xf32>
    %112 = arith.addf %108, %111 : vector<8x1xf32>
    %113 = math.rsqrt %112 : vector<8x1xf32>
    %114 = vector.broadcast %113 : vector<8x1xf32> to vector<8x64xf32>
    %115 = arith.mulf %110, %114 : vector<8x64xf32>
    %116 = vector.broadcast %96 : vector<1x64xf32> to vector<8x64xf32>
    %117 = arith.mulf %115, %116 : vector<8x64xf32>
    %118 = vector.broadcast %97 : vector<1x64xf32> to vector<8x64xf32>
    %119 = arith.addf %117, %118 : vector<8x64xf32>
    %cst_53 = arith.constant 0.000000e+00 : f32
    %120 = vector.broadcast %cst_53 : f32 to vector<8x64xf32>
    %121 = arith.maximumf %119, %120 : vector<8x64xf32>
    %c0_54 = arith.constant 0 : index
    %c0_55 = arith.constant 0 : index
    %122 = vector.load %arg16[%c0_54, %c0_55] : memref<64x128xbf16, #tpu.memory_space<vmem>>, vector<64x128xbf16>
    %c0_56 = arith.constant 0 : index
    %c0_57 = arith.constant 0 : index
    %123 = vector.load %arg17[%c0_56, %c0_57] : memref<1x128xf32, #tpu.memory_space<vmem>>, vector<1x128xf32>
    %124 = arith.truncf %121 : vector<8x64xf32> to vector<8x64xbf16>
    %cst_58 = arith.constant dense<0.000000e+00> : vector<8x128xf32>
    %125 = tpu.matmul %124, %122, %cst_58 {dimension_numbers = #tpu.dot_dimension_numbers<[1], [0], [0], [1], [0, 0, 1, 1], [], []>} : vector<8x64xbf16>, vector<64x128xbf16>, vector<8x128xf32> -> vector<8x128xf32>
    %126 = vector.broadcast %123 : vector<1x128xf32> to vector<8x128xf32>
    %127 = arith.addf %125, %126 : vector<8x128xf32>
    %c0_59 = arith.constant 0 : index
    %c0_60 = arith.constant 0 : index
    %128 = vector.load %arg18[%c0_59, %c0_60] : memref<8x128xf32, #tpu.memory_space<vmem>>, vector<8x128xf32>
    tpu.vector_store %arg18[%c0_59, %c0_60], %127 {strides = array<i32>} : memref<8x128xf32, #tpu.memory_space<vmem>>, vector<8x128xf32>,
    return
  }
  func.func @transform_0(%arg0: i32) -> (i32, i32) {
    %c0_i32 = arith.constant 0 : i32
    %c0_i32_0 = arith.constant 0 : i32
    return %arg0, %c0_i32 : i32, i32
  }
  func.func @transform_1(%arg0: i32) -> (i32, i32) {
    %c0_i32 = arith.constant 0 : i32
    %c0_i32_0 = arith.constant 0 : i32
    %c0_i32_1 = arith.constant 0 : i32
    return %c0_i32, %c0_i32_0 : i32, i32
  }
  func.func @transform_2(%arg0: i32) -> (i32, i32) {
    %c0_i32 = arith.constant 0 : i32
    %c0_i32_0 = arith.constant 0 : i32
    %c0_i32_1 = arith.constant 0 : i32
    return %c0_i32, %c0_i32_0 : i32, i32
  }
  func.func @transform_3(%arg0: i32) -> (i32, i32) {
    %c0_i32 = arith.constant 0 : i32
    %c0_i32_0 = arith.constant 0 : i32
    %c0_i32_1 = arith.constant 0 : i32
    return %c0_i32, %c0_i32_0 : i32, i32
  }
  func.func @transform_4(%arg0: i32) -> (i32, i32) {
    %c0_i32 = arith.constant 0 : i32
    %c0_i32_0 = arith.constant 0 : i32
    %c0_i32_1 = arith.constant 0 : i32
    return %c0_i32, %c0_i32_0 : i32, i32
  }
  func.func @transform_5(%arg0: i32) -> (i32, i32) {
    %c0_i32 = arith.constant 0 : i32
    %c0_i32_0 = arith.constant 0 : i32
    %c0_i32_1 = arith.constant 0 : i32
    return %c0_i32, %c0_i32_0 : i32, i32
  }
  func.func @transform_6(%arg0: i32) -> (i32, i32) {
    %c0_i32 = arith.constant 0 : i32
    %c0_i32_0 = arith.constant 0 : i32
    %c0_i32_1 = arith.constant 0 : i32
    return %c0_i32, %c0_i32_0 : i32, i32
  }
  func.func @transform_7(%arg0: i32) -> (i32, i32) {
    %c0_i32 = arith.constant 0 : i32
    %c0_i32_0 = arith.constant 0 : i32
    %c0_i32_1 = arith.constant 0 : i32
    return %c0_i32, %c0_i32_0 : i32, i32
  }
  func.func @transform_8(%arg0: i32) -> (i32, i32) {
    %c0_i32 = arith.constant 0 : i32
    %c0_i32_0 = arith.constant 0 : i32
    %c0_i32_1 = arith.constant 0 : i32
    return %c0_i32, %c0_i32_0 : i32, i32
  }
  func.func @transform_9(%arg0: i32) -> (i32, i32) {
    %c0_i32 = arith.constant 0 : i32
    %c0_i32_0 = arith.constant 0 : i32
    %c0_i32_1 = arith.constant 0 : i32
    return %c0_i32, %c0_i32_0 : i32, i32
  }
  func.func @transform_10(%arg0: i32) -> (i32, i32) {
    %c0_i32 = arith.constant 0 : i32
    %c0_i32_0 = arith.constant 0 : i32
    %c0_i32_1 = arith.constant 0 : i32
    return %c0_i32, %c0_i32_0 : i32, i32
  }
  func.func @transform_11(%arg0: i32) -> (i32, i32) {
    %c0_i32 = arith.constant 0 : i32
    %c0_i32_0 = arith.constant 0 : i32
    %c0_i32_1 = arith.constant 0 : i32
    return %c0_i32, %c0_i32_0 : i32, i32
  }
  func.func @transform_12(%arg0: i32) -> (i32, i32) {
    %c0_i32 = arith.constant 0 : i32
    %c0_i32_0 = arith.constant 0 : i32
    %c0_i32_1 = arith.constant 0 : i32
    return %c0_i32, %c0_i32_0 : i32, i32
  }
  func.func @transform_13(%arg0: i32) -> (i32, i32) {
    %c0_i32 = arith.constant 0 : i32
    %c0_i32_0 = arith.constant 0 : i32
    %c0_i32_1 = arith.constant 0 : i32
    return %c0_i32, %c0_i32_0 : i32, i32
  }
  func.func @transform_14(%arg0: i32) -> (i32, i32) {
    %c0_i32 = arith.constant 0 : i32
    %c0_i32_0 = arith.constant 0 : i32
    %c0_i32_1 = arith.constant 0 : i32
    return %c0_i32, %c0_i32_0 : i32, i32
  }
  func.func @transform_15(%arg0: i32) -> (i32, i32) {
    %c0_i32 = arith.constant 0 : i32
    %c0_i32_0 = arith.constant 0 : i32
    %c0_i32_1 = arith.constant 0 : i32
    return %c0_i32, %c0_i32_0 : i32, i32
  }
  func.func @transform_16(%arg0: i32) -> (i32, i32) {
    %c0_i32 = arith.constant 0 : i32
    %c0_i32_0 = arith.constant 0 : i32
    %c0_i32_1 = arith.constant 0 : i32
    return %c0_i32, %c0_i32_0 : i32, i32
  }
  func.func @transform_17(%arg0: i32) -> (i32, i32) {
    %c0_i32 = arith.constant 0 : i32
    %c0_i32_0 = arith.constant 0 : i32
    return %arg0, %c0_i32 : i32, i32
  }
}

</mosaic_0001>

<bundles_post_ra>
// kernel: _forward.6
= control target key start
LH: loop header
LB: loop body
LE: loop exit
PB: predicated region body
PF: predicated region fallthrough
CT: control target
= control target key end

     0   :  { %s1761_s15 = smov 0   ;;  %s2088_s0 = inlined_call_operand.vmem [shape: bf16[2,8,1536], index: 0, kind: input, shape index: {}]   ;;  %s2089_s1 = inlined_call_operand.vmem [shape: bf16[1536,128], index: 1, kind: input, shape index: {}]   ;;  %s2090_s2 = inlined_call_operand.vmem [shape: f32[1,128], index: 2, kind: input, shape index: {}]   ;;  %s2091_s3 = inlined_call_operand.vmem [shape: f32[8,128], index: 3, kind: input, shape index: {}]   ;;  %s2092_s4 = inlined_call_operand.vmem [shape: bf16[2,8,128], index: 4, kind: output, shape index: {}]  }
   0x1 LB: > { %s1229_s16 = sadd.s32 4294967295, %s1734_s15   ;;  %p1233_p0 = scmp.ge.s32.totalorder %s1734_s15, 1  ;;  %s1734_s15 = sphi %s1761_s15, %s14_s15  }
   0x2   : > { %p162_p1 = scmp.lt.s32.totalorder %s1734_s15, 3 }
   0x4   : > { %p163_p2 = pnand %p1233_p0, %p162_p1 }
   0x5   : > { %p187_p3 = scmp.lt.s32.totalorder (!%p163_p2), %s1229_s16, 1 }
   0x6   : > { %166 = sbr.rel (%p163_p2) target bundleno = 250 (0xfa), region = 36 }
   0xb   : > { %v1629_v0 = vld [vmem:[%s2089_s1 + $0x38] sm:$0xff]  ;;  %v1628_v4 = vld [vmem:[%s2089_s1 + $0x30] sm:$0xff]  ;;  %v1627_v8 = vld [vmem:[%s2089_s1 + $0x28] sm:$0xff]  ;;  %s2094_s16 = smov (!%p187_p3, %s1229_s16), 1 }
   0xc   : > { %v1637_v1 = vld [vmem:[%s2089_s1 + $0x78] sm:$0xff]  ;;  %1016 = vmatpush.bf16.msra.mxu0 %v1629_v0  ;;  %v1636_v5 = vld [vmem:[%s2089_s1 + $0x70] sm:$0xff]  ;;  %v1635_v9 = vld [vmem:[%s2089_s1 + $0x68] sm:$0xff]  ;;  %s1718_s7 = smul.u32 48, %s2094_s16  ;;  %s1235_s30 = sshll.u32 %s2094_s16, 2 }
   0xd   : > { %v1645_v2 = vld [vmem:[%s2089_s1 + $0xb8] sm:$0xff]  ;;  %1029 = vmatpush.bf16.msra.mxu1 %v1637_v1  ;;  %v1644_v6 = vld [vmem:[%s2089_s1 + $0xb0] sm:$0xff]  ;;  %v1643_v10 = vld [vmem:[%s2089_s1 + $0xa8] sm:$0xff] }
   0xe   : > { %v1653_v3 = vld [vmem:[%s2089_s1 + $0xf8] sm:$0xff]  ;;  %1042 = vmatpush.bf16.msra.mxu2 %v1645_v2  ;;  %v1652_v7 = vld [vmem:[%s2089_s1 + $0xf0] sm:$0xff]  ;;  %v1651_v11 = vld [vmem:[%s2089_s1 + $0xe8] sm:$0xff]  ;;  %s1851_s20 = scalar_lea.vmem %s2088_s0, %s1718_s7  ;;  %s195_s7 = scalar_lea.vmem %s2092_s4, %s1235_s30 }
   0xf   : > { %1055 = vmatpush.bf16.msra.mxu3 %v1653_v3  ;;  %v1626_v12 = vld [vmem:[%s2089_s1 + $0x20] sm:$0xff]  ;;  %v1625_v16 = vld [vmem:[%s2089_s1 + $0x18] sm:$0xff]  ;;  %v1624_v20 = vld [vmem:[%s2089_s1 + $0x10] sm:$0xff] }
  0x10   : > { %1017 = vmatpush.bf16.msra.mxu0 %v1628_v4  ;;  %v1634_v13 = vld [vmem:[%s2089_s1 + $0x60] sm:$0xff]  ;;  %v1633_v17 = vld [vmem:[%s2089_s1 + $0x58] sm:$0xff]  ;;  %v1632_v21 = vld [vmem:[%s2089_s1 + $0x50] sm:$0xff] }
  0x11   : > { %1030 = vmatpush.bf16.msra.mxu1 %v1636_v5  ;;  %v1642_v14 = vld [vmem:[%s2089_s1 + $0xa0] sm:$0xff]  ;;  %v1641_v18 = vld [vmem:[%s2089_s1 + $0x98] sm:$0xff]  ;;  %v1640_v22 = vld [vmem:[%s2089_s1 + $0x90] sm:$0xff] }
  0x12   : > { %1043 = vmatpush.bf16.msra.mxu2 %v1644_v6  ;;  %v1650_v15 = vld [vmem:[%s2089_s1 + $0xe0] sm:$0xff]  ;;  %v1649_v19 = vld [vmem:[%s2089_s1 + $0xd8] sm:$0xff]  ;;  %v1648_v23 = vld [vmem:[%s2089_s1 + $0xd0] sm:$0xff] }
  0x13   : > { %1056 = vmatpush.bf16.msra.mxu3 %v1652_v7  ;;  %v1623_v24 = vld [vmem:[%s2089_s1 + $0x8] sm:$0xff]  ;;  %v196_v29 = vld [vmem:[%s1851_s20] sm:$0xff]  ;;  %v1661_v38 = vld [vmem:[%s2089_s1 + $0x138] sm:$0xff] }
  0x14   : > { %1018 = vmatpush.bf16.msra.mxu0 %v1627_v8  ;;  %v1631_v25 = vld [vmem:[%s2089_s1 + $0x48] sm:$0xff]  ;;  %v1622_v30 = vld [vmem:[%s2089_s1] sm:$0xff]  ;;  %v404_v33 = vunpack.c.l.b16 %v196_v29  ;;  %v405_v37 = vunpack.c.h.b16 %v196_v29  ;;  %v1669_v39 = vld [vmem:[%s2089_s1 + $0x178] sm:$0xff] }
  0x15   : > { %1031 = vmatpush.bf16.msra.mxu1 %v1635_v9  ;;  %v1639_v26 = vld [vmem:[%s2089_s1 + $0x88] sm:$0xff]  ;;  %v1630_v31 = vld [vmem:[%s2089_s1 + $0x40] sm:$0xff]  ;;  %v1677_v40 = vld [vmem:[%s2089_s1 + $0x1b8] sm:$0xff] }
  0x16   : > { %1044 = vmatpush.bf16.msra.mxu2 %v1643_v10  ;;  %v1647_v27 = vld [vmem:[%s2089_s1 + $0xc8] sm:$0xff]  ;;  %v1638_v34 = vld [vmem:[%s2089_s1 + $0x80] sm:$0xff]  ;;  %v1685_v41 = vld [vmem:[%s2089_s1 + $0x1f8] sm:$0xff]  ;;  %v416_v43 = vpack.c.b16 %v404_v33, %v404_v33  ;;  %v417_v45 = vpack.c.b16 %v405_v37, %v405_v37 }
  0x17   : > { %1057 = vmatpush.bf16.msra.mxu3 %v1651_v11  ;;  %v197_v28 = vld [vmem:[%s1851_s20 + $0x8] sm:$0xff]  ;;  %v1646_v35 = vld [vmem:[%s2089_s1 + $0xc0] sm:$0xff]  ;;  %v1660_v46 = vld [vmem:[%s2089_s1 + $0x130] sm:$0xff] }
  0x18   : > { %1019 = vmatpush.bf16.msra.mxu0 %v1626_v12  ;;  %v406_v32 = vunpack.c.l.b16 %v197_v28  ;;  %v407_v36 = vunpack.c.h.b16 %v197_v28  ;;  %v1668_v47 = vld [vmem:[%s2089_s1 + $0x170] sm:$0xff]  ;;  %v1659_v50 = vld [vmem:[%s2089_s1 + $0x128] sm:$0xff]  ;;  %v1658_v54 = vld [vmem:[%s2089_s1 + $0x120] sm:$0xff] }
  0x19   : > { %1032 = vmatpush.bf16.msra.mxu1 %v1634_v13  ;;  %v1676_v48 = vld [vmem:[%s2089_s1 + $0x1b0] sm:$0xff]  ;;  %v1667_v51 = vld [vmem:[%s2089_s1 + $0x168] sm:$0xff]  ;;  %v1666_v55 = vld [vmem:[%s2089_s1 + $0x160] sm:$0xff] }
  0x1a   : > { %1045 = vmatpush.bf16.msra.mxu2 %v1642_v14  ;;  %v418_v42 = vpack.c.b16 %v406_v32, %v406_v32  ;;  %v419_v44 = vpack.c.b16 %v407_v36, %v407_v36  ;;  %v1684_v49 = vld [vmem:[%s2089_s1 + $0x1f0] sm:$0xff]  ;;  %v1675_v52 = vld [vmem:[%s2089_s1 + $0x1a8] sm:$0xff]  ;;  %v1674_v56 = vld [vmem:[%s2089_s1 + $0x1a0] sm:$0xff] }
  0x1b   : > { %1058 = vmatpush.bf16.msra.mxu3 %v1650_v15  ;;  %v1683_v53 = vld [vmem:[%s2089_s1 + $0x1e8] sm:$0xff]  ;;  %v1682_v57 = vld [vmem:[%s2089_s1 + $0x1e0] sm:$0xff]  ;;  %v1657_v58 = vld [vmem:[%s2089_s1 + $0x118] sm:$0xff] }
  0x1c   : > { %1020 = vmatpush.bf16.msra.mxu0 %v1625_v16  ;;  %v1665_v59 = vld [vmem:[%s2089_s1 + $0x158] sm:$0xff]  ;;  %v1656_v62 = vld [vmem:[%s2089_s1 + $0x110] sm:$0xff]  ;;  %v1655_v2 = vld [vmem:[%s2089_s1 + $0x108] sm:$0xff] }
  0x1d   : > { %1033 = vmatpush.bf16.msra.mxu1 %v1633_v17  ;;  %v1673_v60 = vld [vmem:[%s2089_s1 + $0x198] sm:$0xff]  ;;  %v1664_v63 = vld [vmem:[%s2089_s1 + $0x150] sm:$0xff]  ;;  %v1663_v3 = vld [vmem:[%s2089_s1 + $0x148] sm:$0xff] }
  0x1e   : > { %1046 = vmatpush.bf16.msra.mxu2 %v1641_v18  ;;  %v1681_v61 = vld [vmem:[%s2089_s1 + $0x1d8] sm:$0xff]  ;;  %v1672_v0 = vld [vmem:[%s2089_s1 + $0x190] sm:$0xff]  ;;  %v1671_v4 = vld [vmem:[%s2089_s1 + $0x188] sm:$0xff] }
  0x1f   : > { %1059 = vmatpush.bf16.msra.mxu3 %v1649_v19  ;;  %v1680_v1 = vld [vmem:[%s2089_s1 + $0x1d0] sm:$0xff]  ;;  %v1679_v5 = vld [vmem:[%s2089_s1 + $0x1c8] sm:$0xff]  ;;  %v199_v6 = vld [vmem:[%s1851_s20 + $0x18] sm:$0xff] }
  0x20   : > { %1021 = vmatpush.bf16.msra.mxu0 %v1624_v20  ;;  %v198_v7 = vld [vmem:[%s1851_s20 + $0x10] sm:$0xff]  ;;  %v1654_v8 = vld [vmem:[%s2089_s1 + $0x100] sm:$0xff]  ;;  %v410_v10 = vunpack.c.l.b16 %v199_v6  ;;  %v411_v14 = vunpack.c.h.b16 %v199_v6  ;;  %v1693_v16 = vld [vmem:[%s2089_s1 + $0x238] sm:$0xff] }
  0x21   : > { %1034 = vmatpush.bf16.msra.mxu1 %v1632_v21  ;;  %v1662_v9 = vld [vmem:[%s2089_s1 + $0x140] sm:$0xff]  ;;  %v408_v11 = vunpack.c.l.b16 %v198_v7  ;;  %v409_v15 = vunpack.c.h.b16 %v198_v7  ;;  %v1701_v17 = vld [vmem:[%s2089_s1 + $0x278] sm:$0xff]  ;;  %v1691_v28 = vld [vmem:[%s2089_s1 + $0x228] sm:$0xff] }
  0x22   : > { %1047 = vmatpush.bf16.msra.mxu2 %v1640_v22  ;;  %v1670_v12 = vld [vmem:[%s2089_s1 + $0x180] sm:$0xff]  ;;  %v1709_v18 = vld [vmem:[%s2089_s1 + $0x2b8] sm:$0xff]  ;;  %v422_v20 = vpack.c.b16 %v410_v10, %v410_v10  ;;  %v423_v22 = vpack.c.b16 %v411_v14, %v411_v14  ;;  %v1699_v29 = vld [vmem:[%s2089_s1 + $0x268] sm:$0xff] }
  0x23   : > { %1060 = vmatpush.bf16.msra.mxu3 %v1648_v23  ;;  %v1678_v13 = vld [vmem:[%s2089_s1 + $0x1c0] sm:$0xff]  ;;  %v1717_v19 = vld [vmem:[%s2089_s1 + $0x2f8] sm:$0xff]  ;;  %v420_v21 = vpack.c.b16 %v408_v11, %v408_v11  ;;  %v421_v23 = vpack.c.b16 %v409_v15, %v409_v15 }
  0x24   : > { %1022 = vmatpush.bf16.msra.mxu0 %v1623_v24  ;;  %v1692_v24 = vld [vmem:[%s2089_s1 + $0x230] sm:$0xff]  ;;  %v1690_v32 = vld [vmem:[%s2089_s1 + $0x220] sm:$0xff]  ;;  %v1689_v36 = vld [vmem:[%s2089_s1 + $0x218] sm:$0xff] }
  0x25   : > { %1035 = vmatpush.bf16.msra.mxu1 %v1631_v25  ;;  %v1700_v25 = vld [vmem:[%s2089_s1 + $0x270] sm:$0xff]  ;;  %v1698_v33 = vld [vmem:[%s2089_s1 + $0x260] sm:$0xff]  ;;  %v1697_v37 = vld [vmem:[%s2089_s1 + $0x258] sm:$0xff] }
  0x26   : > { %1048 = vmatpush.bf16.msra.mxu2 %v1639_v26  ;;  %v1708_v26 = vld [vmem:[%s2089_s1 + $0x2b0] sm:$0xff]  ;;  %v1727_v6 = vld [vmem:[%s2090_s2] ss:$0 sm:$0xff] }
  0x27   : > { %1061 = vmatpush.bf16.msra.mxu3 %v1647_v27  ;;  %v1716_v27 = vld [vmem:[%s2089_s1 + $0x2f0] sm:$0xff] }
  0x28   : > { %1023 = vmatpush.bf16.msra.mxu0 %v1622_v30  ;;  %v1707_v30 = vld [vmem:[%s2089_s1 + $0x2a8] sm:$0xff] }
  0x29   : > { %1036 = vmatpush.bf16.msra.mxu1 %v1630_v31  ;;  %v1715_v31 = vld [vmem:[%s2089_s1 + $0x2e8] sm:$0xff] }
  0x2a   : > { %1049 = vmatpush.bf16.msra.mxu2 %v1638_v34  ;;  %v1706_v34 = vld [vmem:[%s2089_s1 + $0x2a0] sm:$0xff] }
  0x2b   : > { %1062 = vmatpush.bf16.msra.mxu3 %v1646_v35  ;;  %1024 = vmatmul.bf16.vlgmr.msra.gmra.mxu0 %v416_v43  ;;  %v1714_v35 = vld [vmem:[%s2089_s1 + $0x2e0] sm:$0xff]  ;;  %v1712_v43 = vld [vmem:[%s2089_s1 + $0x2d0] sm:$0xff] }
  0x2c   : > { %1068 = vmatpush.bf16.msrb.mxu0 %v1661_v38  ;;  %1037 = vmatmul.bf16.vlgmr.msra.gmra.mxu1 %v417_v45  ;;  %v1705_v38 = vld [vmem:[%s2089_s1 + $0x298] sm:$0xff]  ;;  %v1695_v45 = vld [vmem:[%s2089_s1 + $0x248] sm:$0xff] }
  0x2d   : > { %1081 = vmatpush.bf16.msrb.mxu1 %v1669_v39  ;;  %1050 = vmatmul.bf16.vlgmr.msra.gmra.mxu2 %v418_v42  ;;  %v1713_v39 = vld [vmem:[%s2089_s1 + $0x2d8] sm:$0xff]  ;;  %v1704_v42 = vld [vmem:[%s2089_s1 + $0x290] sm:$0xff] }
  0x2e   : > { %1094 = vmatpush.bf16.msrb.mxu2 %v1677_v40  ;;  %1063 = vmatmul.bf16.vlgmr.msra.gmra.mxu3 %v419_v44  ;;  %v1688_v40 = vld [vmem:[%s2089_s1 + $0x210] sm:$0xff]  ;;  %v1687_v44 = vld [vmem:[%s2089_s1 + $0x208] sm:$0xff] }
  0x2f   : > { %1107 = vmatpush.bf16.msrb.mxu3 %v1685_v41  ;;  %v1696_v41 = vld [vmem:[%s2089_s1 + $0x250] sm:$0xff] }
  0x30   : > { %1069 = vmatpush.bf16.msrb.mxu0 %v1660_v46  ;;  %v200_v46 = vld [vmem:[%s1851_s20 + $0x20] sm:$0xff] }
  0x31   : > { %1082 = vmatpush.bf16.msrb.mxu1 %v1668_v47  ;;  %v1703_v47 = vld [vmem:[%s2089_s1 + $0x288] sm:$0xff] }
  0x32   : > { %1095 = vmatpush.bf16.msrb.mxu2 %v1676_v48  ;;  %v1711_v48 = vld [vmem:[%s2089_s1 + $0x2c8] sm:$0xff] }
  0x33   : > { %1108 = vmatpush.bf16.msrb.mxu3 %v1684_v49  ;;  %v201_v49 = vld [vmem:[%s1851_s20 + $0x28] sm:$0xff] }
  0x34   : > { %1070 = vmatpush.bf16.msrb.mxu0 %v1659_v50  ;;  %v412_v50 = vunpack.c.l.b16 %v200_v46 }
  0x35   : > { %1083 = vmatpush.bf16.msrb.mxu1 %v1667_v51  ;;  %v413_v51 = vunpack.c.h.b16 %v200_v46 }
  0x36   : > { %1096 = vmatpush.bf16.msrb.mxu2 %v1675_v52  ;;  %v1686_v52 = vld [vmem:[%s2089_s1 + $0x200] sm:$0xff] }
  0x37   : > { %1109 = vmatpush.bf16.msrb.mxu3 %v1683_v53  ;;  %v1694_v53 = vld [vmem:[%s2089_s1 + $0x240] sm:$0xff] }
  0x38   : > { %1071 = vmatpush.bf16.msrb.mxu0 %v1658_v54  ;;  %v414_v54 = vunpack.c.l.b16 %v201_v49 }
  0x39   : > { %1084 = vmatpush.bf16.msrb.mxu1 %v1666_v55  ;;  %v415_v55 = vunpack.c.h.b16 %v201_v49 }
  0x3a   : > { %1097 = vmatpush.bf16.msrb.mxu2 %v1674_v56  ;;  %v1702_v56 = vld [vmem:[%s2089_s1 + $0x280] sm:$0xff] }
  0x3b   : > { %1110 = vmatpush.bf16.msrb.mxu3 %v1682_v57  ;;  %v1710_v57 = vld [vmem:[%s2089_s1 + $0x2c0] sm:$0xff] }
  0x3c   : > { %1072 = vmatpush.bf16.msrb.mxu0 %v1657_v58  ;;  %v424_v58 = vpack.c.b16 %v412_v50, %v412_v50 }
  0x3d   : > { %1085 = vmatpush.bf16.msrb.mxu1 %v1665_v59  ;;  %v425_v59 = vpack.c.b16 %v413_v51, %v413_v51 }
  0x3e   : > { %1098 = vmatpush.bf16.msrb.mxu2 %v1673_v60  ;;  %v426_v60 = vpack.c.b16 %v414_v54, %v414_v54 }
  0x3f   : > { %1111 = vmatpush.bf16.msrb.mxu3 %v1681_v61  ;;  %v427_v61 = vpack.c.b16 %v415_v55, %v415_v55 }
  0x40   : > { %1073 = vmatpush.bf16.msrb.mxu0 %v1656_v62 }
  0x41   : > { %1086 = vmatpush.bf16.msrb.mxu1 %v1664_v63 }
  0x42   : > { %1099 = vmatpush.bf16.msrb.mxu2 %v1672_v0 }
  0x43   : > { %1112 = vmatpush.bf16.msrb.mxu3 %v1680_v1 }
  0x44   : > { %1074 = vmatpush.bf16.msrb.mxu0 %v1655_v2 }
  0x45   : > { %1087 = vmatpush.bf16.msrb.mxu1 %v1663_v3 }
  0x46   : > { %1100 = vmatpush.bf16.msrb.mxu2 %v1671_v4 }
  0x47   : > { %1113 = vmatpush.bf16.msrb.mxu3 %v1679_v5 }
  0x48   : > { %1075 = vmatpush.bf16.msrb.mxu0 %v1654_v8 }
  0x49   : > { %1088 = vmatpush.bf16.msrb.mxu1 %v1662_v9 }
  0x4a   : > { %1101 = vmatpush.bf16.msrb.mxu2 %v1670_v12 }
  0x4b   : > { %1114 = vmatpush.bf16.msrb.mxu3 %v1678_v13  ;;  %1076 = vmatmul.bf16.vlgmr.msrb.gmra.mxu0 %v420_v21 }
  0x4c   : > { %1120 = vmatpush.bf16.msra.mxu0 %v1693_v16  ;;  %1089 = vmatmul.bf16.vlgmr.msrb.gmra.mxu1 %v421_v23 }
  0x4d   : > { %1133 = vmatpush.bf16.msra.mxu1 %v1701_v17  ;;  %1102 = vmatmul.bf16.vlgmr.msrb.gmra.mxu2 %v422_v20 }
  0x4e   : > { %1146 = vmatpush.bf16.msra.mxu2 %v1709_v18  ;;  %1115 = vmatmul.bf16.vlgmr.msrb.gmra.mxu3 %v423_v22 }
  0x4f   : > { %1159 = vmatpush.bf16.msra.mxu3 %v1717_v19 }
  0x50   : > { %1121 = vmatpush.bf16.msra.mxu0 %v1692_v24 }
  0x51   : > { %1134 = vmatpush.bf16.msra.mxu1 %v1700_v25 }
  0x52   : > { %1147 = vmatpush.bf16.msra.mxu2 %v1708_v26 }
  0x53   : > { %1160 = vmatpush.bf16.msra.mxu3 %v1716_v27 }
  0x54   : > { %1122 = vmatpush.bf16.msra.mxu0 %v1691_v28 }
  0x55   : > { %1135 = vmatpush.bf16.msra.mxu1 %v1699_v29 }
  0x56   : > { %1148 = vmatpush.bf16.msra.mxu2 %v1707_v30 }
  0x57   : > { %1161 = vmatpush.bf16.msra.mxu3 %v1715_v31 }
  0x58   : > { %1123 = vmatpush.bf16.msra.mxu0 %v1690_v32  ;;  %v1172_v32 = vld [vmem:[%s2091_s3] sm:$0xff] }
  0x59   : > { %1136 = vmatpush.bf16.msra.mxu1 %v1698_v33 }
  0x5a   : > { %1149 = vmatpush.bf16.msra.mxu2 %v1706_v34 }
  0x5b   : > { %1162 = vmatpush.bf16.msra.mxu3 %v1714_v35 }
  0x5c   : > { %1124 = vmatpush.bf16.msra.mxu0 %v1689_v36 }
  0x5d   : > { %1137 = vmatpush.bf16.msra.mxu1 %v1697_v37 }
  0x5e   : > { %1150 = vmatpush.bf16.msra.mxu2 %v1705_v38 }
  0x5f   : > { %1163 = vmatpush.bf16.msra.mxu3 %v1713_v39 }
  0x60   : > { %1125 = vmatpush.bf16.msra.mxu0 %v1688_v40 }
  0x61   : > { %1138 = vmatpush.bf16.msra.mxu1 %v1696_v41 }
  0x62   : > { %1151 = vmatpush.bf16.msra.mxu2 %v1704_v42 }
  0x63   : > { %1164 = vmatpush.bf16.msra.mxu3 %v1712_v43 }
  0x64   : > { %1126 = vmatpush.bf16.msra.mxu0 %v1687_v44 }
  0x65   : > { %1139 = vmatpush.bf16.msra.mxu1 %v1695_v45 }
  0x66   : > { %1152 = vmatpush.bf16.msra.mxu2 %v1703_v47 }
  0x67   : > { %1165 = vmatpush.bf16.msra.mxu3 %v1711_v48 }
  0x68   : > { %1127 = vmatpush.bf16.msra.mxu0 %v1686_v52 }
  0x69   : > { %1140 = vmatpush.bf16.msra.mxu1 %v1694_v53 }
  0x6a   : > { %1153 = vmatpush.bf16.msra.mxu2 %v1702_v56 }
  0x6b   : > { %1166 = vmatpush.bf16.msra.mxu3 %v1710_v57  ;;  %1128 = vmatmul.bf16.vlgmr.msra.gmra.mxu0 %v424_v58 }
  0x6c   : > { %1141 = vmatmul.bf16.vlgmr.msra.gmra.mxu1 %v425_v59 }
  0x6d   : > { %1154 = vmatmul.bf16.vlgmr.msra.gmra.mxu2 %v426_v60 }
  0x6e   : > { %1167 = vmatmul.bf16.vlgmr.msra.gmra.mxu3 %v427_v61 }
  0xa8   : > { %v1025_v62 = vpop.f32.mrf.mxu0 }
  0xa9   : > { %v1038_v63 = vpop.f32.mrf.mxu1  ;;  %v1026_v8 = vadd.f32 %v1727_v6, %v1025_v62 }
  0xab   : > { %v1039_v10 = vadd.f32 %v1038_v63, %v1026_v8 }
  0xb0   : > { %v1051_v0 = vpop.f32.mrf.mxu2  ;;  %v1027_v2 = vpop.f32.mrf.mxu0 }
  0xb1   : > { %v1064_v1 = vpop.f32.mrf.mxu3  ;;  %v1040_v3 = vpop.f32.mrf.mxu1  ;;  %v1052_v14 = vadd.f32 %v1051_v0, %v1039_v10 }
  0xb3   : > { %v1065_v16 = vadd.f32 %v1064_v1, %v1052_v14 }
  0xb8   : > { %v1053_v4 = vpop.f32.mrf.mxu2 }
  0xb9   : > { %v1066_v5 = vpop.f32.mrf.mxu3 }
  0xc8   : > { %v1077_v7 = vpop.f32.mrf.mxu0 }
  0xc9   : > { %v1090_v9 = vpop.f32.mrf.mxu1  ;;  %v1078_v19 = vadd.f32 %v1077_v7, %v1065_v16 }
  0xcb   : > { %v1091_v20 = vadd.f32 %v1090_v9, %v1078_v19 }
  0xd0   : > { %v1103_v11 = vpop.f32.mrf.mxu2  ;;  %v1079_v13 = vpop.f32.mrf.mxu0 }
  0xd1   : > { %v1116_v12 = vpop.f32.mrf.mxu3  ;;  %v1092_v15 = vpop.f32.mrf.mxu1  ;;  %v1104_v21 = vadd.f32 %v1103_v11, %v1091_v20 }
  0xd3   : > { %v1117_v22 = vadd.f32 %v1116_v12, %v1104_v21 }
  0xd8   : > { %v1105_v17 = vpop.f32.mrf.mxu2 }
  0xd9   : > { %v1118_v18 = vpop.f32.mrf.mxu3 }
  0xe8   : > { %v1129_v23 = vpop.f32.mrf.mxu0 }
  0xe9   : > { %v1142_v24 = vpop.f32.mrf.mxu1  ;;  %v1130_v25 = vadd.f32 %v1129_v23, %v1117_v22 }
  0xeb   : > { %v1143_v26 = vadd.f32 %v1142_v24, %v1130_v25 }
  0xf0   : > { %v1155_v27 = vpop.f32.mrf.mxu2  ;;  %v1131_v30 = vpop.f32.mrf.mxu0 }
  0xf1   : > { %v1168_v28 = vpop.f32.mrf.mxu3  ;;  %v1156_v29 = vadd.f32 %v1155_v27, %v1143_v26  ;;  %v1144_v31 = vpop.f32.mrf.mxu1 }
  0xf3   : > { %v1169_v33 = vadd.f32 %v1168_v28, %v1156_v29 }
  0xf5   : > { %v1173_v34 = vadd.f32 %v1172_v32, %v1169_v33 }
  0xf7   : > { %v1174_v35 = vpack.c.bf16 %v1173_v34, %v1173_v34 }
  0xf8   : > { %v1157_v36 = vpop.f32.mrf.mxu2 }
  0xf9   : > { %v1170_v37 = vpop.f32.mrf.mxu3  ;;  %1175 = vst [vmem:[%s195_s7] sm:$0xf] %v1174_v35 }
  0xfa PF: > { %s14_s15 = sadd.s32 1, %s1734_s15  }
  0xfb   : > { %p11_p4 = scmp.ge.s32.totalorder %s14_s15, 4  }
  0xfd   :  { %13 = sbr.rel (!%p11_p4) target bundleno = 1 (0x1), region = 66 }

// kernel: _forward.7
= control target key start
LH: loop header
LB: loop body
LE: loop exit
PB: predicated region body
PF: predicated region fallthrough
CT: control target
= control target key end

     0   :  { %s2772_s25 = smov 0   ;;  %s2774_s26 = smov 0   ;;  %s3146_s0 = inlined_call_operand.vmem [shape: bf16[2,8,128], index: 0, kind: input, shape index: {}]   ;;  %s3147_s1 = inlined_call_operand.vmem [shape: f32[2,1,128], index: 1, kind: input, shape index: {}]   ;;  %s3148_s2 = inlined_call_operand.vmem [shape: f32[2,1,128], index: 2, kind: input, shape index: {}]   ;;  %s3149_s3 = inlined_call_operand.vmem [shape: bf16[2,128,384], index: 3, kind: input, shape index: {}]   ;;  %s3150_s4 = inlined_call_operand.vmem [shape: f32[2,1,384], index: 4, kind: input, shape index: {}]   ;;  %s3151_s5 = inlined_call_operand.vmem [shape: bf16[2,128,128], index: 5, kind: input, shape index: {}]   ;;  %s3152_s6 = inlined_call_operand.vmem [shape: f32[2,1,128], index: 6, kind: input, shape index: {}]   ;;  %s3153_s7 = inlined_call_operand.vmem [shape: f32[2,1,128], index: 7, kind: input, shape index: {}]   ;;  %s3154_s8 = inlined_call_operand.vmem [shape: f32[2,1,128], index: 8, kind: input, shape index: {}]   ;;  %s3155_s9 = inlined_call_operand.vmem [shape: bf16[2,128,512], index: 9, kind: input, shape index: {}]   ;;  %s3156_s10 = inlined_call_operand.vmem [shape: f32[2,1,512], index: 10, kind: input, shape index: {}]   ;;  %s3157_s11 = inlined_call_operand.vmem [shape: bf16[2,512,128], index: 11, kind: input, shape index: {}]   ;;  %s3158_s12 = inlined_call_operand.vmem [shape: f32[2,1,128], index: 12, kind: input, shape index: {}]   ;;  %s3159_s13 = inlined_call_operand.vmem [shape: bf16[2,8,128], index: 13, kind: output, shape index: {}]  }
   0x1   :  { %3164 = sst [smem:[#allocation9_spill]] %s3146_s0  ;;  %s2776_s27 = smov 0  }
   0x2   :  { %3165 = sst [smem:[#allocation10_spill]] %s3148_s2  ;;  %s2778_s28 = smov 0  }
   0x3   :  { %3166 = sst [smem:[#allocation11_spill]] %s3149_s3  ;;  %s2780_s29 = smov 0  }
   0x4   :  { %3167 = sst [smem:[#allocation12_spill]] %s3150_s4 }
   0x5   :  { %3168 = sst [smem:[#allocation13_spill]] %s3151_s5 }
   0x6   :  { %3169 = sst [smem:[#allocation14_spill]] %s3159_s13 }
   0x7 LB: > { %3170 = sst [smem:[#allocation3_spill]] %s2680_s25  ;;  %s32_s30 = sadd.s32 1, %s2688_s27  ;;  %s2696_s29 = sphi %s2780_s29, %s23_s29   ;;  %s2692_s28 = sphi %s2778_s28, %s3194_s28   ;;  %s2688_s27 = sphi %s2776_s27, %s3193_s27   ;;  %s2684_s26 = sphi %s2774_s26, %s3192_s26   ;;  %s2680_s25 = sphi %s2772_s25, %s3191_s25  }
   0x8   : > { %3171 = sst [smem:[#allocation4_spill]] %s2688_s27  ;;  %s35_s14 = sadd.s32 1, %s2692_s28 }
   0x9   : > { %3172 = sst [smem:[#allocation5_spill]] %s2692_s28  ;;  %p33_p0 = scmp.ge.s32.totalorder %s32_s30, 2 }
   0xa   : > { %3173 = sst [smem:[#allocation6_spill]] %s2696_s29  ;;  %p2070_p1 = scmp.ge.s32.totalorder %s2696_s29, 1 }
   0xb   : > { %p504_p2 = scmp.lt.s32.totalorder %s2696_s29, 5  ;;  %s3196_s30 = smov (%p33_p0, %s32_s30), 0 }
   0xc   : > { %3174 = sst [smem:[#allocation7_spill]] %s3196_s30  ;;  %s3198_s14 = smov (!%p33_p0, %s35_s14), %s2692_s28 }
   0xd   : > { %p505_p3 = pnand %p2070_p1, %p504_p2  ;;  %p37_p4 = scmp.ge.s32.totalorder %s3198_s14, 2 }
   0xe   : > { %p592_p5 = scmp.lt.s32.totalorder (!%p505_p3), %s2684_s26, 1  ;;  %p596_p6 = scmp.lt.s32.totalorder (!%p505_p3), %s2680_s25, 1 }
   0xf   : > { %s3200_s14 = smov (%p37_p4, %s3198_s14), 0  ;;  %508 = sbr.rel (%p505_p3) target bundleno = 1932 (0x78c), region = 72 }
  0x10   : > { %3175 = sst [smem:[#allocation8_spill]] %s3200_s14 }
  0x11   : > { %s3176_s0 = sld [smem:[#allocation9_spill]] (!%p505_p3) }
  0x12   : > { %s3178_s3 = sld [smem:[#allocation11_spill]] (!%p505_p3) }
  0x13   : > { %s3179_s5 = sld [smem:[#allocation13_spill]] (!%p505_p3) }
  0x14   : > { %s3202_s26 = smov (!%p592_p5, %s2684_s26), 1  ;;  %s3180_s4 = sld [smem:[#allocation12_spill]] }
  0x15   : > { %s2806_s15 = scalar_select %p596_p6, %s2680_s25, 1 }
  0x16   : > { %s2071_s16 = sshll.u32 %s3202_s26, 2  ;;  %s3182_s17 = sld [smem:[#allocation3_spill]] }
  0x17   : > { %s595_s19 = scalar_lea.vmem %s3176_s0, %s2071_s16  ;;  %s2576_s30 = smul.u32 192, %s2806_s15 }
  0x18   : > { %s2577_s28 = smul.u32 3, %s2806_s15  ;;  %s2477_s27 = sshll.u32 %s2806_s15, 6 }
  0x19   : > { %s2825_s26 = scalar_lea.vmem %s3178_s3, %s2576_s30  ;;  %s2830_s18 = scalar_lea.vmem %s3179_s5, %s2477_s27 }
  0x1a   : > { %s2835_s22 = scalar_lea.vmem %s3180_s4, %s2577_s28  ;;  %s2478_s13 = sshll.u32 %s2806_s15, 8 }
  0x1b   : > { %s2077_s27 = sshll.u32 %s2806_s15, 2  ;;  %s2854_s20 = scalar_lea.vmem %s3155_s9, %s2478_s13 }
  0x1c   : > { %s2859_s23 = scalar_lea.vmem %s3156_s10, %s2077_s27  ;;  %s2864_s0 = scalar_lea.vmem %s3157_s11, %s2478_s13 }
  0x1d   : > { %s641_s30 = scalar_lea.vmem %s3158_s12, %s2806_s15  ;;  %s3181_s4 = sld [smem:[#allocation14_spill]] }
  0x1e   : > { %p2081_p7 = scmp.ne.s32.totalorder %s3182_s17, 0 }
  0x20   : > { %650 = sbr.rel (%p2081_p7) target bundleno = 41 (0x29), region = 76 }
  0x23   : > { %s2873_s5 = scalar_lea.vmem %s3181_s4, %s2071_s16 }
  0x25   : > { %v651_v0 = vld [vmem:[%s595_s19] sm:$0xf] }
  0x26   : > { %v652_v1 = vunpack.c.l.bf16 %v651_v0 }
  0x28   : > { %653 = vst [vmem:[#allocation2] sm:$0xff] %v652_v1 }
  0x29 PF: > { %v2698_v3 = vmov 128.0   ;;  %v2168_v4 = vld [vmem:[%s2825_s26 + $0xa8] sm:$0xf]  ;;  %v2502_v5 = vld [vmem:[%s2825_s26 + $0xb0] sm:$0xf0]  ;;  %s3183_s14 = scalar_lea.vmem %s3147_s1, %s2806_s15  ;;  %vm924_vm4 = vcmask 261120   ;;  %s3186_s21 = scalar_lea.vmem %s3152_s6, %s2806_s15 }
  0x2a   : > { %2628 = vrcp.f32 %v2698_v3  ;;  %v2501_v6 = vld [vmem:[%s2825_s26 + $0xac] sm:$0xf]  ;;  %v2169_v7 = vor.u32 %v2502_v5, %v2168_v4  ;;  %v2170_v8 = vld [vmem:[%s2825_s26 + $0xb4] sm:$0xf0]  ;;  %v2176_v9 = vld [vmem:[%s2825_s26 + $0xb0] sm:$0xf]  ;;  %s3187_s2 = scalar_lea.vmem %s3153_s7, %s2806_s15  ;;  %s3188_s3 = scalar_lea.vmem %s3154_s8, %s2806_s15 }
  0x2b   : > { %v2503_v10 = vld [vmem:[%s2825_s26 + $0xb8] sm:$0xf0]  ;;  %v2173_v11 = vor.u32 %v2501_v6, %v2170_v8  ;;  %v2156_v23 = vld [vmem:[%s2825_s26 + $0x90] sm:$0xf]  ;;  %v2498_v25 = vld [vmem:[%s2825_s26 + $0x94] sm:$0xf] }
  0x2c   : > { %v2177_v12 = vor.u32 %v2503_v10, %v2176_v9  ;;  %861 = vmatpush.bf16.msra.mxu0 %v2169_v7  ;;  %v2499_v24 = vld [vmem:[%s2825_s26 + $0x98] sm:$0xf0]  ;;  %v2158_v27 = vld [vmem:[%s2825_s26 + $0x9c] sm:$0xf0]  ;;  %v2164_v28 = vld [vmem:[%s2825_s26 + $0x98] sm:$0xf] }
  0x2d   : > { %874 = vmatpush.bf16.msra.mxu1 %v2173_v11  ;;  %v2157_v26 = vor.u32 %v2499_v24, %v2156_v23  ;;  %v2500_v29 = vld [vmem:[%s2825_s26 + $0xa0] sm:$0xf0]  ;;  %v2161_v30 = vor.u32 %v2498_v25, %v2158_v27  ;;  %v2144_v32 = vld [vmem:[%s2825_s26 + $0x78] sm:$0xf]  ;;  %v2495_v34 = vld [vmem:[%s2825_s26 + $0x7c] sm:$0xf] }
  0x2e   : > { %887 = vmatpush.bf16.msra.mxu2 %v2177_v12  ;;  %v2165_v31 = vor.u32 %v2500_v29, %v2164_v28  ;;  %v2496_v33 = vld [vmem:[%s2825_s26 + $0x80] sm:$0xf0]  ;;  %v2146_v36 = vld [vmem:[%s2825_s26 + $0x84] sm:$0xf0]  ;;  %v2152_v37 = vld [vmem:[%s2825_s26 + $0x80] sm:$0xf] }
  0x2f   : > { %v2876_v2 = vld [vmem:[#allocation2] sm:$0xff]  ;;  %v2145_v35 = vor.u32 %v2496_v33, %v2144_v32  ;;  %v2497_v38 = vld [vmem:[%s2825_s26 + $0x88] sm:$0xf0]  ;;  %v2149_v39 = vor.u32 %v2495_v34, %v2146_v36  ;;  %v2134_v45 = vld [vmem:[%s2825_s26 + $0x6c] sm:$0xf0]  ;;  %s2699_s13 = smov 32  }
  0x30   : > { %657 = vadd.xlane.f32.xlu0 %v2876_v2  ;;  %v2629_v13 = vpop.eup %2628  ;;  %862 = vmatpush.bf16.msra.mxu0 %v2157_v26  ;;  %v2153_v40 = vor.u32 %v2497_v38, %v2152_v37  ;;  %v2132_v41 = vld [vmem:[%s2825_s26 + $0x60] sm:$0xf]  ;;  %v2493_v42 = vld [vmem:[%s2825_s26 + $0x68] sm:$0xf0]  ;;  %v2492_v43 = vld [vmem:[%s2825_s26 + $0x64] sm:$0xf] }
  0x31   : > { %v660_v14 = vmul.f32 128.0, %v2629_v13  ;;  %vm664_vm0 = vweird.f32 %v2629_v13  ;;  %875 = vmatpush.bf16.msra.mxu1 %v2161_v30  ;;  %v2133_v44 = vor.u32 %v2493_v42, %v2132_v41  ;;  %v2140_v46 = vld [vmem:[%s2825_s26 + $0x68] sm:$0xf]  ;;  %v2494_v47 = vld [vmem:[%s2825_s26 + $0x70] sm:$0xf0]  ;;  %v2137_v48 = vor.u32 %v2492_v43, %v2134_v45  ;;  %s2700_s27 = smov 64  }
  0x32   : > { %888 = vmatpush.bf16.msra.mxu2 %v2165_v31  ;;  %v2141_v49 = vor.u32 %v2494_v47, %v2140_v46  ;;  %v2120_v50 = vld [vmem:[%s2825_s26 + $0x48] sm:$0xf]  ;;  %v2490_v51 = vld [vmem:[%s2825_s26 + $0x50] sm:$0xf0]  ;;  %v2489_v52 = vld [vmem:[%s2825_s26 + $0x4c] sm:$0xf] }
  0x33   : > { %v661_v15 = vsub.f32 1.0, %v660_v14  ;;  %v2121_v53 = vor.u32 %v2490_v51, %v2120_v50  ;;  %v2122_v54 = vld [vmem:[%s2825_s26 + $0x54] sm:$0xf0]  ;;  %v2128_v55 = vld [vmem:[%s2825_s26 + $0x50] sm:$0xf]  ;;  %s2701_s28 = smov 96  }
  0x34   : > { %863 = vmatpush.bf16.msra.mxu0 %v2145_v35  ;;  %v2491_v56 = vld [vmem:[%s2825_s26 + $0x58] sm:$0xf0]  ;;  %v2125_v57 = vor.u32 %v2489_v52, %v2122_v54  ;;  %v2108_v59 = vld [vmem:[%s2825_s26 + $0x30] sm:$0xf]  ;;  %v2486_v61 = vld [vmem:[%s2825_s26 + $0x34] sm:$0xf] }
  0x35   : > { %v662_v16 = vmul.f32 %v2629_v13, %v661_v15  ;;  %876 = vmatpush.bf16.msra.mxu1 %v2149_v39  ;;  %v2129_v58 = vor.u32 %v2491_v56, %v2128_v55  ;;  %v2487_v60 = vld [vmem:[%s2825_s26 + $0x38] sm:$0xf0]  ;;  %v2110_v63 = vld [vmem:[%s2825_s26 + $0x3c] sm:$0xf0]  ;;  %v2116_v0 = vld [vmem:[%s2825_s26 + $0x38] sm:$0xf] }
  0x36   : > { %889 = vmatpush.bf16.msra.mxu2 %v2153_v40  ;;  %v2109_v62 = vor.u32 %v2487_v60, %v2108_v59  ;;  %v2488_v1 = vld [vmem:[%s2825_s26 + $0x40] sm:$0xf0]  ;;  %v2113_v3 = vor.u32 %v2486_v61, %v2110_v63  ;;  %v2096_v5 = vld [vmem:[%s2825_s26 + $0x18] sm:$0xf]  ;;  %v2483_v7 = vld [vmem:[%s2825_s26 + $0x1c] sm:$0xf] }
  0x37   : > { %v663_v17 = vadd.f32 %v2629_v13, %v662_v16  ;;  %v2117_v4 = vor.u32 %v2488_v1, %v2116_v0  ;;  %v2484_v6 = vld [vmem:[%s2825_s26 + $0x20] sm:$0xf0]  ;;  %v2098_v9 = vld [vmem:[%s2825_s26 + $0x24] sm:$0xf0]  ;;  %v2104_v10 = vld [vmem:[%s2825_s26 + $0x20] sm:$0xf] }
  0x38   : > { %864 = vmatpush.bf16.msra.mxu0 %v2133_v44  ;;  %v2097_v8 = vor.u32 %v2484_v6, %v2096_v5  ;;  %v2485_v11 = vld [vmem:[%s2825_s26 + $0x28] sm:$0xf0]  ;;  %v2101_v12 = vor.u32 %v2483_v7, %v2098_v9  ;;  %v2084_v14 = vld [vmem:[%s2825_s26] sm:$0xf]  ;;  %v2480_v16 = vld [vmem:[%s2825_s26 + $0x4] sm:$0xf] }
  0x39   : > { %v2885_v18 = vsel %vm664_vm0, %v2629_v13, %v663_v17  ;;  %877 = vmatpush.bf16.msra.mxu1 %v2137_v48  ;;  %v2105_v13 = vor.u32 %v2485_v11, %v2104_v10  ;;  %v2481_v15 = vld [vmem:[%s2825_s26 + $0x8] sm:$0xf0]  ;;  %v2622_v34 = vld [vmem:[%s3183_s14] ss:$0 sm:$0xff]  ;;  %vm1057_vm5 = vcmask 1043456   ;;  %vm1005_vm6 = vcmask 64512  }
  0x3a   : > { %890 = vmatpush.bf16.msra.mxu2 %v2141_v49  ;;  %v2085_v17 = vor.u32 %v2481_v15, %v2084_v14  ;;  %v724_v41 = vld [vmem:[%s2835_s22] sm:$0x7]  ;;  %vm1144_vm7 = vcmask 523264   ;;  %vm1146_vm8 = vcmask 785408   ;;  %s3189_s4 = sld [smem:[#allocation3_spill]] }
  0x3b   : > { %v728_v42 = vperm.slane %v724_v41, 1  ;;  %v727_v46 = vperm.slane %v724_v41, 0 }
  0x3c   : > { %865 = vmatpush.bf16.msra.mxu0 %v2121_v53 }
  0x3d   : > { %878 = vmatpush.bf16.msra.mxu1 %v2125_v57 }
  0x3e   : > { %891 = vmatpush.bf16.msra.mxu2 %v2129_v58 }
  0x40   : > { %866 = vmatpush.bf16.msra.mxu0 %v2109_v62  ;;  %p2474_p8 = scmp.ne.s32.totalorder %s3189_s4, 1 }
  0x41   : > { %879 = vmatpush.bf16.msra.mxu1 %v2113_v3 }
  0x42   : > { %892 = vmatpush.bf16.msra.mxu2 %v2117_v4 }
  0x44   : > { %867 = vmatpush.bf16.msra.mxu0 %v2097_v8 }
  0x45   : > { %880 = vmatpush.bf16.msra.mxu1 %v2101_v12 }
  0x46   : > { %893 = vmatpush.bf16.msra.mxu2 %v2105_v13 }
  0x48   : > { %868 = vmatpush.bf16.msra.mxu0 %v2085_v17 }
  0xa3   : > { %v658_v19 = vpop.xlane.xlu0 %657 }
  0xa4   : > { %v666_v20 = vmul.f32 %v2885_v18, %v658_v19  ;;  %v2086_v19 = vld [vmem:[%s2825_s26 + $0xc] sm:$0xf0] }
  0xa5   : > { %v2089_v23 = vor.u32 %v2480_v16, %v2086_v19 }
  0xa6   : > { %v2889_v21 = vsub.f32 %v2876_v2, %v666_v20  ;;  %v2092_v20 = vld [vmem:[%s2825_s26 + $0x8] sm:$0xf] }
  0xa7   : > { %881 = vmatpush.bf16.msra.mxu1 %v2089_v23 }
  0xa8   : > { %v668_v22 = vmul.f32 %v2889_v21, %v2889_v21 }
  0xaa   : > { %669 = vadd.xlane.f32.xlu0 %v668_v22  ;;  %v2482_v22 = vld [vmem:[%s2825_s26 + $0x10] sm:$0xf0]  ;;  %s3184_s26 = sld [smem:[#allocation10_spill]] }
  0xab   : > { %v2093_v24 = vor.u32 %v2482_v22, %v2092_v20 }
  0xad   : > { %894 = vmatpush.bf16.msra.mxu2 %v2093_v24 }
  0xb0   : > { %s3185_s25 = scalar_lea.vmem %s3184_s26, %s2806_s15 }
  0xb1   : > { %v2623_v37 = vld [vmem:[%s3185_s25] ss:$0 sm:$0xff] }
 0x11d   : > { %v670_v25 = vpop.xlane.xlu0 %669 }
 0x11e   : > { %v671_v26 = vmul.f32 %v670_v25, %v2885_v18 }
 0x120   : > { %v672_v27 = vadd.f32 1e-05, %v671_v26 }
 0x122   : > { %2630 = vrsqrt.f32 %v672_v27  ;;  %vm679_vm2 = vweird.f32 %v672_v27 }
 0x128   : > { %v2631_v28 = vpop.eup %2630 }
 0x129   : > { %v674_v29 = vmul.f32 %v2631_v28, %v672_v27  ;;  %vm680_vm1 = vweird.f32 %v2631_v28 }
 0x12a   : > { %vm681_vm3 = vmor %vm679_vm2, %vm680_vm1 }
 0x12b   : > { %v675_v30 = vmul.f32 %v2631_v28, %v674_v29 }
 0x12d   : > { %v676_v31 = vmul.f32 0.5, %v675_v30 }
 0x12f   : > { %v677_v32 = vsub.f32 1.5, %v676_v31 }
 0x131   : > { %v678_v33 = vmul.f32 %v2631_v28, %v677_v32 }
 0x133   : > { %v682_v35 = vsel %vm681_vm3, %v2631_v28, %v678_v33 }
 0x134   : > { %v683_v36 = vmul.f32 %v682_v35, %v2889_v21  ;;  %v729_v21 = vperm.slane %v724_v41, 2 }
 0x136   : > { %v687_v38 = vmul.f32 %v2622_v34, %v683_v36 }
 0x138   : > { %v691_v39 = vadd.f32 %v2623_v37, %v687_v38 }
 0x13a   : > { %v725_v40 = vpack.c.bf16 %v691_v39, %v691_v39 }
 0x13c   : > { %869 = vmatmul.bf16.vlgmr.msra.gmra.mxu0 %v725_v40  ;;  %882 = vmatmul.bf16.vlgmr.msra.gmra.mxu1 %v725_v40 }
 0x13d   : > { %895 = vmatmul.bf16.vlgmr.msra.gmra.mxu2 %v725_v40 }
 0x1b9   : > { %v870_v43 = vpop.f32.mrf.mxu0  ;;  %v883_v44 = vpop.f32.mrf.mxu1 }
 0x1ba   : > { %v884_v45 = vadd.f32 %v883_v44, %v728_v42  ;;  %v871_v49 = vadd.f32 %v870_v43, %v727_v46 }
 0x1bc   : > { %v901_v47 = vpack.c.bf16 %v884_v45, %v884_v45  ;;  %v900_v55 = vpack.c.bf16 %v871_v49, %v871_v49 }
 0x1be   : > { %915 = vrot.lane.b32.xlu0 %v901_v47, %s2699_s13  ;;  %913 = vrot.lane.b32.xlu2 %v901_v47, %s2700_s27  ;;  %v929_v48 = vsel %vm924_vm4, %v901_v47, 0 }
 0x1bf   : > { %911 = vrot.lane.b32.xlu1 %v901_v47, %s2701_s28  ;;  %938 = vmatpush.bf16.xpose.msra.mxu3 %v929_v48 }
 0x1c0   : > { %v896_v50 = vpop.f32.mrf.mxu2 }
 0x1c1   : > { %v897_v51 = vadd.f32 %v896_v50, %v729_v21  ;;  %v872_v52 = vpop.f32.mrf.mxu0  ;;  %v885_v53 = vpop.f32.mrf.mxu1 }
 0x1c3   : > { %v2952_v54 = vpack.c.bf16 %v897_v51, %v897_v51 }
 0x1c5   : > { %v1059_v56 = vsel %vm1057_vm5, %v2952_v54, 0 }
 0x1c6   : > { %1068 = vmatpush.bf16.msrb.mxu2 %v1059_v56  ;;  %906 = vrot.lane.b32.xlu2 %v900_v55, %s2700_s27 }
 0x1c7   : > { %904 = vrot.lane.b32.xlu1 %v900_v55, %s2701_s28  ;;  %2178 = vmatmul.msk.bf16.vlgmr.msra.gmra.mxu3 %vm924_vm4, %v900_v55 }
 0x1c8   : > { %v898_v57 = vpop.f32.mrf.mxu2 }
 0x1cf   : > { %908 = vrot.lane.b32.xlu1 %v900_v55, %s2699_s13 }
 0x218   : > { %v914_v58 = vpop.permute.xlu2 %913 }
 0x219   : > { %v967_v63 = vsel %vm924_vm4, %v914_v58, 0 }
 0x220   : > { %v907_v3 = vpop.permute.xlu2 %906 }
 0x230   : > { %v916_v59 = vpop.permute.xlu0 %915 }
 0x231   : > { %v912_v60 = vpop.permute.xlu1 %911  ;;  %v986_v61 = vsel %vm924_vm4, %v916_v59, 0 }
 0x232   : > { %v948_v62 = vsel %vm924_vm4, %v912_v60, 0  ;;  %995 = vmatpush.bf16.xpose.msrb.mxu0 %v986_v61 }
 0x233   : > { %957 = vmatpush.bf16.xpose.msrb.mxu3 %v948_v62 }
 0x239   : > { %v905_v0 = vpop.permute.xlu1 %904 }
 0x23a   : > { %2179 = vmatmul.msk.bf16.vlgmr.msrb.gmra.mxu3 %vm924_vm4, %v905_v0 }
 0x23b   : > { %976 = vmatpush.bf16.xpose.msra.mxu3 %v967_v63 }
 0x241   : > { %v909_v1 = vpop.permute.xlu1 %908 }
 0x242   : > { %2181 = vmatmul.msk.bf16.vlgmr.msrb.gmra.mxu0 %vm924_vm4, %v909_v1  ;;  %v2511_v1 = vld [vmem:[%s2830_s18 + $0x38] sm:$0xff] }
 0x243   : > { %1217 = vmatpush.bf16.msrb.mxu1 %v2511_v1  ;;  %v2533_v1 = vld [vmem:[%s2854_s20 + $0xac] sm:$0xf] }
 0x24a   : > { %v940_v4 = vpop.f32.mrf.mxu3  ;;  %2180 = vmatmul.msk.bf16.vlgmr.msra.gmra.mxu3 %vm924_vm4, %v907_v3 }
 0x24b   : > { %v1001_v5 = vmul.f32 0.17677669, %v940_v4 }
 0x24d   : > { %v1006_v6 = vsel %vm1005_vm6, %v1001_v5, -inf }
 0x24e   : > { %1007 = vmax.xlane.f32.xlu2 %v1006_v6 }
 0x252   : > { %v942_v7 = vpop.f32.mrf.mxu3 }
 0x2bd   : > { %v959_v8 = vpop.f32.mrf.mxu3 }
 0x2be   : > { %v1002_v9 = vmul.f32 0.17677669, %v959_v8 }
 0x2bf   : > { %v997_v10 = vpop.f32.mrf.mxu0 }
 0x2c0   : > { %v1004_v11 = vmul.f32 0.17677669, %v997_v10  ;;  %v1009_v12 = vsel %vm1005_vm6, %v1002_v9, -inf  ;;  %v2509_v10 = vld [vmem:[%s2830_s18 + $0x28] sm:$0xff] }
 0x2c1   : > { %v1008_v13 = vpop.xlane.xlu2 %1007  ;;  %1010 = vmax.xlane.f32.xlu1 %v1009_v12  ;;  %v2507_v12 = vld [vmem:[%s2830_s18 + $0x18] sm:$0xff] }
 0x2c2   : > { %v1018_v14 = vsub.f32 %v1001_v5, %v1008_v13  ;;  %v1015_v15 = vsel %vm1005_vm6, %v1004_v11, -inf  ;;  %v2506_v13 = vld [vmem:[%s2830_s18 + $0x10] sm:$0xff] }
 0x2c3   : > { %1016 = vmax.xlane.f32.xlu2 %v1015_v15  ;;  %v2504_v15 = vld [vmem:[%s2830_s18] sm:$0xff] }
 0x2c4   : > { %v1022_v16 = vmul.f32 1.442695, %v1018_v14  ;;  %v2505_v14 = vld [vmem:[%s2830_s18 + $0x8] sm:$0xff] }
 0x2c5   : > { %v961_v17 = vpop.f32.mrf.mxu3 }
 0x2c6   : > { %2632 = vpow2.f32 %v1022_v16 }
 0x2c7   : > { %v999_v19 = vpop.f32.mrf.mxu0 }
 0x2cc   : > { %v2633_v20 = vpop.eup %2632 }
 0x2cd   : > { %v978_v22 = vpop.f32.mrf.mxu3  ;;  %v1030_v23 = vsel %vm1005_vm6, %v2633_v20, 0.0 }
 0x2ce   : > { %v1003_v24 = vmul.f32 0.17677669, %v978_v22  ;;  %1031 = vadd.xlane.f32.xlu2 %v1030_v23 }
 0x2d0   : > { %v1012_v25 = vsel %vm1005_vm6, %v1003_v24, -inf }
 0x2d1   : > { %1013 = vmax.xlane.f32.xlu0 %v1012_v25  ;;  %v2624_v25 = vld [vmem:[%s3186_s21] ss:$0 sm:$0xff] }
 0x2d5   : > { %v980_v26 = vpop.f32.mrf.mxu3 }
 0x334   : > { %v1011_v27 = vpop.xlane.xlu1 %1010 }
 0x335   : > { %v1019_v28 = vsub.f32 %v1002_v9, %v1011_v27  ;;  %v2510_v9 = vld [vmem:[%s2830_s18 + $0x30] sm:$0xff] }
 0x336   : > { %v1017_v29 = vpop.xlane.xlu2 %1016  ;;  %1218 = vmatpush.bf16.msrb.mxu1 %v2510_v9  ;;  %v2286_v9 = vld [vmem:[%s2854_s20 + $0x90] sm:$0xf0] }
 0x337   : > { %v1024_v30 = vmul.f32 1.442695, %v1019_v28  ;;  %v1021_v31 = vsub.f32 %v1004_v11, %v1017_v29  ;;  %v2508_v11 = vld [vmem:[%s2830_s18 + $0x20] sm:$0xff] }
 0x339   : > { %2634 = vpow2.f32 %v1024_v30  ;;  %v1028_v32 = vmul.f32 1.442695, %v1021_v31  ;;  %v2332_v30 = vld [vmem:[%s2854_s20 + $0xe0] sm:$0xf]  ;;  %v2542_v31 = vld [vmem:[%s2854_s20 + $0xec] sm:$0xf0] }
 0x33a   : > { %1219 = vmatpush.bf16.msrb.mxu1 %v2509_v10  ;;  %v2292_v10 = vld [vmem:[%s2854_s20 + $0x88] sm:$0xf] }
 0x33b   : > { %2636 = vpow2.f32 %v1028_v32  ;;  %v2540_v32 = vld [vmem:[%s2854_s20 + $0xe4] sm:$0xf] }
 0x33e   : > { %1220 = vmatpush.bf16.msrb.mxu1 %v2508_v11  ;;  %v2531_v11 = vld [vmem:[%s2854_s20 + $0x94] sm:$0xf0] }
 0x33f   : > { %v2635_v33 = vpop.eup %2634 }
 0x340   : > { %v1033_v34 = vsel %vm1005_vm6, %v2635_v33, 0.0 }
 0x341   : > { %v2637_v35 = vpop.eup %2636  ;;  %v1032_v36 = vpop.xlane.xlu2 %1031  ;;  %1034 = vadd.xlane.f32.xlu1 %v1033_v34  ;;  %v2334_v34 = vld [vmem:[%s2854_s20 + $0xf0] sm:$0xf0] }
 0x342   : > { %2638 = vrcp.f32 %v1032_v36  ;;  %v1039_v37 = vsel %vm1005_vm6, %v2637_v35, 0.0  ;;  %1221 = vmatpush.bf16.msrb.mxu1 %v2507_v12  ;;  %v2543_v36 = vld [vmem:[%s2854_s20 + $0xf4] sm:$0xf0] }
 0x343   : > { %1040 = vadd.xlane.f32.xlu0 %v1039_v37  ;;  %v2337_v37 = vor.u32 %v2540_v32, %v2334_v34  ;;  %v2252_v32 = vld [vmem:[%s2854_s20 + $0x40] sm:$0xf]  ;;  %v2520_v34 = vld [vmem:[%s2854_s20 + $0x44] sm:$0xf] }
 0x344   : > { %v1014_v38 = vpop.xlane.xlu0 %1013 }
 0x345   : > { %v1020_v39 = vsub.f32 %v1003_v24, %v1014_v38 }
 0x346   : > { %1222 = vmatpush.bf16.msrb.mxu1 %v2506_v13  ;;  %v2293_v13 = vor.u32 %v2531_v11, %v2292_v10 }
 0x347   : > { %v1026_v40 = vmul.f32 1.442695, %v1020_v39  ;;  %v2541_v39 = vld [vmem:[%s2854_s20 + $0xec] sm:$0xf] }
 0x348   : > { %v2639_v41 = vpop.eup %2638 }
 0x349   : > { %v1046_v42 = vmul.f32 %v2639_v41, %v2633_v20  ;;  %2640 = vpow2.f32 %v1026_v40  ;;  %v2342_v40 = vld [vmem:[%s2854_s20 + $0xf8] sm:$0xf0] }
 0x34a   : > { %1223 = vmatpush.bf16.msrb.mxu1 %v2505_v14  ;;  %v2529_v14 = vld [vmem:[%s2854_s20 + $0x8c] sm:$0xf] }
 0x34b   : > { %v1050_v43 = vpack.c.bf16 %v1046_v42, %v1046_v42 }
 0x34d   : > { %2182 = vmatmul.msk.bf16.vlgmr.msrb.gmra.mxu2 %vm1005_vm6, %v1050_v43 }
 0x34e   : > { %1224 = vmatpush.bf16.msrb.mxu1 %v2504_v15  ;;  %v2294_v15 = vld [vmem:[%s2854_s20 + $0x98] sm:$0xf0] }
 0x34f   : > { %v2641_v44 = vpop.eup %2640 }
 0x350   : > { %v1036_v45 = vsel %vm1005_vm6, %v2641_v44, 0.0 }
 0x351   : > { %1037 = vadd.xlane.f32.xlu2 %v1036_v45  ;;  %v2316_v45 = vld [vmem:[%s2854_s20 + $0xc0] sm:$0xf] }
 0x357   : > { %922 = vrot.lane.b32.xlu0 %v2952_v54, %s2699_s13 }
 0x35a   : > { %918 = vrot.lane.b32.xlu1 %v2952_v54, %s2701_s28 }
 0x369   : > { %920 = vrot.lane.b32.xlu2 %v2952_v54, %s2700_s27 }
 0x3b4   : > { %v1035_v47 = vpop.xlane.xlu1 %1034 }
 0x3b6   : > { %v1041_v46 = vpop.xlane.xlu0 %1040 }
 0x3b7   : > { %2642 = vrcp.f32 %v1041_v46  ;;  %v2538_v46 = vld [vmem:[%s2854_s20 + $0xcc] sm:$0xf0] }
 0x3b8   : > { %2644 = vrcp.f32 %v1035_v47  ;;  %v2536_v47 = vld [vmem:[%s2854_s20 + $0xc4] sm:$0xf] }
 0x3bd   : > { %v2643_v48 = vpop.eup %2642 }
 0x3be   : > { %v2645_v49 = vpop.eup %2644  ;;  %v1049_v50 = vmul.f32 %v2643_v48, %v2637_v35  ;;  %v2340_v35 = vld [vmem:[%s2854_s20 + $0xe8] sm:$0xf]  ;;  %v2318_v48 = vld [vmem:[%s2854_s20 + $0xd0] sm:$0xf0] }
 0x3bf   : > { %v1047_v55 = vmul.f32 %v2645_v49, %v2635_v33  ;;  %v2333_v33 = vor.u32 %v2542_v31, %v2332_v30  ;;  %v2341_v38 = vor.u32 %v2543_v36, %v2340_v35  ;;  %v2324_v49 = vld [vmem:[%s2854_s20 + $0xc8] sm:$0xf]  ;;  %v2278_v30 = vld [vmem:[%s2854_s20 + $0x78] sm:$0xf0]  ;;  %v2254_v36 = vld [vmem:[%s2854_s20 + $0x50] sm:$0xf0] }
 0x3c0   : > { %v1053_v54 = vpack.c.bf16 %v1049_v50, %v1049_v50  ;;  %v2539_v50 = vld [vmem:[%s2854_s20 + $0xd4] sm:$0xf0] }
 0x3c1   : > { %v1051_v62 = vpack.c.bf16 %v1047_v55, %v1047_v55  ;;  %v2326_v55 = vld [vmem:[%s2854_s20 + $0xd8] sm:$0xf0] }
 0x3c4   : > { %v1038_v21 = vpop.xlane.xlu2 %1037 }
 0x3c5   : > { %2646 = vrcp.f32 %v1038_v21  ;;  %v2317_v21 = vor.u32 %v2538_v46, %v2316_v45  ;;  %v2518_v45 = vld [vmem:[%s2854_s20 + $0x2c] sm:$0xf0]  ;;  %v2516_v46 = vld [vmem:[%s2854_s20 + $0x24] sm:$0xf] }
 0x3c9   : > { %v923_v51 = vpop.permute.xlu0 %922 }
 0x3ca   : > { %v1116_v52 = vsel %vm1057_vm5, %v923_v51, 0  ;;  %v2321_v51 = vor.u32 %v2536_v47, %v2318_v48  ;;  %v2244_v48 = vld [vmem:[%s2854_s20 + $0x28] sm:$0xf] }
 0x3cb   : > { %v2647_v53 = vpop.eup %2646  ;;  %1125 = vmatpush.bf16.msra.mxu0 %v1116_v52  ;;  %v2325_v52 = vor.u32 %v2539_v50, %v2324_v49  ;;  %v2519_v49 = vld [vmem:[%s2854_s20 + $0x34] sm:$0xf0] }
 0x3cc   : > { %v1048_v56 = vmul.f32 %v2647_v53, %v2641_v44  ;;  %v919_v57 = vpop.permute.xlu1 %918  ;;  %v921_v58 = vpop.permute.xlu2 %920  ;;  %v2537_v53 = vld [vmem:[%s2854_s20 + $0xcc] sm:$0xf] }
 0x3cd   : > { %v1078_v59 = vsel %vm1057_vm5, %v919_v57, 0  ;;  %v1097_v60 = vsel %vm1057_vm5, %v921_v58, 0  ;;  %v2300_v57 = vld [vmem:[%s2854_s20 + $0xa0] sm:$0xf]  ;;  %v2534_v58 = vld [vmem:[%s2854_s20 + $0xac] sm:$0xf0] }
 0x3ce   : > { %v1052_v61 = vpack.c.bf16 %v1048_v56, %v1048_v56  ;;  %1087 = vmatpush.bf16.msra.mxu2 %v1078_v59  ;;  %1106 = vmatpush.bf16.msrb.mxu3 %v1097_v60  ;;  %v2329_v56 = vor.u32 %v2537_v53, %v2326_v55  ;;  %v2301_v59 = vor.u32 %v2534_v58, %v2300_v57  ;;  %v2302_v60 = vld [vmem:[%s2854_s20 + $0xb0] sm:$0xf0]  ;;  %v2246_v53 = vld [vmem:[%s2854_s20 + $0x38] sm:$0xf0]  ;;  %v2220_v55 = vld [vmem:[%s2854_s20] sm:$0xf] }
 0x3cf   : > { %2185 = vmatmul.msk.bf16.vlgmr.msra.gmra.mxu0 %vm1005_vm6, %v1053_v54  ;;  %v2532_v54 = vld [vmem:[%s2854_s20 + $0xa4] sm:$0xf]  ;;  %v2514_v57 = vld [vmem:[%s2854_s20 + $0xc] sm:$0xf0] }
 0x3d0   : > { %v1070_v63 = vpop.f32.mrf.mxu2  ;;  %1490 = vmatpush.bf16.msrb.mxu0 %v2341_v38  ;;  %v2523_v38 = vld [vmem:[%s2854_s20 + $0x54] sm:$0xf0]  ;;  %v2512_v58 = vld [vmem:[%s2854_s20 + $0x4] sm:$0xf] }
 0x3d1   : > { %2183 = vmatmul.msk.bf16.vlgmr.msra.gmra.mxu2 %vm1005_vm6, %v1051_v62  ;;  %2184 = vmatmul.msk.bf16.vlgmr.msrb.gmra.mxu3 %vm1005_vm6, %v1052_v61  ;;  %v2308_v61 = vld [vmem:[%s2854_s20 + $0xa8] sm:$0xf]  ;;  %v2535_v62 = vld [vmem:[%s2854_s20 + $0xb4] sm:$0xf0] }
 0x3d2   : > { %1464 = vmatpush.bf16.msrb.mxu2 %v2333_v33  ;;  %1477 = vmatpush.bf16.msra.mxu3 %v2337_v37  ;;  %v2522_v33 = vld [vmem:[%s2854_s20 + $0x4c] sm:$0xf0]  ;;  %v2260_v37 = vld [vmem:[%s2854_s20 + $0x48] sm:$0xf] }
 0x3d3   : > { %v2253_v35 = vor.u32 %v2522_v33, %v2252_v32  ;;  %v2572_v32 = vld [vmem:[%s2864_s0 + $0xe0] sm:$0xff]  ;;  %v2549_v33 = vld [vmem:[%s2864_s0 + $0x28] sm:$0xff] }
 0x3d4   : > { %1491 = vmatpush.bf16.msrb.mxu0 %v2325_v52  ;;  %v2517_v52 = vld [vmem:[%s2854_s20 + $0x2c] sm:$0xf] }
 0x3d6   : > { %1465 = vmatpush.bf16.msrb.mxu2 %v2317_v21  ;;  %1478 = vmatpush.bf16.msra.mxu3 %v2321_v51  ;;  %v2238_v21 = vld [vmem:[%s2854_s20 + $0x30] sm:$0xf0]  ;;  %v2245_v51 = vor.u32 %v2519_v49, %v2244_v48  ;;  %v2545_v48 = vld [vmem:[%s2864_s0 + $0x8] sm:$0xff] }
 0x3d7   : > { %v2241_v50 = vor.u32 %v2516_v46, %v2238_v21  ;;  %v2554_v46 = vld [vmem:[%s2864_s0 + $0x50] sm:$0xff]  ;;  %v2568_v21 = vld [vmem:[%s2864_s0 + $0xc0] sm:$0xff]  ;;  %v2553_v49 = vld [vmem:[%s2864_s0 + $0x48] sm:$0xff] }
 0x3d8   : > { %v1072_v0 = vpop.f32.mrf.mxu2 }
 0x3d9   : > { %v2309_v0 = vor.u32 %v2535_v62, %v2308_v61  ;;  %v2228_v61 = vld [vmem:[%s2854_s20 + $0x8] sm:$0xf]  ;;  %v2515_v62 = vld [vmem:[%s2854_s20 + $0x14] sm:$0xf0] }
 0x3da   : > { %1466 = vmatpush.bf16.msrb.mxu2 %v2301_v59  ;;  %v2221_v59 = vor.u32 %v2514_v57, %v2220_v55  ;;  %v2552_v55 = vld [vmem:[%s2864_s0 + $0x40] sm:$0xff] }
 0x3db   : > { %1492 = vmatpush.bf16.msrb.mxu0 %v2309_v0  ;;  %v2229_v0 = vor.u32 %v2515_v62, %v2228_v61 }
 0x3df   : > { %1493 = vmatpush.bf16.msrb.mxu0 %v2293_v13 }
 0x44c   : > { %v1127_v3 = vpop.f32.mrf.mxu0 }
 0x44d   : > { %1140 = vrot.lane.b32.xlu0 %v1127_v3, %s2701_s28  ;;  %v2310_v3 = vld [vmem:[%s2854_s20 + $0xb8] sm:$0xf0] }
 0x454   : > { %v1129_v4 = vpop.f32.mrf.mxu0  ;;  %v1089_v5 = vpop.f32.mrf.mxu2 }
 0x455   : > { %v1108_v6 = vpop.f32.mrf.mxu3  ;;  %1132 = vrot.lane.b32.xlu1 %v1089_v5, %s2699_s13  ;;  %v2313_v4 = vor.u32 %v2533_v1, %v2310_v3  ;;  %v2284_v5 = vld [vmem:[%s2854_s20 + $0x80] sm:$0xf]  ;;  %v2230_v1 = vld [vmem:[%s2854_s20 + $0x18] sm:$0xf0] }
 0x456   : > { %1136 = vrot.lane.b32.xlu2 %v1108_v6, %s2700_s27  ;;  %v2530_v6 = vld [vmem:[%s2854_s20 + $0x8c] sm:$0xf0] }
 0x45c   : > { %v1091_v7 = vpop.f32.mrf.mxu2 }
 0x45d   : > { %v1110_v8 = vpop.f32.mrf.mxu3  ;;  %v2528_v7 = vld [vmem:[%s2854_s20 + $0x84] sm:$0xf] }
 0x45e   : > { %v2285_v8 = vor.u32 %v2530_v6, %v2284_v5  ;;  %v2289_v12 = vor.u32 %v2528_v7, %v2286_v9  ;;  %v2567_v5 = vld [vmem:[%s2864_s0 + $0xb8] sm:$0xff] }
 0x45f   : > { %v2575_v6 = vld [vmem:[%s2864_s0 + $0xf8] sm:$0xff] }
 0x460   : > { %1467 = vmatpush.bf16.msrb.mxu2 %v2285_v8 }
 0x4b0   : > { %v1137_v17 = vpop.permute.xlu2 %1136 }
 0x4bf   : > { %v1141_v20 = vpop.permute.xlu0 %1140 }
 0x4c7   : > { %v1133_v16 = vpop.permute.xlu1 %1132 }
 0x4c8   : > { %v1143_v19 = vsel %vm924_vm4, %v1070_v63, %v1133_v16  ;;  %v2305_v63 = vor.u32 %v2532_v54, %v2302_v60  ;;  %v2297_v16 = vor.u32 %v2529_v14, %v2294_v15  ;;  %v2222_v54 = vld [vmem:[%s2854_s20 + $0x10] sm:$0xf0] }
 0x4c9   : > { %v1145_v22 = vsel %vm1144_vm7, %v1143_v19, %v1137_v17  ;;  %v2268_v17 = vld [vmem:[%s2854_s20 + $0x60] sm:$0xf]  ;;  %v2526_v19 = vld [vmem:[%s2854_s20 + $0x6c] sm:$0xf0]  ;;  %v2225_v60 = vor.u32 %v2512_v58, %v2222_v54 }
 0x4ca   : > { %v1147_v23 = vsel %vm1146_vm8, %v1145_v22, %v1141_v20  ;;  %1479 = vmatpush.bf16.msra.mxu3 %v2305_v63  ;;  %v2524_v20 = vld [vmem:[%s2854_s20 + $0x64] sm:$0xf]  ;;  %v2269_v22 = vor.u32 %v2526_v19, %v2268_v17  ;;  %v2513_v63 = vld [vmem:[%s2854_s20 + $0xc] sm:$0xf]  ;;  %v2626_v17 = vld [vmem:[%s3188_s3] ss:$0 sm:$0xff] }
 0x4cb   : > { %v1165_v24 = vpack.c.bf16 %v1147_v23, %v1147_v23  ;;  %v2270_v23 = vld [vmem:[%s2854_s20 + $0x70] sm:$0xf0]  ;;  %v2233_v3 = vor.u32 %v2513_v63, %v2230_v1 }
 0x4cc   : > { %1468 = vmatpush.bf16.msrb.mxu2 %v2269_v22 }
 0x4cd   : > { %1225 = vmatmul.bf16.vlgmr.msrb.gmra.mxu1 %v1165_v24  ;;  %v2276_v24 = vld [vmem:[%s2854_s20 + $0x68] sm:$0xf] }
 0x4ce   : > { %1480 = vmatpush.bf16.msra.mxu3 %v2289_v12 }
 0x4d0   : > { %1469 = vmatpush.bf16.msrb.mxu2 %v2253_v35  ;;  %v2563_v35 = vld [vmem:[%s2864_s0 + $0x98] sm:$0xff] }
 0x54a   : > { %v1226_v26 = vpop.f32.mrf.mxu1 }
 0x54b   : > { %v1227_v27 = vadd.f32 %v2624_v25, %v1226_v26  ;;  %v2527_v25 = vld [vmem:[%s2854_s20 + $0x74] sm:$0xf0]  ;;  %v2273_v26 = vor.u32 %v2524_v20, %v2270_v23  ;;  %v2566_v23 = vld [vmem:[%s2864_s0 + $0xb0] sm:$0xff] }
 0x54d   : > { %v3005_v28 = vadd.f32 %v1227_v27, %v2876_v2  ;;  %v2345_v2 = vor.u32 %v2541_v39, %v2342_v40  ;;  %v2277_v27 = vor.u32 %v2527_v25, %v2276_v24  ;;  %1481 = vmatpush.bf16.msra.mxu3 %v2273_v26  ;;  %v2257_v39 = vor.u32 %v2520_v34, %v2254_v36  ;;  %v2574_v24 = vld [vmem:[%s2864_s0 + $0xf0] sm:$0xff]  ;;  %v2559_v25 = vld [vmem:[%s2864_s0 + $0x78] sm:$0xff]  ;;  %v2565_v26 = vld [vmem:[%s2864_s0 + $0xa8] sm:$0xff] }
 0x54e   : > { %v2261_v40 = vor.u32 %v2523_v38, %v2260_v37  ;;  %v2557_v34 = vld [vmem:[%s2864_s0 + $0x68] sm:$0xff]  ;;  %v2571_v36 = vld [vmem:[%s2864_s0 + $0xd8] sm:$0xff]  ;;  %v2548_v37 = vld [vmem:[%s2864_s0 + $0x20] sm:$0xff] }
 0x54f   : > { %1233 = vadd.xlane.f32.xlu1 %v3005_v28  ;;  %1503 = vmatpush.bf16.msra.mxu1 %v2345_v2  ;;  %v2521_v2 = vld [vmem:[%s2854_s20 + $0x4c] sm:$0xf]  ;;  %v2556_v38 = vld [vmem:[%s2864_s0 + $0x60] sm:$0xff] }
 0x550   : > { %1494 = vmatpush.bf16.msrb.mxu0 %v2277_v27  ;;  %v2573_v27 = vld [vmem:[%s2864_s0 + $0xe8] sm:$0xff] }
 0x551   : > { %1482 = vmatpush.bf16.msra.mxu3 %v2257_v39  ;;  %v2562_v39 = vld [vmem:[%s2864_s0 + $0x90] sm:$0xff] }
 0x552   : > { %v1228_v29 = vpop.f32.mrf.mxu1 }
 0x553   : > { %1504 = vmatpush.bf16.msra.mxu1 %v2329_v56  ;;  %v2525_v29 = vld [vmem:[%s2854_s20 + $0x6c] sm:$0xf]  ;;  %v2249_v56 = vor.u32 %v2517_v52, %v2246_v53  ;;  %v2544_v53 = vld [vmem:[%s2864_s0] sm:$0xff] }
 0x554   : > { %v2281_v31 = vor.u32 %v2525_v29, %v2278_v30  ;;  %1495 = vmatpush.bf16.msrb.mxu0 %v2261_v40  ;;  %v2550_v29 = vld [vmem:[%s2864_s0 + $0x30] sm:$0xff] }
 0x555   : > { %1483 = vmatpush.bf16.msra.mxu3 %v2241_v50  ;;  %v2558_v30 = vld [vmem:[%s2864_s0 + $0x70] sm:$0xff]  ;;  %v1293_v50 = vld [vmem:[%s2859_s23] sm:$0xf] }
 0x556   : > { %v2570_v40 = vld [vmem:[%s2864_s0 + $0xd0] sm:$0xff]  ;;  %v1299_v52 = vperm.slane %v1293_v50, 3 }
 0x557   : > { %1505 = vmatpush.bf16.msra.mxu1 %v2313_v4 }
 0x558   : > { %1496 = vmatpush.bf16.msrb.mxu0 %v2245_v51  ;;  %v1298_v51 = vperm.slane %v1293_v50, 2 }
 0x559   : > { %1484 = vmatpush.bf16.msra.mxu3 %v2225_v60  ;;  %v1297_v60 = vperm.slane %v1293_v50, 1 }
 0x55b   : > { %1506 = vmatpush.bf16.msra.mxu1 %v2297_v16 }
 0x55c   : > { %1497 = vmatpush.bf16.msrb.mxu0 %v2229_v0 }
 0x55d   : > { %1829 = vmatpush.bf16.msrb.mxu3 %v2559_v25 }
 0x55f   : > { %1507 = vmatpush.bf16.msra.mxu1 %v2281_v31  ;;  %v2564_v31 = vld [vmem:[%s2864_s0 + $0xa0] sm:$0xff] }
 0x560   : > { %1842 = vmatpush.bf16.msra.mxu0 %v2567_v5 }
 0x561   : > { %1830 = vmatpush.bf16.msrb.mxu3 %v2558_v30 }
 0x564   : > { %1843 = vmatpush.bf16.msra.mxu0 %v2566_v23 }
 0x565   : > { %1831 = vmatpush.bf16.msrb.mxu3 %v2557_v34 }
 0x568   : > { %1844 = vmatpush.bf16.msra.mxu0 %v2565_v26 }
 0x569   : > { %1832 = vmatpush.bf16.msrb.mxu3 %v2556_v38 }
 0x56c   : > { %1845 = vmatpush.bf16.msra.mxu0 %v2564_v31 }
 0x570   : > { %1846 = vmatpush.bf16.msra.mxu0 %v2563_v35 }
 0x574   : > { %1847 = vmatpush.bf16.msra.mxu0 %v2562_v39 }
 0x5c2   : > { %v1234_v41 = vpop.xlane.xlu1 %1233 }
 0x5c3   : > { %v1235_v42 = vmul.f32 %v1234_v41, %v2885_v18  ;;  %v2262_v41 = vld [vmem:[%s2854_s20 + $0x58] sm:$0xf0] }
 0x5c5   : > { %v3018_v43 = vsub.f32 %v3005_v28, %v1235_v42  ;;  %v2265_v42 = vor.u32 %v2521_v2, %v2262_v41  ;;  %v2547_v2 = vld [vmem:[%s2864_s0 + $0x18] sm:$0xff] }
 0x5c6   : > { %v2555_v41 = vld [vmem:[%s2864_s0 + $0x58] sm:$0xff] }
 0x5c7   : > { %v1237_v44 = vmul.f32 %v3018_v43, %v3018_v43  ;;  %1508 = vmatpush.bf16.msra.mxu1 %v2265_v42  ;;  %v2561_v42 = vld [vmem:[%s2864_s0 + $0x88] sm:$0xff]  ;;  %1833 = vmatpush.bf16.msrb.mxu3 %v2555_v41 }
 0x5c8   : > { %1848 = vmatpush.bf16.msra.mxu0 %v2561_v42 }
 0x5c9   : > { %1238 = vadd.xlane.f32.xlu2 %v1237_v44  ;;  %v2236_v44 = vld [vmem:[%s2854_s20 + $0x20] sm:$0xf] }
 0x5ca   : > { %v2237_v47 = vor.u32 %v2518_v45, %v2236_v44  ;;  %v2569_v44 = vld [vmem:[%s2864_s0 + $0xc8] sm:$0xff]  ;;  %v2546_v45 = vld [vmem:[%s2864_s0 + $0x10] sm:$0xff] }
 0x5cb   : > { %1509 = vmatpush.bf16.msra.mxu1 %v2249_v56  ;;  %1834 = vmatpush.bf16.msrb.mxu3 %v2554_v46 }
 0x5cc   : > { %1470 = vmatpush.bf16.msrb.mxu2 %v2237_v47  ;;  %v2560_v47 = vld [vmem:[%s2864_s0 + $0x80] sm:$0xff] }
 0x5cd   : > { %1849 = vmatpush.bf16.msra.mxu0 %v2560_v47 }
 0x5cf   : > { %1510 = vmatpush.bf16.msra.mxu1 %v2233_v3  ;;  %1835 = vmatpush.bf16.msrb.mxu3 %v2553_v49  ;;  %v2627_v49 = vld [vmem:[%s641_s30] ss:$0 sm:$0xff] }
 0x5d0   : > { %1471 = vmatpush.bf16.msrb.mxu2 %v2221_v59  ;;  %v1296_v59 = vperm.slane %v1293_v50, 0 }
 0x5d3   : > { %1855 = vmatpush.bf16.msrb.mxu1 %v2575_v6  ;;  %1836 = vmatpush.bf16.msrb.mxu3 %v2552_v55 }
 0x5d7   : > { %1856 = vmatpush.bf16.msrb.mxu1 %v2574_v24 }
 0x5db   : > { %1857 = vmatpush.bf16.msrb.mxu1 %v2573_v27 }
 0x5df   : > { %1858 = vmatpush.bf16.msrb.mxu1 %v2572_v32 }
 0x5e3   : > { %1859 = vmatpush.bf16.msrb.mxu1 %v2571_v36 }
 0x5e7   : > { %1860 = vmatpush.bf16.msrb.mxu1 %v2570_v40 }
 0x5eb   : > { %1861 = vmatpush.bf16.msrb.mxu1 %v2569_v44 }
 0x5ef   : > { %1862 = vmatpush.bf16.msrb.mxu1 %v2568_v21 }
 0x63c   : > { %v1239_v4 = vpop.xlane.xlu2 %1238 }
 0x63d   : > { %v1240_v7 = vmul.f32 %v1239_v4, %v2885_v18  ;;  %v2625_v18 = vld [vmem:[%s3187_s2] ss:$0 sm:$0xff] }
 0x63f   : > { %v1241_v8 = vadd.f32 1e-05, %v1240_v7 }
 0x641   : > { %2648 = vrsqrt.f32 %v1241_v8  ;;  %vm1248_vm10 = vweird.f32 %v1241_v8 }
 0x647   : > { %v2649_v9 = vpop.eup %2648 }
 0x648   : > { %v1243_v10 = vmul.f32 %v2649_v9, %v1241_v8  ;;  %vm1249_vm9 = vweird.f32 %v2649_v9 }
 0x649   : > { %vm1250_vm11 = vmor %vm1248_vm10, %vm1249_vm9 }
 0x64a   : > { %v1244_v11 = vmul.f32 %v2649_v9, %v1243_v10 }
 0x64c   : > { %v1245_v12 = vmul.f32 0.5, %v1244_v11 }
 0x64e   : > { %v1246_v13 = vsub.f32 1.5, %v1245_v12 }
 0x650   : > { %v1247_v14 = vmul.f32 %v2649_v9, %v1246_v13 }
 0x652   : > { %v1251_v15 = vsel %vm1250_vm11, %v2649_v9, %v1247_v14 }
 0x653   : > { %v1252_v16 = vmul.f32 %v1251_v15, %v3018_v43  ;;  %v2551_v43 = vld [vmem:[%s2864_s0 + $0x38] sm:$0xff] }
 0x654   : > { %1816 = vmatpush.bf16.msra.mxu2 %v2551_v43 }
 0x655   : > { %v1256_v19 = vmul.f32 %v2625_v18, %v1252_v16 }
 0x657   : > { %v1260_v20 = vadd.f32 %v2626_v17, %v1256_v19 }
 0x658   : > { %1817 = vmatpush.bf16.msra.mxu2 %v2550_v29 }
 0x659   : > { %v1294_v22 = vpack.c.bf16 %v1260_v20, %v1260_v20 }
 0x65b   : > { %1472 = vmatmul.bf16.vlgmr.msrb.gmra.mxu2 %v1294_v22  ;;  %1485 = vmatmul.bf16.vlgmr.msra.gmra.mxu3 %v1294_v22 }
 0x65c   : > { %1498 = vmatmul.bf16.vlgmr.msrb.gmra.mxu0 %v1294_v22  ;;  %1511 = vmatmul.bf16.vlgmr.msra.gmra.mxu1 %v1294_v22 }
 0x65d   : > { %1818 = vmatpush.bf16.msra.mxu2 %v2549_v33 }
 0x661   : > { %1819 = vmatpush.bf16.msra.mxu2 %v2548_v37 }
 0x665   : > { %1820 = vmatpush.bf16.msra.mxu2 %v2547_v2 }
 0x669   : > { %1821 = vmatpush.bf16.msra.mxu2 %v2546_v45 }
 0x66d   : > { %1822 = vmatpush.bf16.msra.mxu2 %v2545_v48 }
 0x671   : > { %1823 = vmatpush.bf16.msra.mxu2 %v2544_v53 }
 0x6d9   : > { %v1499_v56 = vpop.f32.mrf.mxu0  ;;  %v1512_v57 = vpop.f32.mrf.mxu1 }
 0x6da   : > { %v1500_v58 = vadd.f32 %v1499_v56, %v1298_v51  ;;  %v1513_v54 = vadd.f32 %v1512_v57, %v1299_v52 }
 0x6dc   : > { %v1518_v61 = vmul.f32 %v1500_v58, %v1500_v58  ;;  %v1519_v62 = vmul.f32 %v1513_v54, %v1513_v54 }
 0x6de   : > { %v1522_v63 = vmul.f32 %v1518_v61, %v1500_v58  ;;  %v1523_v0 = vmul.f32 %v1519_v62, %v1513_v54  ;;  %v1473_v1 = vpop.f32.mrf.mxu2  ;;  %v1486_v3 = vpop.f32.mrf.mxu3 }
 0x6df   : > { %v1474_v4 = vadd.f32 %v1473_v1, %v1296_v59  ;;  %v1487_v5 = vadd.f32 %v1486_v3, %v1297_v60 }
 0x6e0   : > { %v1526_v6 = vmul.f32 0.044715, %v1522_v63  ;;  %v1527_v7 = vmul.f32 0.044715, %v1523_v0 }
 0x6e1   : > { %v1516_v8 = vmul.f32 %v1474_v4, %v1474_v4  ;;  %v1517_v9 = vmul.f32 %v1487_v5, %v1487_v5  ;;  %v1501_v10 = vpop.f32.mrf.mxu0  ;;  %v1514_v11 = vpop.f32.mrf.mxu1 }
 0x6e2   : > { %v1530_v12 = vadd.f32 %v1526_v6, %v1500_v58  ;;  %v1531_v13 = vadd.f32 %v1527_v7, %v1513_v54 }
 0x6e3   : > { %v1520_v14 = vmul.f32 %v1516_v8, %v1474_v4  ;;  %v1521_v18 = vmul.f32 %v1517_v9, %v1487_v5 }
 0x6e4   : > { %v1534_v15 = vmul.f32 0.7978846, %v1530_v12  ;;  %v1535_v16 = vmul.f32 0.7978846, %v1531_v13 }
 0x6e5   : > { %v1524_v17 = vmul.f32 0.044715, %v1520_v14  ;;  %v1525_v19 = vmul.f32 0.044715, %v1521_v18 }
 0x6e6   : > { %2650 = vtanh.f32 %v1534_v15  ;;  %v1475_v20 = vpop.f32.mrf.mxu2  ;;  %v1488_v22 = vpop.f32.mrf.mxu3 }
 0x6e7   : > { %2652 = vtanh.f32 %v1535_v16  ;;  %v1528_v23 = vadd.f32 %v1524_v17, %v1474_v4  ;;  %v1529_v24 = vadd.f32 %v1525_v19, %v1487_v5 }
 0x6e9   : > { %v1532_v43 = vmul.f32 0.7978846, %v1528_v23  ;;  %v1533_v25 = vmul.f32 0.7978846, %v1529_v24 }
 0x6eb   : > { %2654 = vtanh.f32 %v1532_v43 }
 0x6ec   : > { %v2651_v26 = vpop.eup %2650  ;;  %2656 = vtanh.f32 %v1533_v25 }
 0x6ed   : > { %v2653_v27 = vpop.eup %2652  ;;  %v1542_v29 = vadd.f32 1.0, %v2651_v26 }
 0x6ee   : > { %v1543_v30 = vadd.f32 1.0, %v2653_v27 }
 0x6ef   : > { %v1546_v31 = vmul.f32 0.5, %v1542_v29 }
 0x6f0   : > { %v1547_v32 = vmul.f32 0.5, %v1543_v30 }
 0x6f1   : > { %v2655_v33 = vpop.eup %2654  ;;  %v1550_v34 = vmul.f32 %v1546_v31, %v1500_v58 }
 0x6f2   : > { %v2657_v35 = vpop.eup %2656  ;;  %v1551_v36 = vmul.f32 %v1547_v32, %v1513_v54  ;;  %v1540_v37 = vadd.f32 1.0, %v2655_v33 }
 0x6f3   : > { %v1619_v38 = vpack.c.bf16 %v1550_v34, %v1550_v34  ;;  %v1541_v39 = vadd.f32 1.0, %v2657_v35 }
 0x6f4   : > { %v1620_v40 = vpack.c.bf16 %v1551_v36, %v1551_v36  ;;  %v1544_v2 = vmul.f32 0.5, %v1540_v37 }
 0x6f5   : > { %1850 = vmatmul.bf16.vlgmr.msra.gmra.mxu0 %v1619_v38  ;;  %v1545_v41 = vmul.f32 0.5, %v1541_v39 }
 0x6f6   : > { %1863 = vmatmul.bf16.vlgmr.msrb.gmra.mxu1 %v1620_v40  ;;  %v1548_v42 = vmul.f32 %v1544_v2, %v1474_v4 }
 0x6f7   : > { %v1549_v44 = vmul.f32 %v1545_v41, %v1487_v5 }
 0x6f8   : > { %v1617_v45 = vpack.c.bf16 %v1548_v42, %v1548_v42 }
 0x6f9   : > { %v1618_v46 = vpack.c.bf16 %v1549_v44, %v1549_v44 }
 0x6fa   : > { %1824 = vmatmul.bf16.vlgmr.msra.gmra.mxu2 %v1617_v45 }
 0x6fb   : > { %1837 = vmatmul.bf16.vlgmr.msrb.gmra.mxu3 %v1618_v46 }
 0x772   : > { %v1851_v47 = vpop.f32.mrf.mxu0 }
 0x773   : > { %v1864_v21 = vpop.f32.mrf.mxu1 }
 0x77a   : > { %v1853_v48 = vpop.f32.mrf.mxu0 }
 0x77b   : > { %v1866_v50 = vpop.f32.mrf.mxu1 }
 0x77d   : > { %v1825_v51 = vpop.f32.mrf.mxu2 }
 0x77e   : > { %v1826_v52 = vadd.f32 %v2627_v49, %v1825_v51  ;;  %v1838_v53 = vpop.f32.mrf.mxu3 }
 0x780   : > { %v1839_v55 = vadd.f32 %v1838_v53, %v1826_v52 }
 0x782   : > { %v1852_v56 = vadd.f32 %v1851_v47, %v1839_v55 }
 0x784   : > { %v1865_v57 = vadd.f32 %v1864_v21, %v1852_v56  ;;  %1873 = sbr.rel (%p2474_p8) target bundleno = 1932 (0x78c), region = 80 }
 0x785   : > { %v1827_v58 = vpop.f32.mrf.mxu2 }
 0x786   : > { %v1868_v54 = vadd.f32 %v1865_v57, %v3005_v28  ;;  %v1840_v59 = vpop.f32.mrf.mxu3 }
 0x788   : > { %1869 = vst [vmem:[#allocation2] sm:$0xff] %v1868_v54 }
 0x789   : > { %v1874_v60 = vpack.c.bf16 %v1868_v54, %v1868_v54 }
 0x78b   : > { %1875 = vst [vmem:[%s2873_s5] sm:$0xf] %v1874_v60 }
 0x78c PF: > { %s3190_s15 = sld [smem:[#allocation6_spill]] }
 0x78d   : > { %s3191_s25 = sld [smem:[#allocation4_spill]] }
 0x78e   : > { %s3192_s26 = sld [smem:[#allocation5_spill]] }
 0x78f   : > { %s3193_s27 = sld [smem:[#allocation7_spill]] }
 0x790   : > { %s3194_s28 = sld [smem:[#allocation8_spill]] }
 0x792   : > { %s23_s29 = sadd.s32 1, %s3190_s15  }
 0x793   : > { %p20_p9 = scmp.ge.s32.totalorder %s23_s29, 6  }
 0x795   :  { %22 = sbr.rel (!%p20_p9) target bundleno = 7 (0x7), region = 146 }

// kernel: _forward.8
= control target key start
LH: loop header
LB: loop body
LE: loop exit
PB: predicated region body
PF: predicated region fallthrough
CT: control target
= control target key end

     0   :  { %vm16_vm0 = vcmask 1043456   ;;  %v82_v1 = vmov 4.0   ;;  %vm60_vm2 = vcmask 1040384   ;;  %vm61_vm3 = vsmask.f32 256  ;;  %s145_s0 = inlined_call_operand.vmem [shape: bf16[4,4,128], index: 0, kind: input, shape index: {}]   ;;  %s146_s1 = inlined_call_operand.vmem [shape: bf16[4,1,128], index: 1, kind: output, shape index: {}]  }
   0x1   :  { %v8_v0 = vld [vmem:[%s145_s0] sm:$0x3]  ;;  %80 = vrcp.f32 %v82_v1  ;;  %v9_v3 = vld [vmem:[%s145_s0 + $0x2] sm:$0x3]  ;;  %v10_v4 = vld [vmem:[%s145_s0 + $0x4] sm:$0x3] }
   0x2   :  { %v12_v2 = vunpack.c.l.bf16 %v8_v0  ;;  %v13_v5 = vunpack.c.l.bf16 %v9_v3  ;;  %v14_v6 = vunpack.c.l.bf16 %v10_v4  ;;  %v11_v7 = vld [vmem:[%s145_s0 + $0x6] sm:$0x3]  ;;  %vm109_vm4 = vmand %vm60_vm2, %vm61_vm3  ;;  %v63_v45 = vld [vmem:[%s146_s1] sm:$0x1] }
   0x3   :  { %v15_v9 = vunpack.c.l.bf16 %v11_v7  ;;  %v66_v49 = vld [vmem:[%s146_s1 + $0x1] sm:$0x1]  ;;  %v69_v50 = vld [vmem:[%s146_s1 + $0x2] sm:$0x1]  ;;  %v72_v54 = vld [vmem:[%s146_s1 + $0x3] sm:$0x1] }
   0x4   :  { %v17_v8 = vsel %vm16_vm0, %v12_v2, 0.0  ;;  %v24_v11 = vsel %vm16_vm0, %v13_v5, 0.0  ;;  %v31_v12 = vsel %vm16_vm0, %v14_v6, 0.0 }
   0x5   :  { %v18_v10 = vrot.slane %v17_v8, 4  ;;  %v25_v13 = vrot.slane %v24_v11, 4  ;;  %v32_v14 = vrot.slane %v31_v12, 4  ;;  %v38_v15 = vsel %vm16_vm0, %v15_v9, 0.0 }
   0x6   :  { %v39_v18 = vrot.slane %v38_v15, 4 }
   0x7   :  { %v81_v16 = vpop.eup %80  ;;  %v19_v17 = vadd.f32 %v18_v10, %v17_v8  ;;  %v26_v20 = vadd.f32 %v25_v13, %v24_v11  ;;  %v33_v21 = vadd.f32 %v32_v14, %v31_v12 }
   0x8   :  { %v46_v19 = vmul.f32 4.0, %v81_v16  ;;  %v40_v23 = vadd.f32 %v39_v18, %v38_v15  ;;  %vm50_vm1 = vweird.f32 %v81_v16 }
   0x9   :  { %v20_v22 = vrot.slane %v19_v17, 2  ;;  %v27_v25 = vrot.slane %v26_v20, 2  ;;  %v34_v26 = vrot.slane %v33_v21, 2 }
   0xa   :  { %v47_v24 = vsub.f32 1.0, %v46_v19  ;;  %v41_v28 = vrot.slane %v40_v23, 2 }
   0xb   :  { %v21_v27 = vadd.f32 %v20_v22, %v19_v17  ;;  %v28_v30 = vadd.f32 %v27_v25, %v26_v20  ;;  %v35_v31 = vadd.f32 %v34_v26, %v33_v21 }
   0xc   :  { %v48_v29 = vmul.f32 %v81_v16, %v47_v24  ;;  %v42_v33 = vadd.f32 %v41_v28, %v40_v23 }
   0xd   :  { %v22_v32 = vrot.slane %v21_v27, 1  ;;  %v29_v35 = vrot.slane %v28_v30, 1  ;;  %v36_v36 = vrot.slane %v35_v31, 1 }
   0xe   :  { %v49_v34 = vadd.f32 %v81_v16, %v48_v29  ;;  %v43_v38 = vrot.slane %v42_v33, 1 }
   0xf   :  { %v23_v37 = vadd.f32 %v22_v32, %v21_v27  ;;  %v30_v40 = vadd.f32 %v29_v35, %v28_v30  ;;  %v37_v41 = vadd.f32 %v36_v36, %v35_v31 }
  0x10   :  { %v51_v39 = vsel %vm50_vm1, %v81_v16, %v49_v34  ;;  %v44_v43 = vadd.f32 %v43_v38, %v42_v33 }
  0x11   :  { %v52_v42 = vmul.f32 %v51_v39, %v23_v37  ;;  %v53_v46 = vmul.f32 %v51_v39, %v30_v40  ;;  %v54_v47 = vmul.f32 %v51_v39, %v37_v41 }
  0x12   :  { %v55_v51 = vmul.f32 %v51_v39, %v44_v43 }
  0x13   :  { %v56_v48 = vpack.c.bf16 %v52_v42, %v52_v42  ;;  %v57_v52 = vpack.c.bf16 %v53_v46, %v53_v46  ;;  %v58_v53 = vpack.c.bf16 %v54_v47, %v54_v47 }
  0x14   :  { %v59_v56 = vpack.c.bf16 %v55_v51, %v55_v51 }
  0x15   :  { %v64_v55 = vsel %vm109_vm4, %v56_v48, %v63_v45  ;;  %v67_v57 = vsel %vm109_vm4, %v57_v52, %v66_v49  ;;  %v70_v58 = vsel %vm109_vm4, %v58_v53, %v69_v50 }
  0x16   :  { %65 = vst [vmem:[%s146_s1] sm:$0x1] %v64_v55  ;;  %v73_v59 = vsel %vm109_vm4, %v59_v56, %v72_v54 }
  0x17   :  { %68 = vst [vmem:[%s146_s1 + $0x1] sm:$0x1] %v67_v57 }
  0x18   :  { %71 = vst [vmem:[%s146_s1 + $0x2] sm:$0x1] %v70_v58 }
  0x19   :  { %74 = vst [vmem:[%s146_s1 + $0x3] sm:$0x1] %v73_v59 }

// kernel: _forward.9
= control target key start
LH: loop header
LB: loop body
LE: loop exit
PB: predicated region body
PF: predicated region fallthrough
CT: control target
= control target key end

     0   :  { %s843_s0 = inlined_call_operand.vmem [shape: bf16[4,128], index: 0, kind: input, shape index: {}]   ;;  %s844_s1 = inlined_call_operand.vmem [shape: bf16[128,128], index: 1, kind: input, shape index: {}]   ;;  %s845_s2 = inlined_call_operand.vmem [shape: f32[1,128], index: 2, kind: input, shape index: {}]   ;;  %s846_s3 = inlined_call_operand.vmem [shape: f32[1,128], index: 3, kind: input, shape index: {}]   ;;  %s847_s4 = inlined_call_operand.vmem [shape: f32[1,128], index: 4, kind: input, shape index: {}]   ;;  %s848_s5 = inlined_call_operand.vmem [shape: bf16[128,64], index: 5, kind: input, shape index: {}]   ;;  %s849_s6 = inlined_call_operand.vmem [shape: f32[1,64], index: 6, kind: input, shape index: {}]   ;;  %s850_s7 = inlined_call_operand.vmem [shape: f32[1,64], index: 7, kind: input, shape index: {}]   ;;  %s851_s8 = inlined_call_operand.vmem [shape: f32[1,64], index: 8, kind: input, shape index: {}]   ;;  %s852_s9 = inlined_call_operand.vmem [shape: bf16[64,64], index: 9, kind: input, shape index: {}]   ;;  %s853_s10 = inlined_call_operand.vmem [shape: f32[1,64], index: 10, kind: input, shape index: {}]   ;;  %s854_s11 = inlined_call_operand.vmem [shape: f32[1,64], index: 11, kind: input, shape index: {}]   ;;  %s855_s12 = inlined_call_operand.vmem [shape: f32[1,64], index: 12, kind: input, shape index: {}]   ;;  %s856_s13 = inlined_call_operand.vmem [shape: bf16[64,128], index: 13, kind: input, shape index: {}]   ;;  %s857_s14 = inlined_call_operand.vmem [shape: f32[1,128], index: 14, kind: input, shape index: {}]   ;;  %s858_s15 = inlined_call_operand.hbm [shape: f32[4,128], index: 15, kind: output, shape index: {}]  }
   0x1   :  { %v572_v0 = vld [vmem:[%s844_s1 + $0x38] sm:$0xff]  ;;  %v571_v1 = vld [vmem:[%s844_s1 + $0x30] sm:$0xff]  ;;  %v570_v2 = vld [vmem:[%s844_s1 + $0x28] sm:$0xff] }
   0x2   :  { %121 = vmatpush.bf16.msra.mxu0 %v572_v0 }
   0x6   :  { %122 = vmatpush.bf16.msra.mxu0 %v571_v1 }
   0x7   :  { %20 = vsyncpa [#allocation3], 0  ;;  %v569_v3 = vld [vmem:[%s844_s1 + $0x20] sm:$0xff]  ;;  %v568_v4 = vld [vmem:[%s844_s1 + $0x18] sm:$0xff]  ;;  %vm136_vm0 = vcmask 1043456   ;;  %v642_v14 = vmov 128.0  }
   0x8   :  { %v567_v5 = vld [vmem:[%s844_s1 + $0x10] sm:$0xff]  ;;  %v566_v6 = vld [vmem:[%s844_s1 + $0x8] sm:$0xff]  ;;  %v565_v7 = vld [vmem:[%s844_s1] sm:$0xff]  ;;  %602 = vrcp.f32 %v642_v14  ;;  %vm259_vm5 = vcmask 519168   ;;  %v643_v56 = vmov 64.0   ;;  %vm335_vm10 = vcmask 523264  }
   0x9   :  { %v52_v8 = vld [vmem:[%s843_s0] sm:$0x3]  ;;  %v580_v26 = vld [vmem:[%s848_s5 + $0x38] sm:$0xff]  ;;  %v579_v27 = vld [vmem:[%s848_s5 + $0x30] sm:$0xff] }
   0xa   :  { %123 = vmatpush.bf16.msra.mxu0 %v570_v2  ;;  %v592_v9 = vld [vmem:[%s845_s2] ss:$0 sm:$0xff]  ;;  %244 = vmatpush.bf16.msra.mxu1 %v580_v26  ;;  %v578_v28 = vld [vmem:[%s848_s5 + $0x28] sm:$0xff]  ;;  %v576_v30 = vld [vmem:[%s848_s5 + $0x18] sm:$0xff] }
   0xb   :  { %v577_v29 = vld [vmem:[%s848_s5 + $0x20] sm:$0xff]  ;;  %v575_v31 = vld [vmem:[%s848_s5 + $0x10] sm:$0xff]  ;;  %v574_v32 = vld [vmem:[%s848_s5 + $0x8] sm:$0xff] }
   0xc   :  { %v573_v33 = vld [vmem:[%s848_s5] sm:$0xff] }
   0xd   :  { %v593_v43 = vld [vmem:[%s846_s3] ss:$0 sm:$0xff] }
   0xe   :  { %124 = vmatpush.bf16.msra.mxu0 %v569_v3  ;;  %v603_v15 = vpop.eup %602  ;;  %245 = vmatpush.bf16.msra.mxu1 %v579_v27  ;;  %v594_v46 = vld [vmem:[%s847_s4] ss:$0 sm:$0xff] }
   0xf   :  { %v141_v16 = vmul.f32 128.0, %v603_v15  ;;  %vm145_vm1 = vweird.f32 %v603_v15  ;;  %v595_v51 = vld [vmem:[%s849_s6] ss:$0 sm:$0xff]  ;;  %s458_s6 = sshll.u32 %s858_s15, 4  ;;  %s459_s6 = int_to_ptr.hbm [resolvable:$true] %s458_s6 }
  0x11   :  { %v142_v17 = vsub.f32 1.0, %v141_v16 }
  0x12   :  { %125 = vmatpush.bf16.msra.mxu0 %v568_v4  ;;  %246 = vmatpush.bf16.msra.mxu1 %v578_v28  ;;  %v584_v4 = vld [vmem:[%s852_s9 + $0x18] sm:$0xff] }
  0x13   :  { %v143_v18 = vmul.f32 %v603_v15, %v142_v17  ;;  %343 = vmatpush.bf16.msra.mxu2 %v584_v4  ;;  %v596_v17 = vld [vmem:[%s850_s7] ss:$0 sm:$0xff] }
  0x15   :  { %v144_v19 = vadd.f32 %v603_v15, %v143_v18 }
  0x16   :  { %126 = vmatpush.bf16.msra.mxu0 %v567_v5  ;;  %247 = vmatpush.bf16.msra.mxu1 %v577_v29  ;;  %v583_v5 = vld [vmem:[%s852_s9 + $0x10] sm:$0xff] }
  0x17   :  { %v146_v20 = vsel %vm145_vm1, %v603_v15, %v144_v19  ;;  %344 = vmatpush.bf16.msra.mxu2 %v583_v5 }
  0x1a   :  { %127 = vmatpush.bf16.msra.mxu0 %v566_v6  ;;  %248 = vmatpush.bf16.msra.mxu1 %v576_v30  ;;  %v582_v6 = vld [vmem:[%s852_s9 + $0x8] sm:$0xff] }
  0x1b   :  { %345 = vmatpush.bf16.msra.mxu2 %v582_v6 }
  0x1e   :  { %128 = vmatpush.bf16.msra.mxu0 %v565_v7  ;;  %249 = vmatpush.bf16.msra.mxu1 %v575_v31  ;;  %v581_v7 = vld [vmem:[%s852_s9] sm:$0xff] }
  0x1f   :  { %346 = vmatpush.bf16.msra.mxu2 %v581_v7 }
  0x21   :  { %129 = vmatmul.bf16.vlgmr.msra.gmra.mxu0 %v52_v8 }
  0x22   :  { %250 = vmatpush.bf16.msra.mxu1 %v574_v32 }
  0x26   :  { %251 = vmatpush.bf16.msra.mxu1 %v573_v33 }
  0x9e   :  { %v130_v10 = vpop.f32.mrf.mxu0 }
  0x9f   :  { %v131_v11 = vadd.f32 %v592_v9, %v130_v10 }
  0xa1   :  { %v137_v12 = vsel %vm136_vm0, %v131_v11, 0.0 }
  0xa2   :  { %138 = vadd.xlane.f32.xlu0 %v137_v12 }
  0xa6   :  { %v132_v13 = vpop.f32.mrf.mxu0 }
 0x115   :  { %v139_v21 = vpop.xlane.xlu0 %138 }
 0x116   :  { %v147_v22 = vmul.f32 %v146_v20, %v139_v21 }
 0x118   :  { %v148_v23 = vsub.f32 %v131_v11, %v147_v22 }
 0x11a   :  { %v149_v24 = vmul.f32 %v148_v23, %v148_v23 }
 0x11c   :  { %v150_v25 = vsel %vm136_vm0, %v149_v24, 0.0 }
 0x11d   :  { %151 = vadd.xlane.f32.xlu0 %v150_v25  ;;  %v598_v25 = vld [vmem:[%s853_s10] ss:$0 sm:$0xff] }
 0x190   :  { %v152_v34 = vpop.xlane.xlu0 %151 }
 0x191   :  { %v153_v35 = vmul.f32 %v152_v34, %v146_v20  ;;  %v597_v20 = vld [vmem:[%s851_s8] ss:$0 sm:$0xff] }
 0x193   :  { %v154_v36 = vadd.f32 1e-05, %v153_v35  ;;  %v588_v35 = vld [vmem:[%s856_s13 + $0x18] sm:$0xff] }
 0x194   :  { %429 = vmatpush.bf16.msra.mxu3 %v588_v35 }
 0x195   :  { %604 = vrsqrt.f32 %v154_v36  ;;  %vm161_vm3 = vweird.f32 %v154_v36 }
 0x196   :  { %606 = vrcp.f32 %v643_v56  ;;  %v601_v56 = vld [vmem:[%s857_s14] ss:$0 sm:$0xff] }
 0x19b   :  { %v605_v37 = vpop.eup %604 }
 0x19c   :  { %v156_v38 = vmul.f32 %v605_v37, %v154_v36  ;;  %vm162_vm2 = vweird.f32 %v605_v37  ;;  %v607_v57 = vpop.eup %606  ;;  %v587_v36 = vld [vmem:[%s856_s13 + $0x10] sm:$0xff] }
 0x19d   :  { %vm163_vm4 = vmor %vm161_vm3, %vm162_vm2  ;;  %v264_v58 = vmul.f32 64.0, %v607_v57  ;;  %vm268_vm6 = vweird.f32 %v607_v57  ;;  %430 = vmatpush.bf16.msra.mxu3 %v587_v36 }
 0x19e   :  { %v157_v39 = vmul.f32 %v605_v37, %v156_v38  ;;  %v585_v38 = vld [vmem:[%s856_s13] sm:$0xff] }
 0x19f   :  { %v265_v59 = vsub.f32 1.0, %v264_v58 }
 0x1a0   :  { %v158_v40 = vmul.f32 0.5, %v157_v39 }
 0x1a1   :  { %v266_v60 = vmul.f32 %v607_v57, %v265_v59 }
 0x1a2   :  { %v159_v41 = vsub.f32 1.5, %v158_v40 }
 0x1a3   :  { %v267_v61 = vadd.f32 %v607_v57, %v266_v60 }
 0x1a4   :  { %v160_v42 = vmul.f32 %v605_v37, %v159_v41 }
 0x1a5   :  { %v269_v62 = vsel %vm268_vm6, %v607_v57, %v267_v61 }
 0x1a6   :  { %v164_v44 = vsel %vm163_vm4, %v605_v37, %v160_v42  ;;  %v586_v37 = vld [vmem:[%s856_s13 + $0x8] sm:$0xff] }
 0x1a7   :  { %v165_v45 = vmul.f32 %v164_v44, %v148_v23  ;;  %431 = vmatpush.bf16.msra.mxu3 %v586_v37 }
 0x1a9   :  { %v169_v47 = vmul.f32 %v593_v43, %v165_v45 }
 0x1ab   :  { %v173_v48 = vadd.f32 %v594_v46, %v169_v47  ;;  %432 = vmatpush.bf16.msra.mxu3 %v585_v38 }
 0x1ad   :  { %v174_v49 = vmax.f32 %v173_v48, 0.0  ;;  %v599_v48 = vld [vmem:[%s854_s11] ss:$0 sm:$0xff]  ;;  %s644_s11 = smov [#allocation2]  }
 0x1af   :  { %v192_v50 = vpack.c.bf16 %v174_v49, %v174_v49 }
 0x1b1   :  { %252 = vmatmul.bf16.vlgmr.msra.gmra.mxu1 %v192_v50 }
 0x22e   :  { %v253_v52 = vpop.f32.mrf.mxu1 }
 0x22f   :  { %v254_v53 = vadd.f32 %v595_v51, %v253_v52  ;;  %v600_v51 = vld [vmem:[%s855_s12] ss:$0 sm:$0xff]  ;;  %s456_s12 = sshll.u32 %s644_s11, 4  ;;  %s457_s12 = int_to_ptr.vmem [resolvable:$true] %s456_s12 }
 0x231   :  { %v260_v54 = vsel %vm259_vm5, %v254_v53, 0.0 }
 0x232   :  { %261 = vadd.xlane.f32.xlu1 %v260_v54 }
 0x236   :  { %v255_v55 = vpop.f32.mrf.mxu1 }
 0x2a5   :  { %v262_v63 = vpop.xlane.xlu1 %261 }
 0x2a6   :  { %v270_v0 = vmul.f32 %v269_v62, %v262_v63 }
 0x2a8   :  { %v271_v1 = vsub.f32 %v254_v53, %v270_v0 }
 0x2aa   :  { %v272_v2 = vmul.f32 %v271_v1, %v271_v1 }
 0x2ac   :  { %v273_v3 = vsel %vm259_vm5, %v272_v2, 0.0 }
 0x2ad   :  { %274 = vadd.xlane.f32.xlu1 %v273_v3 }
 0x320   :  { %v275_v8 = vpop.xlane.xlu1 %274 }
 0x321   :  { %v276_v9 = vmul.f32 %v275_v8, %v269_v62 }
 0x323   :  { %v277_v10 = vadd.f32 1e-05, %v276_v9 }
 0x325   :  { %608 = vrsqrt.f32 %v277_v10  ;;  %vm284_vm8 = vweird.f32 %v277_v10 }
 0x32b   :  { %v609_v11 = vpop.eup %608 }
 0x32c   :  { %v279_v12 = vmul.f32 %v609_v11, %v277_v10  ;;  %vm285_vm7 = vweird.f32 %v609_v11 }
 0x32d   :  { %vm286_vm9 = vmor %vm284_vm8, %vm285_vm7 }
 0x32e   :  { %v280_v13 = vmul.f32 %v609_v11, %v279_v12 }
 0x330   :  { %v281_v14 = vmul.f32 0.5, %v280_v13 }
 0x332   :  { %v282_v15 = vsub.f32 1.5, %v281_v14 }
 0x334   :  { %v283_v16 = vmul.f32 %v609_v11, %v282_v15 }
 0x336   :  { %v287_v18 = vsel %vm286_vm9, %v609_v11, %v283_v16 }
 0x337   :  { %v288_v19 = vmul.f32 %v287_v18, %v271_v1 }
 0x339   :  { %v292_v21 = vmul.f32 %v596_v17, %v288_v19 }
 0x33b   :  { %v296_v22 = vadd.f32 %v597_v20, %v292_v21 }
 0x33d   :  { %v297_v23 = vmax.f32 %v296_v22, 0.0 }
 0x33f   :  { %v307_v24 = vpack.c.bf16 %v297_v23, %v297_v23 }
 0x341   :  { %547 = vmatmul.msk.bf16.vlgmr.msra.gmra.mxu2 %vm335_vm10, %v307_v24 }
 0x3c4   :  { %v348_v26 = vpop.f32.mrf.mxu2 }
 0x3c5   :  { %v349_v27 = vadd.f32 %v598_v25, %v348_v26 }
 0x3c7   :  { %v354_v28 = vsel %vm259_vm5, %v349_v27, 0.0 }
 0x3c8   :  { %355 = vadd.xlane.f32.xlu2 %v354_v28 }
 0x3cc   :  { %v350_v29 = vpop.f32.mrf.mxu2 }
 0x43b   :  { %v356_v30 = vpop.xlane.xlu2 %355 }
 0x43c   :  { %v357_v31 = vmul.f32 %v356_v30, %v269_v62 }
 0x43e   :  { %v358_v32 = vsub.f32 %v349_v27, %v357_v31 }
 0x440   :  { %v359_v33 = vmul.f32 %v358_v32, %v358_v32 }
 0x442   :  { %v360_v34 = vsel %vm259_vm5, %v359_v33, 0.0 }
 0x443   :  { %361 = vadd.xlane.f32.xlu2 %v360_v34 }
 0x4b6   :  { %v362_v39 = vpop.xlane.xlu2 %361 }
 0x4b7   :  { %v363_v40 = vmul.f32 %v362_v39, %v269_v62 }
 0x4b9   :  { %v364_v41 = vadd.f32 1e-05, %v363_v40 }
 0x4bb   :  { %610 = vrsqrt.f32 %v364_v41  ;;  %vm371_vm12 = vweird.f32 %v364_v41 }
 0x4c1   :  { %v611_v42 = vpop.eup %610 }
 0x4c2   :  { %v366_v43 = vmul.f32 %v611_v42, %v364_v41  ;;  %vm372_vm11 = vweird.f32 %v611_v42 }
 0x4c3   :  { %vm373_vm13 = vmor %vm371_vm12, %vm372_vm11 }
 0x4c4   :  { %v367_v44 = vmul.f32 %v611_v42, %v366_v43 }
 0x4c6   :  { %v368_v45 = vmul.f32 0.5, %v367_v44 }
 0x4c8   :  { %v369_v46 = vsub.f32 1.5, %v368_v45 }
 0x4ca   :  { %v370_v47 = vmul.f32 %v611_v42, %v369_v46 }
 0x4cc   :  { %v374_v49 = vsel %vm373_vm13, %v611_v42, %v370_v47 }
 0x4cd   :  { %v375_v50 = vmul.f32 %v374_v49, %v358_v32 }
 0x4cf   :  { %v379_v52 = vmul.f32 %v599_v48, %v375_v50 }
 0x4d1   :  { %v383_v53 = vadd.f32 %v600_v51, %v379_v52 }
 0x4d3   :  { %v384_v54 = vmax.f32 %v383_v53, 0.0 }
 0x4d5   :  { %v394_v55 = vpack.c.bf16 %v384_v54, %v384_v54 }
 0x4d7   :  { %564 = vmatmul.msk.bf16.vlgmr.msra.gmra.mxu3 %vm335_vm10, %v394_v55 }
 0x55a   :  { %v434_v57 = vpop.f32.mrf.mxu3 }
 0x55b   :  { %v435_v58 = vadd.f32 %v601_v56, %v434_v57 }
 0x55d   :  { %v438_v59 = vsel %vm136_vm0, %v435_v58, -inf }
 0x55e   :  { %439 = vmax.xlane.f32.xlu0 %v438_v59 }
 0x562   :  { %v436_v60 = vpop.f32.mrf.mxu3 }
 0x5d1   :  { %v440_v61 = vpop.xlane.xlu0 %439 }
 0x5d2   :  { %v441_v62 = vsub.f32 %v435_v58, %v440_v61 }
 0x5d4   :  { %v442_v63 = vmul.f32 1.442695, %v441_v62 }
 0x5d6   :  { %612 = vpow2.f32 %v442_v63 }
 0x5dc   :  { %v613_v0 = vpop.eup %612 }
 0x5dd   :  { %v444_v1 = vsel %vm136_vm0, %v613_v0, 0.0 }
 0x5de   :  { %445 = vadd.xlane.f32.xlu1 %v444_v1 }
 0x651   :  { %v446_v2 = vpop.xlane.xlu1 %445 }
 0x652   :  { %614 = vlog2.f32 %v446_v2 }
 0x658   :  { %v615_v3 = vpop.eup %614 }
 0x659   :  { %v448_v4 = vmul.f32 0.6931472, %v615_v3 }
 0x65b   :  { %v449_v5 = vsub.f32 %v441_v62, %v448_v4 }
 0x65d   :  { %450 = vst [vmem:[#allocation2] sm:$0xf] %v449_v5 }
 0x65e   :  { %461 = dma.vmem_to_hbm [thread:$0]  %s457_s12, 64, %s459_s6, [#allocation3]  }
 0x65f   :  { %640 = dma.done.wait [#allocation3], 64  }
 0x660   :  { %641 = vsyncadd [#allocation3], 4294967232 }
 0x661   :  { %466 = vsyncpa [#allocation3], 1 }

// kernel: _forward.11
= control target key start
LH: loop header
LB: loop body
LE: loop exit
PB: predicated region body
PF: predicated region fallthrough
CT: control target
= control target key end

     0   :  { %s883_s0 = inlined_call_operand.vmem [shape: bf16[8,128], index: 0, kind: input, shape index: {}]   ;;  %s884_s1 = inlined_call_operand.vmem [shape: f32[1,128], index: 1, kind: input, shape index: {}]   ;;  %s885_s2 = inlined_call_operand.vmem [shape: f32[1,128], index: 2, kind: input, shape index: {}]   ;;  %s886_s3 = inlined_call_operand.vmem [shape: bf16[128,128], index: 3, kind: input, shape index: {}]   ;;  %s887_s4 = inlined_call_operand.vmem [shape: f32[1,128], index: 4, kind: input, shape index: {}]   ;;  %s888_s5 = inlined_call_operand.vmem [shape: f32[1,128], index: 5, kind: input, shape index: {}]   ;;  %s889_s6 = inlined_call_operand.vmem [shape: f32[1,128], index: 6, kind: input, shape index: {}]   ;;  %s890_s7 = inlined_call_operand.vmem [shape: bf16[128,64], index: 7, kind: input, shape index: {}]   ;;  %s891_s8 = inlined_call_operand.vmem [shape: f32[1,64], index: 8, kind: input, shape index: {}]   ;;  %s892_s9 = inlined_call_operand.vmem [shape: f32[1,64], index: 9, kind: input, shape index: {}]   ;;  %s893_s10 = inlined_call_operand.vmem [shape: f32[1,64], index: 10, kind: input, shape index: {}]   ;;  %s894_s11 = inlined_call_operand.vmem [shape: bf16[64,64], index: 11, kind: input, shape index: {}]   ;;  %s895_s12 = inlined_call_operand.vmem [shape: f32[1,64], index: 12, kind: input, shape index: {}]   ;;  %s896_s13 = inlined_call_operand.vmem [shape: f32[1,64], index: 13, kind: input, shape index: {}]   ;;  %s897_s14 = inlined_call_operand.vmem [shape: f32[1,64], index: 14, kind: input, shape index: {}]   ;;  %s898_s15 = inlined_call_operand.vmem [shape: bf16[64,128], index: 15, kind: input, shape index: {}]   ;;  %s899_s16 = inlined_call_operand.vmem [shape: f32[1,128], index: 16, kind: input, shape index: {}]   ;;  %s900_s17 = inlined_call_operand.hbm [shape: f32[8,128], index: 17, kind: output, shape index: {}]  }
   0x1   :  { %901 = sst [smem:[#allocation5_spill]] %s883_s0 }
   0x2   :  { %902 = sst [smem:[#allocation6_spill]] %s884_s1 }
   0x3   :  { %s903_s26 = sld [smem:[#allocation5_spill]] }
   0x9   :  { %v58_v0 = vld [vmem:[%s903_s26] sm:$0xf] }
   0xa   :  { %v59_v1 = vunpack.c.l.bf16 %v58_v0 }
   0xc   :  { %62 = vadd.xlane.f32.xlu0 %v59_v1 }
   0xd   :  { %22 = vsyncpa [#allocation3], 0  ;;  %v664_v2 = vmov 128.0   ;;  %v594_v3 = vld [vmem:[%s886_s3 + $0x38] sm:$0xff]  ;;  %v593_v14 = vld [vmem:[%s886_s3 + $0x30] sm:$0xff]  ;;  %s904_s0 = sld [smem:[#allocation6_spill]] }
   0xe   :  { %626 = vrcp.f32 %v664_v2  ;;  %166 = vmatpush.bf16.msra.mxu0 %v594_v3  ;;  %v592_v15 = vld [vmem:[%s886_s3 + $0x28] sm:$0xff]  ;;  %v591_v16 = vld [vmem:[%s886_s3 + $0x20] sm:$0xff]  ;;  %v590_v17 = vld [vmem:[%s886_s3 + $0x18] sm:$0xff]  ;;  %vm294_vm7 = vcmask 523264  }
   0xf   :  { %v589_v18 = vld [vmem:[%s886_s3 + $0x10] sm:$0xff]  ;;  %v588_v19 = vld [vmem:[%s886_s3 + $0x8] sm:$0xff]  ;;  %v587_v20 = vld [vmem:[%s886_s3] sm:$0xff] }
  0x10   :  { %v615_v33 = vld [vmem:[%s885_s2] ss:$0 sm:$0xff]  ;;  %v602_v45 = vld [vmem:[%s890_s7 + $0x38] sm:$0xff]  ;;  %v601_v46 = vld [vmem:[%s890_s7 + $0x30] sm:$0xff] }
  0x11   :  { %v616_v37 = vld [vmem:[%s887_s4] ss:$0 sm:$0xff]  ;;  %279 = vmatpush.bf16.msra.mxu1 %v602_v45  ;;  %v600_v47 = vld [vmem:[%s890_s7 + $0x28] sm:$0xff]  ;;  %v598_v49 = vld [vmem:[%s890_s7 + $0x18] sm:$0xff]  ;;  %s480_s4 = sshll.u32 %s900_s17, 4  ;;  %s481_s4 = int_to_ptr.hbm [resolvable:$true] %s480_s4 }
  0x12   :  { %167 = vmatpush.bf16.msra.mxu0 %v593_v14  ;;  %v599_v48 = vld [vmem:[%s890_s7 + $0x20] sm:$0xff]  ;;  %v597_v50 = vld [vmem:[%s890_s7 + $0x10] sm:$0xff]  ;;  %v596_v51 = vld [vmem:[%s890_s7 + $0x8] sm:$0xff] }
  0x13   :  { %v614_v30 = vld [vmem:[%s904_s0] ss:$0 sm:$0xff] }
  0x14   :  { %v627_v4 = vpop.eup %626  ;;  %v595_v52 = vld [vmem:[%s890_s7] sm:$0xff] }
  0x15   :  { %v65_v5 = vmul.f32 128.0, %v627_v4  ;;  %vm69_vm0 = vweird.f32 %v627_v4  ;;  %280 = vmatpush.bf16.msra.mxu1 %v601_v46  ;;  %v617_v62 = vld [vmem:[%s888_s5] ss:$0 sm:$0xff] }
  0x16   :  { %168 = vmatpush.bf16.msra.mxu0 %v592_v15 }
  0x17   :  { %v66_v6 = vsub.f32 1.0, %v65_v5 }
  0x19   :  { %v67_v7 = vmul.f32 %v627_v4, %v66_v6  ;;  %281 = vmatpush.bf16.msra.mxu1 %v600_v47  ;;  %v619_v6 = vld [vmem:[%s891_s8] ss:$0 sm:$0xff] }
  0x1a   :  { %169 = vmatpush.bf16.msra.mxu0 %v591_v16 }
  0x1b   :  { %v68_v8 = vadd.f32 %v627_v4, %v67_v7 }
  0x1d   :  { %v763_v9 = vsel %vm69_vm0, %v627_v4, %v68_v8  ;;  %282 = vmatpush.bf16.msra.mxu1 %v599_v48 }
  0x1e   :  { %170 = vmatpush.bf16.msra.mxu0 %v590_v17 }
  0x21   :  { %283 = vmatpush.bf16.msra.mxu1 %v598_v49 }
  0x22   :  { %171 = vmatpush.bf16.msra.mxu0 %v589_v18 }
  0x25   :  { %284 = vmatpush.bf16.msra.mxu1 %v597_v50 }
  0x26   :  { %172 = vmatpush.bf16.msra.mxu0 %v588_v19 }
  0x29   :  { %285 = vmatpush.bf16.msra.mxu1 %v596_v51 }
  0x2a   :  { %173 = vmatpush.bf16.msra.mxu0 %v587_v20 }
  0x2d   :  { %286 = vmatpush.bf16.msra.mxu1 %v595_v52 }
  0x7f   :  { %v63_v10 = vpop.xlane.xlu0 %62 }
  0x80   :  { %v71_v11 = vmul.f32 %v763_v9, %v63_v10 }
  0x82   :  { %v72_v12 = vsub.f32 %v59_v1, %v71_v11  ;;  %v618_v1 = vld [vmem:[%s889_s6] ss:$0 sm:$0xff]  ;;  %v665_v11 = vmov 64.0   ;;  %s666_s6 = smov [#allocation2]  }
  0x83   :  { %s478_s8 = sshll.u32 %s666_s6, 4  ;;  %s479_s8 = int_to_ptr.vmem [resolvable:$true] %s478_s8 }
  0x84   :  { %v73_v13 = vmul.f32 %v72_v12, %v72_v12 }
  0x86   :  { %74 = vadd.xlane.f32.xlu0 %v73_v13 }
  0xf9   :  { %v75_v21 = vpop.xlane.xlu0 %74 }
  0xfa   :  { %v76_v22 = vmul.f32 %v75_v21, %v763_v9 }
  0xfc   :  { %v77_v23 = vadd.f32 1e-05, %v76_v22 }
  0xfe   :  { %628 = vrsqrt.f32 %v77_v23  ;;  %vm84_vm2 = vweird.f32 %v77_v23 }
 0x104   :  { %v629_v24 = vpop.eup %628 }
 0x105   :  { %v79_v25 = vmul.f32 %v629_v24, %v77_v23  ;;  %vm85_vm1 = vweird.f32 %v629_v24  ;;  %v606_v23 = vld [vmem:[%s894_s11 + $0x18] sm:$0xff] }
 0x106   :  { %vm86_vm3 = vmor %vm84_vm2, %vm85_vm1  ;;  %377 = vmatpush.bf16.msra.mxu2 %v606_v23 }
 0x107   :  { %v80_v26 = vmul.f32 %v629_v24, %v79_v25  ;;  %v604_v25 = vld [vmem:[%s894_s11 + $0x8] sm:$0xff] }
 0x109   :  { %v81_v27 = vmul.f32 0.5, %v80_v26  ;;  %v603_v26 = vld [vmem:[%s894_s11] sm:$0xff] }
 0x10b   :  { %v82_v28 = vsub.f32 1.5, %v81_v27 }
 0x10d   :  { %v83_v29 = vmul.f32 %v629_v24, %v82_v28 }
 0x10f   :  { %v87_v31 = vsel %vm86_vm3, %v629_v24, %v83_v29  ;;  %v605_v24 = vld [vmem:[%s894_s11 + $0x10] sm:$0xff] }
 0x110   :  { %v88_v32 = vmul.f32 %v87_v31, %v72_v12  ;;  %378 = vmatpush.bf16.msra.mxu2 %v605_v24 }
 0x112   :  { %v92_v34 = vmul.f32 %v614_v30, %v88_v32 }
 0x114   :  { %v96_v35 = vadd.f32 %v615_v33, %v92_v34  ;;  %379 = vmatpush.bf16.msra.mxu2 %v604_v25 }
 0x116   :  { %v114_v36 = vpack.c.bf16 %v96_v35, %v96_v35 }
 0x118   :  { %174 = vmatmul.bf16.vlgmr.msra.gmra.mxu0 %v114_v36  ;;  %380 = vmatpush.bf16.msra.mxu2 %v603_v26  ;;  %v620_v36 = vld [vmem:[%s892_s9] ss:$0 sm:$0xff] }
 0x195   :  { %v175_v38 = vpop.f32.mrf.mxu0 }
 0x196   :  { %v176_v39 = vadd.f32 %v616_v37, %v175_v38 }
 0x198   :  { %181 = vadd.xlane.f32.xlu1 %v176_v39 }
 0x19d   :  { %v177_v40 = vpop.f32.mrf.mxu0 }
 0x20b   :  { %v182_v41 = vpop.xlane.xlu1 %181 }
 0x20c   :  { %v183_v42 = vmul.f32 %v182_v41, %v763_v9 }
 0x20e   :  { %v184_v43 = vsub.f32 %v176_v39, %v183_v42  ;;  %v621_v39 = vld [vmem:[%s893_s10] ss:$0 sm:$0xff] }
 0x210   :  { %v185_v44 = vmul.f32 %v184_v43, %v184_v43 }
 0x212   :  { %186 = vadd.xlane.f32.xlu1 %v185_v44  ;;  %v622_v44 = vld [vmem:[%s895_s12] ss:$0 sm:$0xff] }
 0x285   :  { %v187_v53 = vpop.xlane.xlu1 %186 }
 0x286   :  { %v188_v54 = vmul.f32 %v187_v53, %v763_v9 }
 0x288   :  { %v189_v55 = vadd.f32 1e-05, %v188_v54  ;;  %v610_v54 = vld [vmem:[%s898_s15 + $0x18] sm:$0xff] }
 0x289   :  { %463 = vmatpush.bf16.msra.mxu3 %v610_v54 }
 0x28a   :  { %630 = vrsqrt.f32 %v189_v55  ;;  %vm196_vm5 = vweird.f32 %v189_v55 }
 0x28b   :  { %632 = vrcp.f32 %v665_v11  ;;  %v625_v11 = vld [vmem:[%s899_s16] ss:$0 sm:$0xff] }
 0x290   :  { %v631_v56 = vpop.eup %630 }
 0x291   :  { %v191_v57 = vmul.f32 %v631_v56, %v189_v55  ;;  %vm197_vm4 = vweird.f32 %v631_v56  ;;  %v633_v12 = vpop.eup %632  ;;  %v609_v55 = vld [vmem:[%s898_s15 + $0x10] sm:$0xff] }
 0x292   :  { %vm198_vm6 = vmor %vm196_vm5, %vm197_vm4  ;;  %v299_v13 = vmul.f32 64.0, %v633_v12  ;;  %vm303_vm8 = vweird.f32 %v633_v12  ;;  %464 = vmatpush.bf16.msra.mxu3 %v609_v55 }
 0x293   :  { %v192_v58 = vmul.f32 %v631_v56, %v191_v57  ;;  %v607_v57 = vld [vmem:[%s898_s15] sm:$0xff] }
 0x294   :  { %v300_v14 = vsub.f32 1.0, %v299_v13 }
 0x295   :  { %v193_v59 = vmul.f32 0.5, %v192_v58 }
 0x296   :  { %v301_v15 = vmul.f32 %v633_v12, %v300_v14 }
 0x297   :  { %v194_v60 = vsub.f32 1.5, %v193_v59 }
 0x298   :  { %v302_v16 = vadd.f32 %v633_v12, %v301_v15 }
 0x299   :  { %v195_v61 = vmul.f32 %v631_v56, %v194_v60 }
 0x29a   :  { %v304_v17 = vsel %vm303_vm8, %v633_v12, %v302_v16 }
 0x29b   :  { %v199_v63 = vsel %vm198_vm6, %v631_v56, %v195_v61  ;;  %v608_v56 = vld [vmem:[%s898_s15 + $0x8] sm:$0xff] }
 0x29c   :  { %v200_v0 = vmul.f32 %v199_v63, %v184_v43  ;;  %465 = vmatpush.bf16.msra.mxu3 %v608_v56 }
 0x29e   :  { %v204_v2 = vmul.f32 %v617_v62, %v200_v0 }
 0x2a0   :  { %v208_v3 = vadd.f32 %v618_v1, %v204_v2  ;;  %466 = vmatpush.bf16.msra.mxu3 %v607_v57 }
 0x2a2   :  { %v209_v4 = vmax.f32 %v208_v3, 0.0  ;;  %v623_v3 = vld [vmem:[%s896_s13] ss:$0 sm:$0xff] }
 0x2a4   :  { %v227_v5 = vpack.c.bf16 %v209_v4, %v209_v4 }
 0x2a6   :  { %287 = vmatmul.bf16.vlgmr.msra.gmra.mxu1 %v227_v5 }
 0x323   :  { %v288_v7 = vpop.f32.mrf.mxu1 }
 0x324   :  { %v289_v8 = vadd.f32 %v619_v6, %v288_v7  ;;  %v624_v6 = vld [vmem:[%s897_s14] ss:$0 sm:$0xff] }
 0x326   :  { %v295_v9 = vsel %vm294_vm7, %v289_v8, 0.0 }
 0x327   :  { %296 = vadd.xlane.f32.xlu2 %v295_v9 }
 0x32b   :  { %v290_v10 = vpop.f32.mrf.mxu1 }
 0x39a   :  { %v297_v18 = vpop.xlane.xlu2 %296 }
 0x39b   :  { %v305_v19 = vmul.f32 %v304_v17, %v297_v18 }
 0x39d   :  { %v306_v20 = vsub.f32 %v289_v8, %v305_v19 }
 0x39f   :  { %v307_v21 = vmul.f32 %v306_v20, %v306_v20 }
 0x3a1   :  { %v308_v22 = vsel %vm294_vm7, %v307_v21, 0.0 }
 0x3a2   :  { %309 = vadd.xlane.f32.xlu2 %v308_v22 }
 0x415   :  { %v310_v27 = vpop.xlane.xlu2 %309 }
 0x416   :  { %v311_v28 = vmul.f32 %v310_v27, %v304_v17 }
 0x418   :  { %v312_v29 = vadd.f32 1e-05, %v311_v28 }
 0x41a   :  { %634 = vrsqrt.f32 %v312_v29  ;;  %vm319_vm10 = vweird.f32 %v312_v29 }
 0x420   :  { %v635_v30 = vpop.eup %634 }
 0x421   :  { %v314_v31 = vmul.f32 %v635_v30, %v312_v29  ;;  %vm320_vm9 = vweird.f32 %v635_v30 }
 0x422   :  { %vm321_vm11 = vmor %vm319_vm10, %vm320_vm9 }
 0x423   :  { %v315_v32 = vmul.f32 %v635_v30, %v314_v31 }
 0x425   :  { %v316_v33 = vmul.f32 0.5, %v315_v32 }
 0x427   :  { %v317_v34 = vsub.f32 1.5, %v316_v33 }
 0x429   :  { %v318_v35 = vmul.f32 %v635_v30, %v317_v34 }
 0x42b   :  { %v322_v37 = vsel %vm321_vm11, %v635_v30, %v318_v35 }
 0x42c   :  { %v323_v38 = vmul.f32 %v322_v37, %v306_v20 }
 0x42e   :  { %v327_v40 = vmul.f32 %v620_v36, %v323_v38 }
 0x430   :  { %v331_v41 = vadd.f32 %v621_v39, %v327_v40 }
 0x432   :  { %v332_v42 = vmax.f32 %v331_v41, 0.0 }
 0x434   :  { %v342_v43 = vpack.c.bf16 %v332_v42, %v332_v42 }
 0x436   :  { %569 = vmatmul.msk.bf16.vlgmr.msra.gmra.mxu2 %vm294_vm7, %v342_v43 }
 0x4b9   :  { %v382_v45 = vpop.f32.mrf.mxu2 }
 0x4ba   :  { %v383_v46 = vadd.f32 %v622_v44, %v382_v45 }
 0x4bc   :  { %v388_v47 = vsel %vm294_vm7, %v383_v46, 0.0 }
 0x4bd   :  { %389 = vadd.xlane.f32.xlu0 %v388_v47 }
 0x4c1   :  { %v384_v48 = vpop.f32.mrf.mxu2 }
 0x530   :  { %v390_v49 = vpop.xlane.xlu0 %389 }
 0x531   :  { %v391_v50 = vmul.f32 %v390_v49, %v304_v17 }
 0x533   :  { %v392_v51 = vsub.f32 %v383_v46, %v391_v50 }
 0x535   :  { %v393_v52 = vmul.f32 %v392_v51, %v392_v51 }
 0x537   :  { %v394_v53 = vsel %vm294_vm7, %v393_v52, 0.0 }
 0x538   :  { %395 = vadd.xlane.f32.xlu1 %v394_v53 }
 0x5ab   :  { %v396_v58 = vpop.xlane.xlu1 %395 }
 0x5ac   :  { %v397_v59 = vmul.f32 %v396_v58, %v304_v17 }
 0x5ae   :  { %v398_v60 = vadd.f32 1e-05, %v397_v59 }
 0x5b0   :  { %636 = vrsqrt.f32 %v398_v60  ;;  %vm405_vm13 = vweird.f32 %v398_v60 }
 0x5b6   :  { %v637_v61 = vpop.eup %636 }
 0x5b7   :  { %v400_v62 = vmul.f32 %v637_v61, %v398_v60  ;;  %vm406_vm12 = vweird.f32 %v637_v61 }
 0x5b8   :  { %vm407_vm14 = vmor %vm405_vm13, %vm406_vm12 }
 0x5b9   :  { %v401_v63 = vmul.f32 %v637_v61, %v400_v62 }
 0x5bb   :  { %v402_v0 = vmul.f32 0.5, %v401_v63 }
 0x5bd   :  { %v403_v1 = vsub.f32 1.5, %v402_v0 }
 0x5bf   :  { %v404_v2 = vmul.f32 %v637_v61, %v403_v1 }
 0x5c1   :  { %v408_v4 = vsel %vm407_vm14, %v637_v61, %v404_v2 }
 0x5c2   :  { %v409_v5 = vmul.f32 %v408_v4, %v392_v51 }
 0x5c4   :  { %v413_v7 = vmul.f32 %v623_v3, %v409_v5 }
 0x5c6   :  { %v417_v8 = vadd.f32 %v624_v6, %v413_v7 }
 0x5c8   :  { %v418_v9 = vmax.f32 %v417_v8, 0.0 }
 0x5ca   :  { %v428_v10 = vpack.c.bf16 %v418_v9, %v418_v9 }
 0x5cc   :  { %586 = vmatmul.msk.bf16.vlgmr.msra.gmra.mxu3 %vm294_vm7, %v428_v10 }
 0x64f   :  { %v468_v12 = vpop.f32.mrf.mxu3 }
 0x650   :  { %v469_v13 = vadd.f32 %v625_v11, %v468_v12 }
 0x652   :  { %472 = vst [vmem:[#allocation2] sm:$0xff] %v469_v13 }
 0x653   :  { %483 = dma.vmem_to_hbm [thread:$0]  %s479_s8, 128, %s481_s4, [#allocation3]  }
 0x657   :  { %v470_v14 = vpop.f32.mrf.mxu3 }
 0x658   :  { %662 = dma.done.wait [#allocation3], 128  }
 0x659   :  { %663 = vsyncadd [#allocation3], 4294967168 }
 0x65a   :  { %488 = vsyncpa [#allocation3], 1 }

// kernel: _forward.10
= control target key start
LH: loop header
LB: loop body
LE: loop exit
PB: predicated region body
PF: predicated region fallthrough
CT: control target
= control target key end

     0   :  { %s3727_s26 = smov 0   ;;  %s3729_s27 = smov 0   ;;  %s4247_s0 = inlined_call_operand.vmem [shape: bf16[2,4,128], index: 0, kind: input, shape index: {}]   ;;  %s4248_s1 = inlined_call_operand.vmem [shape: bf16[2,2,128], index: 1, kind: input, shape index: {}]   ;;  %s4249_s2 = inlined_call_operand.vmem [shape: f32[2,4,4], index: 2, kind: input, shape index: {}]   ;;  %s4250_s3 = inlined_call_operand.vmem [shape: f32[2,1,2], index: 3, kind: input, shape index: {}]   ;;  %s4251_s4 = inlined_call_operand.vmem [shape: bf16[2,128,384], index: 4, kind: input, shape index: {}]   ;;  %s4252_s5 = inlined_call_operand.vmem [shape: f32[2,1,384], index: 5, kind: input, shape index: {}]   ;;  %s4253_s6 = inlined_call_operand.vmem [shape: bf16[2,128,128], index: 6, kind: input, shape index: {}]   ;;  %s4254_s7 = inlined_call_operand.vmem [shape: f32[2,1,128], index: 7, kind: input, shape index: {}]   ;;  %s4255_s8 = inlined_call_operand.vmem [shape: f32[2,1,128], index: 8, kind: input, shape index: {}]   ;;  %s4256_s9 = inlined_call_operand.vmem [shape: f32[2,1,128], index: 9, kind: input, shape index: {}]   ;;  %s4257_s10 = inlined_call_operand.vmem [shape: bf16[2,128,128], index: 10, kind: input, shape index: {}]   ;;  %s4258_s11 = inlined_call_operand.vmem [shape: f32[2,1,128], index: 11, kind: input, shape index: {}]   ;;  %s4259_s12 = inlined_call_operand.vmem [shape: bf16[2,128,256], index: 12, kind: input, shape index: {}]   ;;  %s4260_s13 = inlined_call_operand.vmem [shape: f32[2,1,256], index: 13, kind: input, shape index: {}]   ;;  %s4261_s14 = inlined_call_operand.vmem [shape: bf16[2,128,128], index: 14, kind: input, shape index: {}]   ;;  %s4262_s15 = inlined_call_operand.vmem [shape: f32[2,1,128], index: 15, kind: input, shape index: {}]   ;;  %s4263_s16 = inlined_call_operand.vmem [shape: f32[2,1,128], index: 16, kind: input, shape index: {}]   ;;  %s4264_s17 = inlined_call_operand.vmem [shape: f32[2,1,128], index: 17, kind: input, shape index: {}]   ;;  %s4265_s18 = inlined_call_operand.vmem [shape: bf16[2,128,256], index: 18, kind: input, shape index: {}]   ;;  %s4266_s19 = inlined_call_operand.vmem [shape: f32[2,1,256], index: 19, kind: input, shape index: {}]   ;;  %s4267_s20 = inlined_call_operand.vmem [shape: bf16[2,256,128], index: 20, kind: input, shape index: {}]   ;;  %s4268_s21 = inlined_call_operand.vmem [shape: f32[2,1,128], index: 21, kind: input, shape index: {}]   ;;  %s4269_s22 = inlined_call_operand.vmem [shape: f32[2,1,128], index: 22, kind: input, shape index: {}]   ;;  %s4270_s23 = inlined_call_operand.vmem [shape: f32[2,1,128], index: 23, kind: input, shape index: {}]   ;;  %s4271_s24 = inlined_call_operand.vmem [shape: bf16[2,4,128], index: 24, kind: output, shape index: {}]  }
   0x1   :  { %4279 = sst [smem:[#allocation14_spill]] %s4247_s0  ;;  %s3731_s28 = smov 0  }
   0x2   :  { %4280 = sst [smem:[#allocation15_spill]] %s4248_s1 }
   0x3   :  { %4281 = sst [smem:[#allocation16_spill]] %s4249_s2 }
   0x4   :  { %4282 = sst [smem:[#allocation17_spill]] %s4250_s3 }
   0x5   :  { %4283 = sst [smem:[#allocation18_spill]] %s4251_s4 }
   0x6   :  { %4284 = sst [smem:[#allocation19_spill]] %s4252_s5  ;;  %s3725_s5 = smov 0  }
   0x7   :  { %4285 = sst [smem:[#allocation20_spill]] %s4253_s6  ;;  %s3733_s6 = smov 0  }
   0x8   :  { %4286 = sst [smem:[#allocation21_spill]] %s4254_s7 }
   0x9   :  { %4287 = sst [smem:[#allocation22_spill]] %s4255_s8 }
   0xa   :  { %4288 = sst [smem:[#allocation23_spill]] %s4257_s10 }
   0xb   :  { %4289 = sst [smem:[#allocation24_spill]] %s4258_s11 }
   0xc   :  { %4290 = sst [smem:[#allocation25_spill]] %s4259_s12 }
   0xd   :  { %4291 = sst [smem:[#allocation26_spill]] %s4260_s13 }
   0xe   :  { %4292 = sst [smem:[#allocation27_spill]] %s4261_s14 }
   0xf   :  { %4293 = sst [smem:[#allocation28_spill]] %s4262_s15 }
  0x10   :  { %4294 = sst [smem:[#allocation29_spill]] %s4263_s16 }
  0x11   :  { %4295 = sst [smem:[#allocation30_spill]] %s4264_s17 }
  0x12   :  { %4296 = sst [smem:[#allocation31_spill]] %s4265_s18 }
  0x13   :  { %4297 = sst [smem:[#allocation32_spill]] %s4266_s19 }
  0x14   :  { %4298 = sst [smem:[#allocation33_spill]] %s4267_s20 }
  0x15   :  { %4299 = sst [smem:[#allocation34_spill]] %s4268_s21 }
  0x16   :  { %4300 = sst [smem:[#allocation35_spill]] %s4269_s22 }
  0x17   :  { %4301 = sst [smem:[#allocation36_spill]] %s4270_s23 }
  0x18   :  { %4302 = sst [smem:[#allocation37_spill]] %s4271_s24 }
  0x19 LB: > { %4303 = sst [smem:[#allocation3_spill]] %s3578_s5  ;;  %s43_s2 = sadd.s32 1, %s3586_s27  ;;  %s3594_s6 = sphi %s3733_s6, %s34_s6   ;;  %s3590_s28 = sphi %s3731_s28, %s4370_s28   ;;  %s3586_s27 = sphi %s3729_s27, %s4369_s27   ;;  %s3582_s26 = sphi %s3727_s26, %s4368_s26   ;;  %s3578_s5 = sphi %s3725_s5, %s4367_s5  }
  0x1a   : > { %4304 = sst [smem:[#allocation4_spill]] %s3586_s27  ;;  %s46_s29 = sadd.s32 1, %s3590_s28 }
  0x1b   : > { %4305 = sst [smem:[#allocation5_spill]] %s3590_s28  ;;  %p44_p0 = scmp.ge.s32.totalorder %s43_s2, 2 }
  0x1c   : > { %4306 = sst [smem:[#allocation6_spill]] %s3594_s6  ;;  %p2934_p1 = scmp.ge.s32.totalorder %s3594_s6, 1 }
  0x1d   : > { %p875_p2 = scmp.lt.s32.totalorder %s3594_s6, 5  ;;  %s4372_s2 = smov (%p44_p0, %s43_s2), 0 }
  0x1e   : > { %4307 = sst [smem:[#allocation7_spill]] %s4372_s2  ;;  %s4374_s29 = smov (!%p44_p0, %s46_s29), %s3590_s28 }
  0x1f   : > { %p876_p3 = pnand %p2934_p1, %p875_p2  ;;  %p48_p4 = scmp.ge.s32.totalorder %s4374_s29, 2 }
  0x21   : > { %s4376_s29 = smov (%p48_p4, %s4374_s29), 0  ;;  %879 = sbr.rel (%p876_p3) target bundleno = 3267 (0xcc3), region = 116 }
  0x22   : > { %4308 = sst [smem:[#allocation8_spill]] %s4376_s29 }
  0x26   : > { %p1026_p5 = scmp.lt.s32.totalorder %s3582_s26, 1  ;;  %p1040_p6 = scmp.lt.s32.totalorder %s3578_s5, 1 }
  0x27   : > { %s4310_s29 = sld [smem:[#allocation14_spill]] }
  0x28   : > { %s4378_s26 = smov (!%p1026_p5, %s3582_s26), 1  ;;  %s4317_s6 = sld [smem:[#allocation18_spill]] }
  0x29   : > { %s3761_s0 = scalar_select %p1040_p6, %s3578_s5, 1 }
  0x2a   : > { %s4276_s7 = sshll.u32 %s4378_s26, 1  ;;  %s2936_s28 = sshll.u32 %s4378_s26, 2 }
  0x2b   : > { %s4312_s5 = sld [smem:[#allocation16_spill]]  ;;  %s3459_s3 = smul.u32 192, %s3761_s0 }
  0x2c   : > { %s3357_s25 = sshll.u32 %s3761_s0, 6  ;;  %s3460_s8 = smul.u32 3, %s3761_s0 }
  0x2d   : > { %s3773_s2 = scalar_lea.vmem %s4310_s29, %s4276_s7  ;;  %s4315_s29 = sld [smem:[#allocation20_spill]] }
  0x2e   : > { %4311 = sst [smem:[#allocation9_spill]] %s3773_s2 }
  0x2f   : > { %s4319_s20 = sld [smem:[#allocation19_spill]] }
  0x30   : > { %s4321_s10 = sld [smem:[#allocation23_spill]] }
  0x31   : > { %s3779_s24 = scalar_lea.vmem %s4312_s5, %s2936_s28  ;;  %s3796_s5 = scalar_lea.vmem %s4317_s6, %s3459_s3 }
  0x32   : > { %4313 = sst [smem:[#allocation10_spill]] %s3779_s24 }
  0x33   : > { %s3791_s7 = scalar_lea.vmem %s4315_s29, %s3357_s25  ;;  %s4323_s12 = sld [smem:[#allocation25_spill]] }
  0x34   : > { %4316 = sst [smem:[#allocation11_spill]] %s3791_s7  ;;  %s2944_s7 = sshll.u32 %s3761_s0, 1 }
  0x35   : > { %s3805_s19 = scalar_lea.vmem %s4319_s20, %s3460_s8  ;;  %s3359_s8 = sshll.u32 %s3761_s0, 7 }
  0x36   : > { %s3818_s24 = scalar_lea.vmem %s4321_s10, %s3357_s25  ;;  %s4324_s13 = sld [smem:[#allocation26_spill]] }
  0x37   : > { %s4325_s14 = sld [smem:[#allocation27_spill]]  ;;  %s4337_s29 = sshll.u32 %s4378_s26, 1 }
  0x38   : > { %s4331_s3 = sld [smem:[#allocation32_spill]] }
  0x39   : > { %s3828_s28 = scalar_lea.vmem %s4323_s12, %s3359_s8  ;;  %s4333_s20 = sld [smem:[#allocation33_spill]] }
  0x3a   : > { %s4334_s17 = sld [smem:[#allocation34_spill]] }
  0x3b   : > { %s4335_s12 = sld [smem:[#allocation35_spill]] }
  0x3c   : > { %s3834_s4 = scalar_lea.vmem %s4324_s13, %s2944_s7  ;;  %s4329_s13 = sld [smem:[#allocation31_spill]] }
  0x3d   : > { %s3839_s27 = scalar_lea.vmem %s4325_s14, %s3357_s25  ;;  %s4336_s16 = sld [smem:[#allocation36_spill]] }
  0x3e   : > { %s3861_s14 = scalar_lea.vmem %s4331_s3, %s2944_s7  ;;  %s4338_s3 = sld [smem:[#allocation37_spill]] }
  0x3f   : > { %4332 = sst [smem:[#allocation13_spill]] %s3861_s14  ;;  %s3866_s15 = scalar_lea.vmem %s4333_s20, %s3359_s8 }
  0x40   : > { %s1110_s21 = scalar_lea.vmem %s4334_s17, %s3761_s0  ;;  %s4339_s20 = sld [smem:[#allocation3_spill]] }
  0x41   : > { %s1113_s22 = scalar_lea.vmem %s4335_s12, %s3761_s0 }
  0x42   : > { %s3856_s11 = scalar_lea.vmem %s4329_s13, %s3359_s8 }
  0x43   : > { %4330 = sst [smem:[#allocation12_spill]] %s3856_s11  ;;  %s1116_s11 = scalar_lea.vmem %s4336_s16, %s3761_s0 }
  0x44   : > { %s3885_s14 = scalar_lea.vmem %s4338_s3, %s4337_s29 }
  0x46   : > { %p2953_p7 = scmp.ne.s32.totalorder %s4339_s20, 0 }
  0x47   : > { %s4340_s8 = sld [smem:[#allocation9_spill]] (!%p2953_p7) }
  0x48   : > { %1125 = sbr.rel (%p2953_p7) target bundleno = 81 (0x51), region = 120 }
  0x4d   : > { %v1126_v0 = vld [vmem:[%s4340_s8] sm:$0x3] }
  0x4e   : > { %v1127_v1 = vunpack.c.l.bf16 %v1126_v0 }
  0x50   : > { %1128 = vst [vmem:[#allocation2] sm:$0xf] %v1127_v1 }
  0x51 PF: > { %v3040_v2 = vld [vmem:[%s3796_s5 + $0xa8] sm:$0xf]  ;;  %v3385_v3 = vld [vmem:[%s3796_s5 + $0xb0] sm:$0xf0]  ;;  %v3384_v4 = vld [vmem:[%s3796_s5 + $0xac] sm:$0xf]  ;;  %s4349_s8 = scalar_lea.vmem %s4256_s9, %s3761_s0 }
  0x52   : > { %v3041_v5 = vor.u32 %v3385_v3, %v3040_v2  ;;  %v3042_v6 = vld [vmem:[%s3796_s5 + $0xb4] sm:$0xf0]  ;;  %v3028_v7 = vld [vmem:[%s3796_s5 + $0x90] sm:$0xf]  ;;  %v3382_v8 = vld [vmem:[%s3796_s5 + $0x98] sm:$0xf0] }
  0x53   : > { %v3045_v9 = vor.u32 %v3384_v4, %v3042_v6  ;;  %v3381_v10 = vld [vmem:[%s3796_s5 + $0x94] sm:$0xf]  ;;  %v3030_v11 = vld [vmem:[%s3796_s5 + $0x9c] sm:$0xf0]  ;;  %v3029_v12 = vor.u32 %v3382_v8, %v3028_v7  ;;  %v3016_v14 = vld [vmem:[%s3796_s5 + $0x78] sm:$0xf] }
  0x54   : > { %1302 = vmatpush.bf16.msra.mxu0 %v3041_v5  ;;  %v3033_v13 = vor.u32 %v3381_v10, %v3030_v11  ;;  %v3379_v15 = vld [vmem:[%s3796_s5 + $0x80] sm:$0xf0]  ;;  %v3378_v16 = vld [vmem:[%s3796_s5 + $0x7c] sm:$0xf]  ;;  %v3018_v17 = vld [vmem:[%s3796_s5 + $0x84] sm:$0xf0] }
  0x55   : > { %1315 = vmatpush.bf16.msra.mxu1 %v3045_v9  ;;  %v3017_v18 = vor.u32 %v3379_v15, %v3016_v14  ;;  %v3021_v19 = vor.u32 %v3378_v16, %v3018_v17  ;;  %v3004_v20 = vld [vmem:[%s3796_s5 + $0x60] sm:$0xf]  ;;  %v3376_v21 = vld [vmem:[%s3796_s5 + $0x68] sm:$0xf0]  ;;  %v3375_v22 = vld [vmem:[%s3796_s5 + $0x64] sm:$0xf] }
  0x56   : > { %v3006_v23 = vld [vmem:[%s3796_s5 + $0x6c] sm:$0xf0]  ;;  %v2992_v24 = vld [vmem:[%s3796_s5 + $0x48] sm:$0xf]  ;;  %v3373_v25 = vld [vmem:[%s3796_s5 + $0x50] sm:$0xf0]  ;;  %v3005_v26 = vor.u32 %v3376_v21, %v3004_v20 }
  0x57   : > { %v3372_v27 = vld [vmem:[%s3796_s5 + $0x4c] sm:$0xf]  ;;  %v3009_v28 = vor.u32 %v3375_v22, %v3006_v23  ;;  %v2994_v29 = vld [vmem:[%s3796_s5 + $0x54] sm:$0xf0]  ;;  %v2993_v30 = vor.u32 %v3373_v25, %v2992_v24  ;;  %v2980_v32 = vld [vmem:[%s3796_s5 + $0x30] sm:$0xf] }
  0x58   : > { %1303 = vmatpush.bf16.msra.mxu0 %v3029_v12  ;;  %v2997_v31 = vor.u32 %v3372_v27, %v2994_v29  ;;  %v3370_v33 = vld [vmem:[%s3796_s5 + $0x38] sm:$0xf0]  ;;  %v3369_v34 = vld [vmem:[%s3796_s5 + $0x34] sm:$0xf]  ;;  %v2982_v35 = vld [vmem:[%s3796_s5 + $0x3c] sm:$0xf0] }
  0x59   : > { %1316 = vmatpush.bf16.msra.mxu1 %v3033_v13  ;;  %v2981_v36 = vor.u32 %v3370_v33, %v2980_v32  ;;  %v2985_v37 = vor.u32 %v3369_v34, %v2982_v35  ;;  %v2968_v38 = vld [vmem:[%s3796_s5 + $0x18] sm:$0xf]  ;;  %v3367_v39 = vld [vmem:[%s3796_s5 + $0x20] sm:$0xf0]  ;;  %v3366_v40 = vld [vmem:[%s3796_s5 + $0x1c] sm:$0xf] }
  0x5a   : > { %v2970_v41 = vld [vmem:[%s3796_s5 + $0x24] sm:$0xf0]  ;;  %v2969_v42 = vor.u32 %v3367_v39, %v2968_v38  ;;  %v2956_v44 = vld [vmem:[%s3796_s5] sm:$0xf]  ;;  %v3364_v45 = vld [vmem:[%s3796_s5 + $0x8] sm:$0xf0] }
  0x5b   : > { %v2973_v43 = vor.u32 %v3366_v40, %v2970_v41  ;;  %v3363_v46 = vld [vmem:[%s3796_s5 + $0x4] sm:$0xf]  ;;  %v2958_v47 = vld [vmem:[%s3796_s5 + $0xc] sm:$0xf0]  ;;  %v2957_v48 = vor.u32 %v3364_v45, %v2956_v44  ;;  %v3921_v49 = vld [vmem:[#allocation2] sm:$0xf] }
  0x5c   : > { %1304 = vmatpush.bf16.msra.mxu0 %v3017_v18  ;;  %v2961_v50 = vor.u32 %v3363_v46, %v2958_v47  ;;  %v3925_v51 = vpack.c.bf16 %v3921_v49, %v3921_v49  ;;  %v3930_v52 = vld [vmem:[%s3805_s19] sm:$0x7]  ;;  %vm1365_vm0 = vcmask 261120   ;;  %s3596_s12 = smov 32   ;;  %s3597_s16 = smov 64   ;;  %vm1450_vm1 = vcmask 27648  }
  0x5d   : > { %1317 = vmatpush.bf16.msra.mxu1 %v3021_v19  ;;  %v1169_v53 = vperm.slane %v3930_v52, 1  ;;  %v1168_v56 = vperm.slane %v3930_v52, 0  ;;  %s3598_s19 = smov 96   ;;  %s4341_s17 = sld [smem:[#allocation10_spill]]  ;;  %v3048_v15 = vld [vmem:[%s3796_s5 + $0xb0] sm:$0xf] }
  0x5e   : > { %v3386_v16 = vld [vmem:[%s3796_s5 + $0xb8] sm:$0xf0]  ;;  %v3036_v18 = vld [vmem:[%s3796_s5 + $0x98] sm:$0xf]  ;;  %v3383_v19 = vld [vmem:[%s3796_s5 + $0xa0] sm:$0xf0] }
  0x5f   : > { %v3049_v17 = vor.u32 %v3386_v16, %v3048_v15  ;;  %v3037_v20 = vor.u32 %v3383_v19, %v3036_v18  ;;  %v3024_v21 = vld [vmem:[%s3796_s5 + $0x80] sm:$0xf]  ;;  %v3380_v22 = vld [vmem:[%s3796_s5 + $0x88] sm:$0xf0]  ;;  %v3012_v24 = vld [vmem:[%s3796_s5 + $0x68] sm:$0xf] }
  0x60   : > { %1305 = vmatpush.bf16.msra.mxu0 %v3005_v26  ;;  %v3025_v23 = vor.u32 %v3380_v22, %v3024_v21  ;;  %v3377_v25 = vld [vmem:[%s3796_s5 + $0x70] sm:$0xf0]  ;;  %v3000_v27 = vld [vmem:[%s3796_s5 + $0x50] sm:$0xf]  ;;  %v2976_v33 = vld [vmem:[%s3796_s5 + $0x20] sm:$0xf] }
  0x61   : > { %1318 = vmatpush.bf16.msra.mxu1 %v3009_v28  ;;  %1328 = vmatpush.bf16.msra.mxu2 %v3049_v17  ;;  %v3013_v26 = vor.u32 %v3377_v25, %v3012_v24  ;;  %v3374_v28 = vld [vmem:[%s3796_s5 + $0x58] sm:$0xf0]  ;;  %v3368_v34 = vld [vmem:[%s3796_s5 + $0x28] sm:$0xf0]  ;;  %vm1503_vm2 = vcmask 1041408   ;;  %vm1499_vm3 = vcmask 31744  }
  0x62   : > { %v3001_v29 = vor.u32 %v3374_v28, %v3000_v27  ;;  %v2977_v35 = vor.u32 %v3368_v34, %v2976_v33  ;;  %vm1590_vm4 = vcmask 523264   ;;  %vm1592_vm5 = vcmask 785408   ;;  %s4343_s1 = sld [smem:[#allocation21_spill]] }
  0x63   : > { %v1131_v10 = vld [vmem:[%s4341_s17] sm:$0xf]  ;;  %vm1679_vm6 = vcmask 1043456   ;;  %s4345_s13 = sld [smem:[#allocation15_spill]]  ;;  %vm2091_vm11 = vcmask 1040384   ;;  %vm2038_vm12 = vcmask 11264  }
  0x64   : > { %1306 = vmatpush.bf16.msra.mxu0 %v2993_v30  ;;  %v2988_v30 = vld [vmem:[%s3796_s5 + $0x38] sm:$0xf]  ;;  %vm2087_vm13 = vcmask 15360   ;;  %s4359_s29 = sld [smem:[#allocation13_spill]] }
  0x65   : > { %1319 = vmatpush.bf16.msra.mxu1 %v2997_v31  ;;  %1329 = vmatpush.bf16.msra.mxu2 %v3037_v20  ;;  %v3371_v31 = vld [vmem:[%s3796_s5 + $0x40] sm:$0xf0]  ;;  %s4365_s30 = sld [smem:[#allocation3_spill]] }
  0x66   : > { %v2989_v32 = vor.u32 %v3371_v31, %v2988_v30 }
  0x68   : > { %1307 = vmatpush.bf16.msra.mxu0 %v2981_v36  ;;  %v2964_v36 = vld [vmem:[%s3796_s5 + $0x8] sm:$0xf]  ;;  %s4344_s2 = scalar_lea.vmem %s4343_s1, %s3761_s0  ;;  %s4352_s1 = sld [smem:[#allocation17_spill]] }
  0x69   : > { %1320 = vmatpush.bf16.msra.mxu1 %v2985_v37  ;;  %1330 = vmatpush.bf16.msra.mxu2 %v3025_v23  ;;  %v3365_v37 = vld [vmem:[%s3796_s5 + $0x10] sm:$0xf0]  ;;  %s4342_s5 = sld [smem:[#allocation11_spill]]  ;;  %s4346_s23 = scalar_lea.vmem %s4345_s13, %s4378_s26 }
  0x6a   : > { %v2965_v39 = vor.u32 %v3365_v37, %v2964_v36  ;;  %s4357_s13 = sld [smem:[#allocation29_spill]] }
  0x6b   : > { %p3354_p8 = scmp.ne.s32.totalorder %s4365_s30, 1 }
  0x6c   : > { %1308 = vmatpush.bf16.msra.mxu0 %v2969_v42 }
  0x6d   : > { %1321 = vmatpush.bf16.msra.mxu1 %v2973_v43  ;;  %1331 = vmatpush.bf16.msra.mxu2 %v3013_v26 }
  0x70   : > { %1309 = vmatpush.bf16.msra.mxu0 %v2957_v48 }
  0x71   : > { %1322 = vmatpush.bf16.msra.mxu1 %v2961_v50  ;;  %1332 = vmatpush.bf16.msra.mxu2 %v3001_v29 }
  0x73   : > { %1310 = vmatmul.bf16.vlgmr.msra.gmra.mxu0 %v3925_v51 }
  0x74   : > { %1323 = vmatmul.bf16.vlgmr.msra.gmra.mxu1 %v3925_v51 }
  0x75   : > { %1333 = vmatpush.bf16.msra.mxu2 %v2989_v32 }
  0x79   : > { %1334 = vmatpush.bf16.msra.mxu2 %v2977_v35 }
  0x7d   : > { %1335 = vmatpush.bf16.msra.mxu2 %v2965_v39 }
  0x80   : > { %1336 = vmatmul.bf16.vlgmr.msra.gmra.mxu2 %v3925_v51 }
  0xf0   : > { %v1311_v54 = vpop.f32.mrf.mxu0 }
  0xf1   : > { %v1324_v55 = vpop.f32.mrf.mxu1  ;;  %v1312_v59 = vadd.f32 %v1311_v54, %v1168_v56 }
  0xf2   : > { %v1325_v57 = vadd.f32 %v1324_v55, %v1169_v53 }
  0xf3   : > { %v1341_v63 = vpack.c.bf16 %v1312_v59, %v1312_v59 }
  0xf4   : > { %v1342_v58 = vpack.c.bf16 %v1325_v57, %v1325_v57 }
  0xf6   : > { %1356 = vrot.lane.b32.xlu2 %v1342_v58, %s3596_s12  ;;  %1354 = vrot.lane.b32.xlu1 %v1342_v58, %s3597_s16  ;;  %v1370_v60 = vsel %vm1365_vm0, %v1342_v58, 0 }
  0xf7   : > { %1352 = vrot.lane.b32.xlu0 %v1342_v58, %s3598_s19  ;;  %1379 = vmatpush.bf16.xpose.msra.mxu3 %v1370_v60 }
  0xf8   : > { %v1313_v61 = vpop.f32.mrf.mxu0 }
  0xf9   : > { %v1326_v62 = vpop.f32.mrf.mxu1  ;;  %v1170_v61 = vperm.slane %v3930_v52, 2 }
  0xfe   : > { %1349 = vrot.lane.b32.xlu2 %v1341_v63, %s3596_s12  ;;  %1347 = vrot.lane.b32.xlu1 %v1341_v63, %s3597_s16 }
  0xff   : > { %1345 = vrot.lane.b32.xlu0 %v1341_v63, %s3598_s19  ;;  %3050 = vmatmul.msk.bf16.vlgmr.msra.gmra.mxu3 %vm1365_vm0, %v1341_v63 }
 0x103   : > { %v1337_v62 = vpop.f32.mrf.mxu2 }
 0x104   : > { %v1338_v63 = vadd.f32 %v1337_v62, %v1170_v61 }
 0x150   : > { %v1357_v0 = vpop.permute.xlu2 %1356 }
 0x151   : > { %v1427_v1 = vsel %vm1365_vm0, %v1357_v0, 0  ;;  %v1343_v0 = vpack.c.bf16 %v1338_v63, %v1338_v63 }
 0x152   : > { %1436 = vmatpush.bf16.xpose.msrb.mxu0 %v1427_v1 }
 0x153   : > { %v1505_v1 = vsel %vm1503_vm2, %v1343_v0, 0 }
 0x154   : > { %1514 = vmatpush.bf16.msrb.mxu2 %v1505_v1 }
 0x158   : > { %v1350_v2 = vpop.permute.xlu2 %1349 }
 0x159   : > { %3053 = vmatmul.msk.bf16.vlgmr.msrb.gmra.mxu0 %vm1365_vm0, %v1350_v2  ;;  %v1339_v2 = vpop.f32.mrf.mxu2 }
 0x168   : > { %v1355_v3 = vpop.permute.xlu1 %1354 }
 0x169   : > { %v1408_v4 = vsel %vm1365_vm0, %v1355_v3, 0  ;;  %v1353_v5 = vpop.permute.xlu0 %1352 }
 0x16a   : > { %v1389_v6 = vsel %vm1365_vm0, %v1353_v5, 0 }
 0x16b   : > { %1398 = vmatpush.bf16.xpose.msrb.mxu3 %v1389_v6 }
 0x170   : > { %v1348_v8 = vpop.permute.xlu1 %1347 }
 0x171   : > { %v1346_v7 = vpop.permute.xlu0 %1345 }
 0x172   : > { %3051 = vmatmul.msk.bf16.vlgmr.msrb.gmra.mxu3 %vm1365_vm0, %v1346_v7 }
 0x173   : > { %1417 = vmatpush.bf16.xpose.msra.mxu3 %v1408_v4 }
 0x182   : > { %v1381_v9 = vpop.f32.mrf.mxu3  ;;  %3052 = vmatmul.msk.bf16.vlgmr.msra.gmra.mxu3 %vm1365_vm0, %v1348_v8 }
 0x183   : > { %v1442_v11 = vmul.f32 0.17677669, %v1381_v9 }
 0x185   : > { %v1446_v12 = vadd.f32 %v1442_v11, %v1131_v10 }
 0x187   : > { %v1451_v13 = vsel %vm1450_vm1, %v1446_v12, -inf }
 0x188   : > { %1452 = vmax.xlane.f32.xlu0 %v1451_v13 }
 0x18a   : > { %v1383_v14 = vpop.f32.mrf.mxu3 }
 0x1d6   : > { %v1438_v38 = vpop.f32.mrf.mxu0 }
 0x1d7   : > { %v1445_v51 = vmul.f32 0.17677669, %v1438_v38 }
 0x1d9   : > { %v1449_v59 = vadd.f32 %v1445_v51, %v1131_v10  ;;  %v3387_v51 = vld [vmem:[%s4342_s5] sm:$0xff] }
 0x1db   : > { %v1460_v60 = vsel %vm1450_vm1, %v1449_v59, -inf }
 0x1de   : > { %v1440_v40 = vpop.f32.mrf.mxu0 }
 0x1f5   : > { %v1400_v41 = vpop.f32.mrf.mxu3 }
 0x1f6   : > { %v1443_v42 = vmul.f32 0.17677669, %v1400_v41 }
 0x1f8   : > { %v1447_v43 = vadd.f32 %v1443_v42, %v1131_v10  ;;  %v3394_v42 = vld [vmem:[%s4342_s5 + $0x38] sm:$0xff] }
 0x1f9   : > { %1663 = vmatpush.bf16.msrb.mxu1 %v3394_v42  ;;  %v4034_v42 = vld [vmem:[%s4346_s23] sm:$0x1]  ;;  %s4358_s23 = scalar_lea.vmem %s4357_s13, %s3761_s0 }
 0x1fa   : > { %v1454_v44 = vsel %vm1450_vm1, %v1447_v43, -inf }
 0x1fb   : > { %v1453_v45 = vpop.xlane.xlu0 %1452  ;;  %1455 = vmax.xlane.f32.xlu1 %v1454_v44 }
 0x1fc   : > { %v1463_v46 = vsub.f32 %v1446_v12, %v1453_v45 }
 0x1fd   : > { %v1402_v47 = vpop.f32.mrf.mxu3 }
 0x1fe   : > { %v1467_v48 = vmul.f32 1.442695, %v1463_v46 }
 0x200   : > { %3516 = vpow2.f32 %v1467_v48 }
 0x205   : > { %v1419_v50 = vpop.f32.mrf.mxu3 }
 0x206   : > { %v3517_v53 = vpop.eup %3516  ;;  %v1444_v54 = vmul.f32 0.17677669, %v1419_v50  ;;  %v3392_v50 = vld [vmem:[%s4342_s5 + $0x28] sm:$0xff] }
 0x207   : > { %v1475_v55 = vsel %vm1450_vm1, %v3517_v53, 0.0 }
 0x208   : > { %1476 = vadd.xlane.f32.xlu0 %v1475_v55  ;;  %v1448_v56 = vadd.f32 %v1444_v54, %v1131_v10  ;;  %v3390_v54 = vld [vmem:[%s4342_s5 + $0x18] sm:$0xff]  ;;  %v3389_v55 = vld [vmem:[%s4342_s5 + $0x10] sm:$0xff] }
 0x20a   : > { %v1457_v57 = vsel %vm1450_vm1, %v1448_v56, -inf }
 0x20b   : > { %1458 = vmax.xlane.f32.xlu2 %v1457_v57 }
 0x20d   : > { %v1421_v58 = vpop.f32.mrf.mxu3 }
 0x213   : > { %1461 = vmax.xlane.f32.xlu2 %v1460_v60 }
 0x21c   : > { %1359 = vrot.lane.b32.xlu0 %v1343_v0, %s3598_s19 }
 0x26e   : > { %v1456_v9 = vpop.xlane.xlu1 %1455 }
 0x26f   : > { %v1464_v13 = vsub.f32 %v1447_v43, %v1456_v9  ;;  %v3393_v43 = vld [vmem:[%s4342_s5 + $0x30] sm:$0xff] }
 0x270   : > { %1664 = vmatpush.bf16.msrb.mxu1 %v3393_v43  ;;  %v3400_v43 = vld [vmem:[%s3818_s24 + $0x28] sm:$0xff] }
 0x271   : > { %v1469_v16 = vmul.f32 1.442695, %v1464_v13  ;;  %v3414_v13 = vld [vmem:[%s3828_s28 + $0x54] sm:$0xf0] }
 0x274   : > { %1665 = vmatpush.bf16.msrb.mxu1 %v3392_v50 }
 0x27b   : > { %v1477_v3 = vpop.xlane.xlu0 %1476 }
 0x27c   : > { %3518 = vrcp.f32 %v1477_v3 }
 0x27e   : > { %v1459_v4 = vpop.xlane.xlu2 %1458 }
 0x27f   : > { %v1465_v5 = vsub.f32 %v1448_v56, %v1459_v4  ;;  %v3388_v56 = vld [vmem:[%s4342_s5 + $0x8] sm:$0xff] }
 0x281   : > { %v1471_v6 = vmul.f32 1.442695, %v1465_v5 }
 0x282   : > { %v3519_v7 = vpop.eup %3518 }
 0x283   : > { %v1491_v8 = vmul.f32 %v3519_v7, %v3517_v53  ;;  %3520 = vpow2.f32 %v1471_v6  ;;  %v3391_v53 = vld [vmem:[%s4342_s5 + $0x20] sm:$0xff]  ;;  %v3599_v6 = vmov 128.0   ;;  %v3180_v7 = vld [vmem:[%s3828_s28 + $0x70] sm:$0xf]  ;;  %s4350_s5 = sld [smem:[#allocation24_spill]] }
 0x284   : > { %1666 = vmatpush.bf16.msrb.mxu1 %v3391_v53 }
 0x285   : > { %v1495_v52 = vpack.c.bf16 %v1491_v8, %v1491_v8  ;;  %v3418_v8 = vld [vmem:[%s3828_s28 + $0x74] sm:$0xf0] }
 0x286   : > { %v1462_v10 = vpop.xlane.xlu2 %1461  ;;  %v3181_v9 = vor.u32 %v3418_v8, %v3180_v7 }
 0x287   : > { %v1466_v11 = vsub.f32 %v1449_v59, %v1462_v10  ;;  %3054 = vmatmul.msk.bf16.vlgmr.msrb.gmra.mxu2 %vm1499_vm3, %v1495_v52  ;;  %v3172_v52 = vld [vmem:[%s3828_s28 + $0x60] sm:$0xf]  ;;  %v3416_v10 = vld [vmem:[%s3828_s28 + $0x64] sm:$0xf0] }
 0x288   : > { %1667 = vmatpush.bf16.msrb.mxu1 %v3390_v54 }
 0x289   : > { %v3521_v12 = vpop.eup %3520  ;;  %v1473_v14 = vmul.f32 1.442695, %v1466_v11  ;;  %s4351_s6 = scalar_lea.vmem %s4350_s5, %s3761_s0 }
 0x28a   : > { %v1481_v15 = vsel %vm1450_vm1, %v3521_v12, 0.0 }
 0x28b   : > { %3522 = vpow2.f32 %v1473_v14  ;;  %1482 = vadd.xlane.f32.xlu2 %v1481_v15  ;;  %v3402_v14 = vld [vmem:[%s3818_s24 + $0x38] sm:$0xff] }
 0x28c   : > { %3524 = vpow2.f32 %v1469_v16  ;;  %1668 = vmatpush.bf16.msrb.mxu1 %v3389_v55 }
 0x28e   : > { %v1360_v21 = vpop.permute.xlu0 %1359 }
 0x28f   : > { %v1524_v22 = vsel %vm1503_vm2, %v1360_v21, 0  ;;  %v3148_v21 = vld [vmem:[%s3828_s28 + $0x30] sm:$0xf] }
 0x290   : > { %1533 = vmatpush.bf16.msra.mxu2 %v1524_v22  ;;  %1669 = vmatpush.bf16.msrb.mxu1 %v3388_v56  ;;  %v3410_v22 = vld [vmem:[%s3828_s28 + $0x34] sm:$0xf0] }
 0x291   : > { %v3523_v17 = vpop.eup %3522 }
 0x292   : > { %v1484_v18 = vsel %vm1450_vm1, %v3523_v17, 0.0  ;;  %v3525_v19 = vpop.eup %3524 }
 0x293   : > { %1485 = vadd.xlane.f32.xlu1 %v1484_v18  ;;  %v1478_v20 = vsel %vm1450_vm1, %v3525_v19, 0.0  ;;  %v3412_v18 = vld [vmem:[%s3828_s28 + $0x44] sm:$0xf0] }
 0x294   : > { %1670 = vmatpush.bf16.msrb.mxu1 %v3387_v51  ;;  %1786 = vmatpush.bf16.msrb.mxu2 %v3402_v14  ;;  %v3508_v14 = vld [vmem:[%s4351_s6] ss:$0 sm:$0xff] }
 0x29b   : > { %1479 = vadd.xlane.f32.xlu1 %v1478_v20 }
 0x2a3   : > { %1361 = vrot.lane.b32.xlu2 %v1343_v0, %s3597_s16 }
 0x2b4   : > { %1363 = vrot.lane.b32.xlu1 %v1343_v0, %s3596_s12  ;;  %v3505_v0 = vld [vmem:[%s4344_s2] ss:$0 sm:$0xff]  ;;  %s4353_s2 = scalar_lea.vmem %s4352_s1, %s4378_s26  ;;  %s4354_s26 = sld [smem:[#allocation12_spill]] }
 0x2fe   : > { %v1483_v23 = vpop.xlane.xlu2 %1482 }
 0x2ff   : > { %3526 = vrcp.f32 %v1483_v23 }
 0x305   : > { %v3527_v24 = vpop.eup %3526 }
 0x306   : > { %v1493_v25 = vmul.f32 %v3527_v24, %v3521_v12  ;;  %v1486_v26 = vpop.xlane.xlu1 %1485  ;;  %v1362_v27 = vpop.permute.xlu2 %1361  ;;  %v3173_v12 = vor.u32 %v3416_v10, %v3172_v52  ;;  %v3149_v24 = vor.u32 %v3410_v22, %v3148_v21  ;;  %v3182_v10 = vld [vmem:[%s3828_s28 + $0x78] sm:$0xf0]  ;;  %v3411_v21 = vld [vmem:[%s3828_s28 + $0x44] sm:$0xf] }
 0x307   : > { %v1543_v28 = vsel %vm1503_vm2, %v1362_v27, 0 }
 0x308   : > { %v1497_v29 = vpack.c.bf16 %v1493_v25, %v1493_v25  ;;  %1552 = vmatpush.bf16.msrb.mxu3 %v1543_v28  ;;  %v3140_v25 = vld [vmem:[%s3828_s28 + $0x20] sm:$0xf] }
 0x30a   : > { %v1516_v30 = vpop.f32.mrf.mxu2 }
 0x30b   : > { %3056 = vmatmul.msk.bf16.vlgmr.msrb.gmra.mxu3 %vm1499_vm3, %v1497_v29  ;;  %v3132_v29 = vld [vmem:[%s3828_s28 + $0x10] sm:$0xf] }
 0x30c   : > { %1901 = vmatpush.bf16.msra.mxu3 %v3181_v9  ;;  %v3417_v9 = vld [vmem:[%s3828_s28 + $0x74] sm:$0xf] }
 0x30e   : > { %v1480_v31 = vpop.xlane.xlu1 %1479 }
 0x30f   : > { %3528 = vrcp.f32 %v1480_v31 }
 0x310   : > { %3530 = vrcp.f32 %v1486_v26  ;;  %1902 = vmatpush.bf16.msra.mxu3 %v3173_v12  ;;  %v3408_v26 = vld [vmem:[%s3828_s28 + $0x24] sm:$0xf0]  ;;  %v3185_v12 = vor.u32 %v3417_v9, %v3182_v10 }
 0x311   : > { %3532 = vrcp.f32 %v3599_v6  ;;  %v3141_v28 = vor.u32 %v3408_v26, %v3140_v25  ;;  %v3409_v25 = vld [vmem:[%s3828_s28 + $0x34] sm:$0xf]  ;;  %v3150_v26 = vld [vmem:[%s3828_s28 + $0x38] sm:$0xf0] }
 0x312   : > { %v1518_v32 = vpop.f32.mrf.mxu2 }
 0x315   : > { %v3529_v33 = vpop.eup %3528 }
 0x316   : > { %v1492_v34 = vmul.f32 %v3529_v33, %v3525_v19  ;;  %v3531_v36 = vpop.eup %3530 }
 0x317   : > { %v1494_v37 = vmul.f32 %v3531_v36, %v3523_v17  ;;  %v3533_v11 = vpop.eup %3532  ;;  %v3156_v17 = vld [vmem:[%s3828_s28 + $0x40] sm:$0xf] }
 0x318   : > { %v1496_v35 = vpack.c.bf16 %v1492_v34, %v1492_v34  ;;  %v1684_v15 = vmul.f32 128.0, %v3533_v11  ;;  %v3157_v20 = vor.u32 %v3412_v18, %v3156_v17  ;;  %vm1688_vm7 = vweird.f32 %v3533_v11 }
 0x319   : > { %v1498_v40 = vpack.c.bf16 %v1494_v37, %v1494_v37 }
 0x31a   : > { %3055 = vmatmul.msk.bf16.vlgmr.msra.gmra.mxu2 %vm1499_vm3, %v1496_v35  ;;  %v1685_v19 = vsub.f32 1.0, %v1684_v15 }
 0x31c   : > { %v1686_v23 = vmul.f32 %v3533_v11, %v1685_v19  ;;  %v3413_v19 = vld [vmem:[%s3828_s28 + $0x54] sm:$0xf] }
 0x31e   : > { %v1687_v27 = vadd.f32 %v3533_v11, %v1686_v23  ;;  %v3158_v23 = vld [vmem:[%s3828_s28 + $0x48] sm:$0xf0] }
 0x320   : > { %v4022_v31 = vsel %vm1688_vm7, %v3533_v11, %v1687_v27  ;;  %v3415_v11 = vld [vmem:[%s3828_s28 + $0x64] sm:$0xf]  ;;  %v3153_v27 = vor.u32 %v3409_v25, %v3150_v26 }
 0x326   : > { %v1364_v38 = vpop.permute.xlu1 %1363 }
 0x327   : > { %v1562_v39 = vsel %vm1503_vm2, %v1364_v38, 0  ;;  %v3124_v38 = vld [vmem:[%s3828_s28] sm:$0xf] }
 0x328   : > { %1571 = vmatpush.bf16.msra.mxu0 %v1562_v39  ;;  %v3404_v39 = vld [vmem:[%s3828_s28 + $0x4] sm:$0xf0] }
 0x32b   : > { %3057 = vmatmul.msk.bf16.vlgmr.msra.gmra.mxu0 %vm1499_vm3, %v1498_v40  ;;  %v3401_v40 = vld [vmem:[%s3818_s24 + $0x30] sm:$0xff] }
 0x32c   : > { %1787 = vmatpush.bf16.msrb.mxu2 %v3401_v40  ;;  %1914 = vmatpush.bf16.msrb.mxu0 %v3185_v12 }
 0x330   : > { %1788 = vmatpush.bf16.msrb.mxu2 %v3400_v43 }
 0x38e   : > { %v1554_v41 = vpop.f32.mrf.mxu3 }
 0x396   : > { %v1556_v44 = vpop.f32.mrf.mxu3 }
 0x397   : > { %v3399_v44 = vld [vmem:[%s3818_s24 + $0x20] sm:$0xff] }
 0x398   : > { %1789 = vmatpush.bf16.msrb.mxu2 %v3399_v44 }
 0x39d   : > { %v1535_v45 = vpop.f32.mrf.mxu2 }
 0x39e   : > { %1578 = vrot.lane.b32.xlu0 %v1535_v45, %s3596_s12  ;;  %v3398_v45 = vld [vmem:[%s3818_s24 + $0x18] sm:$0xff] }
 0x39f   : > { %1790 = vmatpush.bf16.msrb.mxu2 %v3398_v45 }
 0x3a5   : > { %v1537_v46 = vpop.f32.mrf.mxu2 }
 0x3a6   : > { %1582 = vrot.lane.b32.xlu0 %v1554_v41, %s3597_s16  ;;  %v3125_v41 = vor.u32 %v3404_v39, %v3124_v38  ;;  %v3397_v46 = vld [vmem:[%s3818_s24 + $0x10] sm:$0xff] }
 0x3a7   : > { %1791 = vmatpush.bf16.msrb.mxu2 %v3397_v46 }
 0x3a8   : > { %v1573_v47 = vpop.f32.mrf.mxu0 }
 0x3a9   : > { %1586 = vrot.lane.b32.xlu2 %v1573_v47, %s3598_s19  ;;  %v3396_v47 = vld [vmem:[%s3818_s24 + $0x8] sm:$0xff] }
 0x3ab   : > { %1792 = vmatpush.bf16.msrb.mxu2 %v3396_v47 }
 0x3b0   : > { %v1575_v48 = vpop.f32.mrf.mxu0 }
 0x3b1   : > { %v3395_v48 = vld [vmem:[%s3818_s24] sm:$0xff]  ;;  %s4347_s24 = sld [smem:[#allocation22_spill]] }
 0x3b2   : > { %1793 = vmatpush.bf16.msrb.mxu2 %v3395_v48 }
 0x3b7   : > { %s4348_s25 = scalar_lea.vmem %s4347_s24, %s3761_s0 }
 0x403   : > { %v1587_v60 = vpop.permute.xlu2 %1586 }
 0x410   : > { %v1579_v57 = vpop.permute.xlu0 %1578 }
 0x411   : > { %v1589_v58 = vsel %vm1365_vm0, %v1516_v30, %v1579_v57  ;;  %v3406_v30 = vld [vmem:[%s3828_s28 + $0x14] sm:$0xf0] }
 0x412   : > { %v3133_v32 = vor.u32 %v3406_v30, %v3132_v29  ;;  %v3142_v29 = vld [vmem:[%s3828_s28 + $0x28] sm:$0xf0] }
 0x418   : > { %v1583_v59 = vpop.permute.xlu0 %1582 }
 0x419   : > { %v1591_v61 = vsel %vm1590_vm4, %v1589_v58, %v1583_v59 }
 0x41a   : > { %v1593_v62 = vsel %vm1592_vm5, %v1591_v61, %v1587_v60  ;;  %v3506_v60 = vld [vmem:[%s4348_s25] ss:$0 sm:$0xff]  ;;  %s4360_s25 = sld [smem:[#allocation30_spill]] }
 0x41b   : > { %v1611_v63 = vpack.c.bf16 %v1593_v62, %v1593_v62 }
 0x41d   : > { %1671 = vmatmul.bf16.vlgmr.msrb.gmra.mxu1 %v1611_v63  ;;  %v3507_v63 = vld [vmem:[%s4349_s8] ss:$0 sm:$0xff] }
 0x420   : > { %s4361_s3 = scalar_lea.vmem %s4360_s25, %s3761_s0 }
 0x49a   : > { %v1672_v1 = vpop.f32.mrf.mxu1 }
 0x49b   : > { %v1673_v2 = vadd.f32 %v3505_v0, %v1672_v1 }
 0x49d   : > { %v1676_v3 = vadd.f32 %v1673_v2, %v3921_v49  ;;  %v3164_v49 = vld [vmem:[%s3828_s28 + $0x50] sm:$0xf] }
 0x49e   : > { %v3165_v16 = vor.u32 %v3414_v13, %v3164_v49  ;;  %v3174_v49 = vld [vmem:[%s3828_s28 + $0x68] sm:$0xf0] }
 0x49f   : > { %v1680_v4 = vsel %vm1679_vm6, %v1676_v3, 0.0  ;;  %v3177_v13 = vor.u32 %v3415_v11, %v3174_v49 }
 0x4a0   : > { %1681 = vadd.xlane.f32.xlu1 %v1680_v4  ;;  %1903 = vmatpush.bf16.msra.mxu3 %v3165_v16 }
 0x4a1   : > { %1915 = vmatpush.bf16.msrb.mxu0 %v3177_v13 }
 0x4a2   : > { %v1674_v5 = vpop.f32.mrf.mxu1 }
 0x4a4   : > { %1904 = vmatpush.bf16.msra.mxu3 %v3157_v20  ;;  %v3166_v20 = vld [vmem:[%s3828_s28 + $0x58] sm:$0xf0] }
 0x4a5   : > { %v3169_v22 = vor.u32 %v3413_v19, %v3166_v20 }
 0x4a7   : > { %1916 = vmatpush.bf16.msrb.mxu0 %v3169_v22 }
 0x4a8   : > { %1905 = vmatpush.bf16.msra.mxu3 %v3149_v24  ;;  %v3161_v24 = vor.u32 %v3411_v21, %v3158_v23 }
 0x4ab   : > { %1917 = vmatpush.bf16.msrb.mxu0 %v3161_v24 }
 0x4ac   : > { %1906 = vmatpush.bf16.msra.mxu3 %v3141_v28  ;;  %v3407_v28 = vld [vmem:[%s3828_s28 + $0x24] sm:$0xf] }
 0x4ad   : > { %v3145_v30 = vor.u32 %v3407_v28, %v3142_v29 }
 0x4af   : > { %1918 = vmatpush.bf16.msrb.mxu0 %v3153_v27 }
 0x4b0   : > { %1907 = vmatpush.bf16.msra.mxu3 %v3133_v32  ;;  %v3405_v32 = vld [vmem:[%s3828_s28 + $0x14] sm:$0xf] }
 0x4b3   : > { %1919 = vmatpush.bf16.msrb.mxu0 %v3145_v30 }
 0x4b4   : > { %1908 = vmatpush.bf16.msra.mxu3 %v3125_v41 }
 0x4b7   : > { %1909 = vmatmul.bf16.vlgmr.msra.gmra.mxu3 %v4034_v42 }
 0x513   : > { %v1682_v33 = vpop.xlane.xlu1 %1681 }
 0x514   : > { %v1690_v34 = vmul.f32 %v4022_v31, %v1682_v33  ;;  %v3134_v33 = vld [vmem:[%s3828_s28 + $0x18] sm:$0xf0] }
 0x516   : > { %v1691_v35 = vsub.f32 %v1676_v3, %v1690_v34  ;;  %v4059_v3 = vld [vmem:[%s3834_s4] sm:$0x3]  ;;  %v3137_v34 = vor.u32 %v3405_v32, %v3134_v33 }
 0x517   : > { %v1817_v4 = vperm.slane %v4059_v3, 0 }
 0x518   : > { %v1692_v36 = vmul.f32 %v1691_v35, %v1691_v35  ;;  %1920 = vmatpush.bf16.msrb.mxu0 %v3137_v34 }
 0x51a   : > { %v1693_v37 = vsel %vm1679_vm6, %v1692_v36, 0.0  ;;  %v3126_v36 = vld [vmem:[%s3828_s28 + $0x8] sm:$0xf0] }
 0x51b   : > { %1694 = vadd.xlane.f32.xlu0 %v1693_v37 }
 0x53a   : > { %v1910_v5 = vpop.f32.mrf.mxu3 }
 0x53b   : > { %v1911_v6 = vadd.f32 %v1910_v5, %v1817_v4 }
 0x53d   : > { %v1928_v7 = vpack.c.bf16 %v1911_v6, %v1911_v6 }
 0x53f   : > { %1938 = vrot.lane.b32.xlu2 %v1928_v7, %s3598_s19  ;;  %v1955_v8 = vsel %vm1365_vm0, %v1928_v7, 0 }
 0x540   : > { %1964 = vmatpush.bf16.xpose.msra.mxu1 %v1955_v8 }
 0x542   : > { %v1912_v52 = vpop.f32.mrf.mxu3 }
 0x547   : > { %1940 = vrot.lane.b32.xlu2 %v1928_v7, %s3597_s16 }
 0x58e   : > { %v1695_v50 = vpop.xlane.xlu0 %1694 }
 0x58f   : > { %v1696_v53 = vmul.f32 %v1695_v50, %v4022_v31 }
 0x591   : > { %v1697_v54 = vadd.f32 1e-05, %v1696_v53 }
 0x593   : > { %3534 = vrsqrt.f32 %v1697_v54  ;;  %vm1704_vm9 = vweird.f32 %v1697_v54 }
 0x599   : > { %v3535_v55 = vpop.eup %3534  ;;  %v1939_v38 = vpop.permute.xlu2 %1938 }
 0x59a   : > { %v1699_v56 = vmul.f32 %v3535_v55, %v1697_v54  ;;  %vm1705_vm8 = vweird.f32 %v3535_v55  ;;  %v1974_v39 = vsel %vm1365_vm0, %v1939_v38, 0  ;;  %v1818_v54 = vperm.slane %v4059_v3, 1 }
 0x59b   : > { %vm1706_vm10 = vmor %vm1704_vm9, %vm1705_vm8  ;;  %1983 = vmatpush.bf16.xpose.msra.mxu2 %v1974_v39 }
 0x59c   : > { %v1700_v51 = vmul.f32 %v3535_v55, %v1699_v56 }
 0x59e   : > { %v1701_v57 = vmul.f32 0.5, %v1700_v51 }
 0x5a0   : > { %v1702_v58 = vsub.f32 1.5, %v1701_v57 }
 0x5a1   : > { %v1941_v40 = vpop.permute.xlu2 %1940 }
 0x5a2   : > { %v1703_v59 = vmul.f32 %v3535_v55, %v1702_v58  ;;  %v1993_v41 = vsel %vm1365_vm0, %v1941_v40, 0 }
 0x5a3   : > { %2002 = vmatpush.bf16.xpose.msrb.mxu3 %v1993_v41 }
 0x5a4   : > { %v1707_v61 = vsel %vm1706_vm10, %v3535_v55, %v1703_v59  ;;  %v3509_v59 = vld [vmem:[%s4353_s2] ss:$0 sm:$0xff] }
 0x5a5   : > { %v1708_v62 = vmul.f32 %v1707_v61, %v1691_v35  ;;  %v3403_v35 = vld [vmem:[%s3828_s28 + $0x4] sm:$0xf] }
 0x5a6   : > { %v3129_v37 = vor.u32 %v3403_v35, %v3126_v36 }
 0x5a7   : > { %v1712_v0 = vmul.f32 %v3506_v60, %v1708_v62 }
 0x5a8   : > { %1921 = vmatpush.bf16.msrb.mxu0 %v3129_v37 }
 0x5a9   : > { %v4054_v1 = vadd.f32 %v3507_v63, %v1712_v0 }
 0x5ab   : > { %v1734_v2 = vpack.c.bf16 %v4054_v1, %v4054_v1  ;;  %1922 = vmatmul.bf16.vlgmr.msrb.gmra.mxu0 %v4034_v42 }
 0x5ad   : > { %1794 = vmatmul.bf16.vlgmr.msrb.gmra.mxu2 %v1734_v2 }
 0x628   : > { %v1923_v50 = vpop.f32.mrf.mxu0 }
 0x629   : > { %v1924_v55 = vadd.f32 %v1923_v50, %v1818_v54 }
 0x62b   : > { %v1929_v56 = vpack.c.bf16 %v1924_v55, %v1924_v55 }
 0x62d   : > { %v2093_v51 = vsel %vm2091_vm11, %v1929_v56, 0 }
 0x62e   : > { %2102 = vmatpush.bf16.msrb.mxu1 %v2093_v51 }
 0x630   : > { %v1795_v15 = vpop.f32.mrf.mxu2  ;;  %v1925_v53 = vpop.f32.mrf.mxu0 }
 0x631   : > { %v1796_v16 = vadd.f32 %v3508_v14, %v1795_v15 }
 0x633   : > { %v1927_v17 = vpack.c.bf16 %v1796_v16, %v1796_v16 }
 0x635   : > { %1935 = vrot.lane.b32.xlu1 %v1927_v17, %s3596_s12  ;;  %1931 = vrot.lane.b32.xlu2 %v1927_v17, %s3598_s19 }
 0x636   : > { %3186 = vmatmul.msk.bf16.vlgmr.msra.gmra.mxu1 %vm1365_vm0, %v1927_v17 }
 0x638   : > { %v1797_v18 = vpop.f32.mrf.mxu2 }
 0x63d   : > { %1933 = vrot.lane.b32.xlu2 %v1927_v17, %s3597_s16 }
 0x645   : > { %1942 = vrot.lane.b32.xlu2 %v1928_v7, %s3596_s12 }
 0x68f   : > { %v1932_v43 = vpop.permute.xlu2 %1931 }
 0x690   : > { %3187 = vmatmul.msk.bf16.vlgmr.msra.gmra.mxu2 %vm1365_vm0, %v1932_v43 }
 0x697   : > { %v1934_v44 = vpop.permute.xlu2 %1933 }
 0x698   : > { %3188 = vmatmul.msk.bf16.vlgmr.msrb.gmra.mxu3 %vm1365_vm0, %v1934_v44 }
 0x69f   : > { %v1943_v45 = vpop.permute.xlu2 %1942 }
 0x6a0   : > { %v2012_v46 = vsel %vm1365_vm0, %v1943_v45, 0 }
 0x6a1   : > { %2021 = vmatpush.bf16.xpose.msra.mxu0 %v2012_v46 }
 0x6a7   : > { %v1936_v42 = vpop.permute.xlu1 %1935 }
 0x6a8   : > { %3189 = vmatmul.msk.bf16.vlgmr.msra.gmra.mxu0 %vm1365_vm0, %v1936_v42 }
 0x6b3   : > { %v1966_v47 = vpop.f32.mrf.mxu1 }
 0x6b4   : > { %v2027_v8 = vmul.f32 0.17677669, %v1966_v47 }
 0x6b6   : > { %v2034_v10 = vadd.f32 %v3509_v59, %v2027_v8  ;;  %v3419_v8 = vld [vmem:[%s3839_s27] sm:$0xff] }
 0x6b8   : > { %v2039_v11 = vsel %vm2038_vm12, %v2034_v10, -inf }
 0x6bb   : > { %v1968_v48 = vpop.f32.mrf.mxu1 }
 0x713   : > { %v1985_v57 = vpop.f32.mrf.mxu2 }
 0x714   : > { %v2028_v58 = vmul.f32 0.17677669, %v1985_v57 }
 0x716   : > { %v2035_v60 = vadd.f32 %v3509_v59, %v2028_v58 }
 0x718   : > { %v2042_v61 = vsel %vm2038_vm12, %v2035_v60, -inf }
 0x719   : > { %2043 = vmax.xlane.f32.xlu0 %v2042_v61 }
 0x71b   : > { %v1987_v62 = vpop.f32.mrf.mxu2  ;;  %v2004_v63 = vpop.f32.mrf.mxu3 }
 0x71c   : > { %v2029_v0 = vmul.f32 0.17677669, %v2004_v63  ;;  %v3426_v62 = vld [vmem:[%s3839_s27 + $0x38] sm:$0xff]  ;;  %v3425_v63 = vld [vmem:[%s3839_s27 + $0x30] sm:$0xff] }
 0x71d   : > { %2249 = vmatpush.bf16.msra.mxu1 %v3426_v62 }
 0x71e   : > { %v2036_v2 = vadd.f32 %v3509_v59, %v2029_v0  ;;  %v3424_v0 = vld [vmem:[%s3839_s27 + $0x28] sm:$0xff] }
 0x720   : > { %v2045_v3 = vsel %vm2038_vm12, %v2036_v2, -inf }
 0x721   : > { %2046 = vmax.xlane.f32.xlu2 %v2045_v3  ;;  %2250 = vmatpush.bf16.msra.mxu1 %v3425_v63  ;;  %v3422_v3 = vld [vmem:[%s3839_s27 + $0x18] sm:$0xff]  ;;  %v3236_v63 = vld [vmem:[%s4354_s26 + $0x10] sm:$0xf] }
 0x723   : > { %v2006_v4 = vpop.f32.mrf.mxu3 }
 0x725   : > { %v2023_v5 = vpop.f32.mrf.mxu0  ;;  %2251 = vmatpush.bf16.msra.mxu1 %v3424_v0  ;;  %v3430_v0 = vld [vmem:[%s4354_s26 + $0x14] sm:$0xf0] }
 0x726   : > { %v2030_v6 = vmul.f32 0.17677669, %v2023_v5 }
 0x728   : > { %v2037_v7 = vadd.f32 %v3509_v59, %v2030_v6  ;;  %v3421_v6 = vld [vmem:[%s3839_s27 + $0x10] sm:$0xff] }
 0x72a   : > { %v2048_v52 = vsel %vm2038_vm12, %v2037_v7, -inf }
 0x72b   : > { %2049 = vmax.xlane.f32.xlu0 %v2048_v52 }
 0x72d   : > { %v2025_v9 = vpop.f32.mrf.mxu0 }
 0x733   : > { %2040 = vmax.xlane.f32.xlu0 %v2039_v11 }
 0x747   : > { %1945 = vrot.lane.b32.xlu0 %v1929_v56, %s3598_s19 }
 0x78c   : > { %v2044_v12 = vpop.xlane.xlu0 %2043 }
 0x78d   : > { %v2052_v49 = vsub.f32 %v2035_v60, %v2044_v12 }
 0x78f   : > { %v2057_v13 = vmul.f32 1.442695, %v2052_v49 }
 0x791   : > { %3536 = vpow2.f32 %v2057_v13 }
 0x794   : > { %v2047_v14 = vpop.xlane.xlu2 %2046 }
 0x795   : > { %v2053_v15 = vsub.f32 %v2036_v2, %v2047_v14  ;;  %v3423_v2 = vld [vmem:[%s3839_s27 + $0x20] sm:$0xff] }
 0x796   : > { %2252 = vmatpush.bf16.msra.mxu1 %v3423_v2  ;;  %v3429_v2 = vld [vmem:[%s4354_s26 + $0x14] sm:$0xf] }
 0x797   : > { %v3537_v16 = vpop.eup %3536  ;;  %v2059_v17 = vmul.f32 1.442695, %v2053_v15 }
 0x798   : > { %v2066_v18 = vsel %vm2038_vm12, %v3537_v16, 0.0 }
 0x799   : > { %3538 = vpow2.f32 %v2059_v17  ;;  %2067 = vadd.xlane.f32.xlu1 %v2066_v18 }
 0x79a   : > { %2253 = vmatpush.bf16.msra.mxu1 %v3422_v3  ;;  %v3237_v3 = vor.u32 %v3430_v0, %v3236_v63 }
 0x79e   : > { %v2050_v19 = vpop.xlane.xlu0 %2049  ;;  %2254 = vmatpush.bf16.msra.mxu1 %v3421_v6  ;;  %v3428_v6 = vld [vmem:[%s4354_s26 + $0x4] sm:$0xf0] }
 0x79f   : > { %v3539_v20 = vpop.eup %3538  ;;  %v2054_v21 = vsub.f32 %v2037_v7, %v2050_v19  ;;  %v3420_v7 = vld [vmem:[%s3839_s27 + $0x8] sm:$0xff] }
 0x7a0   : > { %v2069_v22 = vsel %vm2038_vm12, %v3539_v20, 0.0 }
 0x7a1   : > { %v2061_v23 = vmul.f32 1.442695, %v2054_v21  ;;  %2070 = vadd.xlane.f32.xlu0 %v2069_v22  ;;  %v3442_v21 = vld [vmem:[%s4354_s26 + $0x74] sm:$0xf0]  ;;  %v3441_v22 = vld [vmem:[%s4354_s26 + $0x74] sm:$0xf] }
 0x7a2   : > { %2255 = vmatpush.bf16.msra.mxu1 %v3420_v7 }
 0x7a3   : > { %3540 = vpow2.f32 %v2061_v23 }
 0x7a6   : > { %v2041_v26 = vpop.xlane.xlu0 %2040  ;;  %2256 = vmatpush.bf16.msra.mxu1 %v3419_v8  ;;  %v3427_v8 = vld [vmem:[%s4354_s26 + $0x4] sm:$0xf] }
 0x7a7   : > { %v2051_v29 = vsub.f32 %v2034_v10, %v2041_v26 }
 0x7a9   : > { %v3541_v24 = vpop.eup %3540  ;;  %v2055_v30 = vmul.f32 1.442695, %v2051_v29 }
 0x7aa   : > { %v2072_v25 = vsel %vm2038_vm12, %v3541_v24, 0.0 }
 0x7ab   : > { %2073 = vadd.xlane.f32.xlu2 %v2072_v25  ;;  %3542 = vpow2.f32 %v2055_v30  ;;  %v3276_v30 = vld [vmem:[%s4354_s26 + $0x60] sm:$0xf] }
 0x7b1   : > { %v3543_v32 = vpop.eup %3542 }
 0x7b2   : > { %v2063_v33 = vsel %vm2038_vm12, %v3543_v32, 0.0 }
 0x7b5   : > { %1949 = vrot.lane.b32.xlu0 %v1929_v56, %s3596_s12 }
 0x7b9   : > { %v1946_v27 = vpop.permute.xlu0 %1945 }
 0x7ba   : > { %v2112_v28 = vsel %vm2091_vm11, %v1946_v27, 0 }
 0x7bb   : > { %2121 = vmatpush.bf16.msrb.mxu2 %v2112_v28 }
 0x7c3   : > { %1947 = vrot.lane.b32.xlu2 %v1929_v56, %s3597_s16 }
 0x7df   : > { %2064 = vadd.xlane.f32.xlu0 %v2063_v33  ;;  %v3439_v33 = vld [vmem:[%s4354_s26 + $0x64] sm:$0xf] }
 0x80c   : > { %v2068_v34 = vpop.xlane.xlu1 %2067 }
 0x80d   : > { %3544 = vrcp.f32 %v2068_v34 }
 0x813   : > { %v3545_v35 = vpop.eup %3544 }
 0x814   : > { %v2080_v36 = vmul.f32 %v3545_v35, %v3537_v16  ;;  %v2071_v38 = vpop.xlane.xlu0 %2070  ;;  %v3278_v35 = vld [vmem:[%s4354_s26 + $0x68] sm:$0xf0] }
 0x815   : > { %3546 = vrcp.f32 %v2071_v38  ;;  %v3438_v38 = vld [vmem:[%s4354_s26 + $0x54] sm:$0xf0] }
 0x816   : > { %v2084_v37 = vpack.c.bf16 %v2080_v36, %v2080_v36  ;;  %v3281_v36 = vor.u32 %v3439_v33, %v3278_v35  ;;  %v3512_v35 = vld [vmem:[%s4361_s3] ss:$0 sm:$0xff] }
 0x818   : > { %3191 = vmatmul.msk.bf16.vlgmr.msrb.gmra.mxu2 %vm2087_vm13, %v2084_v37  ;;  %v3268_v37 = vld [vmem:[%s4354_s26 + $0x50] sm:$0xf] }
 0x81b   : > { %v3547_v40 = vpop.eup %3546 }
 0x81c   : > { %v2081_v43 = vmul.f32 %v3547_v40, %v3539_v20  ;;  %v3284_v20 = vld [vmem:[%s4354_s26 + $0x70] sm:$0xf]  ;;  %v3269_v40 = vor.u32 %v3438_v38, %v3268_v37 }
 0x81d   : > { %v3285_v23 = vor.u32 %v3442_v21, %v3284_v20  ;;  %v3455_v20 = vld [vmem:[%s3866_s15 + $0x60] sm:$0xff] }
 0x81e   : > { %v2074_v39 = vpop.xlane.xlu2 %2073  ;;  %v2085_v48 = vpack.c.bf16 %v2081_v43, %v2081_v43 }
 0x81f   : > { %3548 = vrcp.f32 %v2074_v39  ;;  %2398 = vmatpush.bf16.msra.mxu2 %v3285_v23  ;;  %v3437_v39 = vld [vmem:[%s4354_s26 + $0x54] sm:$0xf]  ;;  %v3446_v23 = vld [vmem:[%s3866_s15 + $0x18] sm:$0xff] }
 0x825   : > { %v3549_v41 = vpop.eup %3548 }
 0x826   : > { %v2082_v44 = vmul.f32 %v3549_v41, %v3541_v24  ;;  %v1948_v45 = vpop.permute.xlu2 %1947  ;;  %v3286_v24 = vld [vmem:[%s4354_s26 + $0x78] sm:$0xf0] }
 0x827   : > { %v2131_v46 = vsel %vm2091_vm11, %v1948_v45, 0  ;;  %v1950_v42 = vpop.permute.xlu0 %1949  ;;  %v3289_v25 = vor.u32 %v3441_v22, %v3286_v24  ;;  %v3270_v41 = vld [vmem:[%s4354_s26 + $0x58] sm:$0xf0]  ;;  %v3436_v45 = vld [vmem:[%s4354_s26 + $0x44] sm:$0xf0] }
 0x828   : > { %v2150_v47 = vsel %vm2091_vm11, %v1950_v42, 0  ;;  %2140 = vmatpush.bf16.msra.mxu3 %v2131_v46  ;;  %v2086_v50 = vpack.c.bf16 %v2082_v44, %v2082_v44  ;;  %v3273_v43 = vor.u32 %v3437_v39, %v3270_v41  ;;  %v3260_v44 = vld [vmem:[%s4354_s26 + $0x40] sm:$0xf]  ;;  %v3435_v46 = vld [vmem:[%s4354_s26 + $0x44] sm:$0xf]  ;;  %v3454_v24 = vld [vmem:[%s3866_s15 + $0x58] sm:$0xff] }
 0x829   : > { %2159 = vmatpush.bf16.msrb.mxu0 %v2150_v47  ;;  %v3261_v42 = vor.u32 %v3436_v45, %v3260_v44  ;;  %v3262_v47 = vld [vmem:[%s4354_s26 + $0x48] sm:$0xf0]  ;;  %v3443_v41 = vld [vmem:[%s3866_s15] sm:$0xff] }
 0x82a   : > { %v3444_v39 = vld [vmem:[%s3866_s15 + $0x8] sm:$0xff] }
 0x82b   : > { %3192 = vmatmul.msk.bf16.vlgmr.msra.gmra.mxu3 %vm2087_vm13, %v2085_v48  ;;  %v3265_v48 = vor.u32 %v3435_v46, %v3262_v47 }
 0x82c   : > { %3193 = vmatmul.msk.bf16.vlgmr.msrb.gmra.mxu0 %vm2087_vm13, %v2086_v50  ;;  %2411 = vmatpush.bf16.msrb.mxu3 %v3289_v25  ;;  %v3252_v50 = vld [vmem:[%s4354_s26 + $0x30] sm:$0xf] }
 0x830   : > { %2412 = vmatpush.bf16.msrb.mxu3 %v3281_v36 }
 0x834   : > { %2413 = vmatpush.bf16.msrb.mxu3 %v3273_v43  ;;  %v3451_v43 = vld [vmem:[%s3866_s15 + $0x40] sm:$0xff] }
 0x838   : > { %2414 = vmatpush.bf16.msrb.mxu3 %v3265_v48 }
 0x852   : > { %v2065_v53 = vpop.xlane.xlu0 %2064 }
 0x853   : > { %3550 = vrcp.f32 %v2065_v53  ;;  %v3434_v53 = vld [vmem:[%s4354_s26 + $0x34] sm:$0xf0] }
 0x859   : > { %v3551_v54 = vpop.eup %3550 }
 0x85a   : > { %v2079_v55 = vmul.f32 %v3551_v54, %v3543_v32  ;;  %v3440_v32 = vld [vmem:[%s4354_s26 + $0x64] sm:$0xf0]  ;;  %v3433_v54 = vld [vmem:[%s4354_s26 + $0x34] sm:$0xf] }
 0x85b   : > { %v3277_v34 = vor.u32 %v3440_v32, %v3276_v30  ;;  %v3511_v32 = vld [vmem:[%s4358_s23] ss:$0 sm:$0xff] }
 0x85c   : > { %v2083_v56 = vpack.c.bf16 %v2079_v55, %v2079_v55  ;;  %v3253_v55 = vor.u32 %v3434_v53, %v3252_v50 }
 0x85d   : > { %2399 = vmatpush.bf16.msra.mxu2 %v3277_v34 }
 0x85e   : > { %3190 = vmatmul.msk.bf16.vlgmr.msrb.gmra.mxu1 %vm2087_vm13, %v2083_v56  ;;  %v3254_v56 = vld [vmem:[%s4354_s26 + $0x38] sm:$0xf0] }
 0x861   : > { %2400 = vmatpush.bf16.msra.mxu2 %v3269_v40  ;;  %v3452_v40 = vld [vmem:[%s3866_s15 + $0x48] sm:$0xff] }
 0x865   : > { %2401 = vmatpush.bf16.msra.mxu2 %v3261_v42 }
 0x869   : > { %2402 = vmatpush.bf16.msra.mxu2 %v3253_v55 }
 0x89b   : > { %v2123_v51 = vpop.f32.mrf.mxu2 }
 0x89c   : > { %2166 = vrot.lane.b32.xlu1 %v2123_v51, %s3596_s12  ;;  %v3257_v51 = vor.u32 %v3433_v54, %v3254_v56 }
 0x89e   : > { %2415 = vmatpush.bf16.msrb.mxu3 %v3257_v51 }
 0x8a3   : > { %v2125_v57 = vpop.f32.mrf.mxu2 }
 0x8a4   : > { %v3244_v57 = vld [vmem:[%s4354_s26 + $0x20] sm:$0xf] }
 0x8a9   : > { %v2161_v58 = vpop.f32.mrf.mxu0 }
 0x8ae   : > { %v2142_v59 = vpop.f32.mrf.mxu3 }
 0x8af   : > { %2170 = vrot.lane.b32.xlu2 %v2142_v59, %s3597_s16  ;;  %v3431_v59 = vld [vmem:[%s4354_s26 + $0x24] sm:$0xf] }
 0x8b1   : > { %v2163_v60 = vpop.f32.mrf.mxu0 }
 0x8b6   : > { %v2144_v61 = vpop.f32.mrf.mxu3 }
 0x8b7   : > { %2174 = vrot.lane.b32.xlu2 %v2161_v58, %s3598_s19  ;;  %s4355_s19 = sld [smem:[#allocation28_spill]]  ;;  %v3432_v58 = vld [vmem:[%s4354_s26 + $0x24] sm:$0xf0]  ;;  %v3246_v61 = vld [vmem:[%s4354_s26 + $0x28] sm:$0xf0] }
 0x8b8   : > { %v3245_v60 = vor.u32 %v3432_v58, %v3244_v57  ;;  %v3249_v62 = vor.u32 %v3431_v59, %v3246_v61  ;;  %v3513_v57 = vld [vmem:[%s1110_s21] ss:$0 sm:$0xff] }
 0x8ba   : > { %2403 = vmatpush.bf16.msra.mxu2 %v3245_v60  ;;  %2416 = vmatpush.bf16.msrb.mxu3 %v3249_v62 }
 0x8bd   : > { %s4356_s27 = scalar_lea.vmem %s4355_s19, %s3761_s0 }
 0x8be   : > { %v3510_v14 = vld [vmem:[%s4356_s27] ss:$0 sm:$0xff]  ;;  %2404 = vmatpush.bf16.msra.mxu2 %v3237_v3 }
 0x8db   : > { %v2104_v4 = vpop.f32.mrf.mxu1 }
 0x8e3   : > { %v2106_v5 = vpop.f32.mrf.mxu1 }
 0x8e4   : > { %v3228_v5 = vld [vmem:[%s4354_s26] sm:$0xf] }
 0x909   : > { %v2171_v52 = vpop.permute.xlu2 %2170 }
 0x90e   : > { %v2167_v9 = vpop.permute.xlu1 %2166 }
 0x90f   : > { %v2177_v10 = vsel %vm1365_vm0, %v2104_v4, %v2167_v9  ;;  %v3238_v4 = vld [vmem:[%s4354_s26 + $0x18] sm:$0xf0]  ;;  %v3229_v9 = vor.u32 %v3428_v6, %v3228_v5 }
 0x910   : > { %v2178_v11 = vsel %vm1590_vm4, %v2177_v10, %v2171_v52  ;;  %v3241_v7 = vor.u32 %v3429_v2, %v3238_v4  ;;  %v3230_v52 = vld [vmem:[%s4354_s26 + $0x8] sm:$0xf0] }
 0x911   : > { %v2175_v12 = vpop.permute.xlu2 %2174  ;;  %v3233_v10 = vor.u32 %v3427_v8, %v3230_v52  ;;  %2405 = vmatpush.bf16.msra.mxu2 %v3229_v9 }
 0x912   : > { %v2179_v49 = vsel %vm1592_vm5, %v2178_v11, %v2175_v12  ;;  %2417 = vmatpush.bf16.msrb.mxu3 %v3241_v7  ;;  %v3450_v11 = vld [vmem:[%s3866_s15 + $0x38] sm:$0xff] }
 0x913   : > { %v2197_v13 = vpack.c.bf16 %v2179_v49, %v2179_v49  ;;  %v3458_v12 = vld [vmem:[%s3866_s15 + $0x78] sm:$0xff]  ;;  %2560 = vmatpush.bf16.msra.mxu0 %v3450_v11 }
 0x914   : > { %2573 = vmatpush.bf16.msrb.mxu1 %v3458_v12 }
 0x915   : > { %2257 = vmatmul.bf16.vlgmr.msra.gmra.mxu1 %v2197_v13 }
 0x916   : > { %2418 = vmatpush.bf16.msrb.mxu3 %v3233_v10 }
 0x992   : > { %v2258_v15 = vpop.f32.mrf.mxu1 }
 0x993   : > { %v2259_v16 = vadd.f32 %v3510_v14, %v2258_v15  ;;  %v3449_v14 = vld [vmem:[%s3866_s15 + $0x30] sm:$0xff] }
 0x994   : > { %v3457_v15 = vld [vmem:[%s3866_s15 + $0x70] sm:$0xff]  ;;  %2561 = vmatpush.bf16.msra.mxu0 %v3449_v14 }
 0x995   : > { %v2262_v17 = vadd.f32 %v2259_v16, %v4054_v1  ;;  %2574 = vmatpush.bf16.msrb.mxu1 %v3457_v15  ;;  %v3514_v15 = vld [vmem:[%s1113_s22] ss:$0 sm:$0xff] }
 0x997   : > { %v2265_v18 = vsel %vm1679_vm6, %v2262_v17, 0.0 }
 0x998   : > { %2266 = vadd.xlane.f32.xlu1 %v2265_v18  ;;  %v3456_v18 = vld [vmem:[%s3866_s15 + $0x68] sm:$0xff] }
 0x999   : > { %2575 = vmatpush.bf16.msrb.mxu1 %v3456_v18 }
 0x99a   : > { %v2260_v19 = vpop.f32.mrf.mxu1 }
 0x99b   : > { %v3447_v19 = vld [vmem:[%s3866_s15 + $0x20] sm:$0xff] }
 0x99d   : > { %2576 = vmatpush.bf16.msrb.mxu1 %v3455_v20 }
 0x9a1   : > { %2577 = vmatpush.bf16.msrb.mxu1 %v3454_v24 }
 0xa0b   : > { %v2267_v26 = vpop.xlane.xlu1 %2266 }
 0xa0c   : > { %v2268_v1 = vmul.f32 %v2267_v26, %v4022_v31 }
 0xa0e   : > { %v4149_v27 = vsub.f32 %v2262_v17, %v2268_v1  ;;  %v3448_v17 = vld [vmem:[%s3866_s15 + $0x28] sm:$0xff]  ;;  %v3445_v1 = vld [vmem:[%s3866_s15 + $0x10] sm:$0xff] }
 0xa0f   : > { %2562 = vmatpush.bf16.msra.mxu0 %v3448_v17 }
 0xa10   : > { %v2270_v28 = vmul.f32 %v4149_v27, %v4149_v27 }
 0xa12   : > { %v2271_v29 = vsel %vm1679_vm6, %v2270_v28, 0.0  ;;  %v3453_v28 = vld [vmem:[%s3866_s15 + $0x50] sm:$0xff] }
 0xa13   : > { %2272 = vadd.xlane.f32.xlu2 %v2271_v29  ;;  %2563 = vmatpush.bf16.msra.mxu0 %v3447_v19 }
 0xa14   : > { %2578 = vmatpush.bf16.msrb.mxu1 %v3453_v28 }
 0xa17   : > { %2564 = vmatpush.bf16.msra.mxu0 %v3446_v23 }
 0xa18   : > { %2579 = vmatpush.bf16.msrb.mxu1 %v3452_v40 }
 0xa1b   : > { %2565 = vmatpush.bf16.msra.mxu0 %v3445_v1 }
 0xa1c   : > { %2580 = vmatpush.bf16.msrb.mxu1 %v3451_v43 }
 0xa1f   : > { %2566 = vmatpush.bf16.msra.mxu0 %v3444_v39 }
 0xa23   : > { %2567 = vmatpush.bf16.msra.mxu0 %v3443_v41 }
 0xa86   : > { %v2273_v49 = vpop.xlane.xlu2 %2272 }
 0xa87   : > { %v2274_v13 = vmul.f32 %v2273_v49, %v4022_v31 }
 0xa89   : > { %v2275_v16 = vadd.f32 1e-05, %v2274_v13 }
 0xa8b   : > { %3552 = vrsqrt.f32 %v2275_v16  ;;  %vm2282_vm15 = vweird.f32 %v2275_v16 }
 0xa91   : > { %v3553_v21 = vpop.eup %3552 }
 0xa92   : > { %v2277_v22 = vmul.f32 %v3553_v21, %v2275_v16  ;;  %vm2283_vm14 = vweird.f32 %v3553_v21 }
 0xa93   : > { %vm2284_vm0 = vmor %vm2282_vm15, %vm2283_vm14 }
 0xa94   : > { %v2278_v25 = vmul.f32 %v3553_v21, %v2277_v22 }
 0xa96   : > { %v2279_v26 = vmul.f32 0.5, %v2278_v25 }
 0xa98   : > { %v2280_v29 = vsub.f32 1.5, %v2279_v26 }
 0xa9a   : > { %v2281_v30 = vmul.f32 %v3553_v21, %v2280_v29 }
 0xa9c   : > { %v2285_v33 = vsel %vm2284_vm0, %v3553_v21, %v2281_v30 }
 0xa9d   : > { %v2286_v34 = vmul.f32 %v2285_v33, %v4149_v27  ;;  %v2311_v27 = vld [vmem:[%s4359_s29] sm:$0x3] }
 0xa9e   : > { %v2314_v44 = vperm.slane %v2311_v27, 0  ;;  %v2315_v45 = vperm.slane %v2311_v27, 1 }
 0xa9f   : > { %v2290_v36 = vmul.f32 %v3511_v32, %v2286_v34 }
 0xaa1   : > { %v2294_v37 = vadd.f32 %v3512_v35, %v2290_v36 }
 0xaa3   : > { %v2312_v38 = vpack.c.bf16 %v2294_v37, %v2294_v37 }
 0xaa5   : > { %2406 = vmatmul.bf16.vlgmr.msra.gmra.mxu2 %v2312_v38  ;;  %2419 = vmatmul.bf16.vlgmr.msrb.gmra.mxu3 %v2312_v38 }
 0xb28   : > { %v2407_v46 = vpop.f32.mrf.mxu2  ;;  %v2420_v42 = vpop.f32.mrf.mxu3 }
 0xb29   : > { %v2408_v47 = vadd.f32 %v2407_v46, %v2314_v44  ;;  %v2421_v48 = vadd.f32 %v2420_v42, %v2315_v45 }
 0xb2b   : > { %v2424_v50 = vmax.f32 %v2408_v47, 0.0  ;;  %v2425_v53 = vmax.f32 %v2421_v48, 0.0 }
 0xb2d   : > { %v2459_v54 = vpack.c.bf16 %v2424_v50, %v2424_v50  ;;  %v2460_v55 = vpack.c.bf16 %v2425_v53, %v2425_v53 }
 0xb2f   : > { %2568 = vmatmul.bf16.vlgmr.msra.gmra.mxu0 %v2459_v54  ;;  %2581 = vmatmul.bf16.vlgmr.msrb.gmra.mxu1 %v2460_v55 }
 0xb30   : > { %v2409_v56 = vpop.f32.mrf.mxu2  ;;  %v2422_v51 = vpop.f32.mrf.mxu3 }
 0xbac   : > { %v2569_v58 = vpop.f32.mrf.mxu0  ;;  %v2582_v59 = vpop.f32.mrf.mxu1 }
 0xbad   : > { %v2570_v60 = vadd.f32 %v3513_v57, %v2569_v58 }
 0xbaf   : > { %v2583_v61 = vadd.f32 %v2582_v59, %v2570_v60 }
 0xbb1   : > { %v2586_v62 = vadd.f32 %v2583_v61, %v2294_v37 }
 0xbb3   : > { %v2589_v63 = vsel %vm1679_vm6, %v2586_v62, 0.0 }
 0xbb4   : > { %v2571_v0 = vpop.f32.mrf.mxu0  ;;  %v2584_v2 = vpop.f32.mrf.mxu1  ;;  %2590 = vadd.xlane.f32.xlu0 %v2589_v63 }
 0xc27   : > { %v2591_v3 = vpop.xlane.xlu0 %2590 }
 0xc28   : > { %v2592_v4 = vmul.f32 %v2591_v3, %v4022_v31 }
 0xc2a   : > { %v2593_v5 = vsub.f32 %v2586_v62, %v2592_v4 }
 0xc2c   : > { %v2594_v6 = vmul.f32 %v2593_v5, %v2593_v5 }
 0xc2e   : > { %v2595_v7 = vsel %vm1679_vm6, %v2594_v6, 0.0 }
 0xc2f   : > { %2596 = vadd.xlane.f32.xlu0 %v2595_v7 }
 0xca2   : > { %v2597_v8 = vpop.xlane.xlu0 %2596 }
 0xca3   : > { %v2598_v52 = vmul.f32 %v2597_v8, %v4022_v31  ;;  %v3515_v31 = vld [vmem:[%s1116_s11] ss:$0 sm:$0xff] }
 0xca5   : > { %v2599_v9 = vadd.f32 1e-05, %v2598_v52 }
 0xca7   : > { %3554 = vrsqrt.f32 %v2599_v9  ;;  %vm2606_vm2 = vweird.f32 %v2599_v9 }
 0xcad   : > { %v3555_v10 = vpop.eup %3554 }
 0xcae   : > { %v2601_v11 = vmul.f32 %v3555_v10, %v2599_v9  ;;  %vm2607_vm1 = vweird.f32 %v3555_v10 }
 0xcaf   : > { %vm2608_vm3 = vmor %vm2606_vm2, %vm2607_vm1 }
 0xcb0   : > { %v2602_v12 = vmul.f32 %v3555_v10, %v2601_v11 }
 0xcb2   : > { %v2603_v49 = vmul.f32 0.5, %v2602_v12 }
 0xcb4   : > { %v2604_v13 = vsub.f32 1.5, %v2603_v49 }
 0xcb6   : > { %v2605_v14 = vmul.f32 %v3555_v10, %v2604_v13 }
 0xcb8   : > { %v2609_v16 = vsel %vm2608_vm3, %v3555_v10, %v2605_v14 }
 0xcb9   : > { %v2610_v17 = vmul.f32 %v2609_v16, %v2593_v5 }
 0xcbb   : > { %v2614_v18 = vmul.f32 %v3514_v15, %v2610_v17  ;;  %2623 = sbr.rel (%p3354_p8) target bundleno = 3267 (0xcc3), region = 124 }
 0xcbd   : > { %v2618_v19 = vadd.f32 %v3515_v31, %v2614_v18 }
 0xcbf   : > { %2619 = vst [vmem:[#allocation2] sm:$0xf] %v2618_v19 }
 0xcc0   : > { %v2624_v20 = vpack.c.bf16 %v2618_v19, %v2618_v19 }
 0xcc2   : > { %2625 = vst [vmem:[%s3885_s14] sm:$0x3] %v2624_v20 }
 0xcc3 PF: > { %s4366_s22 = sld [smem:[#allocation6_spill]] }
 0xcc4   : > { %s4367_s5 = sld [smem:[#allocation4_spill]] }
 0xcc5   : > { %s4368_s26 = sld [smem:[#allocation5_spill]] }
 0xcc6   : > { %s4369_s27 = sld [smem:[#allocation7_spill]] }
 0xcc7   : > { %s4370_s28 = sld [smem:[#allocation8_spill]] }
 0xcc9   : > { %s34_s6 = sadd.s32 1, %s4366_s22  }
 0xcca   : > { %p31_p9 = scmp.ge.s32.totalorder %s34_s6, 6  }
 0xccc   :  { %33 = sbr.rel (!%p31_p9) target bundleno = 25 (0x19), region = 223 }

</bundles_post_ra>
